<compile_context>
chip_gen: v6e
topology: v6e:2x2x1
jax: 0.10.0
libtpu: 0.0.40
codegen_flags: <defaults>
</compile_context>

<pallas_src>
import jax
import jax.numpy as jnp
from jax.experimental import pallas as pl
from jax.experimental.pallas import tpu as pltpu


# ----------------------------- Pallas kernel --------------------------------

def pcnet_kernel(xp_ref, xc_ref,
                 wp_ref, bp_ref,
                 wc_ref, bc_ref,
                 w1p_ref, w1c_ref, b1_ref,
                 w2_ref, b2_ref,
                 w3_ref, b3_ref,
                 w4t_ref, b4_ref,
                 out_ref):
    f32 = jnp.float32
    bf16 = jnp.bfloat16

    # fc_prot / fc_comp: relu(x @ W + b). Inputs and weights arrive in bf16.
    op = jnp.maximum(
        jnp.dot(xp_ref[...], wp_ref[...], preferred_element_type=f32)
        + bp_ref[...], 0.0)                                    # (Bt, 32)
    oc = jnp.maximum(
        jnp.dot(xc_ref[...], wc_ref[...], preferred_element_type=f32)
        + bc_ref[...], 0.0)                                    # (Bt, 24)

    # fc_lin1 over the "concat" WITHOUT materializing it: split-K accumulation.
    #   relu([op | oc] @ W1 + b1) == relu(op @ W1[:32] + oc @ W1[32:] + b1)
    h = jnp.dot(op.astype(bf16), w1p_ref[...], preferred_element_type=f32)
    h = h + jnp.dot(oc.astype(bf16), w1c_ref[...], preferred_element_type=f32)
    h = jnp.maximum(h + b1_ref[...], 0.0)                      # (Bt, 1024)
    # TODO(synk): training-mode dropout (p=0.1) not implemented; eval semantics.

    # fc_lin2 -> relu -> dropout(eval: identity)                (Bt, 1024)
    h = jnp.maximum(
        jnp.dot(h.astype(bf16), w2_ref[...], preferred_element_type=f32)
        + b2_ref[...], 0.0)

    # fc_lin3 -> relu                                           (Bt, 512)
    h = jnp.maximum(
        jnp.dot(h.astype(bf16), w3_ref[...], preferred_element_type=f32)
        + b3_ref[...], 0.0)

    # fc_lin4 (N=1): VPU multiply + XLU lane-reduce instead of a 1-lane matmul.
    # w4t is stored in f32 (2 KiB) so no per-tile cast is needed.
    o = jnp.sum(h * w4t_ref[...], axis=-1, keepdims=True)
    out_ref[...] = jnp.maximum(o + b4_ref[...], 0.0).astype(out_ref.dtype)


# ------------------------------ Wrapper --------------------------------------

def _round_up(x, m):
    return ((x + m - 1) // m) * m


def prepare_params(params):
    """One-time conversion of f32 'master' weights to the kernel layout:
    bf16 weights, W1 split at hidden_size_prot (so no in-kernel concat),
    W4 transposed and kept in f32. Call once, reuse for every forward."""
    (wp, bp, wc, bc, w1, b1, w2, b2, w3, b3, w4, b4) = params
    bf16, f32 = jnp.bfloat16, jnp.float32
    hp = wp.shape[1]
    return (wp.astype(bf16), bp.astype(f32),
            wc.astype(bf16), bc.astype(f32),
            w1[:hp, :].astype(bf16), w1[hp:, :].astype(bf16), b1.astype(f32),
            w2.astype(bf16), b2.astype(f32),
            w3.astype(bf16), b3.astype(f32),
            w4.T.astype(f32), b4.astype(f32))


def _pcnet_call(xp, xc, prepared, batch_tile, single_buffer_weights):
    (wp, bp, wc, bc, w1p, w1c, b1, w2, b2, w3, b3, w4t, b4) = prepared
    Bp = xp.shape[0]

    def x_spec(feat):
        return pl.BlockSpec((batch_tile, feat), lambda i: (i, 0))

    if single_buffer_weights:
        # Constant index_map => weights are DMA'd once; single-buffer them so
        # default double-buffering doesn't waste ~3.3 MiB of VMEM (matters most
        # on v7x's 64 MiB/TC VMEM).
        def full_spec(arr):
            return pl.BlockSpec(arr.shape, lambda i: (0,) * arr.ndim,
                                pipeline_mode=pl.Buffered(1))
    else:
        def full_spec(arr):
            return pl.BlockSpec(arr.shape, lambda i: (0,) * arr.ndim)

    grid = (Bp // batch_tile,)

    return pl.pallas_call(
        pcnet_kernel,
        out_shape=jax.ShapeDtypeStruct((Bp, 1), jnp.float32),
        grid_spec=pltpu.PrefetchScalarGridSpec(
            num_scalar_prefetch=0,
            grid=grid,
            in_specs=[
                x_spec(xp.shape[1]),
                x_spec(xc.shape[1]),
                full_spec(wp), full_spec(bp),
                full_spec(wc), full_spec(bc),
                full_spec(w1p), full_spec(w1c), full_spec(b1),
                full_spec(w2), full_spec(b2),
                full_spec(w3), full_spec(b3),
                full_spec(w4t), full_spec(b4),
            ],
            out_specs=pl.BlockSpec((batch_tile, 1), lambda i: (i, 0)),
        ),
        compiler_params=pltpu.CompilerParams(
            dimension_semantics=("parallel",),
            vmem_limit_bytes=48 * 1024 * 1024,
        ),
    )(xp, xc, wp, bp, wc, bc, w1p, w1c, b1, w2, b2, w3, b3, w4t, b4)


def pcnet_forward(x_prot, x_comp, prepared_params, *, max_batch_tile=1024):
    """Fused PcNet forward. `prepared_params` comes from prepare_params()."""
    bf16 = jnp.bfloat16
    B = x_prot.shape[0]

    # Inputs in bf16 halve the only non-amortized HBM stream. Ideally the
    # upstream producer emits bf16 directly; otherwise this is one small cast.
    if x_prot.dtype != bf16:
        x_prot = x_prot.astype(bf16)
    if x_comp.dtype != bf16:
        x_comp = x_comp.astype(bf16)

    # Adaptive batch tile:
    #  * small batches: one tile rounded up to 8 rows (no 32x zero-row waste),
    #  * large batches: big tiles (amortize ~0.35us/grid-step) while keeping
    #    >= 2 grid steps so v7x's two TensorCores can both be used via
    #    dimension_semantics=("parallel",).
    B8 = _round_up(B, 8)
    if B8 <= 128:
        batch_tile = B8
    else:
        batch_tile = min(max_batch_tile, _round_up(pl.cdiv(B8, 2), 8))

    Bp = _round_up(B8, batch_tile)
    if Bp != B:
        x_prot = jnp.pad(x_prot, ((0, Bp - B), (0, 0)))
        x_comp = jnp.pad(x_comp, ((0, Bp - B), (0, 0)))

    try:
        out = _pcnet_call(x_prot, x_comp, prepared_params, batch_tile,
                          single_buffer_weights=True)
    except Exception:
        # Fallback for jax versions where pipeline_mode=pl.Buffered(1) on a
        # top-level pallas_call BlockSpec is unsupported; identical math,
        # default (double-buffered) weight pipelining.
        out = _pcnet_call(x_prot, x_comp, prepared_params, batch_tile,
                          single_buffer_weights=False)
    return out[:B]


# ------------------------- Parameter construction ----------------------------

def init_linear(key, in_f, out_f):
    """PyTorch nn.Linear default init: U(-1/sqrt(in), 1/sqrt(in))."""
    kw, kb = jax.random.split(key)
    bound = 1.0 / jnp.sqrt(jnp.float32(in_f))
    w = jax.random.uniform(kw, (in_f, out_f), jnp.float32, -bound, bound)
    b = jax.random.uniform(kb, (1, out_f), jnp.float32, -bound, bound)
    return w, b


def make_params(key,
                input_size_prot=1024, input_size_comp=768,
                hidden_size_prot=32, hidden_size_comp=24):
    keys = jax.random.split(key, 6)
    wp, bp = init_linear(keys[0], input_size_prot, hidden_size_prot)
    wc, bc = init_linear(keys[1], input_size_comp, hidden_size_comp)
    w1, b1 = init_linear(keys[2], hidden_size_prot + hidden_size_comp, 1024)
    w2, b2 = init_linear(keys[3], 1024, 1024)
    w3, b3 = init_linear(keys[4], 1024, 512)
    w4, b4 = init_linear(keys[5], 512, 1)
    return (wp, bp, wc, bc, w1, b1, w2, b2, w3, b3, w4, b4)


# -------------------------------- Main ---------------------------------------

if __name__ == "__main__":
    key = jax.random.PRNGKey(0)
    k_params, k_xp, k_xc = jax.random.split(key, 3)

    B = 8                     # small demo batch; tile adapts to 8 rows
    input_size_prot = 1024
    input_size_comp = 768

    params = make_params(k_params,
                         input_size_prot=input_size_prot,
                         input_size_comp=input_size_comp)
    prepared = prepare_params(params)   # one-time weight layout conversion

    # x is a pair: x[0] protein features, x[1] compound features
    x_prot = jax.random.normal(k_xp, (B, input_size_prot), jnp.float32)
    x_comp = jax.random.normal(k_xc, (B, input_size_comp), jnp.float32)

    out = pcnet_forward(x_prot, x_comp, prepared)
    out = jax.block_until_ready(out)

    # Reference in plain JAX, using the same bf16-input/weight, f32-accumulate
    # math as the kernel (eval-mode dropout == identity; relu on output head
    # matches the PyTorch spec).
    (wp, bp, wc, bc, w1, b1, w2, b2, w3, b3, w4, b4) = params
    bf16, f32 = jnp.bfloat16, jnp.float32
    relu = lambda v: jnp.maximum(v, 0.0)
    mm = lambda a, w: jnp.dot(a.astype(bf16), w.astype(bf16),
                              preferred_element_type=f32)
    hp = wp.shape[1]
    op = relu(mm(x_prot, wp) + bp)
    oc = relu(mm(x_comp, wc) + bc)
    h = relu(mm(op, w1[:hp]) + mm(oc, w1[hp:]) + b1)
    h = relu(mm(h, w2) + b2)
    h = relu(mm(h, w3) + b3)
    ref = relu(jnp.sum(h * w4.T, axis=-1, keepdims=True) + b4)

    assert out.shape == (B, 1)
    assert jnp.allclose(out, ref, atol=1e-2, rtol=1e-2), (
        float(jnp.max(jnp.abs(out - ref))))

    print("KERNEL_OK")
</pallas_src>

<mosaic_0001>
module attributes {stable_mosaic.version = 11 : i64} {
  func.func @pcnet_kernel(%arg0: i32, %arg1: memref<8x1024xbf16, #tpu.memory_space<vmem>>, %arg2: memref<8x768xbf16, #tpu.memory_space<vmem>>, %arg3: memref<1024x32xbf16, #tpu.memory_space<vmem>>, %arg4: memref<1x32xf32, #tpu.memory_space<vmem>>, %arg5: memref<768x24xbf16, #tpu.memory_space<vmem>>, %arg6: memref<1x24xf32, #tpu.memory_space<vmem>>, %arg7: memref<32x1024xbf16, #tpu.memory_space<vmem>>, %arg8: memref<24x1024xbf16, #tpu.memory_space<vmem>>, %arg9: memref<1x1024xf32, #tpu.memory_space<vmem>>, %arg10: memref<1024x1024xbf16, #tpu.memory_space<vmem>>, %arg11: memref<1x1024xf32, #tpu.memory_space<vmem>>, %arg12: memref<1024x512xbf16, #tpu.memory_space<vmem>>, %arg13: memref<1x512xf32, #tpu.memory_space<vmem>>, %arg14: memref<1x512xf32, #tpu.memory_space<vmem>>, %arg15: memref<1x1xf32, #tpu.memory_space<vmem>>, %arg16: memref<8x1xf32, #tpu.memory_space<vmem>>) attributes {dimension_semantics = [#tpu.dimension_semantics<parallel>], iteration_bounds = array<i64: 1>, scalar_prefetch = 0 : i64, scratch_operands = 0 : i64, tpu.core_type = #tpu.core_type<tc>, window_params = [{transform_indices = @transform_0, window_bounds = array<i64: 8, 1024>}, {transform_indices = @transform_1, window_bounds = array<i64: 8, 768>}, {pipeline_mode = #tpu.pipeline_mode<synchronous>, transform_indices = @transform_2, window_bounds = array<i64: 1024, 32>}, {pipeline_mode = #tpu.pipeline_mode<synchronous>, transform_indices = @transform_3, window_bounds = array<i64: 1, 32>}, {pipeline_mode = #tpu.pipeline_mode<synchronous>, transform_indices = @transform_4, window_bounds = array<i64: 768, 24>}, {pipeline_mode = #tpu.pipeline_mode<synchronous>, transform_indices = @transform_5, window_bounds = array<i64: 1, 24>}, {pipeline_mode = #tpu.pipeline_mode<synchronous>, transform_indices = @transform_6, window_bounds = array<i64: 32, 1024>}, {pipeline_mode = #tpu.pipeline_mode<synchronous>, transform_indices = @transform_7, window_bounds = array<i64: 24, 1024>}, {pipeline_mode = #tpu.pipeline_mode<synchronous>, transform_indices = @transform_8, window_bounds = array<i64: 1, 1024>}, {pipeline_mode = #tpu.pipeline_mode<synchronous>, transform_indices = @transform_9, window_bounds = array<i64: 1024, 1024>}, {pipeline_mode = #tpu.pipeline_mode<synchronous>, transform_indices = @transform_10, window_bounds = array<i64: 1, 1024>}, {pipeline_mode = #tpu.pipeline_mode<synchronous>, transform_indices = @transform_11, window_bounds = array<i64: 1024, 512>}, {pipeline_mode = #tpu.pipeline_mode<synchronous>, transform_indices = @transform_12, window_bounds = array<i64: 1, 512>}, {pipeline_mode = #tpu.pipeline_mode<synchronous>, transform_indices = @transform_13, window_bounds = array<i64: 1, 512>}, {pipeline_mode = #tpu.pipeline_mode<synchronous>, transform_indices = @transform_14, window_bounds = array<i64: 1, 1>}, {transform_indices = @transform_15, window_bounds = array<i64: 8, 1>}]} {
    %c0 = arith.constant 0 : index
    %c0_0 = arith.constant 0 : index
    %0 = vector.load %arg1[%c0, %c0_0] : memref<8x1024xbf16, #tpu.memory_space<vmem>>, vector<8x1024xbf16>
    %c0_1 = arith.constant 0 : index
    %c0_2 = arith.constant 0 : index
    %1 = vector.load %arg3[%c0_1, %c0_2] : memref<1024x32xbf16, #tpu.memory_space<vmem>>, vector<1024x32xbf16>
    %cst = arith.constant dense<0.000000e+00> : vector<8x32xf32>
    %2 = tpu.matmul %0, %1, %cst {dimension_numbers = #tpu.dot_dimension_numbers<[1], [0], [0], [1], [0, 0, 1, 1], [], []>} : vector<8x1024xbf16>, vector<1024x32xbf16>, vector<8x32xf32> -> vector<8x32xf32>
    %c0_3 = arith.constant 0 : index
    %c0_4 = arith.constant 0 : index
    %3 = vector.load %arg4[%c0_3, %c0_4] : memref<1x32xf32, #tpu.memory_space<vmem>>, vector<1x32xf32>
    %4 = vector.broadcast %3 : vector<1x32xf32> to vector<8x32xf32>
    %5 = arith.addf %2, %4 : vector<8x32xf32>
    %cst_5 = arith.constant 0.000000e+00 : f32
    %6 = vector.broadcast %cst_5 : f32 to vector<8x32xf32>
    %7 = arith.maximumf %5, %6 : vector<8x32xf32>
    %c0_6 = arith.constant 0 : index
    %c0_7 = arith.constant 0 : index
    %8 = vector.load %arg2[%c0_6, %c0_7] : memref<8x768xbf16, #tpu.memory_space<vmem>>, vector<8x768xbf16>
    %c0_8 = arith.constant 0 : index
    %c0_9 = arith.constant 0 : index
    %9 = vector.load %arg5[%c0_8, %c0_9] : memref<768x24xbf16, #tpu.memory_space<vmem>>, vector<768x24xbf16>
    %cst_10 = arith.constant dense<0.000000e+00> : vector<8x24xf32>
    %10 = tpu.matmul %8, %9, %cst_10 {dimension_numbers = #tpu.dot_dimension_numbers<[1], [0], [0], [1], [0, 0, 1, 1], [], []>} : vector<8x768xbf16>, vector<768x24xbf16>, vector<8x24xf32> -> vector<8x24xf32>
    %c0_11 = arith.constant 0 : index
    %c0_12 = arith.constant 0 : index
    %11 = vector.load %arg6[%c0_11, %c0_12] : memref<1x24xf32, #tpu.memory_space<vmem>>, vector<1x24xf32>
    %12 = vector.broadcast %11 : vector<1x24xf32> to vector<8x24xf32>
    %13 = arith.addf %10, %12 : vector<8x24xf32>
    %cst_13 = arith.constant 0.000000e+00 : f32
    %14 = vector.broadcast %cst_13 : f32 to vector<8x24xf32>
    %15 = arith.maximumf %13, %14 : vector<8x24xf32>
    %16 = arith.truncf %7 : vector<8x32xf32> to vector<8x32xbf16>
    %c0_14 = arith.constant 0 : index
    %c0_15 = arith.constant 0 : index
    %17 = vector.load %arg7[%c0_14, %c0_15] : memref<32x1024xbf16, #tpu.memory_space<vmem>>, vector<32x1024xbf16>
    %cst_16 = arith.constant dense<0.000000e+00> : vector<8x1024xf32>
    %18 = tpu.matmul %16, %17, %cst_16 {dimension_numbers = #tpu.dot_dimension_numbers<[1], [0], [0], [1], [0, 0, 1, 1], [], []>} : vector<8x32xbf16>, vector<32x1024xbf16>, vector<8x1024xf32> -> vector<8x1024xf32>
    %19 = arith.truncf %15 : vector<8x24xf32> to vector<8x24xbf16>
    %c0_17 = arith.constant 0 : index
    %c0_18 = arith.constant 0 : index
    %20 = vector.load %arg8[%c0_17, %c0_18] : memref<24x1024xbf16, #tpu.memory_space<vmem>>, vector<24x1024xbf16>
    %cst_19 = arith.constant dense<0.000000e+00> : vector<8x1024xf32>
    %21 = tpu.matmul %19, %20, %cst_19 {dimension_numbers = #tpu.dot_dimension_numbers<[1], [0], [0], [1], [0, 0, 1, 1], [], []>} : vector<8x24xbf16>, vector<24x1024xbf16>, vector<8x1024xf32> -> vector<8x1024xf32>
    %22 = arith.addf %18, %21 : vector<8x1024xf32>
    %c0_20 = arith.constant 0 : index
    %c0_21 = arith.constant 0 : index
    %23 = vector.load %arg9[%c0_20, %c0_21] : memref<1x1024xf32, #tpu.memory_space<vmem>>, vector<1x1024xf32>
    %24 = vector.broadcast %23 : vector<1x1024xf32> to vector<8x1024xf32>
    %25 = arith.addf %22, %24 : vector<8x1024xf32>
    %cst_22 = arith.constant 0.000000e+00 : f32
    %26 = vector.broadcast %cst_22 : f32 to vector<8x1024xf32>
    %27 = arith.maximumf %25, %26 : vector<8x1024xf32>
    %28 = arith.truncf %27 : vector<8x1024xf32> to vector<8x1024xbf16>
    %c0_23 = arith.constant 0 : index
    %c0_24 = arith.constant 0 : index
    %29 = vector.load %arg10[%c0_23, %c0_24] : memref<1024x1024xbf16, #tpu.memory_space<vmem>>, vector<1024x1024xbf16>
    %cst_25 = arith.constant dense<0.000000e+00> : vector<8x1024xf32>
    %30 = tpu.matmul %28, %29, %cst_25 {dimension_numbers = #tpu.dot_dimension_numbers<[1], [0], [0], [1], [0, 0, 1, 1], [], []>} : vector<8x1024xbf16>, vector<1024x1024xbf16>, vector<8x1024xf32> -> vector<8x1024xf32>
    %c0_26 = arith.constant 0 : index
    %c0_27 = arith.constant 0 : index
    %31 = vector.load %arg11[%c0_26, %c0_27] : memref<1x1024xf32, #tpu.memory_space<vmem>>, vector<1x1024xf32>
    %32 = vector.broadcast %31 : vector<1x1024xf32> to vector<8x1024xf32>
    %33 = arith.addf %30, %32 : vector<8x1024xf32>
    %cst_28 = arith.constant 0.000000e+00 : f32
    %34 = vector.broadcast %cst_28 : f32 to vector<8x1024xf32>
    %35 = arith.maximumf %33, %34 : vector<8x1024xf32>
    %36 = arith.truncf %35 : vector<8x1024xf32> to vector<8x1024xbf16>
    %c0_29 = arith.constant 0 : index
    %c0_30 = arith.constant 0 : index
    %37 = vector.load %arg12[%c0_29, %c0_30] : memref<1024x512xbf16, #tpu.memory_space<vmem>>, vector<1024x512xbf16>
    %cst_31 = arith.constant dense<0.000000e+00> : vector<8x512xf32>
    %38 = tpu.matmul %36, %37, %cst_31 {dimension_numbers = #tpu.dot_dimension_numbers<[1], [0], [0], [1], [0, 0, 1, 1], [], []>} : vector<8x1024xbf16>, vector<1024x512xbf16>, vector<8x512xf32> -> vector<8x512xf32>
    %c0_32 = arith.constant 0 : index
    %c0_33 = arith.constant 0 : index
    %39 = vector.load %arg13[%c0_32, %c0_33] : memref<1x512xf32, #tpu.memory_space<vmem>>, vector<1x512xf32>
    %40 = vector.broadcast %39 : vector<1x512xf32> to vector<8x512xf32>
    %41 = arith.addf %38, %40 : vector<8x512xf32>
    %cst_34 = arith.constant 0.000000e+00 : f32
    %42 = vector.broadcast %cst_34 : f32 to vector<8x512xf32>
    %43 = arith.maximumf %41, %42 : vector<8x512xf32>
    %c0_35 = arith.constant 0 : index
    %c0_36 = arith.constant 0 : index
    %44 = vector.load %arg14[%c0_35, %c0_36] : memref<1x512xf32, #tpu.memory_space<vmem>>, vector<1x512xf32>
    %45 = vector.broadcast %44 : vector<1x512xf32> to vector<8x512xf32>
    %46 = arith.mulf %43, %45 : vector<8x512xf32>
    %cst_37 = arith.constant dense<0.000000e+00> : vector<8xf32>
    %47 = vector.multi_reduction <add>, %46, %cst_37 [1] : vector<8x512xf32> to vector<8xf32>
    %48 = vector.shape_cast %47 : vector<8xf32> to vector<8x1xf32>
    %c0_38 = arith.constant 0 : index
    %c0_39 = arith.constant 0 : index
    %49 = vector.load %arg15[%c0_38, %c0_39] : memref<1x1xf32, #tpu.memory_space<vmem>>, vector<1x1xf32>
    %50 = vector.broadcast %49 : vector<1x1xf32> to vector<8x1xf32>
    %51 = arith.addf %48, %50 : vector<8x1xf32>
    %cst_40 = arith.constant 0.000000e+00 : f32
    %52 = vector.broadcast %cst_40 : f32 to vector<8x1xf32>
    %53 = arith.maximumf %51, %52 : vector<8x1xf32>
    %c0_41 = arith.constant 0 : index
    %c0_42 = arith.constant 0 : index
    %54 = vector.load %arg16[%c0_41, %c0_42] : memref<8x1xf32, #tpu.memory_space<vmem>>, vector<8x1xf32>
    tpu.vector_store %arg16[%c0_41, %c0_42], %53 {strides = array<i32>} : memref<8x1xf32, #tpu.memory_space<vmem>>, vector<8x1xf32>,
    return
  }
  func.func @transform_0(%arg0: i32) -> (i32, i32) {
    %c0_i32 = arith.constant 0 : i32
    %c0_i32_0 = arith.constant 0 : i32
    return %arg0, %c0_i32 : i32, i32
  }
  func.func @transform_1(%arg0: i32) -> (i32, i32) {
    %c0_i32 = arith.constant 0 : i32
    %c0_i32_0 = arith.constant 0 : i32
    return %arg0, %c0_i32 : i32, i32
  }
  func.func @transform_2(%arg0: i32) -> (i32, i32) {
    %c0_i32 = arith.constant 0 : i32
    %c0_i32_0 = arith.constant 0 : i32
    %c0_i32_1 = arith.constant 0 : i32
    return %c0_i32, %c0_i32_0 : i32, i32
  }
  func.func @transform_3(%arg0: i32) -> (i32, i32) {
    %c0_i32 = arith.constant 0 : i32
    %c0_i32_0 = arith.constant 0 : i32
    %c0_i32_1 = arith.constant 0 : i32
    return %c0_i32, %c0_i32_0 : i32, i32
  }
  func.func @transform_4(%arg0: i32) -> (i32, i32) {
    %c0_i32 = arith.constant 0 : i32
    %c0_i32_0 = arith.constant 0 : i32
    %c0_i32_1 = arith.constant 0 : i32
    return %c0_i32, %c0_i32_0 : i32, i32
  }
  func.func @transform_5(%arg0: i32) -> (i32, i32) {
    %c0_i32 = arith.constant 0 : i32
    %c0_i32_0 = arith.constant 0 : i32
    %c0_i32_1 = arith.constant 0 : i32
    return %c0_i32, %c0_i32_0 : i32, i32
  }
  func.func @transform_6(%arg0: i32) -> (i32, i32) {
    %c0_i32 = arith.constant 0 : i32
    %c0_i32_0 = arith.constant 0 : i32
    %c0_i32_1 = arith.constant 0 : i32
    return %c0_i32, %c0_i32_0 : i32, i32
  }
  func.func @transform_7(%arg0: i32) -> (i32, i32) {
    %c0_i32 = arith.constant 0 : i32
    %c0_i32_0 = arith.constant 0 : i32
    %c0_i32_1 = arith.constant 0 : i32
    return %c0_i32, %c0_i32_0 : i32, i32
  }
  func.func @transform_8(%arg0: i32) -> (i32, i32) {
    %c0_i32 = arith.constant 0 : i32
    %c0_i32_0 = arith.constant 0 : i32
    %c0_i32_1 = arith.constant 0 : i32
    return %c0_i32, %c0_i32_0 : i32, i32
  }
  func.func @transform_9(%arg0: i32) -> (i32, i32) {
    %c0_i32 = arith.constant 0 : i32
    %c0_i32_0 = arith.constant 0 : i32
    %c0_i32_1 = arith.constant 0 : i32
    return %c0_i32, %c0_i32_0 : i32, i32
  }
  func.func @transform_10(%arg0: i32) -> (i32, i32) {
    %c0_i32 = arith.constant 0 : i32
    %c0_i32_0 = arith.constant 0 : i32
    %c0_i32_1 = arith.constant 0 : i32
    return %c0_i32, %c0_i32_0 : i32, i32
  }
  func.func @transform_11(%arg0: i32) -> (i32, i32) {
    %c0_i32 = arith.constant 0 : i32
    %c0_i32_0 = arith.constant 0 : i32
    %c0_i32_1 = arith.constant 0 : i32
    return %c0_i32, %c0_i32_0 : i32, i32
  }
  func.func @transform_12(%arg0: i32) -> (i32, i32) {
    %c0_i32 = arith.constant 0 : i32
    %c0_i32_0 = arith.constant 0 : i32
    %c0_i32_1 = arith.constant 0 : i32
    return %c0_i32, %c0_i32_0 : i32, i32
  }
  func.func @transform_13(%arg0: i32) -> (i32, i32) {
    %c0_i32 = arith.constant 0 : i32
    %c0_i32_0 = arith.constant 0 : i32
    %c0_i32_1 = arith.constant 0 : i32
    return %c0_i32, %c0_i32_0 : i32, i32
  }
  func.func @transform_14(%arg0: i32) -> (i32, i32) {
    %c0_i32 = arith.constant 0 : i32
    %c0_i32_0 = arith.constant 0 : i32
    %c0_i32_1 = arith.constant 0 : i32
    return %c0_i32, %c0_i32_0 : i32, i32
  }
  func.func @transform_15(%arg0: i32) -> (i32, i32) {
    %c0_i32 = arith.constant 0 : i32
    %c0_i32_0 = arith.constant 0 : i32
    return %arg0, %c0_i32 : i32, i32
  }
}

module attributes {stable_mosaic.version = 11 : i64} {
  func.func @pcnet_kernel(%arg0: i32, %arg1: memref<8x1024xbf16, #tpu.memory_space<vmem>>, %arg2: memref<8x768xbf16, #tpu.memory_space<vmem>>, %arg3: memref<1024x32xbf16, #tpu.memory_space<vmem>>, %arg4: memref<1x32xf32, #tpu.memory_space<vmem>>, %arg5: memref<768x24xbf16, #tpu.memory_space<vmem>>, %arg6: memref<1x24xf32, #tpu.memory_space<vmem>>, %arg7: memref<32x1024xbf16, #tpu.memory_space<vmem>>, %arg8: memref<24x1024xbf16, #tpu.memory_space<vmem>>, %arg9: memref<1x1024xf32, #tpu.memory_space<vmem>>, %arg10: memref<1024x1024xbf16, #tpu.memory_space<vmem>>, %arg11: memref<1x1024xf32, #tpu.memory_space<vmem>>, %arg12: memref<1024x512xbf16, #tpu.memory_space<vmem>>, %arg13: memref<1x512xf32, #tpu.memory_space<vmem>>, %arg14: memref<1x512xf32, #tpu.memory_space<vmem>>, %arg15: memref<1x1xf32, #tpu.memory_space<vmem>>, %arg16: memref<8x1xf32, #tpu.memory_space<vmem>>) attributes {dimension_semantics = [#tpu.dimension_semantics<parallel>], iteration_bounds = array<i64: 1>, scalar_prefetch = 0 : i64, scratch_operands = 0 : i64, tpu.core_type = #tpu.core_type<tc>, window_params = [{transform_indices = @transform_0, window_bounds = array<i64: 8, 1024>}, {transform_indices = @transform_1, window_bounds = array<i64: 8, 768>}, {pipeline_mode = #tpu.pipeline_mode<synchronous>, transform_indices = @transform_2, window_bounds = array<i64: 1024, 32>}, {pipeline_mode = #tpu.pipeline_mode<synchronous>, transform_indices = @transform_3, window_bounds = array<i64: 1, 32>}, {pipeline_mode = #tpu.pipeline_mode<synchronous>, transform_indices = @transform_4, window_bounds = array<i64: 768, 24>}, {pipeline_mode = #tpu.pipeline_mode<synchronous>, transform_indices = @transform_5, window_bounds = array<i64: 1, 24>}, {pipeline_mode = #tpu.pipeline_mode<synchronous>, transform_indices = @transform_6, window_bounds = array<i64: 32, 1024>}, {pipeline_mode = #tpu.pipeline_mode<synchronous>, transform_indices = @transform_7, window_bounds = array<i64: 24, 1024>}, {pipeline_mode = #tpu.pipeline_mode<synchronous>, transform_indices = @transform_8, window_bounds = array<i64: 1, 1024>}, {pipeline_mode = #tpu.pipeline_mode<synchronous>, transform_indices = @transform_9, window_bounds = array<i64: 1024, 1024>}, {pipeline_mode = #tpu.pipeline_mode<synchronous>, transform_indices = @transform_10, window_bounds = array<i64: 1, 1024>}, {pipeline_mode = #tpu.pipeline_mode<synchronous>, transform_indices = @transform_11, window_bounds = array<i64: 1024, 512>}, {pipeline_mode = #tpu.pipeline_mode<synchronous>, transform_indices = @transform_12, window_bounds = array<i64: 1, 512>}, {pipeline_mode = #tpu.pipeline_mode<synchronous>, transform_indices = @transform_13, window_bounds = array<i64: 1, 512>}, {pipeline_mode = #tpu.pipeline_mode<synchronous>, transform_indices = @transform_14, window_bounds = array<i64: 1, 1>}, {transform_indices = @transform_15, window_bounds = array<i64: 8, 1>}]} {
    %c0 = arith.constant 0 : index
    %c0_0 = arith.constant 0 : index
    %0 = vector.load %arg1[%c0, %c0_0] : memref<8x1024xbf16, #tpu.memory_space<vmem>>, vector<8x1024xbf16>
    %c0_1 = arith.constant 0 : index
    %c0_2 = arith.constant 0 : index
    %1 = vector.load %arg3[%c0_1, %c0_2] : memref<1024x32xbf16, #tpu.memory_space<vmem>>, vector<1024x32xbf16>
    %cst = arith.constant dense<0.000000e+00> : vector<8x32xf32>
    %2 = tpu.matmul %0, %1, %cst {dimension_numbers = #tpu.dot_dimension_numbers<[1], [0], [0], [1], [0, 0, 1, 1], [], []>} : vector<8x1024xbf16>, vector<1024x32xbf16>, vector<8x32xf32> -> vector<8x32xf32>
    %c0_3 = arith.constant 0 : index
    %c0_4 = arith.constant 0 : index
    %3 = vector.load %arg4[%c0_3, %c0_4] : memref<1x32xf32, #tpu.memory_space<vmem>>, vector<1x32xf32>
    %4 = vector.broadcast %3 : vector<1x32xf32> to vector<8x32xf32>
    %5 = arith.addf %2, %4 : vector<8x32xf32>
    %cst_5 = arith.constant 0.000000e+00 : f32
    %6 = vector.broadcast %cst_5 : f32 to vector<8x32xf32>
    %7 = arith.maximumf %5, %6 : vector<8x32xf32>
    %c0_6 = arith.constant 0 : index
    %c0_7 = arith.constant 0 : index
    %8 = vector.load %arg2[%c0_6, %c0_7] : memref<8x768xbf16, #tpu.memory_space<vmem>>, vector<8x768xbf16>
    %c0_8 = arith.constant 0 : index
    %c0_9 = arith.constant 0 : index
    %9 = vector.load %arg5[%c0_8, %c0_9] : memref<768x24xbf16, #tpu.memory_space<vmem>>, vector<768x24xbf16>
    %cst_10 = arith.constant dense<0.000000e+00> : vector<8x24xf32>
    %10 = tpu.matmul %8, %9, %cst_10 {dimension_numbers = #tpu.dot_dimension_numbers<[1], [0], [0], [1], [0, 0, 1, 1], [], []>} : vector<8x768xbf16>, vector<768x24xbf16>, vector<8x24xf32> -> vector<8x24xf32>
    %c0_11 = arith.constant 0 : index
    %c0_12 = arith.constant 0 : index
    %11 = vector.load %arg6[%c0_11, %c0_12] : memref<1x24xf32, #tpu.memory_space<vmem>>, vector<1x24xf32>
    %12 = vector.broadcast %11 : vector<1x24xf32> to vector<8x24xf32>
    %13 = arith.addf %10, %12 : vector<8x24xf32>
    %cst_13 = arith.constant 0.000000e+00 : f32
    %14 = vector.broadcast %cst_13 : f32 to vector<8x24xf32>
    %15 = arith.maximumf %13, %14 : vector<8x24xf32>
    %16 = arith.truncf %7 : vector<8x32xf32> to vector<8x32xbf16>
    %c0_14 = arith.constant 0 : index
    %c0_15 = arith.constant 0 : index
    %17 = vector.load %arg7[%c0_14, %c0_15] : memref<32x1024xbf16, #tpu.memory_space<vmem>>, vector<32x1024xbf16>
    %cst_16 = arith.constant dense<0.000000e+00> : vector<8x1024xf32>
    %18 = tpu.matmul %16, %17, %cst_16 {dimension_numbers = #tpu.dot_dimension_numbers<[1], [0], [0], [1], [0, 0, 1, 1], [], []>} : vector<8x32xbf16>, vector<32x1024xbf16>, vector<8x1024xf32> -> vector<8x1024xf32>
    %19 = arith.truncf %15 : vector<8x24xf32> to vector<8x24xbf16>
    %c0_17 = arith.constant 0 : index
    %c0_18 = arith.constant 0 : index
    %20 = vector.load %arg8[%c0_17, %c0_18] : memref<24x1024xbf16, #tpu.memory_space<vmem>>, vector<24x1024xbf16>
    %cst_19 = arith.constant dense<0.000000e+00> : vector<8x1024xf32>
    %21 = tpu.matmul %19, %20, %cst_19 {dimension_numbers = #tpu.dot_dimension_numbers<[1], [0], [0], [1], [0, 0, 1, 1], [], []>} : vector<8x24xbf16>, vector<24x1024xbf16>, vector<8x1024xf32> -> vector<8x1024xf32>
    %22 = arith.addf %18, %21 : vector<8x1024xf32>
    %c0_20 = arith.constant 0 : index
    %c0_21 = arith.constant 0 : index
    %23 = vector.load %arg9[%c0_20, %c0_21] : memref<1x1024xf32, #tpu.memory_space<vmem>>, vector<1x1024xf32>
    %24 = vector.broadcast %23 : vector<1x1024xf32> to vector<8x1024xf32>
    %25 = arith.addf %22, %24 : vector<8x1024xf32>
    %cst_22 = arith.constant 0.000000e+00 : f32
    %26 = vector.broadcast %cst_22 : f32 to vector<8x1024xf32>
    %27 = arith.maximumf %25, %26 : vector<8x1024xf32>
    %28 = arith.truncf %27 : vector<8x1024xf32> to vector<8x1024xbf16>
    %c0_23 = arith.constant 0 : index
    %c0_24 = arith.constant 0 : index
    %29 = vector.load %arg10[%c0_23, %c0_24] : memref<1024x1024xbf16, #tpu.memory_space<vmem>>, vector<1024x1024xbf16>
    %cst_25 = arith.constant dense<0.000000e+00> : vector<8x1024xf32>
    %30 = tpu.matmul %28, %29, %cst_25 {dimension_numbers = #tpu.dot_dimension_numbers<[1], [0], [0], [1], [0, 0, 1, 1], [], []>} : vector<8x1024xbf16>, vector<1024x1024xbf16>, vector<8x1024xf32> -> vector<8x1024xf32>
    %c0_26 = arith.constant 0 : index
    %c0_27 = arith.constant 0 : index
    %31 = vector.load %arg11[%c0_26, %c0_27] : memref<1x1024xf32, #tpu.memory_space<vmem>>, vector<1x1024xf32>
    %32 = vector.broadcast %31 : vector<1x1024xf32> to vector<8x1024xf32>
    %33 = arith.addf %30, %32 : vector<8x1024xf32>
    %cst_28 = arith.constant 0.000000e+00 : f32
    %34 = vector.broadcast %cst_28 : f32 to vector<8x1024xf32>
    %35 = arith.maximumf %33, %34 : vector<8x1024xf32>
    %36 = arith.truncf %35 : vector<8x1024xf32> to vector<8x1024xbf16>
    %c0_29 = arith.constant 0 : index
    %c0_30 = arith.constant 0 : index
    %37 = vector.load %arg12[%c0_29, %c0_30] : memref<1024x512xbf16, #tpu.memory_space<vmem>>, vector<1024x512xbf16>
    %cst_31 = arith.constant dense<0.000000e+00> : vector<8x512xf32>
    %38 = tpu.matmul %36, %37, %cst_31 {dimension_numbers = #tpu.dot_dimension_numbers<[1], [0], [0], [1], [0, 0, 1, 1], [], []>} : vector<8x1024xbf16>, vector<1024x512xbf16>, vector<8x512xf32> -> vector<8x512xf32>
    %c0_32 = arith.constant 0 : index
    %c0_33 = arith.constant 0 : index
    %39 = vector.load %arg13[%c0_32, %c0_33] : memref<1x512xf32, #tpu.memory_space<vmem>>, vector<1x512xf32>
    %40 = vector.broadcast %39 : vector<1x512xf32> to vector<8x512xf32>
    %41 = arith.addf %38, %40 : vector<8x512xf32>
    %cst_34 = arith.constant 0.000000e+00 : f32
    %42 = vector.broadcast %cst_34 : f32 to vector<8x512xf32>
    %43 = arith.maximumf %41, %42 : vector<8x512xf32>
    %c0_35 = arith.constant 0 : index
    %c0_36 = arith.constant 0 : index
    %44 = vector.load %arg14[%c0_35, %c0_36] : memref<1x512xf32, #tpu.memory_space<vmem>>, vector<1x512xf32>
    %45 = vector.broadcast %44 : vector<1x512xf32> to vector<8x512xf32>
    %46 = arith.mulf %43, %45 : vector<8x512xf32>
    %cst_37 = arith.constant dense<0.000000e+00> : vector<8xf32>
    %47 = vector.multi_reduction <add>, %46, %cst_37 [1] : vector<8x512xf32> to vector<8xf32>
    %48 = vector.shape_cast %47 : vector<8xf32> to vector<8x1xf32>
    %c0_38 = arith.constant 0 : index
    %c0_39 = arith.constant 0 : index
    %49 = vector.load %arg15[%c0_38, %c0_39] : memref<1x1xf32, #tpu.memory_space<vmem>>, vector<1x1xf32>
    %50 = vector.broadcast %49 : vector<1x1xf32> to vector<8x1xf32>
    %51 = arith.addf %48, %50 : vector<8x1xf32>
    %cst_40 = arith.constant 0.000000e+00 : f32
    %52 = vector.broadcast %cst_40 : f32 to vector<8x1xf32>
    %53 = arith.maximumf %51, %52 : vector<8x1xf32>
    %c0_41 = arith.constant 0 : index
    %c0_42 = arith.constant 0 : index
    %54 = vector.load %arg16[%c0_41, %c0_42] : memref<8x1xf32, #tpu.memory_space<vmem>>, vector<8x1xf32>
    tpu.vector_store %arg16[%c0_41, %c0_42], %53 {strides = array<i32>} : memref<8x1xf32, #tpu.memory_space<vmem>>, vector<8x1xf32>,
    return
  }
  func.func @transform_0(%arg0: i32) -> (i32, i32) {
    %c0_i32 = arith.constant 0 : i32
    %c0_i32_0 = arith.constant 0 : i32
    return %arg0, %c0_i32 : i32, i32
  }
  func.func @transform_1(%arg0: i32) -> (i32, i32) {
    %c0_i32 = arith.constant 0 : i32
    %c0_i32_0 = arith.constant 0 : i32
    return %arg0, %c0_i32 : i32, i32
  }
  func.func @transform_2(%arg0: i32) -> (i32, i32) {
    %c0_i32 = arith.constant 0 : i32
    %c0_i32_0 = arith.constant 0 : i32
    %c0_i32_1 = arith.constant 0 : i32
    return %c0_i32, %c0_i32_0 : i32, i32
  }
  func.func @transform_3(%arg0: i32) -> (i32, i32) {
    %c0_i32 = arith.constant 0 : i32
    %c0_i32_0 = arith.constant 0 : i32
    %c0_i32_1 = arith.constant 0 : i32
    return %c0_i32, %c0_i32_0 : i32, i32
  }
  func.func @transform_4(%arg0: i32) -> (i32, i32) {
    %c0_i32 = arith.constant 0 : i32
    %c0_i32_0 = arith.constant 0 : i32
    %c0_i32_1 = arith.constant 0 : i32
    return %c0_i32, %c0_i32_0 : i32, i32
  }
  func.func @transform_5(%arg0: i32) -> (i32, i32) {
    %c0_i32 = arith.constant 0 : i32
    %c0_i32_0 = arith.constant 0 : i32
    %c0_i32_1 = arith.constant 0 : i32
    return %c0_i32, %c0_i32_0 : i32, i32
  }
  func.func @transform_6(%arg0: i32) -> (i32, i32) {
    %c0_i32 = arith.constant 0 : i32
    %c0_i32_0 = arith.constant 0 : i32
    %c0_i32_1 = arith.constant 0 : i32
    return %c0_i32, %c0_i32_0 : i32, i32
  }
  func.func @transform_7(%arg0: i32) -> (i32, i32) {
    %c0_i32 = arith.constant 0 : i32
    %c0_i32_0 = arith.constant 0 : i32
    %c0_i32_1 = arith.constant 0 : i32
    return %c0_i32, %c0_i32_0 : i32, i32
  }
  func.func @transform_8(%arg0: i32) -> (i32, i32) {
    %c0_i32 = arith.constant 0 : i32
    %c0_i32_0 = arith.constant 0 : i32
    %c0_i32_1 = arith.constant 0 : i32
    return %c0_i32, %c0_i32_0 : i32, i32
  }
  func.func @transform_9(%arg0: i32) -> (i32, i32) {
    %c0_i32 = arith.constant 0 : i32
    %c0_i32_0 = arith.constant 0 : i32
    %c0_i32_1 = arith.constant 0 : i32
    return %c0_i32, %c0_i32_0 : i32, i32
  }
  func.func @transform_10(%arg0: i32) -> (i32, i32) {
    %c0_i32 = arith.constant 0 : i32
    %c0_i32_0 = arith.constant 0 : i32
    %c0_i32_1 = arith.constant 0 : i32
    return %c0_i32, %c0_i32_0 : i32, i32
  }
  func.func @transform_11(%arg0: i32) -> (i32, i32) {
    %c0_i32 = arith.constant 0 : i32
    %c0_i32_0 = arith.constant 0 : i32
    %c0_i32_1 = arith.constant 0 : i32
    return %c0_i32, %c0_i32_0 : i32, i32
  }
  func.func @transform_12(%arg0: i32) -> (i32, i32) {
    %c0_i32 = arith.constant 0 : i32
    %c0_i32_0 = arith.constant 0 : i32
    %c0_i32_1 = arith.constant 0 : i32
    return %c0_i32, %c0_i32_0 : i32, i32
  }
  func.func @transform_13(%arg0: i32) -> (i32, i32) {
    %c0_i32 = arith.constant 0 : i32
    %c0_i32_0 = arith.constant 0 : i32
    %c0_i32_1 = arith.constant 0 : i32
    return %c0_i32, %c0_i32_0 : i32, i32
  }
  func.func @transform_14(%arg0: i32) -> (i32, i32) {
    %c0_i32 = arith.constant 0 : i32
    %c0_i32_0 = arith.constant 0 : i32
    %c0_i32_1 = arith.constant 0 : i32
    return %c0_i32, %c0_i32_0 : i32, i32
  }
  func.func @transform_15(%arg0: i32) -> (i32, i32) {
    %c0_i32 = arith.constant 0 : i32
    %c0_i32_0 = arith.constant 0 : i32
    return %arg0, %c0_i32 : i32, i32
  }
}

</mosaic_0001>

<bundles_post_ra>
// kernel: tpu_custom_call.1
= control target key start
LH: loop header
LB: loop body
LE: loop exit
PB: predicated region body
PF: predicated region fallthrough
CT: control target
= control target key end

     0   :  { %s10455_s0 = inlined_call_operand.hbm [shape: bf16[8,1024], index: 0, kind: input, shape index: {}]   ;;  %s10456_s1 = inlined_call_operand.hbm [shape: bf16[8,768], index: 1, kind: input, shape index: {}]   ;;  %s10457_s2 = inlined_call_operand.vmem [shape: bf16[1024,32], index: 2, kind: input, shape index: {}]   ;;  %s10458_s3 = inlined_call_operand.hbm [shape: f32[1,32], index: 3, kind: input, shape index: {}]   ;;  %s10459_s4 = inlined_call_operand.vmem [shape: bf16[768,24], index: 4, kind: input, shape index: {}]   ;;  %s10460_s5 = inlined_call_operand.hbm [shape: f32[1,24], index: 5, kind: input, shape index: {}]   ;;  %s10461_s6 = inlined_call_operand.hbm [shape: bf16[32,1024], index: 6, kind: input, shape index: {}]   ;;  %s10462_s7 = inlined_call_operand.hbm [shape: bf16[24,1024], index: 7, kind: input, shape index: {}]   ;;  %s10463_s8 = inlined_call_operand.hbm [shape: f32[1,1024], index: 8, kind: input, shape index: {}]   ;;  %s10464_s9 = inlined_call_operand.hbm [shape: bf16[1024,1024], index: 9, kind: input, shape index: {}]   ;;  %s10465_s10 = inlined_call_operand.hbm [shape: f32[1,1024], index: 10, kind: input, shape index: {}]   ;;  %s10466_s11 = inlined_call_operand.hbm [shape: bf16[1024,512], index: 11, kind: input, shape index: {}]   ;;  %s10467_s12 = inlined_call_operand.hbm [shape: f32[1,512], index: 12, kind: input, shape index: {}]   ;;  %s10468_s13 = inlined_call_operand.hbm [shape: f32[1,512], index: 13, kind: input, shape index: {}]   ;;  %s10469_s14 = inlined_call_operand.<no memory space> [shape: f32[1,1], index: 14, kind: input, shape index: {}]   ;;  %s10470_s15 = inlined_call_operand.vmem [shape: f32[8,1], index: 15, kind: output, shape index: {}]  }
   0x1   :  { %v20_v0 = vstv %s10469_s14 }
   0x2   :  { %21 = vst [vmem:[#allocation2] sm:$0x1] %v20_v0 }
   0x3   :  { %22 = vsyncpa [#allocation4], 0 }
   0x4   :  { %23 = vsyncpa [#allocation6], 0 }
   0x5   :  { %24 = vsyncpa [#allocation9], 0 }
   0x6   :  { %25 = vsyncpa [#allocation12], 0 }
   0x7   :  { %26 = vsyncpa [#allocation15], 0 }
   0x8   :  { %27 = vsyncpa [#allocation18], 0 }
   0x9   :  { %28 = vsyncpa [#allocation21], 0  ;;  %s9659_s20 = smov [#allocation5]   ;;  %s9660_s22 = smov [#allocation8]  }
   0xa   :  { %s45_s21 = sshll.u32 %s9659_s20, 4  ;;  %s69_s23 = sshll.u32 %s9660_s22, 4  ;;  %s46_s21 = int_to_ptr.vmem [resolvable:$true] %s45_s21  ;;  %s70_s23 = int_to_ptr.vmem [resolvable:$true] %s69_s23 }
   0xb   :  { %s9413_s24 = scalar_lea.vmem %s46_s21, 384  ;;  %p9418_p1 = scmp.lt.s32.totalorder %s46_s21, %s46_s21 }
   0xc   :  { %p9414_p0 = scmp.ne.s32.totalorder %s46_s21, %s9413_s24  ;;  %p9419_p2 = scmp.lt.s32.totalorder %s9413_s24, %s9413_s24 }
   0xe   :  { %p9420_p3 = por %p9419_p2, %p9418_p1 }
  0x10   :  { %p9421_p4 = pnand %p9420_p3, %p9414_p0 }
  0x12   :  { %9424 = shalt.err (!%p9421_p4)
}
  0x13   :  { %48 = dma.hbm_to_vmem [thread:$0]  %s10456_s1, 384, %s46_s21, [#allocation6]  }
  0x14   :  { %s9433_s26 = scalar_lea.vmem %s70_s23, 16  ;;  %s9437_s27 = scalar_lea.vmem %s70_s23, 32 }
  0x15   :  { %p9434_p5 = scmp.ne.s32.totalorder %s70_s23, %s9433_s26  ;;  %p9438_p6 = scmp.lt.s32.totalorder %s70_s23, %s70_s23 }
  0x16   :  { %p9439_p7 = scmp.lt.s32.totalorder %s9437_s27, %s9433_s26 }
  0x18   :  { %p9440_p8 = por %p9439_p7, %p9438_p6 }
  0x1a   :  { %p9441_p9 = pnand %p9440_p8, %p9434_p5 }
  0x1c   :  { %9444 = shalt.err (!%p9441_p9)
}
  0x1d   :  { %72 = dma.hbm_to_vmem [thread:$0]  %s10460_s5, 16, %s70_s23, [#allocation9]  }
  0x1e   :  { %s9661_s30 = smov [#allocation11]   ;;  %s9662_s17 = smov [#allocation14]  }
  0x1f   :  { %s90_s16 = sshll.u32 %s9661_s30, 4  ;;  %s112_s18 = sshll.u32 %s9662_s17, 4  ;;  %s91_s16 = int_to_ptr.vmem [resolvable:$true] %s90_s16  ;;  %s113_s18 = int_to_ptr.vmem [resolvable:$true] %s112_s18 }
  0x20   :  { %s9453_s19 = scalar_lea.vmem %s91_s16, 1536  ;;  %p9458_p11 = scmp.lt.s32.totalorder %s91_s16, %s91_s16 }
  0x21   :  { %p9454_p10 = scmp.ne.s32.totalorder %s91_s16, %s9453_s19  ;;  %p9459_p12 = scmp.lt.s32.totalorder %s9453_s19, %s9453_s19 }
  0x23   :  { %p9460_p13 = por %p9459_p12, %p9458_p11 }
  0x25   :  { %p9461_p0 = pnand %p9460_p13, %p9454_p10 }
  0x27   :  { %9464 = shalt.err (!%p9461_p0)
}
  0x28   :  { %s9663_s1 = smov 512   ;;  %s9664_s20 = smov 32  }
  0x29   :  { %96 = dma.hbm_to_vmem [thread:$0]  %s10462_s7, 1536, %s91_s16, [#allocation12], %s9663_s1, %s9663_s1, %s9664_s20  }
  0x2a   :  { %s9473_s22 = scalar_lea.vmem %s113_s18, 65536  ;;  %p9478_p2 = scmp.lt.s32.totalorder %s113_s18, %s113_s18 }
  0x2b   :  { %p9474_p1 = scmp.ne.s32.totalorder %s113_s18, %s9473_s22  ;;  %p9479_p3 = scmp.lt.s32.totalorder %s9473_s22, %s9473_s22 }
  0x2d   :  { %p9480_p4 = por %p9479_p3, %p9478_p2 }
  0x2f   :  { %p9481_p5 = pnand %p9480_p4, %p9474_p1 }
  0x31   :  { %9484 = shalt.err (!%p9481_p5)
}
  0x32   :  { %118 = dma.hbm_to_vmem [thread:$0]  %s10464_s9, 65536, %s113_s18, [#allocation15], %s9663_s1, %s9663_s1, %s9664_s20  }
  0x33   :  { %s9665_s14 = smov [#allocation17]  }
  0x34   :  { %s134_s25 = sshll.u32 %s9665_s14, 4  ;;  %s135_s25 = int_to_ptr.vmem [resolvable:$true] %s134_s25 }
  0x35   :  { %s9493_s26 = scalar_lea.vmem %s135_s25, 32768  ;;  %p9498_p7 = scmp.lt.s32.totalorder %s135_s25, %s135_s25 }
  0x36   :  { %p9494_p6 = scmp.ne.s32.totalorder %s135_s25, %s9493_s26  ;;  %p9499_p8 = scmp.lt.s32.totalorder %s9493_s26, %s9493_s26 }
  0x38   :  { %p9500_p9 = por %p9499_p8, %p9498_p7 }
  0x3a   :  { %p9501_p10 = pnand %p9500_p9, %p9494_p6 }
  0x3c   :  { %9504 = shalt.err (!%p9501_p10)
}
  0x3d   :  { %s9666_s7 = smov 256   ;;  %s9667_s27 = smov 16  }
  0x3e   :  { %140 = dma.hbm_to_vmem [thread:$0]  %s10466_s11, 32768, %s135_s25, [#allocation18], %s9666_s7, %s9666_s7, %s9667_s27  }
  0x3f   :  { %s9668_s30 = smov [#allocation3]   ;;  %s9669_s9 = smov [#allocation7]  }
  0x40   :  { %s35_s16 = sshll.u32 %s9668_s30, 4  ;;  %s57_s17 = sshll.u32 %s9669_s9, 4  ;;  %s36_s16 = int_to_ptr.vmem [resolvable:$true] %s35_s16  ;;  %s58_s17 = int_to_ptr.vmem [resolvable:$true] %s57_s17 }
  0x41   :  { %s9513_s18 = scalar_lea.vmem %s36_s16, 512  ;;  %p9518_p12 = scmp.lt.s32.totalorder %s36_s16, %s36_s16 }
  0x42   :  { %p9514_p11 = scmp.ne.s32.totalorder %s36_s16, %s9513_s18  ;;  %p9519_p13 = scmp.lt.s32.totalorder %s9513_s18, %s9513_s18 }
  0x44   :  { %p9520_p0 = por %p9519_p13, %p9518_p12 }
  0x46   :  { %p9521_p1 = pnand %p9520_p0, %p9514_p11 }
  0x48   :  { %9524 = shalt.err (!%p9521_p1)
}
  0x49   :  { %38 = dma.hbm_to_vmem [thread:$0]  %s10455_s0, 512, %s36_s16, [#allocation4]  }
  0x4a   :  { %s9533_s5 = scalar_lea.vmem %s58_s17, 16  ;;  %s9537_s11 = scalar_lea.vmem %s58_s17, 32 }
  0x4b   :  { %p9534_p2 = scmp.ne.s32.totalorder %s58_s17, %s9533_s5  ;;  %p9538_p3 = scmp.lt.s32.totalorder %s58_s17, %s58_s17 }
  0x4c   :  { %p9539_p4 = scmp.lt.s32.totalorder %s9537_s11, %s9533_s5 }
  0x4e   :  { %p9540_p5 = por %p9539_p4, %p9538_p3 }
  0x50   :  { %p9541_p6 = pnand %p9540_p5, %p9534_p2 }
  0x52   :  { %9544 = shalt.err (!%p9541_p6)
}
  0x53   :  { %60 = dma.hbm_to_vmem [thread:$0]  %s10458_s3, 16, %s58_s17, [#allocation6]  }
  0x54   :  { %s9670_s24 = smov [#allocation10]   ;;  %s9671_s25 = smov [#allocation13]  }
  0x55   :  { %s78_s14 = sshll.u32 %s9670_s24, 4  ;;  %s103_s26 = sshll.u32 %s9671_s25, 4  ;;  %s79_s14 = int_to_ptr.vmem [resolvable:$true] %s78_s14  ;;  %s104_s26 = int_to_ptr.vmem [resolvable:$true] %s103_s26 }
  0x56   :  { %s9553_s7 = scalar_lea.vmem %s79_s14, 2048  ;;  %p9558_p8 = scmp.lt.s32.totalorder %s79_s14, %s79_s14 }
  0x57   :  { %p9554_p7 = scmp.ne.s32.totalorder %s79_s14, %s9553_s7  ;;  %p9559_p9 = scmp.lt.s32.totalorder %s9553_s7, %s9553_s7 }
  0x59   :  { %p9560_p10 = por %p9559_p9, %p9558_p8 }
  0x5b   :  { %p9561_p11 = pnand %p9560_p10, %p9554_p7 }
  0x5d   :  { %9564 = shalt.err (!%p9561_p11)
}
  0x5e   :  { %84 = dma.hbm_to_vmem [thread:$0]  %s10461_s6, 2048, %s79_s14, [#allocation9], %s9663_s1, %s9663_s1, %s9664_s20  }
  0x5f   :  { %s9573_s3 = scalar_lea.vmem %s104_s26, 128  ;;  %p9578_p13 = scmp.lt.s32.totalorder %s104_s26, %s104_s26 }
  0x60   :  { %p9574_p12 = scmp.ne.s32.totalorder %s104_s26, %s9573_s3  ;;  %p9579_p0 = scmp.lt.s32.totalorder %s9573_s3, %s9573_s3 }
  0x62   :  { %p9580_p1 = por %p9579_p0, %p9578_p13 }
  0x64   :  { %p9581_p2 = pnand %p9580_p1, %p9574_p12 }
  0x66   :  { %9584 = shalt.err (!%p9581_p2)
}
  0x67   :  { %106 = dma.hbm_to_vmem [thread:$0]  %s10463_s8, 128, %s104_s26, [#allocation12]  }
  0x68   :  { %s9672_s30 = smov [#allocation16]   ;;  %s9673_s9 = smov [#allocation19]  }
  0x69   :  { %s125_s16 = sshll.u32 %s9672_s30, 4  ;;  %s147_s17 = sshll.u32 %s9673_s9, 4  ;;  %s126_s16 = int_to_ptr.vmem [resolvable:$true] %s125_s16  ;;  %s148_s17 = int_to_ptr.vmem [resolvable:$true] %s147_s17 }
  0x6a   :  { %s9593_s18 = scalar_lea.vmem %s126_s16, 128  ;;  %p9598_p4 = scmp.lt.s32.totalorder %s126_s16, %s126_s16 }
  0x6b   :  { %p9594_p3 = scmp.ne.s32.totalorder %s126_s16, %s9593_s18  ;;  %p9599_p5 = scmp.lt.s32.totalorder %s9593_s18, %s9593_s18 }
  0x6d   :  { %p9600_p6 = por %p9599_p5, %p9598_p4 }
  0x6f   :  { %p9601_p7 = pnand %p9600_p6, %p9594_p3 }
  0x71   :  { %9604 = shalt.err (!%p9601_p7)
}
  0x72   :  { %128 = dma.hbm_to_vmem [thread:$0]  %s10465_s10, 128, %s126_s16, [#allocation15]  }
  0x73   :  { %s9613_s20 = scalar_lea.vmem %s148_s17, 64  ;;  %p9618_p9 = scmp.lt.s32.totalorder %s148_s17, %s148_s17 }
  0x74   :  { %p9614_p8 = scmp.ne.s32.totalorder %s148_s17, %s9613_s20  ;;  %p9619_p10 = scmp.lt.s32.totalorder %s9613_s20, %s9613_s20 }
  0x76   :  { %p9620_p11 = por %p9619_p10, %p9618_p9 }
  0x78   :  { %p9621_p12 = pnand %p9620_p11, %p9614_p8 }
  0x7a   :  { %9624 = shalt.err (!%p9621_p12)
}
  0x7b   :  { %150 = dma.hbm_to_vmem [thread:$0]  %s10467_s12, 64, %s148_s17, [#allocation18]  }
  0x7c   :  { %s9674_s21 = smov [#allocation20]  }
  0x7d   :  { %s157_s5 = sshll.u32 %s9674_s21, 4  ;;  %s158_s5 = int_to_ptr.vmem [resolvable:$true] %s157_s5 }
  0x7e   :  { %s9633_s11 = scalar_lea.vmem %s158_s5, 64  ;;  %p9638_p0 = scmp.lt.s32.totalorder %s158_s5, %s158_s5 }
  0x7f   :  { %p9634_p13 = scmp.ne.s32.totalorder %s158_s5, %s9633_s11  ;;  %p9639_p1 = scmp.lt.s32.totalorder %s9633_s11, %s9633_s11 }
  0x81   :  { %p9640_p2 = por %p9639_p1, %p9638_p0 }
  0x83   :  { %p9641_p3 = pnand %p9640_p2, %p9634_p13 }
  0x85   :  { %9644 = shalt.err (!%p9641_p3)
}
  0x86   :  { %160 = dma.hbm_to_vmem [thread:$0]  %s10468_s13, 64, %s158_s5, [#allocation21]  }
  0x87   :  { %9645 = dma.done.wait [#allocation4], 512  }
  0x88   :  { %9646 = vsyncadd [#allocation4], 4294966784 }
  0x89   :  { %9647 = dma.done.wait [#allocation6], 400  }
  0x8a   :  { %9648 = vsyncadd [#allocation6], 4294966896 }
  0x8b   :  { %9649 = dma.done.wait [#allocation9], 2064  }
  0x8c   :  { %9650 = vsyncadd [#allocation9], 4294965232 }
  0x8d   :  { %9651 = dma.done.wait [#allocation12], 1664  }
  0x8e   :  { %9652 = vsyncadd [#allocation12], 4294965632 }
  0x8f   :  { %9653 = dma.done.wait [#allocation15], 65664  }
  0x90   :  { %9654 = vsyncadd [#allocation15], 4294901632 }
  0x91   :  { %9655 = dma.done.wait [#allocation18], 32832  }
  0x92   :  { %9656 = vsyncadd [#allocation18], 4294934464 }
  0x93   :  { %9657 = dma.done.wait [#allocation21], 64  }
  0x94   :  { %9658 = vsyncadd [#allocation21], 4294967232  ;;  %v8886_v1 = vld [vmem:[%s10457_s2 + $0x78] sm:$0xff]   ;;  %v8890_v5 = vld [vmem:[%s10457_s2 + $0x70] sm:$0xff]   ;;  %vm1542_vm0 = vcmask 1043456   ;;  %vm1811_vm1 = vcmask 261120  }
  0x95   :  { %v8887_v2 = vld [vmem:[%s10457_s2 + $0x38] sm:$0xff]   ;;  %8715 = vmatprep.subr.bf16.mxu0 %v8886_v1  ;;  %v8891_v6 = vld [vmem:[%s10457_s2 + $0x30] sm:$0xff]   ;;  %v8894_v9 = vld [vmem:[%s10457_s2 + $0x68] sm:$0xff]   ;;  %vm1538_vm2 = vcmask 195584   ;;  %vm7761_vm3 = vcmask 7168  }
  0x96   :  { %v8888_v3 = vld [vmem:[%s10457_s2 + $0xf8] sm:$0xff]   ;;  %8716 = vmatpush3.bf16.msra.mxu0 %v8887_v2  ;;  %v8892_v7 = vld [vmem:[%s10457_s2 + $0xf0] sm:$0xff]   ;;  %v8895_v10 = vld [vmem:[%s10457_s2 + $0x28] sm:$0xff]  }
  0x97   :  { %v8889_v4 = vld [vmem:[%s10457_s2 + $0xb8] sm:$0xff]   ;;  %8737 = vmatprep.subr.bf16.mxu1 %v8888_v3  ;;  %8717 = vmatprep.subr.bf16.mxu0 %v8890_v5  ;;  %v8893_v8 = vld [vmem:[%s10457_s2 + $0xb0] sm:$0xff]   ;;  %v8896_v11 = vld [vmem:[%s10457_s2 + $0xe8] sm:$0xff]  }
  0x98   :  { %8738 = vmatpush3.bf16.msra.mxu1 %v8889_v4  ;;  %v8897_v12 = vld [vmem:[%s10457_s2 + $0xa8] sm:$0xff]   ;;  %v8898_v13 = vld [vmem:[%s10457_s2 + $0x60] sm:$0xff]   ;;  %v8902_v17 = vld [vmem:[%s10457_s2 + $0x58] sm:$0xff]  }
  0x99   :  { %8739 = vmatprep.subr.bf16.mxu1 %v8892_v7  ;;  %v8899_v14 = vld [vmem:[%s10457_s2 + $0x20] sm:$0xff]   ;;  %v8903_v18 = vld [vmem:[%s10457_s2 + $0x18] sm:$0xff]   ;;  %v8906_v21 = vld [vmem:[%s10457_s2 + $0x50] sm:$0xff]  }
  0x9a   :  { %8718 = vmatpush3.bf16.msra.mxu0 %v8891_v6  ;;  %v8900_v15 = vld [vmem:[%s10457_s2 + $0xe0] sm:$0xff]   ;;  %v8904_v19 = vld [vmem:[%s10457_s2 + $0xd8] sm:$0xff]   ;;  %v8907_v22 = vld [vmem:[%s10457_s2 + $0x10] sm:$0xff]  }
  0x9b   :  { %8719 = vmatprep.subr.bf16.mxu0 %v8894_v9  ;;  %v8901_v16 = vld [vmem:[%s10457_s2 + $0xa0] sm:$0xff]   ;;  %v8905_v20 = vld [vmem:[%s10457_s2 + $0x98] sm:$0xff]   ;;  %v8908_v23 = vld [vmem:[%s10457_s2 + $0xd0] sm:$0xff]  }
  0x9c   :  { %8740 = vmatpush3.bf16.msra.mxu1 %v8893_v8  ;;  %v8909_v24 = vld [vmem:[%s10457_s2 + $0x90] sm:$0xff]   ;;  %v8910_v25 = vld [vmem:[%s10457_s2 + $0x48] sm:$0xff]   ;;  %v8914_v29 = vld [vmem:[%s10457_s2 + $0x40] sm:$0xff]  }
  0x9d   :  { %8741 = vmatprep.subr.bf16.mxu1 %v8896_v11  ;;  %v8911_v26 = vld [vmem:[%s10457_s2 + $0x8] sm:$0xff]   ;;  %v8915_v30 = vld [vmem:[%s10457_s2] sm:$0xff]   ;;  %v8920_v36 = vld [vmem:[%s10457_s2 + $0x178] sm:$0xff]  }
  0x9e   :  { %8720 = vmatpush3.bf16.msra.mxu0 %v8895_v10  ;;  %v8912_v27 = vld [vmem:[%s10457_s2 + $0xc8] sm:$0xff]   ;;  %v8916_v31 = vld [vmem:[%s10457_s2 + $0xc0] sm:$0xff]   ;;  %v8923_v40 = vld [vmem:[%s10457_s2 + $0x138] sm:$0xff]  }
  0x9f   :  { %8721 = vmatprep.subr.bf16.mxu0 %v8898_v13  ;;  %v8913_v28 = vld [vmem:[%s10457_s2 + $0x88] sm:$0xff]   ;;  %v8919_v35 = vld [vmem:[%s10457_s2 + $0x80] sm:$0xff]   ;;  %v8924_v41 = vld [vmem:[%s10457_s2 + $0x1f8] sm:$0xff]  }
  0xa0   :  { %8742 = vmatpush3.bf16.msra.mxu1 %v8897_v12  ;;  %v200_v32 = vld [vmem:[#allocation3] sm:$0xff]  ;;  %v201_v37 = vld [vmem:[#allocation3 + $0x8] sm:$0xff]  ;;  %v8925_v42 = vld [vmem:[%s10457_s2 + $0x1b8] sm:$0xff]  }
  0xa1   :  { %8743 = vmatprep.subr.bf16.mxu1 %v8900_v15  ;;  %v7775_v33 = vcombine.low %v200_v32, %v200_v32  ;;  %v7776_v34 = vcombine.high %v200_v32, %v200_v32  ;;  %v7777_v38 = vcombine.low %v201_v37, %v201_v37  ;;  %v7778_v39 = vcombine.high %v201_v37, %v201_v37  ;;  %v8926_v43 = vld [vmem:[%s10457_s2 + $0x170] sm:$0xff]   ;;  %v8930_v47 = vld [vmem:[%s10457_s2 + $0x168] sm:$0xff]   ;;  %v8934_v51 = vld [vmem:[%s10457_s2 + $0x160] sm:$0xff]  }
  0xa2   :  { %8722 = vmatpush3.bf16.msra.mxu0 %v8899_v14  ;;  %v8927_v44 = vld [vmem:[%s10457_s2 + $0x130] sm:$0xff]   ;;  %v8931_v48 = vld [vmem:[%s10457_s2 + $0x128] sm:$0xff]   ;;  %v8935_v52 = vld [vmem:[%s10457_s2 + $0x120] sm:$0xff]  }
  0xa3   :  { %8723 = vmatprep.subr.bf16.mxu0 %v8902_v17  ;;  %783 = vmatprep.mubr.bf16.mxu0 %v7776_v34  ;;  %v8928_v45 = vld [vmem:[%s10457_s2 + $0x1f0] sm:$0xff]   ;;  %v8932_v49 = vld [vmem:[%s10457_s2 + $0x1e8] sm:$0xff]   ;;  %v8936_v53 = vld [vmem:[%s10457_s2 + $0x1e0] sm:$0xff]  }
  0xa4   :  { %8744 = vmatpush3.bf16.msra.mxu1 %v8901_v16  ;;  %823 = vmatprep.mubr.bf16.mxu1 %v7778_v39  ;;  %v8929_v46 = vld [vmem:[%s10457_s2 + $0x1b0] sm:$0xff]   ;;  %v8933_v50 = vld [vmem:[%s10457_s2 + $0x1a8] sm:$0xff]   ;;  %v8937_v54 = vld [vmem:[%s10457_s2 + $0x1a0] sm:$0xff]  }
  0xa5   :  { %8745 = vmatprep.subr.bf16.mxu1 %v8904_v19  ;;  %v8938_v55 = vld [vmem:[%s10457_s2 + $0x158] sm:$0xff]   ;;  %v8942_v59 = vld [vmem:[%s10457_s2 + $0x150] sm:$0xff]   ;;  %v8946_v63 = vld [vmem:[%s10457_s2 + $0x148] sm:$0xff]  }
  0xa6   :  { %8724 = vmatpush3.bf16.msra.mxu0 %v8903_v18  ;;  %v8939_v56 = vld [vmem:[%s10457_s2 + $0x118] sm:$0xff]   ;;  %v8943_v60 = vld [vmem:[%s10457_s2 + $0x110] sm:$0xff]   ;;  %v8947_v0 = vld [vmem:[%s10457_s2 + $0x108] sm:$0xff]  }
  0xa7   :  { %8725 = vmatprep.subr.bf16.mxu0 %v8906_v21  ;;  %v8940_v57 = vld [vmem:[%s10457_s2 + $0x1d8] sm:$0xff]   ;;  %v8944_v61 = vld [vmem:[%s10457_s2 + $0x1d0] sm:$0xff]   ;;  %v8948_v1 = vld [vmem:[%s10457_s2 + $0x1c8] sm:$0xff]  }
  0xa8   :  { %8746 = vmatpush3.bf16.msra.mxu1 %v8905_v20  ;;  %v8941_v58 = vld [vmem:[%s10457_s2 + $0x198] sm:$0xff]   ;;  %v8945_v62 = vld [vmem:[%s10457_s2 + $0x190] sm:$0xff]   ;;  %v8949_v2 = vld [vmem:[%s10457_s2 + $0x188] sm:$0xff]  }
  0xa9   :  { %8747 = vmatprep.subr.bf16.mxu1 %v8908_v23  ;;  %v8950_v3 = vld [vmem:[%s10457_s2 + $0x140] sm:$0xff]   ;;  %v202_v6 = vld [vmem:[#allocation3 + $0x10] sm:$0xff]  ;;  %v8966_v21 = vld [vmem:[%s10459_s4 + $0x68] sm:$0xff]  }
  0xaa   :  { %8726 = vmatpush3.bf16.msra.mxu0 %v8907_v22  ;;  %v8951_v4 = vld [vmem:[%s10457_s2 + $0x100] sm:$0xff]   ;;  %v7779_v7 = vcombine.low %v202_v6, %v202_v6  ;;  %v7780_v8 = vcombine.high %v202_v6, %v202_v6  ;;  %v8956_v10 = vld [vmem:[%s10459_s4 + $0x78] sm:$0xff]   ;;  %v8962_v17 = vld [vmem:[%s10459_s4 + $0x70] sm:$0xff]  }
  0xab   :  { %8727 = vmatprep.subr.bf16.mxu0 %v8910_v25  ;;  %v8952_v5 = vld [vmem:[%s10457_s2 + $0x1c0] sm:$0xff]   ;;  %v8959_v14 = vld [vmem:[%s10459_s4 + $0x38] sm:$0xff]   ;;  %v8963_v18 = vld [vmem:[%s10459_s4 + $0x30] sm:$0xff]  }
  0xac   :  { %8748 = vmatpush3.bf16.msra.mxu1 %v8909_v24  ;;  %v8955_v9 = vld [vmem:[%s10457_s2 + $0x180] sm:$0xff]   ;;  %v8960_v15 = vld [vmem:[%s10459_s4 + $0xf8] sm:$0xff]   ;;  %v8964_v19 = vld [vmem:[%s10459_s4 + $0xf0] sm:$0xff]  }
  0xad   :  { %8749 = vmatprep.subr.bf16.mxu1 %v8912_v27  ;;  %v203_v11 = vld [vmem:[#allocation3 + $0x18] sm:$0xff]  ;;  %v8965_v20 = vld [vmem:[%s10459_s4 + $0xb0] sm:$0xff]   ;;  %v8967_v22 = vld [vmem:[%s10459_s4 + $0x28] sm:$0xff]  }
  0xae   :  { %8728 = vmatpush3.bf16.msra.mxu0 %v8911_v26  ;;  %v7781_v12 = vcombine.low %v203_v11, %v203_v11  ;;  %v7782_v13 = vcombine.high %v203_v11, %v203_v11  ;;  %v8961_v16 = vld [vmem:[%s10459_s4 + $0xb8] sm:$0xff]   ;;  %v8968_v23 = vld [vmem:[%s10459_s4 + $0xe8] sm:$0xff]   ;;  %v8970_v25 = vld [vmem:[%s10459_s4 + $0x60] sm:$0xff]  }
  0xaf   :  { %8729 = vmatprep.subr.bf16.mxu0 %v8914_v29  ;;  %v8969_v24 = vld [vmem:[%s10459_s4 + $0xa8] sm:$0xff]   ;;  %v8971_v26 = vld [vmem:[%s10459_s4 + $0x20] sm:$0xff]   ;;  %v8974_v29 = vld [vmem:[%s10459_s4 + $0x58] sm:$0xff]  }
  0xb0   :  { %8750 = vmatpush3.bf16.msra.mxu1 %v8913_v28  ;;  %v8972_v27 = vld [vmem:[%s10459_s4 + $0xe0] sm:$0xff]   ;;  %v8977_v32 = vld [vmem:[%s10459_s4 + $0x98] sm:$0xff]   ;;  %v8979_v34 = vld [vmem:[%s10459_s4 + $0x10] sm:$0xff]  }
  0xb1   :  { %8751 = vmatprep.subr.bf16.mxu1 %v8916_v31  ;;  %v8973_v28 = vld [vmem:[%s10459_s4 + $0xa0] sm:$0xff]   ;;  %v8976_v31 = vld [vmem:[%s10459_s4 + $0xd8] sm:$0xff]   ;;  %v8982_v37 = vld [vmem:[%s10459_s4 + $0x48] sm:$0xff]  }
  0xb2   :  { %8730 = vmatpush3.bf16.msra.mxu0 %v8915_v30  ;;  %v8975_v30 = vld [vmem:[%s10459_s4 + $0x18] sm:$0xff]   ;;  %v8984_v39 = vld [vmem:[%s10459_s4 + $0xc8] sm:$0xff]  }
  0xb3   :  { %8759 = vmatprep.subr.bf16.mxu0 %v8920_v36  ;;  %v8981_v36 = vld [vmem:[%s10459_s4 + $0x90] sm:$0xff]   ;;  %v1457_v6 = vld [vmem:[#allocation10 + $0x40] sm:$0xff] }
  0xb4   :  { %8752 = vmatpush3.bf16.msra.mxu1 %v8919_v35  ;;  %v8980_v35 = vld [vmem:[%s10459_s4 + $0xd0] sm:$0xff]   ;;  %v1453_v11 = vld [vmem:[#allocation10 + $0x20] sm:$0xff] }
  0xb5   :  { %784 = vmatmul.mubr.bf16.vlgmr.msra.gmra.mxu0 %v7775_v33  ;;  %8781 = vmatprep.subr.bf16.mxu1 %v8924_v41  ;;  %v8978_v33 = vld [vmem:[%s10459_s4 + $0x50] sm:$0xff]   ;;  %v8986_v41 = vld [vmem:[%s10459_s4 + $0x40] sm:$0xff]  }
  0xb6   :  { %8760 = vmatpush3.bf16.msra.mxu0 %v8923_v40  ;;  %863 = vmatprep.mubr.bf16.mxu0 %v7780_v8  ;;  %v8985_v40 = vld [vmem:[%s10459_s4 + $0x88] sm:$0xff]  }
  0xb7   :  { %824 = vmatmul.mubr.bf16.vlgmr.msra.gmra.mxu1 %v7777_v38  ;;  %8761 = vmatprep.subr.bf16.mxu0 %v8926_v43  ;;  %v8983_v38 = vld [vmem:[%s10459_s4 + $0x8] sm:$0xff]   ;;  %v8988_v43 = vld [vmem:[%s10459_s4 + $0xc0] sm:$0xff]  }
  0xb8   :  { %8782 = vmatpush3.bf16.msra.mxu1 %v8925_v42  ;;  %903 = vmatprep.mubr.bf16.mxu1 %v7782_v13  ;;  %v8987_v42 = vld [vmem:[%s10459_s4] sm:$0xff]  }
  0xb9   :  { %8783 = vmatprep.subr.bf16.mxu1 %v8928_v45 }
  0xba   :  { %8762 = vmatpush3.bf16.msra.mxu0 %v8927_v44  ;;  %v912_v44 = vld [vmem:[#allocation5] sm:$0xff] }
  0xbb   :  { %8763 = vmatprep.subr.bf16.mxu0 %v8930_v47  ;;  %v7848_v45 = vcombine.low %v912_v44, %v912_v44  ;;  %v8991_v47 = vld [vmem:[%s10459_s4 + $0x80] sm:$0xff]  }
  0xbc   :  { %8784 = vmatpush3.bf16.msra.mxu1 %v8929_v46  ;;  %v7849_v46 = vcombine.high %v912_v44, %v912_v44 }
  0xbd   :  { %8785 = vmatprep.subr.bf16.mxu1 %v8932_v49  ;;  %v913_v49 = vld [vmem:[#allocation5 + $0x8] sm:$0xff] }
  0xbe   :  { %8764 = vmatpush3.bf16.msra.mxu0 %v8931_v48  ;;  %v8992_v48 = vld [vmem:[%s10459_s4 + $0x178] sm:$0xff]  }
  0xbf   :  { %8765 = vmatprep.subr.bf16.mxu0 %v8934_v51  ;;  %v7851_v51 = vcombine.high %v913_v49, %v913_v49 }
  0xc0   :  { %8786 = vmatpush3.bf16.msra.mxu1 %v8933_v50  ;;  %v7850_v50 = vcombine.low %v913_v49, %v913_v49 }
  0xc1   :  { %8787 = vmatprep.subr.bf16.mxu1 %v8936_v53  ;;  %v8996_v53 = vld [vmem:[%s10459_s4 + $0x170] sm:$0xff]  }
  0xc2   :  { %8766 = vmatpush3.bf16.msra.mxu0 %v8935_v52  ;;  %v8995_v52 = vld [vmem:[%s10459_s4 + $0x138] sm:$0xff]  }
  0xc3   :  { %8767 = vmatprep.subr.bf16.mxu0 %v8938_v55  ;;  %v8998_v55 = vld [vmem:[%s10459_s4 + $0x168] sm:$0xff]  }
  0xc4   :  { %8788 = vmatpush3.bf16.msra.mxu1 %v8937_v54  ;;  %v8997_v54 = vld [vmem:[%s10459_s4 + $0x130] sm:$0xff]  }
  0xc5   :  { %8789 = vmatprep.subr.bf16.mxu1 %v8940_v57  ;;  %v9000_v57 = vld [vmem:[%s10459_s4 + $0x160] sm:$0xff]  }
  0xc6   :  { %8768 = vmatpush3.bf16.msra.mxu0 %v8939_v56  ;;  %v8999_v56 = vld [vmem:[%s10459_s4 + $0x128] sm:$0xff]  }
  0xc7   :  { %8769 = vmatprep.subr.bf16.mxu0 %v8942_v59  ;;  %v9002_v59 = vld [vmem:[%s10459_s4 + $0x158] sm:$0xff]  }
  0xc8   :  { %8790 = vmatpush3.bf16.msra.mxu1 %v8941_v58  ;;  %v9001_v58 = vld [vmem:[%s10459_s4 + $0x120] sm:$0xff]  }
  0xc9   :  { %8791 = vmatprep.subr.bf16.mxu1 %v8944_v61  ;;  %v9004_v61 = vld [vmem:[%s10459_s4 + $0x150] sm:$0xff]  }
  0xca   :  { %8770 = vmatpush3.bf16.msra.mxu0 %v8943_v60  ;;  %v9003_v60 = vld [vmem:[%s10459_s4 + $0x118] sm:$0xff]  }
  0xcb   :  { %8771 = vmatprep.subr.bf16.mxu0 %v8946_v63  ;;  %v9005_v63 = vld [vmem:[%s10459_s4 + $0x110] sm:$0xff]  }
  0xcc   :  { %8792 = vmatpush3.bf16.msra.mxu1 %v8945_v62  ;;  %v914_v62 = vld [vmem:[#allocation5 + $0x10] sm:$0xff] }
  0xcd   :  { %8793 = vmatprep.subr.bf16.mxu1 %v8948_v1  ;;  %v9006_v1 = vld [vmem:[%s10459_s4 + $0x148] sm:$0xff]  }
  0xce   :  { %8772 = vmatpush3.bf16.msra.mxu0 %v8947_v0  ;;  %v7853_v0 = vcombine.high %v914_v62, %v914_v62 }
  0xcf   :  { %8773 = vmatprep.subr.bf16.mxu0 %v8950_v3  ;;  %v9008_v3 = vld [vmem:[%s10459_s4 + $0x140] sm:$0xff]  }
  0xd0   :  { %8794 = vmatpush3.bf16.msra.mxu1 %v8949_v2  ;;  %v9007_v2 = vld [vmem:[%s10459_s4 + $0x108] sm:$0xff]  }
  0xd1   :  { %8795 = vmatprep.subr.bf16.mxu1 %v8952_v5  ;;  %v7852_v5 = vcombine.low %v914_v62, %v914_v62 }
  0xd2   :  { %8774 = vmatpush3.bf16.msra.mxu0 %v8951_v4  ;;  %v9009_v4 = vld [vmem:[%s10459_s4 + $0x100] sm:$0xff]  }
  0xd3   :  { %8803 = vmatprep.subr.bf16.mxu0 %v8956_v10  ;;  %v1449_v10 = vld [vmem:[#allocation10] sm:$0xff] }
  0xd4   :  { %8796 = vmatpush3.bf16.msra.mxu1 %v8955_v9  ;;  %v7926_v13 = vcombine.low %v1449_v10, %v1453_v11 }
  0xd5   :  { %864 = vmatmul.mubr.bf16.vlgmr.msra.gmra.mxu0 %v7779_v7  ;;  %8825 = vmatprep.subr.bf16.mxu1 %v8960_v15  ;;  %v1461_v7 = vld [vmem:[#allocation10 + $0x60] sm:$0xff]  ;;  %v1463_v15 = vld [vmem:[#allocation10 + $0x70] sm:$0xff] }
  0xd6   :  { %8804 = vmatpush3.bf16.msra.mxu0 %v8959_v14  ;;  %1359 = vmatprep.mubr.bf16.mxu0 %v7849_v46  ;;  %v7935_v8 = vcombine.high %v1457_v6, %v1461_v7  ;;  %v7934_v9 = vcombine.low %v1457_v6, %v1461_v7  ;;  %v1459_v14 = vld [vmem:[#allocation10 + $0x50] sm:$0xff] }
  0xd7   :  { %904 = vmatmul.mubr.bf16.vlgmr.msra.gmra.mxu1 %v7781_v12  ;;  %8805 = vmatprep.subr.bf16.mxu0 %v8962_v17  ;;  %v7927_v12 = vcombine.high %v1449_v10, %v1453_v11  ;;  %v9675_v17 = vmov 0  }
  0xd8   :  { %8826 = vmatpush3.bf16.msra.mxu1 %v8961_v16  ;;  %1399 = vmatprep.mubr.bf16.mxu1 %v7851_v51  ;;  %v7939_v16 = vcombine.high %v1459_v14, %v1463_v15 }
  0xd9   :  { %8827 = vmatprep.subr.bf16.mxu1 %v8964_v19  ;;  %v1474_v19 = vld [vmem:[#allocation11 + $0x40] sm:$0xff] }
  0xda   :  { %8806 = vmatpush3.bf16.msra.mxu0 %v8963_v18  ;;  %v7938_v18 = vcombine.low %v1459_v14, %v1463_v15 }
  0xdb   :  { %8807 = vmatprep.subr.bf16.mxu0 %v8966_v21  ;;  %v7910_v21 = vcombine.low %v1474_v19, %v1474_v19 }
  0xdc   :  { %8828 = vmatpush3.bf16.msra.mxu1 %v8965_v20  ;;  %v7911_v20 = vcombine.high %v1474_v19, %v1474_v19 }
  0xdd   :  { %8829 = vmatprep.subr.bf16.mxu1 %v8968_v23  ;;  %v1466_v23 = vld [vmem:[#allocation11] sm:$0xff] }
  0xde   :  { %8808 = vmatpush3.bf16.msra.mxu0 %v8967_v22  ;;  %v1544_v22 = vsel %vm1542_vm0, %v7910_v21, 0 }
  0xdf   :  { %8809 = vmatprep.subr.bf16.mxu0 %v8970_v25 }
  0xe0   :  { %8830 = vmatpush3.bf16.msra.mxu1 %v8969_v24  ;;  %v1470_v24 = vld [vmem:[#allocation11 + $0x20] sm:$0xff] }
  0xe1   :  { %8831 = vmatprep.subr.bf16.mxu1 %v8972_v27  ;;  %v7903_v25 = vcombine.high %v1466_v23, %v1470_v24  ;;  %v10144_v27 = vld [vmem:[#allocation11 + $0x48] sm:$0xff] }
  0xe2   :  { %8810 = vmatpush3.bf16.msra.mxu0 %v8971_v26  ;;  %v7902_v26 = vcombine.low %v1466_v23, %v1470_v24  ;;  %v7912_v14 = vcombine.low %v10144_v27, %v10144_v27  ;;  %v1476_v23 = vld [vmem:[#allocation11 + $0x50] sm:$0xff] }
  0xe3   :  { %8811 = vmatprep.subr.bf16.mxu0 %v8974_v29 }
  0xe4   :  { %8832 = vmatpush3.bf16.msra.mxu1 %v8973_v28  ;;  %v7913_v28 = vcombine.high %v10144_v27, %v10144_v27  ;;  %v1550_v21 = vsel %vm1542_vm0, %v7912_v14, 0  ;;  %v1468_v27 = vld [vmem:[#allocation11 + $0x10] sm:$0xff]  ;;  %v2057_v14 = vld [vmem:[#allocation14 + $0x60] sm:$0xff] }
  0xe5   :  { %8833 = vmatprep.subr.bf16.mxu1 %v8976_v31 }
  0xe6   :  { %8812 = vmatpush3.bf16.msra.mxu0 %v8975_v30 }
  0xe7   :  { %8813 = vmatprep.subr.bf16.mxu0 %v8978_v33 }
  0xe8   :  { %8834 = vmatpush3.bf16.msra.mxu1 %v8977_v32 }
  0xe9   :  { %8835 = vmatprep.subr.bf16.mxu1 %v8980_v35 }
  0xea   :  { %8814 = vmatpush3.bf16.msra.mxu0 %v8979_v34 }
  0xeb   :  { %8815 = vmatprep.subr.bf16.mxu0 %v8982_v37 }
  0xec   :  { %8836 = vmatpush3.bf16.msra.mxu1 %v8981_v36 }
  0xed   :  { %8837 = vmatprep.subr.bf16.mxu1 %v8984_v39 }
  0xee   :  { %8816 = vmatpush3.bf16.msra.mxu0 %v8983_v38  ;;  %v7774_v38 = vld [vmem:[#allocation7] ss:$0 sm:$0xff] }
  0xef   :  { %8817 = vmatprep.subr.bf16.mxu0 %v8986_v41 }
  0xf0   :  { %8838 = vmatpush3.bf16.msra.mxu1 %v8985_v40 }
  0xf1   :  { %8839 = vmatprep.subr.bf16.mxu1 %v8988_v43 }
  0xf2   :  { %8818 = vmatpush3.bf16.msra.mxu0 %v8987_v42 }
  0xf3   :  { %8847 = vmatprep.subr.bf16.mxu0 %v8992_v48 }
  0xf4   :  { %8840 = vmatpush3.bf16.msra.mxu1 %v8991_v47 }
  0xf5   :  { %1360 = vmatmul.mubr.bf16.vlgmr.msra.gmra.mxu0 %v7848_v45  ;;  %7918 = vmatprep.subr.msk.bf16.mxu1 %vm1542_vm0, %v7911_v20 }
  0xf6   :  { %8848 = vmatpush3.bf16.msra.mxu0 %v8995_v52  ;;  %1439 = vmatprep.mubr.bf16.mxu0 %v7853_v0 }
  0xf7   :  { %1400 = vmatmul.mubr.bf16.vlgmr.msra.gmra.mxu1 %v7850_v50  ;;  %8849 = vmatprep.subr.bf16.mxu0 %v8996_v53  ;;  %v1451_v53 = vld [vmem:[#allocation10 + $0x10] sm:$0xff] }
  0xf8   :  { %1599 = vmatprep.mubr.bf16.mxu1 %v9675_v17  ;;  %1580 = vmatpush1.bf16.msra.mxu1 %v1544_v22 }
  0xf9   :  { %1581 = vmatprep.subr.bf16.mxu1 %v7903_v25  ;;  %v7915_v25 = vcombine.high %v1476_v23, %v1476_v23 }
  0xfa   :  { %8850 = vmatpush3.bf16.msra.mxu0 %v8997_v54  ;;  %v1455_v54 = vld [vmem:[#allocation10 + $0x30] sm:$0xff] }
  0xfb   :  { %8851 = vmatprep.subr.bf16.mxu0 %v8998_v55 }
  0xfc   :  { %1582 = vmatpush1.bf16.msra.mxu1 %v7902_v26  ;;  %v7914_v26 = vcombine.low %v1476_v23, %v1476_v23  ;;  %v2233_v23 = vld [vmem:[#allocation14 + $0x5e0] sm:$0xff] }
  0xfd   :  { %7920 = vmatprep.subr.msk.bf16.mxu1 %vm1542_vm0, %v7913_v28  ;;  %v1472_v28 = vld [vmem:[#allocation11 + $0x30] sm:$0xff] }
  0xfe   :  { %8852 = vmatpush3.bf16.msra.mxu0 %v8999_v56 }
  0xff   :  { %8853 = vmatprep.subr.bf16.mxu0 %v9000_v57 }
 0x102   :  { %8854 = vmatpush3.bf16.msra.mxu0 %v9001_v58  ;;  %v7931_v58 = vcombine.high %v1451_v53, %v1455_v54 }
 0x103   :  { %8855 = vmatprep.subr.bf16.mxu0 %v9002_v59  ;;  %v7930_v59 = vcombine.low %v1451_v53, %v1455_v54 }
 0x106   :  { %8856 = vmatpush3.bf16.msra.mxu0 %v9003_v60 }
 0x107   :  { %8857 = vmatprep.subr.bf16.mxu0 %v9004_v61 }
 0x10a   :  { %8858 = vmatpush3.bf16.msra.mxu0 %v9005_v63 }
 0x10b   :  { %8859 = vmatprep.subr.bf16.mxu0 %v9006_v1 }
 0x10e   :  { %8860 = vmatpush3.bf16.msra.mxu0 %v9007_v2 }
 0x10f   :  { %8861 = vmatprep.subr.bf16.mxu0 %v9008_v3 }
 0x112   :  { %8862 = vmatpush3.bf16.msra.mxu0 %v9009_v4 }
 0x113   :  { %1827 = vmatprep.subr.bf16.mxu0 %v7935_v8 }
 0x115   :  { %1440 = vmatmul.mubr.bf16.vlgmr.msra.gmra.mxu0 %v7852_v5  ;;  %v7847_v5 = vld [vmem:[#allocation8] ss:$0 sm:$0xff] }
 0x116   :  { %1828 = vmatpush1.bf16.msra.mxu0 %v7934_v9  ;;  %1847 = vmatprep.mubr.bf16.mxu0 %v9675_v17 }
 0x117   :  { %1829 = vmatprep.subr.bf16.mxu0 %v7927_v12 }
 0x11a   :  { %1830 = vmatpush1.bf16.msra.mxu0 %v7926_v13 }
 0x11b   :  { %1909 = vmatprep.subr.bf16.mxu0 %v7939_v16  ;;  %v1467_v16 = vld [vmem:[#allocation11 + $0x8] sm:$0xff] }
 0x175   :  { %v8731_v29 = vpop.f32.mrf.mxu0 }
 0x177   :  { %v8732_v30 = vpop.f32.mrf.mxu0  ;;  %v8753_v31 = vpop.f32.mrf.mxu1 }
 0x178   :  { %v8733_v37 = vadd.f32 %v8732_v30, %v8731_v29  ;;  %v1556_v29 = vsel %vm1542_vm0, %v7914_v26, 0  ;;  %v7907_v30 = vcombine.high %v1468_v27, %v1472_v28 }
 0x179   :  { %v8734_v32 = vpop.f32.mrf.mxu0  ;;  %v8754_v33 = vpop.f32.mrf.mxu1 }
 0x17a   :  { %v786_v39 = vadd.f32 %v8733_v37, %v7774_v38  ;;  %v8755_v40 = vadd.f32 %v8754_v33, %v8753_v31  ;;  %v1477_v31 = vld [vmem:[#allocation11 + $0x58] sm:$0xff]  ;;  %v2101_v32 = vld [vmem:[#allocation14 + $0x1c0] sm:$0xff] }
 0x17b   :  { %v8735_v34 = vpop.f32.mrf.mxu0  ;;  %v8756_v35 = vpop.f32.mrf.mxu1  ;;  %v2105_v33 = vld [vmem:[#allocation14 + $0x1e0] sm:$0xff]  ;;  %v7916_v37 = vcombine.low %v1477_v31, %v1477_v31 }
 0x17c   :  { %v826_v43 = vadd.f32 %v8755_v40, %v786_v39  ;;  %v7906_v34 = vcombine.low %v1468_v27, %v1472_v28  ;;  %v8003_v35 = vcombine.high %v2101_v32, %v2105_v33  ;;  %v8002_v38 = vcombine.low %v2101_v32, %v2105_v33  ;;  %v1469_v39 = vld [vmem:[#allocation11 + $0x18] sm:$0xff]  ;;  %v2165_v27 = vld [vmem:[#allocation14 + $0x3c0] sm:$0xff] }
 0x17d   :  { %v8757_v36 = vpop.f32.mrf.mxu1  ;;  %v1473_v40 = vld [vmem:[#allocation11 + $0x38] sm:$0xff]  ;;  %v2169_v28 = vld [vmem:[#allocation14 + $0x3e0] sm:$0xff] }
 0x17e   :  { %v7917_v36 = vcombine.high %v1477_v31, %v1477_v31  ;;  %v2225_v31 = vld [vmem:[#allocation14 + $0x5a0] sm:$0xff]  ;;  %v8067_v33 = vcombine.high %v2165_v27, %v2169_v28 }
 0x195   :  { %v8775_v41 = vpop.f32.mrf.mxu0 }
 0x197   :  { %v8776_v42 = vpop.f32.mrf.mxu0  ;;  %v8797_v45 = vpop.f32.mrf.mxu1 }
 0x198   :  { %v8777_v44 = vadd.f32 %v8776_v42, %v8775_v41  ;;  %v2093_v41 = vld [vmem:[#allocation14 + $0x180] sm:$0xff] }
 0x199   :  { %v8778_v46 = vpop.f32.mrf.mxu0  ;;  %v8798_v48 = vpop.f32.mrf.mxu1  ;;  %v2097_v42 = vld [vmem:[#allocation14 + $0x1a0] sm:$0xff] }
 0x19a   :  { %v866_v47 = vadd.f32 %v8777_v44, %v826_v43  ;;  %v8799_v49 = vadd.f32 %v8798_v48, %v8797_v45  ;;  %v7995_v43 = vcombine.high %v2093_v41, %v2097_v42  ;;  %v1562_v44 = vsel %vm1542_vm0, %v7916_v37, 0  ;;  %v1462_v48 = vld [vmem:[#allocation10 + $0x68] sm:$0xff] }
 0x19b   :  { %v8779_v50 = vpop.f32.mrf.mxu0  ;;  %v8800_v51 = vpop.f32.mrf.mxu1  ;;  %v7909_v45 = vcombine.high %v1469_v39, %v1473_v40  ;;  %v7994_v46 = vcombine.low %v2093_v41, %v2097_v42  ;;  %v2149_v42 = vld [vmem:[#allocation14 + $0x340] sm:$0xff] }
 0x19c   :  { %v906_v52 = vadd.f32 %v8799_v49, %v866_v47  ;;  %v1458_v47 = vld [vmem:[#allocation10 + $0x48] sm:$0xff] }
 0x19d   :  { %v8801_v55 = vpop.f32.mrf.mxu1  ;;  %v2085_v49 = vld [vmem:[#allocation14 + $0x140] sm:$0xff] }
 0x19e   :  { %v911_v56 = vmax.f32 %v906_v52, 0.0  ;;  %v2089_v50 = vld [vmem:[#allocation14 + $0x160] sm:$0xff]  ;;  %v7908_v52 = vcombine.low %v1469_v39, %v1473_v40  ;;  %v8066_v39 = vcombine.low %v2165_v27, %v2169_v28 }
 0x19f   :  { %v2077_v51 = vld [vmem:[#allocation14 + $0x100] sm:$0xff]  ;;  %v7986_v53 = vcombine.low %v2085_v49, %v2089_v50  ;;  %v7987_v54 = vcombine.high %v2085_v49, %v2089_v50 }
 0x1a0   :  { %v10149_v57 = vpack.c.bf16 %v911_v56, %v911_v56  ;;  %v2081_v55 = vld [vmem:[#allocation14 + $0x120] sm:$0xff]  ;;  %v7937_v56 = vcombine.high %v1458_v47, %v1462_v48 }
 0x1a1   :  { %v2145_v50 = vld [vmem:[#allocation14 + $0x320] sm:$0xff] }
 0x1a2   :  { %7942 = vmatmul.mubr.msk.bf16.vlgmr.msra.gmra.mxu0 %vm1811_vm1, %v10149_v57  ;;  %v2297_v27 = vld [vmem:[#allocation14 + $0x7e0] sm:$0xff] }
 0x1a3   :  { %1910 = vmatpush1.bf16.msra.mxu0 %v7938_v18  ;;  %1929 = vmatprep.mubr.bf16.mxu0 %v9675_v17  ;;  %v1471_v18 = vld [vmem:[#allocation11 + $0x28] sm:$0xff] }
 0x1a4   :  { %1911 = vmatprep.subr.bf16.mxu0 %v7931_v58  ;;  %v7905_v22 = vcombine.high %v1467_v16, %v1471_v18  ;;  %v7904_v24 = vcombine.low %v1467_v16, %v1471_v18  ;;  %v1450_v58 = vld [vmem:[#allocation10 + $0x8] sm:$0xff] }
 0x1a5   :  { %v10182_v28 = vld [vmem:[#allocation14 + $0x9c0] sm:$0xff] }
 0x1a7   :  { %1912 = vmatpush1.bf16.msra.mxu0 %v7930_v59  ;;  %v7979_v59 = vcombine.high %v2077_v51, %v2081_v55 }
 0x1a8   :  { %5159 = vmatprep.subr.bf16.mxu0 %v8003_v35  ;;  %v2157_v35 = vld [vmem:[#allocation14 + $0x380] sm:$0xff] }
 0x1aa   :  { %7944 = vmatmul.mubr.msk.bf16.vlgmr.msra.gmra.mxu0 %vm1811_vm1, %v10149_v57 }
 0x1ab   :  { %5160 = vmatpush1.bf16.msra.mxu0 %v8002_v38  ;;  %v2213_v38 = vld [vmem:[#allocation14 + $0x540] sm:$0xff] }
 0x1ac   :  { %5161 = vmatprep.subr.bf16.mxu0 %v7995_v43  ;;  %v2153_v43 = vld [vmem:[#allocation14 + $0x360] sm:$0xff] }
 0x1af   :  { %5162 = vmatpush1.bf16.msra.mxu0 %v7994_v46  ;;  %v2209_v46 = vld [vmem:[#allocation14 + $0x520] sm:$0xff] }
 0x1b0   :  { %5163 = vmatprep.subr.bf16.mxu0 %v7987_v54  ;;  %v8050_v54 = vcombine.low %v2149_v42, %v2153_v43 }
 0x1b3   :  { %5164 = vmatpush1.bf16.msra.mxu0 %v7986_v53  ;;  %v2201_v53 = vld [vmem:[#allocation14 + $0x4e0] sm:$0xff] }
 0x1b4   :  { %5165 = vmatprep.subr.bf16.mxu0 %v7979_v59  ;;  %v2137_v59 = vld [vmem:[#allocation14 + $0x2e0] sm:$0xff] }
 0x1b5   :  { %v8819_v60 = vpop.f32.mrf.mxu0 }
 0x1b7   :  { %v8820_v61 = vpop.f32.mrf.mxu0  ;;  %v8841_v62 = vpop.f32.mrf.mxu1 }
 0x1b8   :  { %v8821_v4 = vadd.f32 %v8820_v61, %v8819_v60  ;;  %v1454_v60 = vld [vmem:[#allocation10 + $0x28] sm:$0xff] }
 0x1b9   :  { %v8822_v63 = vpop.f32.mrf.mxu0  ;;  %v8842_v0 = vpop.f32.mrf.mxu1  ;;  %v2069_v61 = vld [vmem:[#allocation14 + $0xc0] sm:$0xff] }
 0x1ba   :  { %v1362_v6 = vadd.f32 %v8821_v4, %v7847_v5  ;;  %v8843_v7 = vadd.f32 %v8842_v0, %v8841_v62  ;;  %v2073_v62 = vld [vmem:[#allocation14 + $0xe0] sm:$0xff]  ;;  %v7978_v63 = vcombine.low %v2077_v51, %v2081_v55  ;;  %v7936_v0 = vcombine.low %v1458_v47, %v1462_v48  ;;  %v1460_v5 = vld [vmem:[#allocation10 + $0x58] sm:$0xff] }
 0x1bb   :  { %v8823_v1 = vpop.f32.mrf.mxu0  ;;  %v8844_v2 = vpop.f32.mrf.mxu1  ;;  %v2065_v4 = vld [vmem:[#allocation14 + $0xa0] sm:$0xff]  ;;  %v8051_v48 = vcombine.high %v2149_v42, %v2153_v43 }
 0x1bc   :  { %v1402_v10 = vadd.f32 %v8843_v7, %v1362_v6  ;;  %v7929_v1 = vcombine.high %v1450_v58, %v1454_v60  ;;  %v7971_v2 = vcombine.high %v2069_v61, %v2073_v62  ;;  %v1464_v6 = vld [vmem:[#allocation10 + $0x78] sm:$0xff]  ;;  %5166 = vmatpush1.bf16.msra.mxu0 %v7978_v63  ;;  %v7970_v7 = vcombine.low %v2069_v61, %v2073_v62  ;;  %v2189_v61 = vld [vmem:[#allocation14 + $0x480] sm:$0xff] }
 0x1bd   :  { %v8845_v3 = vpop.f32.mrf.mxu1  ;;  %v7940_v16 = vcombine.low %v1460_v5, %v1464_v6  ;;  %v2193_v62 = vld [vmem:[#allocation14 + $0x4a0] sm:$0xff] }
 0x1be   :  { %v2061_v3 = vld [vmem:[#allocation14 + $0x80] sm:$0xff]  ;;  %5167 = vmatprep.subr.bf16.mxu0 %v7971_v2 }
 0x1bf   :  { %v2125_v2 = vld [vmem:[#allocation14 + $0x280] sm:$0xff] }
 0x1c0   :  { %5168 = vmatpush1.bf16.msra.mxu0 %v7970_v7  ;;  %v8090_v7 = vcombine.low %v2189_v61, %v2193_v62  ;;  %v2273_v42 = vld [vmem:[#allocation14 + $0x720] sm:$0xff] }
 0x1d5   :  { %v8863_v8 = vpop.f32.mrf.mxu0 }
 0x1d7   :  { %v8864_v9 = vpop.f32.mrf.mxu0 }
 0x1d8   :  { %v8865_v11 = vadd.f32 %v8864_v9, %v8863_v8  ;;  %v7928_v8 = vcombine.low %v1450_v58, %v1454_v60  ;;  %v7963_v9 = vcombine.high %v2061_v3, %v2065_v4  ;;  %v2133_v58 = vld [vmem:[#allocation14 + $0x2c0] sm:$0xff] }
 0x1d9   :  { %v8866_v12 = vpop.f32.mrf.mxu0 }
 0x1da   :  { %v1442_v13 = vadd.f32 %v8865_v11, %v1402_v10  ;;  %v7941_v10 = vcombine.high %v1460_v5, %v1464_v6  ;;  %v1452_v11 = vld [vmem:[#allocation10 + $0x18] sm:$0xff]  ;;  %5169 = vmatprep.subr.bf16.mxu0 %v7963_v9  ;;  %v8034_v5 = vcombine.low %v2133_v58, %v2137_v59  ;;  %v2117_v9 = vld [vmem:[#allocation14 + $0x240] sm:$0xff] }
 0x1db   :  { %v8867_v15 = vpop.f32.mrf.mxu0  ;;  %v1456_v12 = vld [vmem:[#allocation10 + $0x38] sm:$0xff] }
 0x1dc   :  { %v1447_v19 = vmax.f32 %v1442_v13, 0.0  ;;  %v2053_v13 = vld [vmem:[#allocation14 + $0x40] sm:$0xff]  ;;  %v7962_v15 = vcombine.low %v2061_v3, %v2065_v4  ;;  %v7933_v18 = vcombine.high %v1452_v11, %v1456_v12  ;;  %v8091_v4 = vcombine.high %v2189_v61, %v2193_v62 }
 0x1dd   :  { %v2129_v3 = vld [vmem:[#allocation14 + $0x2a0] sm:$0xff] }
 0x1de   :  { %v10158_v20 = vpack.c.bf16 %v1447_v19, %v1447_v19  ;;  %v7955_v19 = vcombine.high %v2053_v13, %v2057_v14  ;;  %5170 = vmatpush1.bf16.msra.mxu0 %v7962_v15  ;;  %v8027_v6 = vcombine.high %v2125_v2, %v2129_v3  ;;  %v10190_v61 = vld [vmem:[#allocation14 + $0xdc0] sm:$0xff] }
 0x1df   :  { %v10192_v62 = vld [vmem:[#allocation14 + $0xde0] sm:$0xff] }
 0x1e0   :  { %7919 = vmatmul.mubr.msk.bf16.vlgmr.msra.gmra.mxu1 %vm1538_vm2, %v10158_v20  ;;  %5171 = vmatprep.subr.bf16.mxu0 %v7955_v19  ;;  %v2113_v19 = vld [vmem:[#allocation14 + $0x220] sm:$0xff] }
 0x1e1   :  { %1621 = vmatpush1.bf16.msra.mxu1 %v1550_v21  ;;  %1640 = vmatprep.mubr.bf16.mxu1 %v9675_v17  ;;  %v2049_v21 = vld [vmem:[#allocation14 + $0x20] sm:$0xff] }
 0x1e2   :  { %1622 = vmatprep.subr.bf16.mxu1 %v7905_v22  ;;  %v2229_v22 = vld [vmem:[#allocation14 + $0x5c0] sm:$0xff] }
 0x1e5   :  { %1623 = vmatpush1.bf16.msra.mxu1 %v7904_v24  ;;  %v7954_v24 = vcombine.low %v2053_v13, %v2057_v14  ;;  %v2185_v13 = vld [vmem:[#allocation14 + $0x460] sm:$0xff] }
 0x1e6   :  { %7922 = vmatprep.subr.msk.bf16.mxu1 %vm1542_vm0, %v7915_v25  ;;  %v7932_v25 = vcombine.low %v1452_v11, %v1456_v12  ;;  %v2181_v12 = vld [vmem:[#allocation14 + $0x440] sm:$0xff] }
 0x1e7   :  { %5172 = vmatpush1.bf16.msra.mxu0 %v7954_v24  ;;  %v8082_v15 = vcombine.low %v2181_v12, %v2185_v13 }
 0x1e8   :  { %7921 = vmatmul.mubr.msk.bf16.vlgmr.msra.gmra.mxu1 %vm1538_vm2, %v10158_v20 }
 0x1e9   :  { %1662 = vmatpush1.bf16.msra.mxu1 %v1556_v29  ;;  %1681 = vmatprep.mubr.bf16.mxu1 %v9675_v17  ;;  %v8131_v29 = vcombine.high %v2229_v22, %v2233_v23 }
 0x1ea   :  { %1663 = vmatprep.subr.bf16.mxu1 %v7907_v30  ;;  %v2221_v30 = vld [vmem:[#allocation14 + $0x580] sm:$0xff] }
 0x1eb   :  { %v8123_v37 = vcombine.high %v2221_v30, %v2225_v31  ;;  %v8122_v41 = vcombine.low %v2221_v30, %v2225_v31  ;;  %v10184_v30 = vld [vmem:[#allocation14 + $0x9e0] sm:$0xff] }
 0x1ed   :  { %1664 = vmatpush1.bf16.msra.mxu1 %v7906_v34  ;;  %v8130_v34 = vcombine.low %v2229_v22, %v2233_v23  ;;  %v2177_v22 = vld [vmem:[#allocation14 + $0x420] sm:$0xff] }
 0x1ee   :  { %7924 = vmatprep.subr.msk.bf16.mxu1 %vm1542_vm0, %v7917_v36  ;;  %v2161_v36 = vld [vmem:[#allocation14 + $0x3a0] sm:$0xff] }
 0x1ef   :  { %v8059_v40 = vcombine.high %v2157_v35, %v2161_v36  ;;  %v8058_v47 = vcombine.low %v2157_v35, %v2161_v36  ;;  %v2289_v35 = vld [vmem:[#allocation14 + $0x7a0] sm:$0xff] }
 0x1f0   :  { %7923 = vmatmul.mubr.msk.bf16.vlgmr.msra.gmra.mxu1 %vm1538_vm2, %v10158_v20 }
 0x1f1   :  { %1703 = vmatpush1.bf16.msra.mxu1 %v1562_v44  ;;  %1722 = vmatprep.mubr.bf16.mxu1 %v9675_v17 }
 0x1f2   :  { %1704 = vmatprep.subr.bf16.mxu1 %v7909_v45  ;;  %v2205_v45 = vld [vmem:[#allocation14 + $0x500] sm:$0xff] }
 0x1f3   :  { %v8107_v51 = vcombine.high %v2205_v45, %v2209_v46 }
 0x1f5   :  { %1705 = vmatpush1.bf16.msra.mxu1 %v7908_v52  ;;  %v2197_v52 = vld [vmem:[#allocation14 + $0x4c0] sm:$0xff] }
 0x1f6   :  { %1868 = vmatprep.subr.bf16.mxu1 %v7937_v56  ;;  %v8106_v56 = vcombine.low %v2205_v45, %v2209_v46  ;;  %v8099_v60 = vcombine.high %v2197_v52, %v2201_v53  ;;  %v2261_v45 = vld [vmem:[#allocation14 + $0x6c0] sm:$0xff] }
 0x1f7   :  { %v2265_v46 = vld [vmem:[#allocation14 + $0x6e0] sm:$0xff] }
 0x1f8   :  { %7925 = vmatmul.mubr.msk.bf16.vlgmr.msra.gmra.mxu1 %vm1538_vm2, %v10158_v20  ;;  %v2045_v20 = vld [vmem:[#allocation14] sm:$0xff] }
 0x1f9   :  { %1869 = vmatpush1.bf16.msra.mxu1 %v7936_v0  ;;  %1888 = vmatprep.mubr.bf16.mxu1 %v9675_v17  ;;  %v7947_v26 = vcombine.high %v2045_v20, %v2049_v21  ;;  %v7946_v32 = vcombine.low %v2045_v20, %v2049_v21  ;;  %v8035_v0 = vcombine.high %v2133_v58, %v2137_v59  ;;  %v2173_v20 = vld [vmem:[#allocation14 + $0x400] sm:$0xff] }
 0x1fa   :  { %1870 = vmatprep.subr.bf16.mxu1 %v7929_v1  ;;  %v8098_v1 = vcombine.low %v2197_v52, %v2201_v53  ;;  %v8074_v24 = vcombine.low %v2173_v20, %v2177_v22  ;;  %v2245_v52 = vld [vmem:[#allocation14 + $0x640] sm:$0xff] }
 0x1fb   :  { %5173 = vmatprep.subr.bf16.mxu0 %v7947_v26  ;;  %v2293_v26 = vld [vmem:[#allocation14 + $0x7c0] sm:$0xff] }
 0x1fc   :  { %5174 = vmatpush1.bf16.msra.mxu0 %v7946_v32  ;;  %v8194_v31 = vcombine.low %v2293_v26, %v2297_v27  ;;  %v8258_v32 = vcombine.low %v10182_v28, %v10184_v30  ;;  %v2249_v53 = vld [vmem:[#allocation14 + $0x660] sm:$0xff] }
 0x1fd   :  { %1871 = vmatpush1.bf16.msra.mxu1 %v7928_v8  ;;  %5175 = vmatprep.subr.bf16.mxu0 %v8067_v33  ;;  %v8026_v8 = vcombine.low %v2125_v2, %v2129_v3  ;;  %v8259_v33 = vcombine.high %v10182_v28, %v10184_v30  ;;  %v2241_v58 = vld [vmem:[#allocation14 + $0x620] sm:$0xff] }
 0x1fe   :  { %1950 = vmatprep.subr.bf16.mxu1 %v7941_v10  ;;  %v2121_v10 = vld [vmem:[#allocation14 + $0x260] sm:$0xff] }
 0x1ff   :  { %v8019_v11 = vcombine.high %v2117_v9, %v2121_v10  ;;  %v8018_v14 = vcombine.low %v2117_v9, %v2121_v10  ;;  %v1981_v9 = vlaneseq }
 0x200   :  { %7943 = vmatmul.mubr.msk.bf16.vlgmr.msra.gmra.mxu1 %vm1811_vm1, %v10149_v57  ;;  %5176 = vmatpush2.bf16.msra.mxu0 %v8066_v39 }
 0x201   :  { %1951 = vmatpush1.bf16.msra.mxu1 %v7940_v16  ;;  %1970 = vmatprep.mubr.bf16.mxu1 %v9675_v17  ;;  %v2217_v17 = vld [vmem:[#allocation14 + $0x560] sm:$0xff]  ;;  %v8083_v16 = vcombine.high %v2181_v12, %v2185_v13  ;;  %v10200_v10 = vshrl.u32 %v1981_v9, 7  ;;  %v10205_v12 = vld [vmem:[#allocation13] sm:$0xff] }
 0x202   :  { %1952 = vmatprep.subr.bf16.mxu1 %v7933_v18  ;;  %v8115_v44 = vcombine.high %v2213_v38, %v2217_v17  ;;  %5177 = vmatprep.subr.bf16.mxu0 %v8059_v40  ;;  %v8114_v49 = vcombine.low %v2213_v38, %v2217_v17  ;;  %v2109_v18 = vld [vmem:[#allocation14 + $0x200] sm:$0xff] }
 0x203   :  { %v8011_v21 = vcombine.high %v2109_v18, %v2113_v19  ;;  %v8010_v23 = vcombine.low %v2109_v18, %v2113_v19  ;;  %v2277_v38 = vld [vmem:[#allocation14 + $0x740] sm:$0xff]  ;;  %v10208_v13 = vsub.s32 1, %v10200_v10 }
 0x204   :  { %5178 = vmatpush2.bf16.msra.mxu0 %v8058_v47  ;;  %v2281_v17 = vld [vmem:[#allocation14 + $0x760] sm:$0xff]  ;;  %v8162_v47 = vcombine.low %v2261_v45, %v2265_v46 }
 0x205   :  { %1953 = vmatpush1.bf16.msra.mxu1 %v7932_v25  ;;  %5179 = vmatprep.subr.bf16.mxu0 %v8051_v48  ;;  %v8075_v25 = vcombine.high %v2173_v20, %v2177_v22  ;;  %v8179_v39 = vcombine.high %v2277_v38, %v2281_v17  ;;  %v8178_v40 = vcombine.low %v2277_v38, %v2281_v17  ;;  %v2345_v38 = vld [vmem:[#allocation14 + $0x960] sm:$0xff] }
 0x206   :  { %5200 = vmatprep.subr.bf16.mxu1 %v8131_v29  ;;  %v8195_v29 = vcombine.high %v2293_v26, %v2297_v27  ;;  %v8163_v48 = vcombine.high %v2261_v45, %v2265_v46  ;;  %v1988_v18 = vrot.slane %v10205_v12, %v10208_v13  ;;  %v2349_v27 = vld [vmem:[#allocation14 + $0x980] sm:$0xff] }
 0x208   :  { %7945 = vmatmul.mubr.msk.bf16.vlgmr.msra.gmra.mxu1 %vm1811_vm1, %v10149_v57  ;;  %v2141_v57 = vld [vmem:[#allocation14 + $0x300] sm:$0xff]  ;;  %5180 = vmatpush2.bf16.msra.mxu0 %v8050_v54  ;;  %v8147_v54 = vcombine.high %v2245_v52, %v2249_v53 }
 0x209   :  { %5201 = vmatpush1.bf16.msra.mxu1 %v8130_v34  ;;  %v8043_v55 = vcombine.high %v2141_v57, %v2145_v50  ;;  %v8042_v63 = vcombine.low %v2141_v57, %v2145_v50  ;;  %v2285_v34 = vld [vmem:[#allocation14 + $0x780] sm:$0xff] }
 0x20a   :  { %5202 = vmatprep.subr.bf16.mxu1 %v8123_v37  ;;  %v8186_v36 = vcombine.low %v2285_v34, %v2289_v35  ;;  %v8187_v37 = vcombine.high %v2285_v34, %v2289_v35  ;;  %v2257_v57 = vld [vmem:[#allocation14 + $0x6a0] sm:$0xff] }
 0x20b   :  { %5181 = vmatprep.subr.bf16.mxu0 %v8043_v55  ;;  %v8146_v55 = vcombine.low %v2245_v52, %v2249_v53 }
 0x20c   :  { %5182 = vmatpush2.bf16.msra.mxu0 %v8042_v63  ;;  %v8386_v63 = vcombine.low %v10190_v61, %v10192_v62 }
 0x20d   :  { %5203 = vmatpush1.bf16.msra.mxu1 %v8122_v41  ;;  %5183 = vmatprep.subr.bf16.mxu0 %v8035_v0  ;;  %v2269_v41 = vld [vmem:[#allocation14 + $0x700] sm:$0xff]  ;;  %v8387_v0 = vcombine.high %v10190_v61, %v10192_v62 }
 0x20e   :  { %5204 = vmatprep.subr.bf16.mxu1 %v8115_v44  ;;  %v8171_v43 = vcombine.high %v2269_v41, %v2273_v42  ;;  %v8170_v44 = vcombine.low %v2269_v41, %v2273_v42 }
 0x210   :  { %5184 = vmatpush2.bf16.msra.mxu0 %v8034_v5 }
 0x211   :  { %5205 = vmatpush1.bf16.msra.mxu1 %v8114_v49  ;;  %5185 = vmatprep.subr.bf16.mxu0 %v8027_v6  ;;  %v2253_v49 = vld [vmem:[#allocation14 + $0x680] sm:$0xff] }
 0x212   :  { %5206 = vmatprep.subr.bf16.mxu1 %v8107_v51  ;;  %v8154_v50 = vcombine.low %v2253_v49, %v2257_v57  ;;  %v8155_v51 = vcombine.high %v2253_v49, %v2257_v57  ;;  %v2329_v49 = vld [vmem:[#allocation14 + $0x8e0] sm:$0xff] }
 0x214   :  { %5186 = vmatpush2.bf16.msra.mxu0 %v8026_v8 }
 0x215   :  { %5207 = vmatpush1.bf16.msra.mxu1 %v8106_v56  ;;  %5187 = vmatprep.subr.bf16.mxu0 %v8019_v11  ;;  %v2237_v56 = vld [vmem:[#allocation14 + $0x600] sm:$0xff]  ;;  %v10203_v11 = vsub.s32 0, %v10200_v10 }
 0x216   :  { %5208 = vmatprep.subr.bf16.mxu1 %v8099_v60  ;;  %v8139_v59 = vcombine.high %v2237_v56, %v2241_v58  ;;  %v8138_v60 = vcombine.low %v2237_v56, %v2241_v58  ;;  %v2321_v56 = vld [vmem:[#allocation14 + $0x8a0] sm:$0xff] }
 0x218   :  { %5188 = vmatpush2.bf16.msra.mxu0 %v8018_v14  ;;  %v1984_v14 = vrot.slane %v10205_v12, %v10203_v11 }
 0x219   :  { %5209 = vmatpush1.bf16.msra.mxu1 %v8098_v1  ;;  %5189 = vmatprep.subr.bf16.mxu0 %v8011_v21 }
 0x21a   :  { %5210 = vmatprep.subr.bf16.mxu1 %v8091_v4 }
 0x21c   :  { %5190 = vmatpush2.bf16.msra.mxu0 %v8010_v23 }
 0x21d   :  { %5211 = vmatpush1.bf16.msra.mxu1 %v8090_v7  ;;  %5241 = vmatprep.subr.bf16.mxu0 %v8259_v33 }
 0x21e   :  { %5212 = vmatprep.subr.bf16.mxu1 %v8083_v16 }
 0x221   :  { %5213 = vmatpush1.bf16.msra.mxu1 %v8082_v15 }
 0x222   :  { %5214 = vmatprep.subr.bf16.mxu1 %v8075_v25 }
 0x225   :  { %5215 = vmatpush1.bf16.msra.mxu1 %v8074_v24 }
 0x226   :  { %5216 = vmatprep.subr.bf16.mxu1 %v8195_v29  ;;  %v2353_v29 = vld [vmem:[#allocation14 + $0x9a0] sm:$0xff] }
 0x229   :  { %5217 = vmatpush2.bf16.msra.mxu1 %v8194_v31 }
 0x22a   :  { %5218 = vmatprep.subr.bf16.mxu1 %v8187_v37  ;;  %v2341_v37 = vld [vmem:[#allocation14 + $0x940] sm:$0xff] }
 0x22b   :  { %v8243_v42 = vcombine.high %v2341_v37, %v2345_v38 }
 0x22d   :  { %5219 = vmatpush2.bf16.msra.mxu1 %v8186_v36  ;;  %v8251_v36 = vcombine.high %v2349_v27, %v2353_v29 }
 0x22e   :  { %5220 = vmatprep.subr.bf16.mxu1 %v8179_v39  ;;  %v8250_v39 = vcombine.low %v2349_v27, %v2353_v29  ;;  %v2007_v27 = vsub.s32 6, %v10200_v10  ;;  %v2421_v29 = vld [vmem:[#allocation14 + $0xbc0] sm:$0xff] }
 0x231   :  { %5221 = vmatpush2.bf16.msra.mxu1 %v8178_v40  ;;  %v2003_v40 = vsub.s32 5, %v10200_v10 }
 0x232   :  { %5222 = vmatprep.subr.bf16.mxu1 %v8171_v43  ;;  %v2333_v43 = vld [vmem:[#allocation14 + $0x900] sm:$0xff] }
 0x233   :  { %v2004_v46 = vrot.slane %v10205_v12, %v2003_v40 }
 0x235   :  { %5223 = vmatpush2.bf16.msra.mxu1 %v8170_v44  ;;  %v2337_v44 = vld [vmem:[#allocation14 + $0x920] sm:$0xff] }
 0x236   :  { %5224 = vmatprep.subr.bf16.mxu1 %v8163_v48  ;;  %v8235_v28 = vcombine.high %v2333_v43, %v2337_v44 }
 0x239   :  { %5225 = vmatpush2.bf16.msra.mxu1 %v8162_v47  ;;  %v8242_v47 = vcombine.low %v2341_v37, %v2345_v38 }
 0x23a   :  { %5226 = vmatprep.subr.bf16.mxu1 %v8155_v51  ;;  %v8234_v51 = vcombine.low %v2333_v43, %v2337_v44  ;;  %v2413_v43 = vld [vmem:[#allocation14 + $0xb80] sm:$0xff] }
 0x23d   :  { %5227 = vmatpush2.bf16.msra.mxu1 %v8154_v50 }
 0x23e   :  { %5228 = vmatprep.subr.bf16.mxu1 %v8147_v54 }
 0x241   :  { %5229 = vmatpush2.bf16.msra.mxu1 %v8146_v55  ;;  %v2317_v55 = vld [vmem:[#allocation14 + $0x880] sm:$0xff] }
 0x242   :  { %5230 = vmatprep.subr.bf16.mxu1 %v8139_v59 }
 0x245   :  { %5231 = vmatpush2.bf16.msra.mxu1 %v8138_v60 }
 0x246   :  { %5282 = vmatprep.subr.bf16.mxu1 %v8387_v0 }
 0x262   :  { %v1849_v1 = vpop.f32.mrf.mxu0 }
 0x264   :  { %v1851_v2 = vpop.f32.mrf.mxu0 }
 0x266   :  { %v1853_v3 = vpop.f32.mrf.mxu0 }
 0x267   :  { %v2309_v3 = vld [vmem:[#allocation14 + $0x840] sm:$0xff] }
 0x268   :  { %v1854_v4 = vpop.f32.mrf.mxu0 }
 0x269   :  { %v2313_v4 = vld [vmem:[#allocation14 + $0x860] sm:$0xff] }
 0x26a   :  { %v10198_v5 = vpop.f32.mrf.mxu0 }
 0x26c   :  { %v1933_v6 = vpop.f32.mrf.mxu0 }
 0x26e   :  { %v1935_v7 = vpop.f32.mrf.mxu0 }
 0x26f   :  { %v8218_v7 = vcombine.low %v2317_v55, %v2321_v56 }
 0x270   :  { %v1936_v8 = vpop.f32.mrf.mxu0 }
 0x271   :  { %v10238_v8 = vsub.s32 3, %v10200_v10 }
 0x2a0   :  { %v1601_v15 = vpop.f32.mrf.mxu1 }
 0x2a1   :  { %v1850_v16 = vadd.f32 %v1849_v1, %v1601_v15  ;;  %v8219_v1 = vcombine.high %v2317_v55, %v2321_v56 }
 0x2a2   :  { %v1603_v19 = vpop.f32.mrf.mxu1 }
 0x2a3   :  { %v2021_v20 = vadd.f32 %v1984_v14, %v1850_v16  ;;  %v1852_v21 = vadd.f32 %v1851_v2, %v1603_v19  ;;  %v10235_v2 = vsub.s32 2, %v10200_v10  ;;  %v8211_v14 = vcombine.high %v2309_v3, %v2313_v4  ;;  %v2301_v16 = vld [vmem:[#allocation14 + $0x800] sm:$0xff] }
 0x2a4   :  { %v1605_v22 = vpop.f32.mrf.mxu1 }
 0x2a5   :  { %v2022_v23 = vadd.f32 %v1988_v18, %v1852_v21  ;;  %v2029_v24 = vmax.f32 %v2021_v20, 0.0  ;;  %v1992_v15 = vrot.slane %v10205_v12, %v10235_v2  ;;  %v2305_v18 = vld [vmem:[#allocation14 + $0x820] sm:$0xff]  ;;  %v1996_v21 = vrot.slane %v10205_v12, %v10238_v8 }
 0x2a6   :  { %v1606_v25 = vpop.f32.mrf.mxu1  ;;  %v8210_v22 = vcombine.low %v2309_v3, %v2313_v4 }
 0x2a7   :  { %v2030_v26 = vmax.f32 %v2022_v23, 0.0  ;;  %v10216_v34 = vpack.c.bf16 %v2029_v24, %v2029_v24  ;;  %v8203_v24 = vcombine.high %v2301_v16, %v2305_v18 }
 0x2a8   :  { %v1642_v31 = vpop.f32.mrf.mxu1 }
 0x2a9   :  { %v10214_v33 = vpack.c.bf16 %v2030_v26, %v2030_v26 }
 0x2aa   :  { %v10218_v35 = vpop.f32.mrf.mxu1 }
 0x2ab   :  { %5191 = vmatprep.mubr.bf16.mxu0 %v10214_v33 }
 0x2ac   :  { %v1646_v17 = vpop.f32.mrf.mxu1  ;;  %5192 = vmatmul.mubr.bf16.vlgmr.msra.gmra.mxu0 %v10216_v34 }
 0x2ad   :  { %5242 = vmatpush1.bf16.msra.mxu0 %v8258_v32  ;;  %v2325_v32 = vld [vmem:[#allocation14 + $0x8c0] sm:$0xff]  ;;  %v8202_v17 = vcombine.low %v2301_v16, %v2305_v18 }
 0x2ae   :  { %v1647_v41 = vpop.f32.mrf.mxu1  ;;  %5243 = vmatprep.subr.bf16.mxu0 %v8251_v36  ;;  %v8227_v53 = vcombine.high %v2325_v32, %v2329_v49  ;;  %v8226_v60 = vcombine.low %v2325_v32, %v2329_v49  ;;  %v2425_v36 = vld [vmem:[#allocation14 + $0xbe0] sm:$0xff] }
 0x2af   :  { %v2401_v18 = vld [vmem:[#allocation14 + $0xb20] sm:$0xff] }
 0x2b0   :  { %v10226_v45 = vpop.f32.mrf.mxu1 }
 0x2b1   :  { %5244 = vmatpush1.bf16.msra.mxu0 %v8250_v39 }
 0x2b2   :  { %v1685_v48 = vpop.f32.mrf.mxu1  ;;  %5245 = vmatprep.subr.bf16.mxu0 %v8243_v42  ;;  %v8323_v42 = vcombine.high %v2421_v29, %v2425_v36 }
 0x2b3   :  { %v1934_v30 = vadd.f32 %v1933_v6, %v1685_v48  ;;  %v2481_v48 = vld [vmem:[#allocation14 + $0xda0] sm:$0xff] }
 0x2b4   :  { %v1687_v57 = vpop.f32.mrf.mxu1 }
 0x2b5   :  { %v2026_v50 = vadd.f32 %v2004_v46, %v1934_v30  ;;  %5246 = vmatpush1.bf16.msra.mxu0 %v8242_v47  ;;  %v2417_v46 = vld [vmem:[#allocation14 + $0xba0] sm:$0xff]  ;;  %v8322_v57 = vcombine.low %v2421_v29, %v2425_v36 }
 0x2b6   :  { %v1688_v52 = vpop.f32.mrf.mxu1  ;;  %5247 = vmatprep.subr.bf16.mxu0 %v8235_v28  ;;  %v2477_v47 = vld [vmem:[#allocation14 + $0xd80] sm:$0xff] }
 0x2b7   :  { %v2034_v54 = vmax.f32 %v2026_v50, 0.0  ;;  %v8315_v52 = vcombine.high %v2413_v43, %v2417_v46 }
 0x2b8   :  { %v1724_v58 = vpop.f32.mrf.mxu1 }
 0x2b9   :  { %v10231_v59 = vpack.c.bf16 %v2034_v54, %v2034_v54  ;;  %5248 = vmatpush1.bf16.msra.mxu0 %v8234_v51  ;;  %v2405_v54 = vld [vmem:[#allocation14 + $0xb40] sm:$0xff] }
 0x2ba   :  { %v1726_v0 = vpop.f32.mrf.mxu1  ;;  %5249 = vmatprep.subr.bf16.mxu0 %v8227_v53  ;;  %v8379_v53 = vcombine.high %v2477_v47, %v2481_v48 }
 0x2bb   :  { %5273 = vmatprep.mubr.bf16.mxu0 %v10231_v59 }
 0x2bc   :  { %v1728_v6 = vpop.f32.mrf.mxu1 }
 0x2bd   :  { %5250 = vmatpush1.bf16.msra.mxu0 %v8226_v60  ;;  %v2409_v60 = vld [vmem:[#allocation14 + $0xb60] sm:$0xff]  ;;  %v8314_v6 = vcombine.low %v2413_v43, %v2417_v46  ;;  %v1999_v43 = vsub.s32 4, %v10200_v10 }
 0x2be   :  { %v1729_v9 = vpop.f32.mrf.mxu1  ;;  %5251 = vmatprep.subr.bf16.mxu0 %v8219_v1  ;;  %v2473_v1 = vld [vmem:[#allocation14 + $0xd60] sm:$0xff] }
 0x2c0   :  { %v1890_v19 = vpop.f32.mrf.mxu1 }
 0x2c1   :  { %v1891_v20 = vadd.f32 %v1890_v19, %v1642_v31  ;;  %5252 = vmatpush1.bf16.msra.mxu0 %v8218_v7  ;;  %v2011_v31 = vsub.s32 7, %v10200_v10  ;;  %v8378_v7 = vcombine.low %v2477_v47, %v2481_v48  ;;  %v2461_v19 = vld [vmem:[#allocation14 + $0xd00] sm:$0xff] }
 0x2c2   :  { %v1892_v23 = vpop.f32.mrf.mxu1  ;;  %5253 = vmatprep.subr.bf16.mxu0 %v8211_v14  ;;  %v2373_v48 = vld [vmem:[#allocation14 + $0xa40] sm:$0xff] }
 0x2c3   :  { %v2023_v25 = vadd.f32 %v1992_v15, %v1891_v20  ;;  %v1893_v26 = vadd.f32 %v1892_v23, %v10218_v35  ;;  %v2008_v35 = vrot.slane %v10205_v12, %v2007_v27  ;;  %v2012_v49 = vrot.slane %v10205_v12, %v2011_v31  ;;  %v2397_v15 = vld [vmem:[#allocation14 + $0xb00] sm:$0xff] }
 0x2c4   :  { %v1894_v37 = vpop.f32.mrf.mxu1  ;;  %v2465_v20 = vld [vmem:[#allocation14 + $0xd20] sm:$0xff]  ;;  %v8299_v61 = vcombine.high %v2397_v15, %v2401_v18  ;;  %v8298_v29 = vcombine.low %v2397_v15, %v2401_v18 }
 0x2c5   :  { %v2024_v38 = vadd.f32 %v1996_v21, %v1893_v26  ;;  %5254 = vmatpush1.bf16.msra.mxu0 %v8210_v22  ;;  %v2031_v39 = vmax.f32 %v2023_v25, 0.0  ;;  %v8306_v22 = vcombine.low %v2405_v54, %v2409_v60  ;;  %v8363_v62 = vcombine.high %v2461_v19, %v2465_v20  ;;  %v2453_v25 = vld [vmem:[#allocation14 + $0xcc0] sm:$0xff] }
 0x2c6   :  { %v1895_v41 = vpop.f32.mrf.mxu1  ;;  %5255 = vmatprep.subr.bf16.mxu0 %v8203_v24  ;;  %v2393_v24 = vld [vmem:[#allocation14 + $0xae0] sm:$0xff]  ;;  %v8362_v36 = vcombine.low %v2461_v19, %v2465_v20 }
 0x2c7   :  { %v2032_v44 = vmax.f32 %v2024_v38, 0.0  ;;  %v10255_v50 = vpack.c.bf16 %v2031_v39, %v2031_v39  ;;  %v2457_v26 = vld [vmem:[#allocation14 + $0xce0] sm:$0xff] }
 0x2c8   :  { %v1972_v28 = vpop.f32.mrf.mxu1  ;;  %v8355_v38 = vcombine.high %v2453_v25, %v2457_v26  ;;  %v2385_v39 = vld [vmem:[#allocation14 + $0xaa0] sm:$0xff] }
 0x2c9   :  { %v10250_v30 = vpack.c.bf16 %v2032_v44, %v2032_v44  ;;  %v1973_v32 = vadd.f32 %v1972_v28, %v1724_v58  ;;  %5256 = vmatpush1.bf16.msra.mxu0 %v8202_v17  ;;  %v2469_v58 = vld [vmem:[#allocation14 + $0xd40] sm:$0xff] }
 0x2ca   :  { %v1974_v51 = vpop.f32.mrf.mxu1  ;;  %5257 = vmatprep.subr.bf16.mxu0 %v8323_v42  ;;  %v8371_v14 = vcombine.high %v2469_v58, %v2473_v1  ;;  %v8370_v23 = vcombine.low %v2469_v58, %v2473_v1  ;;  %v2381_v17 = vld [vmem:[#allocation14 + $0xa80] sm:$0xff] }
 0x2cb   :  { %v10257_v55 = vadd.f32 %v2008_v35, %v1973_v32  ;;  %v1975_v56 = vadd.f32 %v1974_v51, %v1726_v0  ;;  %5232 = vmatprep.mubr.bf16.mxu1 %v10250_v30  ;;  %v8307_v0 = vcombine.high %v2405_v54, %v2409_v60  ;;  %v2445_v41 = vld [vmem:[#allocation14 + $0xc80] sm:$0xff]  ;;  %v8354_v35 = vcombine.low %v2453_v25, %v2457_v26 }
 0x2cc   :  { %v1976_v3 = vpop.f32.mrf.mxu1  ;;  %5233 = vmatmul.mubr.bf16.vlgmr.msra.gmra.mxu1 %v10255_v50  ;;  %v2449_v42 = vld [vmem:[#allocation14 + $0xca0] sm:$0xff]  ;;  %v8283_v46 = vcombine.high %v2381_v17, %v2385_v39  ;;  %v8282_v51 = vcombine.low %v2381_v17, %v2385_v39  ;;  %v2090_v17 = vld [vmem:[#allocation14 + $0x168] sm:$0xff] }
 0x2cd   :  { %v2028_v4 = vadd.f32 %v2012_v49, %v1975_v56  ;;  %5258 = vmatpush2.bf16.msra.mxu0 %v8322_v57  ;;  %5283 = vmatpush1.bf16.msra.mxu1 %v8386_v63  ;;  %v2389_v63 = vld [vmem:[#allocation14 + $0xac0] sm:$0xff]  ;;  %v8347_v47 = vcombine.high %v2445_v41, %v2449_v42  ;;  %v2000_v57 = vrot.slane %v10205_v12, %v1999_v43 }
 0x2ce   :  { %v1977_v9 = vpop.f32.mrf.mxu1  ;;  %5259 = vmatprep.subr.bf16.mxu0 %v8315_v52  ;;  %5284 = vmatprep.subr.bf16.mxu1 %v8379_v53  ;;  %v8291_v37 = vcombine.high %v2389_v63, %v2393_v24  ;;  %v8290_v44 = vcombine.low %v2389_v63, %v2393_v24  ;;  %v2377_v28 = vld [vmem:[#allocation14 + $0xa60] sm:$0xff]  ;;  %v8346_v52 = vcombine.low %v2445_v41, %v2449_v42 }
 0x2cf   :  { %v2036_v16 = vmax.f32 %v2028_v4, 0.0  ;;  %v2437_v32 = vld [vmem:[#allocation14 + $0xc40] sm:$0xff]  ;;  %v1932_v53 = vadd.f32 %v10198_v5, %v10226_v45  ;;  %v8275_v54 = vcombine.high %v2373_v48, %v2377_v28  ;;  %v8274_v4 = vcombine.low %v2373_v48, %v2377_v28  ;;  %v2102_v5 = vld [vmem:[#allocation14 + $0x1c8] sm:$0xff] }
 0x2d0   :  { %v2441_v49 = vld [vmem:[#allocation14 + $0xc60] sm:$0xff]  ;;  %v2106_v45 = vld [vmem:[#allocation14 + $0x1e8] sm:$0xff] }
 0x2d1   :  { %v10264_v21 = vpack.c.bf16 %v2036_v16, %v2036_v16  ;;  %5260 = vmatpush2.bf16.msra.mxu0 %v8314_v6  ;;  %5285 = vmatpush1.bf16.msra.mxu1 %v8378_v7  ;;  %v8339_v56 = vcombine.high %v2437_v32, %v2441_v49  ;;  %v2365_v60 = vld [vmem:[#allocation14 + $0xa00] sm:$0xff]  ;;  %v8338_v6 = vcombine.low %v2437_v32, %v2441_v49  ;;  %v2082_v48 = vld [vmem:[#allocation14 + $0x128] sm:$0xff] }
 0x2d2   :  { %5261 = vmatprep.subr.bf16.mxu0 %v8307_v0  ;;  %5286 = vmatprep.subr.bf16.mxu1 %v8371_v14  ;;  %v2369_v58 = vld [vmem:[#allocation14 + $0xa20] sm:$0xff]  ;;  %v2025_v12 = vadd.f32 %v2000_v57, %v1932_v53  ;;  %v8005_v20 = vcombine.high %v2102_v5, %v2106_v45  ;;  %v8004_v24 = vcombine.low %v2102_v5, %v2106_v45  ;;  %v2070_v53 = vld [vmem:[#allocation14 + $0xc8] sm:$0xff] }
 0x2d3   :  { %5314 = vmatprep.mubr.bf16.mxu1 %v10264_v21  ;;  %v2429_v1 = vld [vmem:[#allocation14 + $0xc00] sm:$0xff]  ;;  %v8267_v7 = vcombine.high %v2365_v60, %v2369_v58  ;;  %v8266_v15 = vcombine.low %v2365_v60, %v2369_v58 }
 0x2d4   :  { %v2433_v3 = vld [vmem:[#allocation14 + $0xc20] sm:$0xff]  ;;  %v2033_v18 = vmax.f32 %v2025_v12, 0.0  ;;  %v2066_v12 = vld [vmem:[#allocation14 + $0xa8] sm:$0xff] }
 0x2d5   :  { %5262 = vmatpush2.bf16.msra.mxu0 %v8306_v22  ;;  %5287 = vmatpush1.bf16.msra.mxu1 %v8370_v23  ;;  %v8331_v9 = vcombine.high %v2429_v1, %v2433_v3  ;;  %v2549_v0 = vld [vmem:[#allocation14 + $0xfc0] sm:$0xff]  ;;  %v8330_v16 = vcombine.low %v2429_v1, %v2433_v3 }
 0x2d6   :  { %5263 = vmatprep.subr.bf16.mxu0 %v8299_v61  ;;  %5288 = vmatprep.subr.bf16.mxu1 %v8363_v62  ;;  %v2553_v14 = vld [vmem:[#allocation14 + $0xfe0] sm:$0xff]  ;;  %v2094_v61 = vld [vmem:[#allocation14 + $0x188] sm:$0xff]  ;;  %v10273_v25 = vpack.c.bf16 %v2033_v18, %v2033_v18 }
 0x2d7   :  { %v8451_v19 = vcombine.high %v2549_v0, %v2553_v14  ;;  %v2541_v22 = vld [vmem:[#allocation14 + $0xf80] sm:$0xff]  ;;  %v2098_v62 = vld [vmem:[#allocation14 + $0x1a8] sm:$0xff]  ;;  %v8450_v63 = vcombine.low %v2549_v0, %v2553_v14 }
 0x2d8   :  { %v2545_v23 = vld [vmem:[#allocation14 + $0xfa0] sm:$0xff]  ;;  %v7996_v41 = vcombine.low %v2094_v61, %v2098_v62 }
 0x2d9   :  { %5264 = vmatpush2.bf16.msra.mxu0 %v8298_v29  ;;  %5289 = vmatpush1.bf16.msra.mxu1 %v8362_v36  ;;  %v8443_v26 = vcombine.high %v2541_v22, %v2545_v23  ;;  %v2533_v29 = vld [vmem:[#allocation14 + $0xf40] sm:$0xff]  ;;  %v7997_v36 = vcombine.high %v2094_v61, %v2098_v62  ;;  %v8442_v39 = vcombine.low %v2541_v22, %v2545_v23  ;;  %v2046_v62 = vld [vmem:[#allocation14 + $0x8] sm:$0xff] }
 0x2da   :  { %5265 = vmatprep.subr.bf16.mxu0 %v8291_v37  ;;  %5290 = vmatprep.subr.bf16.mxu1 %v8355_v38  ;;  %v2537_v37 = vld [vmem:[#allocation14 + $0xf60] sm:$0xff]  ;;  %v2086_v38 = vld [vmem:[#allocation14 + $0x148] sm:$0xff] }
 0x2db   :  { %v8435_v42 = vcombine.high %v2533_v29, %v2537_v37  ;;  %v8434_v28 = vcombine.low %v2533_v29, %v2537_v37  ;;  %v7988_v32 = vcombine.low %v2086_v38, %v2090_v17  ;;  %v2509_v3 = vld [vmem:[#allocation14 + $0xe80] sm:$0xff]  ;;  %v2166_v37 = vld [vmem:[#allocation14 + $0x3c8] sm:$0xff] }
 0x2dc   :  { %v2501_v5 = vld [vmem:[#allocation14 + $0xe40] sm:$0xff] }
 0x2dd   :  { %5266 = vmatpush2.bf16.msra.mxu0 %v8290_v44  ;;  %5291 = vmatpush1.bf16.msra.mxu1 %v8354_v35  ;;  %v7989_v44 = vcombine.high %v2086_v38, %v2090_v17  ;;  %v2525_v35 = vld [vmem:[#allocation14 + $0xf00] sm:$0xff]  ;;  %v2170_v38 = vld [vmem:[#allocation14 + $0x3e8] sm:$0xff] }
 0x2de   :  { %5267 = vmatprep.subr.bf16.mxu0 %v8283_v46  ;;  %5292 = vmatprep.subr.bf16.mxu1 %v8347_v47  ;;  %v2529_v46 = vld [vmem:[#allocation14 + $0xf20] sm:$0xff]  ;;  %v2078_v47 = vld [vmem:[#allocation14 + $0x108] sm:$0xff] }
 0x2df   :  { %v8427_v49 = vcombine.high %v2525_v35, %v2529_v46  ;;  %v7981_v57 = vcombine.high %v2078_v47, %v2082_v48  ;;  %v7980_v60 = vcombine.low %v2078_v47, %v2082_v48  ;;  %v2505_v45 = vld [vmem:[#allocation14 + $0xe60] sm:$0xff]  ;;  %v2230_v17 = vld [vmem:[#allocation14 + $0x5c8] sm:$0xff] }
 0x2e0   :  { %v2493_v23 = vld [vmem:[#allocation14 + $0xe00] sm:$0xff]  ;;  %v2158_v47 = vld [vmem:[#allocation14 + $0x388] sm:$0xff] }
 0x2e1   :  { %5268 = vmatpush2.bf16.msra.mxu0 %v8282_v51  ;;  %5293 = vmatpush1.bf16.msra.mxu1 %v8346_v52  ;;  %v2517_v51 = vld [vmem:[#allocation14 + $0xec0] sm:$0xff]  ;;  %v2162_v48 = vld [vmem:[#allocation14 + $0x3a8] sm:$0xff] }
 0x2e2   :  { %5269 = vmatprep.subr.bf16.mxu0 %v8275_v54  ;;  %5294 = vmatprep.subr.bf16.mxu1 %v8339_v56  ;;  %v2521_v52 = vld [vmem:[#allocation14 + $0xee0] sm:$0xff]  ;;  %v2074_v54 = vld [vmem:[#allocation14 + $0xe8] sm:$0xff]  ;;  %v8426_v56 = vcombine.low %v2525_v35, %v2529_v46  ;;  %v8069_v35 = vcombine.high %v2166_v37, %v2170_v38 }
 0x2e3   :  { %v8419_v58 = vcombine.high %v2517_v51, %v2521_v52  ;;  %v7973_v1 = vcombine.high %v2070_v53, %v2074_v54  ;;  %v2497_v61 = vld [vmem:[#allocation14 + $0xe20] sm:$0xff] }
 0x2e4   :  { %v8395_v29 = vcombine.high %v2493_v23, %v2497_v61 }
 0x2e5   :  { %5270 = vmatpush2.bf16.msra.mxu0 %v8274_v4  ;;  %5295 = vmatpush1.bf16.msra.mxu1 %v8338_v6  ;;  %v2513_v4 = vld [vmem:[#allocation14 + $0xea0] sm:$0xff]  ;;  %v2062_v6 = vld [vmem:[#allocation14 + $0x88] sm:$0xff] }
 0x2e6   :  { %5271 = vmatprep.subr.bf16.mxu0 %v8267_v7  ;;  %5296 = vmatprep.subr.bf16.mxu1 %v8331_v9  ;;  %v8418_v7 = vcombine.low %v2517_v51, %v2521_v52  ;;  %v7972_v9 = vcombine.low %v2070_v53, %v2074_v54  ;;  %v8411_v0 = vcombine.high %v2509_v3, %v2513_v4  ;;  %v2150_v53 = vld [vmem:[#allocation14 + $0x348] sm:$0xff] }
 0x2e7   :  { %v7965_v14 = vcombine.high %v2062_v6, %v2066_v12  ;;  %v8410_v18 = vcombine.low %v2509_v3, %v2513_v4  ;;  %v8061_v52 = vcombine.high %v2158_v47, %v2162_v48 }
 0x2e9   :  { %5272 = vmatpush2.bf16.msra.mxu0 %v8266_v15  ;;  %5297 = vmatpush1.bf16.msra.mxu1 %v8330_v16  ;;  %v2054_v15 = vld [vmem:[#allocation14 + $0x48] sm:$0xff] }
 0x2ea   :  { %5298 = vmatprep.subr.bf16.mxu1 %v8451_v19  ;;  %5323 = vmatprep.subr.bf16.mxu0 %v8005_v20  ;;  %v2058_v16 = vld [vmem:[#allocation14 + $0x68] sm:$0xff]  ;;  %v7964_v19 = vcombine.low %v2062_v6, %v2066_v12  ;;  %v8403_v20 = vcombine.high %v2501_v5, %v2505_v45 }
 0x2eb   :  { %v7957_v22 = vcombine.high %v2054_v15, %v2058_v16  ;;  %v2142_v6 = vld [vmem:[#allocation14 + $0x308] sm:$0xff] }
 0x2ec   :  { %5274 = vmatmul.mubr.bf16.vlgmr.msra.gmra.mxu0 %v10273_v25  ;;  %v2146_v12 = vld [vmem:[#allocation14 + $0x328] sm:$0xff] }
 0x2ed   :  { %5299 = vmatpush2.bf16.msra.mxu1 %v8450_v63  ;;  %5324 = vmatpush1.bf16.msra.mxu0 %v8004_v24  ;;  %v2050_v63 = vld [vmem:[#allocation14 + $0x28] sm:$0xff]  ;;  %v8402_v24 = vcombine.low %v2501_v5, %v2505_v45  ;;  %v8045_v5 = vcombine.high %v2142_v6, %v2146_v12 }
 0x2ee   :  { %5355 = vmatprep.mubr.bf16.mxu0 %v10214_v33  ;;  %5300 = vmatprep.subr.bf16.mxu1 %v8443_v26  ;;  %v7956_v26 = vcombine.low %v2054_v15, %v2058_v16  ;;  %v2134_v15 = vld [vmem:[#allocation14 + $0x2c8] sm:$0xff] }
 0x2ef   :  { %5325 = vmatprep.subr.bf16.mxu0 %v7997_v36  ;;  %v7949_v36 = vcombine.high %v2046_v62, %v2050_v63  ;;  %v2138_v16 = vld [vmem:[#allocation14 + $0x2e8] sm:$0xff] }
 0x2f1   :  { %5301 = vmatpush2.bf16.msra.mxu1 %v8442_v39  ;;  %5326 = vmatpush1.bf16.msra.mxu0 %v7996_v41  ;;  %v2234_v39 = vld [vmem:[#allocation14 + $0x5e8] sm:$0xff]  ;;  %v8394_v41 = vcombine.low %v2493_v23, %v2497_v61  ;;  %v8037_v23 = vcombine.high %v2134_v15, %v2138_v16 }
 0x2f2   :  { %5302 = vmatprep.subr.bf16.mxu1 %v8435_v42  ;;  %5327 = vmatprep.subr.bf16.mxu0 %v7989_v44  ;;  %v7948_v42 = vcombine.low %v2046_v62, %v2050_v63  ;;  %v2035_v44 = vmax.f32 %v10257_v55, 0.0  ;;  %v8133_v46 = vcombine.high %v2230_v17, %v2234_v39  ;;  %v2154_v55 = vld [vmem:[#allocation14 + $0x368] sm:$0xff] }
 0x2f3   :  { %v8053_v3 = vcombine.high %v2150_v53, %v2154_v55  ;;  %v2126_v62 = vld [vmem:[#allocation14 + $0x288] sm:$0xff] }
 0x2f4   :  { %v10278_v51 = vpack.c.bf16 %v2035_v44, %v2035_v44  ;;  %v2130_v63 = vld [vmem:[#allocation14 + $0x2a8] sm:$0xff] }
 0x2f5   :  { %5303 = vmatpush2.bf16.msra.mxu1 %v8434_v28  ;;  %5328 = vmatpush1.bf16.msra.mxu0 %v7988_v32  ;;  %v2222_v28 = vld [vmem:[#allocation14 + $0x588] sm:$0xff]  ;;  %v8028_v44 = vcombine.low %v2126_v62, %v2130_v63 }
 0x2f6   :  { %5304 = vmatprep.subr.bf16.mxu1 %v8427_v49  ;;  %5329 = vmatprep.subr.bf16.mxu0 %v7981_v57  ;;  %v2226_v32 = vld [vmem:[#allocation14 + $0x5a8] sm:$0xff]  ;;  %v8068_v49 = vcombine.low %v2166_v37, %v2170_v38  ;;  %v8132_v57 = vcombine.low %v2230_v17, %v2234_v39  ;;  %v8029_v37 = vcombine.high %v2126_v62, %v2130_v63 }
 0x2f7   :  { %v8125_v54 = vcombine.high %v2222_v28, %v2226_v32  ;;  %v2118_v17 = vld [vmem:[#allocation14 + $0x248] sm:$0xff] }
 0x2f8   :  { %v2122_v39 = vld [vmem:[#allocation14 + $0x268] sm:$0xff] }
 0x2f9   :  { %5305 = vmatpush2.bf16.msra.mxu1 %v8426_v56  ;;  %5330 = vmatpush1.bf16.msra.mxu0 %v7980_v60  ;;  %v2214_v56 = vld [vmem:[#allocation14 + $0x548] sm:$0xff] }
 0x2fa   :  { %5306 = vmatprep.subr.bf16.mxu1 %v8419_v58  ;;  %5331 = vmatprep.subr.bf16.mxu0 %v7973_v1  ;;  %v2218_v60 = vld [vmem:[#allocation14 + $0x568] sm:$0xff]  ;;  %v8060_v58 = vcombine.low %v2158_v47, %v2162_v48  ;;  %v8124_v1 = vcombine.low %v2222_v28, %v2226_v32 }
 0x2fb   :  { %v8117_v4 = vcombine.high %v2214_v56, %v2218_v60  ;;  %v2110_v48 = vld [vmem:[#allocation14 + $0x208] sm:$0xff] }
 0x2fc   :  { %v2114_v28 = vld [vmem:[#allocation14 + $0x228] sm:$0xff] }
 0x2fd   :  { %5307 = vmatpush2.bf16.msra.mxu1 %v8418_v7  ;;  %5332 = vmatpush1.bf16.msra.mxu0 %v7972_v9  ;;  %v2206_v7 = vld [vmem:[#allocation14 + $0x508] sm:$0xff] }
 0x2fe   :  { %5308 = vmatprep.subr.bf16.mxu1 %v8411_v0  ;;  %5333 = vmatprep.subr.bf16.mxu0 %v7965_v14  ;;  %v2210_v9 = vld [vmem:[#allocation14 + $0x528] sm:$0xff]  ;;  %v8052_v0 = vcombine.low %v2150_v53, %v2154_v55  ;;  %v8116_v14 = vcombine.low %v2214_v56, %v2218_v60  ;;  %v8013_v53 = vcombine.high %v2110_v48, %v2114_v28 }
 0x2ff   :  { %v8109_v45 = vcombine.high %v2206_v7, %v2210_v9  ;;  %v2174_v32 = vld [vmem:[#allocation14 + $0x408] sm:$0xff] }
 0x300   :  { %v2294_v55 = vld [vmem:[#allocation14 + $0x7c8] sm:$0xff] }
 0x301   :  { %5309 = vmatpush2.bf16.msra.mxu1 %v8410_v18  ;;  %5334 = vmatpush1.bf16.msra.mxu0 %v7964_v19  ;;  %v2198_v18 = vld [vmem:[#allocation14 + $0x4c8] sm:$0xff] }
 0x302   :  { %5310 = vmatprep.subr.bf16.mxu1 %v8403_v20  ;;  %5335 = vmatprep.subr.bf16.mxu0 %v7957_v22  ;;  %v2202_v19 = vld [vmem:[#allocation14 + $0x4e8] sm:$0xff]  ;;  %v8044_v20 = vcombine.low %v2142_v6, %v2146_v12  ;;  %v8108_v22 = vcombine.low %v2206_v7, %v2210_v9 }
 0x303   :  { %v8101_v61 = vcombine.high %v2198_v18, %v2202_v19  ;;  %v2298_v56 = vld [vmem:[#allocation14 + $0x7e8] sm:$0xff] }
 0x304   :  { %v2358_v60 = vld [vmem:[#allocation14 + $0x9c8] sm:$0xff] }
 0x305   :  { %5311 = vmatpush2.bf16.msra.mxu1 %v8402_v24  ;;  %5336 = vmatpush1.bf16.msra.mxu0 %v7956_v26  ;;  %v2190_v24 = vld [vmem:[#allocation14 + $0x488] sm:$0xff] }
 0x306   :  { %5312 = vmatprep.subr.bf16.mxu1 %v8395_v29  ;;  %5337 = vmatprep.subr.bf16.mxu0 %v7949_v36  ;;  %v2194_v26 = vld [vmem:[#allocation14 + $0x4a8] sm:$0xff]  ;;  %v8036_v29 = vcombine.low %v2134_v15, %v2138_v16  ;;  %v8100_v36 = vcombine.low %v2198_v18, %v2202_v19 }
 0x307   :  { %v8093_v38 = vcombine.high %v2190_v24, %v2194_v26  ;;  %v2286_v12 = vld [vmem:[#allocation14 + $0x788] sm:$0xff] }
 0x308   :  { %v2290_v7 = vld [vmem:[#allocation14 + $0x7a8] sm:$0xff] }
 0x309   :  { %5313 = vmatpush2.bf16.msra.mxu1 %v8394_v41  ;;  %5338 = vmatpush1.bf16.msra.mxu0 %v7948_v42  ;;  %v2182_v41 = vld [vmem:[#allocation14 + $0x448] sm:$0xff] }
 0x30a   :  { %5339 = vmatprep.subr.bf16.mxu0 %v8069_v35  ;;  %5364 = vmatprep.subr.bf16.mxu1 %v8133_v46  ;;  %v2186_v42 = vld [vmem:[#allocation14 + $0x468] sm:$0xff]  ;;  %v8092_v35 = vcombine.low %v2190_v24, %v2194_v26  ;;  %v8021_v46 = vcombine.high %v2118_v17, %v2122_v39 }
 0x30b   :  { %v8085_v47 = vcombine.high %v2182_v41, %v2186_v42  ;;  %v2350_v9 = vld [vmem:[#allocation14 + $0x988] sm:$0xff] }
 0x30c   :  { %5315 = vmatmul.mubr.bf16.vlgmr.msra.gmra.mxu1 %v10278_v51  ;;  %v2278_v15 = vld [vmem:[#allocation14 + $0x748] sm:$0xff] }
 0x30d   :  { %5340 = vmatpush2.bf16.msra.mxu0 %v8068_v49  ;;  %5365 = vmatpush1.bf16.msra.mxu1 %v8132_v57  ;;  %v2178_v49 = vld [vmem:[#allocation14 + $0x428] sm:$0xff]  ;;  %v8020_v57 = vcombine.low %v2118_v17, %v2122_v39 }
 0x30e   :  { %5396 = vmatprep.mubr.bf16.mxu1 %v10250_v30  ;;  %5341 = vmatprep.subr.bf16.mxu0 %v8061_v52  ;;  %v8084_v52 = vcombine.low %v2182_v41, %v2186_v42  ;;  %v2282_v18 = vld [vmem:[#allocation14 + $0x768] sm:$0xff] }
 0x30f   :  { %5366 = vmatprep.subr.bf16.mxu1 %v8125_v54  ;;  %v8077_v54 = vcombine.high %v2174_v32, %v2178_v49  ;;  %v2342_v19 = vld [vmem:[#allocation14 + $0x948] sm:$0xff] }
 0x310   :  { %v2270_v63 = vld [vmem:[#allocation14 + $0x708] sm:$0xff] }
 0x311   :  { %5342 = vmatpush2.bf16.msra.mxu0 %v8060_v58  ;;  %5367 = vmatpush1.bf16.msra.mxu1 %v8124_v1  ;;  %v2362_v58 = vld [vmem:[#allocation14 + $0x9e8] sm:$0xff]  ;;  %v8012_v1 = vcombine.low %v2110_v48, %v2114_v28 }
 0x312   :  { %5343 = vmatprep.subr.bf16.mxu0 %v8053_v3  ;;  %5368 = vmatprep.subr.bf16.mxu1 %v8117_v4  ;;  %v8076_v3 = vcombine.low %v2174_v32, %v2178_v49  ;;  %v8197_v4 = vcombine.high %v2294_v55, %v2298_v56  ;;  %v8261_v6 = vcombine.high %v2358_v60, %v2362_v58  ;;  %v2274_v24 = vld [vmem:[#allocation14 + $0x728] sm:$0xff] }
 0x313   :  { %v2334_v26 = vld [vmem:[#allocation14 + $0x908] sm:$0xff] }
 0x314   :  { %v2262_v39 = vld [vmem:[#allocation14 + $0x6c8] sm:$0xff] }
 0x315   :  { %5344 = vmatpush2.bf16.msra.mxu0 %v8052_v0  ;;  %5369 = vmatpush1.bf16.msra.mxu1 %v8116_v14  ;;  %v2354_v0 = vld [vmem:[#allocation14 + $0x9a8] sm:$0xff]  ;;  %v8196_v14 = vcombine.low %v2294_v55, %v2298_v56 }
 0x316   :  { %5345 = vmatprep.subr.bf16.mxu0 %v8045_v5  ;;  %5370 = vmatprep.subr.bf16.mxu1 %v8109_v45  ;;  %v8260_v5 = vcombine.low %v2358_v60, %v2362_v58  ;;  %v8189_v45 = vcombine.high %v2286_v12, %v2290_v7  ;;  %v8253_v16 = vcombine.high %v2350_v9, %v2354_v0  ;;  %v2266_v41 = vld [vmem:[#allocation14 + $0x6e8] sm:$0xff] }
 0x317   :  { %v2326_v42 = vld [vmem:[#allocation14 + $0x8c8] sm:$0xff] }
 0x318   :  { %v2254_v28 = vld [vmem:[#allocation14 + $0x688] sm:$0xff] }
 0x319   :  { %5346 = vmatpush2.bf16.msra.mxu0 %v8044_v20  ;;  %5371 = vmatpush1.bf16.msra.mxu1 %v8108_v22  ;;  %v2346_v20 = vld [vmem:[#allocation14 + $0x968] sm:$0xff]  ;;  %v8188_v22 = vcombine.low %v2286_v12, %v2290_v7 }
 0x31a   :  { %5347 = vmatprep.subr.bf16.mxu0 %v8037_v23  ;;  %5372 = vmatprep.subr.bf16.mxu1 %v8101_v61  ;;  %v8252_v23 = vcombine.low %v2350_v9, %v2354_v0  ;;  %v8181_v61 = vcombine.high %v2278_v15, %v2282_v18  ;;  %v8245_v62 = vcombine.high %v2342_v19, %v2346_v20  ;;  %v2258_v32 = vld [vmem:[#allocation14 + $0x6a8] sm:$0xff] }
 0x31b   :  { %v2318_v49 = vld [vmem:[#allocation14 + $0x888] sm:$0xff] }
 0x31c   :  { %v2246_v56 = vld [vmem:[#allocation14 + $0x648] sm:$0xff] }
 0x31d   :  { %5348 = vmatpush2.bf16.msra.mxu0 %v8036_v29  ;;  %5373 = vmatpush1.bf16.msra.mxu1 %v8100_v36  ;;  %v2338_v29 = vld [vmem:[#allocation14 + $0x928] sm:$0xff]  ;;  %v8180_v36 = vcombine.low %v2278_v15, %v2282_v18 }
 0x31e   :  { %5349 = vmatprep.subr.bf16.mxu0 %v8029_v37  ;;  %5374 = vmatprep.subr.bf16.mxu1 %v8093_v38  ;;  %v8244_v37 = vcombine.low %v2342_v19, %v2346_v20  ;;  %v8173_v38 = vcombine.high %v2270_v63, %v2274_v24  ;;  %v8237_v17 = vcombine.high %v2334_v26, %v2338_v29  ;;  %v2250_v60 = vld [vmem:[#allocation14 + $0x668] sm:$0xff] }
 0x31f   :  { %v2310_v58 = vld [vmem:[#allocation14 + $0x848] sm:$0xff] }
 0x320   :  { %v2238_v7 = vld [vmem:[#allocation14 + $0x608] sm:$0xff] }
 0x321   :  { %5350 = vmatpush2.bf16.msra.mxu0 %v8028_v44  ;;  %5375 = vmatpush1.bf16.msra.mxu1 %v8092_v35  ;;  %v2330_v44 = vld [vmem:[#allocation14 + $0x8e8] sm:$0xff]  ;;  %v8172_v35 = vcombine.low %v2270_v63, %v2274_v24 }
 0x322   :  { %5351 = vmatprep.subr.bf16.mxu0 %v8021_v46  ;;  %5376 = vmatprep.subr.bf16.mxu1 %v8085_v47  ;;  %v8236_v46 = vcombine.low %v2334_v26, %v2338_v29  ;;  %v8165_v47 = vcombine.high %v2262_v39, %v2266_v41  ;;  %v8229_v48 = vcombine.high %v2326_v42, %v2330_v44  ;;  %v2242_v9 = vld [vmem:[#allocation14 + $0x628] sm:$0xff] }
 0x323   :  { %v2302_v0 = vld [vmem:[#allocation14 + $0x808] sm:$0xff]  ;;  %v8141_v15 = vcombine.high %v2238_v7, %v2242_v9 }
 0x324   :  { %v2422_v18 = vld [vmem:[#allocation14 + $0xbc8] sm:$0xff] }
 0x325   :  { %5352 = vmatpush2.bf16.msra.mxu0 %v8020_v57  ;;  %5377 = vmatpush1.bf16.msra.mxu1 %v8084_v52  ;;  %v2322_v57 = vld [vmem:[#allocation14 + $0x8a8] sm:$0xff]  ;;  %v8164_v52 = vcombine.low %v2262_v39, %v2266_v41 }
 0x326   :  { %5353 = vmatprep.subr.bf16.mxu0 %v8013_v53  ;;  %5378 = vmatprep.subr.bf16.mxu1 %v8077_v54  ;;  %v8228_v53 = vcombine.low %v2326_v42, %v2330_v44  ;;  %v8157_v54 = vcombine.high %v2254_v28, %v2258_v32  ;;  %v8221_v55 = vcombine.high %v2318_v49, %v2322_v57  ;;  %v2426_v19 = vld [vmem:[#allocation14 + $0xbe8] sm:$0xff] }
 0x327   :  { %v2486_v20 = vld [vmem:[#allocation14 + $0xdc8] sm:$0xff] }
 0x328   :  { %v2414_v24 = vld [vmem:[#allocation14 + $0xb88] sm:$0xff] }
 0x329   :  { %5354 = vmatpush2.bf16.msra.mxu0 %v8012_v1  ;;  %5379 = vmatpush1.bf16.msra.mxu1 %v8076_v3  ;;  %v2314_v1 = vld [vmem:[#allocation14 + $0x868] sm:$0xff]  ;;  %v8156_v3 = vcombine.low %v2254_v28, %v2258_v32 }
 0x32a   :  { %5380 = vmatprep.subr.bf16.mxu1 %v8197_v4  ;;  %5405 = vmatprep.subr.bf16.mxu0 %v8261_v6  ;;  %v8220_v4 = vcombine.low %v2318_v49, %v2322_v57  ;;  %v8149_v6 = vcombine.high %v2246_v56, %v2250_v60  ;;  %v8213_v12 = vcombine.high %v2310_v58, %v2314_v1  ;;  %v2418_v26 = vld [vmem:[#allocation14 + $0xba8] sm:$0xff] }
 0x32b   :  { %v2478_v29 = vld [vmem:[#allocation14 + $0xd88] sm:$0xff] }
 0x32c   :  { %5356 = vmatmul.mubr.bf16.vlgmr.msra.gmra.mxu0 %v10216_v34  ;;  %v2406_v39 = vld [vmem:[#allocation14 + $0xb48] sm:$0xff] }
 0x32d   :  { %5381 = vmatpush2.bf16.msra.mxu1 %v8196_v14  ;;  %5406 = vmatpush1.bf16.msra.mxu0 %v8260_v5  ;;  %v2306_v14 = vld [vmem:[#allocation14 + $0x828] sm:$0xff]  ;;  %v8148_v5 = vcombine.low %v2246_v56, %v2250_v60 }
 0x32e   :  { %5437 = vmatprep.mubr.bf16.mxu0 %v10231_v59  ;;  %5382 = vmatprep.subr.bf16.mxu1 %v8189_v45  ;;  %v8212_v45 = vcombine.low %v2310_v58, %v2314_v1  ;;  %v2410_v42 = vld [vmem:[#allocation14 + $0xb68] sm:$0xff] }
 0x32f   :  { %5407 = vmatprep.subr.bf16.mxu0 %v8253_v16  ;;  %v8205_v16 = vcombine.high %v2302_v0, %v2306_v14  ;;  %v2470_v44 = vld [vmem:[#allocation14 + $0xd48] sm:$0xff] }
 0x330   :  { %v2398_v32 = vld [vmem:[#allocation14 + $0xb08] sm:$0xff] }
 0x331   :  { %5383 = vmatpush2.bf16.msra.mxu1 %v8188_v22  ;;  %5408 = vmatpush1.bf16.msra.mxu0 %v8252_v23  ;;  %v2490_v22 = vld [vmem:[#allocation14 + $0xde8] sm:$0xff]  ;;  %v8140_v23 = vcombine.low %v2238_v7, %v2242_v9 }
 0x332   :  { %5384 = vmatprep.subr.bf16.mxu1 %v8181_v61  ;;  %5409 = vmatprep.subr.bf16.mxu0 %v8245_v62  ;;  %v8204_v61 = vcombine.low %v2302_v0, %v2306_v14  ;;  %v8325_v62 = vcombine.high %v2422_v18, %v2426_v19  ;;  %v8389_v63 = vcombine.high %v2486_v20, %v2490_v22  ;;  %v2402_v49 = vld [vmem:[#allocation14 + $0xb28] sm:$0xff] }
 0x333   :  { %v2462_v57 = vld [vmem:[#allocation14 + $0xd08] sm:$0xff] }
 0x334   :  { %v2390_v60 = vld [vmem:[#allocation14 + $0xac8] sm:$0xff] }
 0x335   :  { %5385 = vmatpush2.bf16.msra.mxu1 %v8180_v36  ;;  %5410 = vmatpush1.bf16.msra.mxu0 %v8244_v37  ;;  %v2482_v36 = vld [vmem:[#allocation14 + $0xda8] sm:$0xff]  ;;  %v8324_v37 = vcombine.low %v2422_v18, %v2426_v19 }
 0x336   :  { %5386 = vmatprep.subr.bf16.mxu1 %v8173_v38  ;;  %5411 = vmatprep.subr.bf16.mxu0 %v8237_v17  ;;  %v8388_v38 = vcombine.low %v2486_v20, %v2490_v22  ;;  %v8317_v17 = vcombine.high %v2414_v24, %v2418_v26  ;;  %v8381_v41 = vcombine.high %v2478_v29, %v2482_v36  ;;  %v2394_v58 = vld [vmem:[#allocation14 + $0xae8] sm:$0xff] }
 0x337   :  { %v2454_v1 = vld [vmem:[#allocation14 + $0xcc8] sm:$0xff] }
 0x338   :  { %v2382_v9 = vld [vmem:[#allocation14 + $0xa88] sm:$0xff] }
 0x339   :  { %5387 = vmatpush2.bf16.msra.mxu1 %v8172_v35  ;;  %5412 = vmatpush1.bf16.msra.mxu0 %v8236_v46  ;;  %v2474_v35 = vld [vmem:[#allocation14 + $0xd68] sm:$0xff]  ;;  %v8316_v46 = vcombine.low %v2414_v24, %v2418_v26 }
 0x33a   :  { %5388 = vmatprep.subr.bf16.mxu1 %v8165_v47  ;;  %5413 = vmatprep.subr.bf16.mxu0 %v8229_v48  ;;  %v8380_v47 = vcombine.low %v2478_v29, %v2482_v36  ;;  %v8309_v48 = vcombine.high %v2406_v39, %v2410_v42  ;;  %v8373_v28 = vcombine.high %v2470_v44, %v2474_v35  ;;  %v2386_v0 = vld [vmem:[#allocation14 + $0xaa8] sm:$0xff] }
 0x33b   :  { %v2446_v14 = vld [vmem:[#allocation14 + $0xc88] sm:$0xff] }
 0x33c   :  { %v2374_v19 = vld [vmem:[#allocation14 + $0xa48] sm:$0xff] }
 0x33d   :  { %5389 = vmatpush2.bf16.msra.mxu1 %v8164_v52  ;;  %5414 = vmatpush1.bf16.msra.mxu0 %v8228_v53  ;;  %v2466_v52 = vld [vmem:[#allocation14 + $0xd28] sm:$0xff]  ;;  %v8308_v53 = vcombine.low %v2406_v39, %v2410_v42 }
 0x33e   :  { %5390 = vmatprep.subr.bf16.mxu1 %v8157_v54  ;;  %5415 = vmatprep.subr.bf16.mxu0 %v8221_v55  ;;  %v8372_v54 = vcombine.low %v2470_v44, %v2474_v35  ;;  %v8301_v55 = vcombine.high %v2398_v32, %v2402_v49  ;;  %v8365_v56 = vcombine.high %v2462_v57, %v2466_v52  ;;  %v2378_v20 = vld [vmem:[#allocation14 + $0xa68] sm:$0xff]  ;;  %v2103_v35 = vld [vmem:[#allocation14 + $0x1d0] sm:$0xff] }
 0x33f   :  { %v2438_v22 = vld [vmem:[#allocation14 + $0xc48] sm:$0xff] }
 0x340   :  { %v2366_v26 = vld [vmem:[#allocation14 + $0xa08] sm:$0xff] }
 0x341   :  { %5391 = vmatpush2.bf16.msra.mxu1 %v8156_v3  ;;  %5416 = vmatpush1.bf16.msra.mxu0 %v8220_v4  ;;  %v2458_v3 = vld [vmem:[#allocation14 + $0xce8] sm:$0xff]  ;;  %v8300_v4 = vcombine.low %v2398_v32, %v2402_v49 }
 0x342   :  { %5392 = vmatprep.subr.bf16.mxu1 %v8149_v6  ;;  %5417 = vmatprep.subr.bf16.mxu0 %v8213_v12  ;;  %v8364_v6 = vcombine.low %v2462_v57, %v2466_v52  ;;  %v8293_v12 = vcombine.high %v2390_v60, %v2394_v58  ;;  %v8357_v7 = vcombine.high %v2454_v1, %v2458_v3  ;;  %v2370_v29 = vld [vmem:[#allocation14 + $0xa28] sm:$0xff]  ;;  %v2095_v52 = vld [vmem:[#allocation14 + $0x190] sm:$0xff] }
 0x343   :  { %v2430_v36 = vld [vmem:[#allocation14 + $0xc08] sm:$0xff]  ;;  %v8269_v39 = vcombine.high %v2366_v26, %v2370_v29 }
 0x344   :  { %v2550_v42 = vld [vmem:[#allocation14 + $0xfc8] sm:$0xff] }
 0x345   :  { %5393 = vmatpush2.bf16.msra.mxu1 %v8148_v5  ;;  %5418 = vmatpush1.bf16.msra.mxu0 %v8212_v45  ;;  %v2450_v5 = vld [vmem:[#allocation14 + $0xca8] sm:$0xff]  ;;  %v8292_v45 = vcombine.low %v2390_v60, %v2394_v58 }
 0x346   :  { %5394 = vmatprep.subr.bf16.mxu1 %v8141_v15  ;;  %5419 = vmatprep.subr.bf16.mxu0 %v8205_v16  ;;  %v8356_v15 = vcombine.low %v2454_v1, %v2458_v3  ;;  %v8285_v16 = vcombine.high %v2382_v9, %v2386_v0  ;;  %v8349_v18 = vcombine.high %v2446_v14, %v2450_v5  ;;  %v2554_v44 = vld [vmem:[#allocation14 + $0xfe8] sm:$0xff]  ;;  %v2087_v3 = vld [vmem:[#allocation14 + $0x150] sm:$0xff] }
 0x347   :  { %v2542_v49 = vld [vmem:[#allocation14 + $0xf88] sm:$0xff] }
 0x348   :  { %v2546_v57 = vld [vmem:[#allocation14 + $0xfa8] sm:$0xff] }
 0x349   :  { %5395 = vmatpush2.bf16.msra.mxu1 %v8140_v23  ;;  %5420 = vmatpush1.bf16.msra.mxu0 %v8204_v61  ;;  %v2442_v23 = vld [vmem:[#allocation14 + $0xc68] sm:$0xff]  ;;  %v8284_v61 = vcombine.low %v2382_v9, %v2386_v0 }
 0x34a   :  { %5421 = vmatprep.subr.bf16.mxu0 %v8325_v62  ;;  %5446 = vmatprep.subr.bf16.mxu1 %v8389_v63  ;;  %v8348_v62 = vcombine.low %v2446_v14, %v2450_v5  ;;  %v8277_v63 = vcombine.high %v2374_v19, %v2378_v20  ;;  %v8341_v24 = vcombine.high %v2438_v22, %v2442_v23  ;;  %v2534_v60 = vld [vmem:[#allocation14 + $0xf48] sm:$0xff] }
 0x34b   :  { %v2538_v1 = vld [vmem:[#allocation14 + $0xf68] sm:$0xff] }
 0x34c   :  { %5397 = vmatmul.mubr.bf16.vlgmr.msra.gmra.mxu1 %v10255_v50  ;;  %v8437_v0 = vcombine.high %v2534_v60, %v2538_v1  ;;  %v2526_v5 = vld [vmem:[#allocation14 + $0xf08] sm:$0xff] }
 0x34d   :  { %5422 = vmatpush2.bf16.msra.mxu0 %v8324_v37  ;;  %5447 = vmatpush1.bf16.msra.mxu1 %v8388_v38  ;;  %v2434_v37 = vld [vmem:[#allocation14 + $0xc28] sm:$0xff]  ;;  %v8276_v38 = vcombine.low %v2374_v19, %v2378_v20  ;;  %v8436_v19 = vcombine.low %v2534_v60, %v2538_v1  ;;  %v2047_v60 = vld [vmem:[#allocation14 + $0x10] sm:$0xff] }
 0x34e   :  { %5478 = vmatprep.mubr.bf16.mxu1 %v10264_v21  ;;  %5423 = vmatprep.subr.bf16.mxu0 %v8317_v17  ;;  %v8340_v17 = vcombine.low %v2438_v22, %v2442_v23 }
 0x34f   :  { %5448 = vmatprep.subr.bf16.mxu1 %v8381_v41  ;;  %v8333_v41 = vcombine.high %v2430_v36, %v2434_v37 }
 0x351   :  { %5424 = vmatpush2.bf16.msra.mxu0 %v8316_v46  ;;  %5449 = vmatpush1.bf16.msra.mxu1 %v8380_v47  ;;  %v2107_v46 = vld [vmem:[#allocation14 + $0x1f0] sm:$0xff]  ;;  %v8268_v47 = vcombine.low %v2366_v26, %v2370_v29 }
 0x352   :  { %5425 = vmatprep.subr.bf16.mxu0 %v8309_v48  ;;  %5450 = vmatprep.subr.bf16.mxu1 %v8373_v28  ;;  %v8332_v48 = vcombine.low %v2430_v36, %v2434_v37  ;;  %v8453_v28 = vcombine.high %v2550_v42, %v2554_v44  ;;  %v8007_v32 = vcombine.high %v2103_v35, %v2107_v46  ;;  %v2075_v26 = vld [vmem:[#allocation14 + $0xf0] sm:$0xff] }
 0x355   :  { %5426 = vmatpush2.bf16.msra.mxu0 %v8308_v53  ;;  %5451 = vmatpush1.bf16.msra.mxu1 %v8372_v54  ;;  %v2099_v53 = vld [vmem:[#allocation14 + $0x1b0] sm:$0xff]  ;;  %v8452_v54 = vcombine.low %v2550_v42, %v2554_v44 }
 0x356   :  { %5427 = vmatprep.subr.bf16.mxu0 %v8301_v55  ;;  %5452 = vmatprep.subr.bf16.mxu1 %v8365_v56  ;;  %v8006_v55 = vcombine.low %v2103_v35, %v2107_v46  ;;  %v8445_v56 = vcombine.high %v2542_v49, %v2546_v57  ;;  %v7999_v58 = vcombine.high %v2095_v52, %v2099_v53  ;;  %v2067_v42 = vld [vmem:[#allocation14 + $0xb0] sm:$0xff] }
 0x359   :  { %5428 = vmatpush2.bf16.msra.mxu0 %v8300_v4  ;;  %5453 = vmatpush1.bf16.msra.mxu1 %v8364_v6  ;;  %v2091_v4 = vld [vmem:[#allocation14 + $0x170] sm:$0xff] }
 0x35a   :  { %5429 = vmatprep.subr.bf16.mxu0 %v8293_v12  ;;  %5454 = vmatprep.subr.bf16.mxu1 %v8357_v7  ;;  %v8444_v12 = vcombine.low %v2542_v49, %v2546_v57  ;;  %v7998_v7 = vcombine.low %v2095_v52, %v2099_v53  ;;  %v7991_v14 = vcombine.high %v2087_v3, %v2091_v4  ;;  %v2059_v49 = vld [vmem:[#allocation14 + $0x70] sm:$0xff] }
 0x35b   :  { %v7990_v20 = vcombine.low %v2087_v3, %v2091_v4 }
 0x35d   :  { %5430 = vmatpush2.bf16.msra.mxu0 %v8292_v45  ;;  %5455 = vmatpush1.bf16.msra.mxu1 %v8356_v15  ;;  %v2530_v45 = vld [vmem:[#allocation14 + $0xf28] sm:$0xff]  ;;  %v2079_v15 = vld [vmem:[#allocation14 + $0x110] sm:$0xff] }
 0x35e   :  { %5431 = vmatprep.subr.bf16.mxu0 %v8285_v16  ;;  %5456 = vmatprep.subr.bf16.mxu1 %v8349_v18  ;;  %v2083_v16 = vld [vmem:[#allocation14 + $0x130] sm:$0xff]  ;;  %v8429_v23 = vcombine.high %v2526_v5, %v2530_v45  ;;  %v8428_v29 = vcombine.low %v2526_v5, %v2530_v45  ;;  %v10292_v45 = vld [vmem:[#allocation16] sm:$0xff] }
 0x35f   :  { %v7982_v36 = vcombine.low %v2079_v15, %v2083_v16  ;;  %v2235_v5 = vld [vmem:[#allocation14 + $0x5f0] sm:$0xff] }
 0x361   :  { %5432 = vmatpush2.bf16.msra.mxu0 %v8284_v61  ;;  %5457 = vmatpush1.bf16.msra.mxu1 %v8348_v62  ;;  %v7983_v61 = vcombine.high %v2079_v15, %v2083_v16  ;;  %v2518_v62 = vld [vmem:[#allocation14 + $0xec8] sm:$0xff] }
 0x362   :  { %5433 = vmatprep.subr.bf16.mxu0 %v8277_v63  ;;  %5458 = vmatprep.subr.bf16.mxu1 %v8341_v24  ;;  %v2522_v63 = vld [vmem:[#allocation14 + $0xee8] sm:$0xff]  ;;  %v2071_v24 = vld [vmem:[#allocation14 + $0xd0] sm:$0xff] }
 0x363   :  { %v8421_v37 = vcombine.high %v2518_v62, %v2522_v63  ;;  %v8420_v44 = vcombine.low %v2518_v62, %v2522_v63  ;;  %v7974_v35 = vcombine.low %v2071_v24, %v2075_v26  ;;  %v2227_v62 = vld [vmem:[#allocation14 + $0x5b0] sm:$0xff]  ;;  %v2566_v63 = vrot.slane %v10292_v45, %v10208_v13 }
 0x365   :  { %5434 = vmatpush2.bf16.msra.mxu0 %v8276_v38  ;;  %5459 = vmatpush1.bf16.msra.mxu1 %v8340_v17  ;;  %v7975_v38 = vcombine.high %v2071_v24, %v2075_v26  ;;  %v2510_v17 = vld [vmem:[#allocation14 + $0xe88] sm:$0xff] }
 0x366   :  { %5435 = vmatprep.subr.bf16.mxu0 %v8269_v39  ;;  %5460 = vmatprep.subr.bf16.mxu1 %v8333_v41  ;;  %v2514_v39 = vld [vmem:[#allocation14 + $0xea8] sm:$0xff]  ;;  %v2063_v41 = vld [vmem:[#allocation14 + $0x90] sm:$0xff] }
 0x367   :  { %v8413_v46 = vcombine.high %v2510_v17, %v2514_v39  ;;  %v8412_v57 = vcombine.low %v2510_v17, %v2514_v39  ;;  %v7966_v52 = vcombine.low %v2063_v41, %v2067_v42  ;;  %v2155_v17 = vld [vmem:[#allocation14 + $0x370] sm:$0xff] }
 0x368   :  { %v2215_v39 = vld [vmem:[#allocation14 + $0x550] sm:$0xff] }
 0x369   :  { %5436 = vmatpush2.bf16.msra.mxu0 %v8268_v47  ;;  %5461 = vmatpush1.bf16.msra.mxu1 %v8332_v48  ;;  %v7967_v47 = vcombine.high %v2063_v41, %v2067_v42  ;;  %v2502_v48 = vld [vmem:[#allocation14 + $0xe48] sm:$0xff]  ;;  %v2219_v41 = vld [vmem:[#allocation14 + $0x570] sm:$0xff] }
 0x36a   :  { %5462 = vmatprep.subr.bf16.mxu1 %v8453_v28  ;;  %5487 = vmatprep.subr.bf16.mxu0 %v8007_v32  ;;  %v2506_v28 = vld [vmem:[#allocation14 + $0xe68] sm:$0xff]  ;;  %v2055_v32 = vld [vmem:[#allocation14 + $0x50] sm:$0xff] }
 0x36b   :  { %v8405_v53 = vcombine.high %v2502_v48, %v2506_v28  ;;  %v8404_v1 = vcombine.low %v2502_v48, %v2506_v28  ;;  %v7958_v3 = vcombine.low %v2055_v32, %v2059_v49  ;;  %v8119_v28 = vcombine.high %v2215_v39, %v2219_v41 }
 0x36c   :  { %5438 = vmatmul.mubr.bf16.vlgmr.msra.gmra.mxu0 %v10273_v25  ;;  %v10287_v6 = vpop.f32.mrf.mxu0 }
 0x36d   :  { %5463 = vmatpush2.bf16.msra.mxu1 %v8452_v54  ;;  %5488 = vmatpush1.bf16.msra.mxu0 %v8006_v55  ;;  %v7959_v54 = vcombine.high %v2055_v32, %v2059_v49  ;;  %v2494_v55 = vld [vmem:[#allocation14 + $0xe08] sm:$0xff]  ;;  %v2143_v32 = vld [vmem:[#allocation14 + $0x310] sm:$0xff] }
 0x36e   :  { %5519 = vmatprep.mubr.bf16.mxu0 %v10214_v33  ;;  %v10290_v9 = vpop.f32.mrf.mxu0  ;;  %5464 = vmatprep.subr.bf16.mxu1 %v8445_v56  ;;  %v2498_v56 = vld [vmem:[#allocation14 + $0xe28] sm:$0xff] }
 0x36f   :  { %5489 = vmatprep.subr.bf16.mxu0 %v7999_v58  ;;  %v2051_v58 = vld [vmem:[#allocation14 + $0x30] sm:$0xff]  ;;  %v8397_v4 = vcombine.high %v2494_v55, %v2498_v56  ;;  %v8396_v15 = vcombine.low %v2494_v55, %v2498_v56  ;;  %v8118_v55 = vcombine.low %v2215_v39, %v2219_v41 }
 0x370   :  { %v5197_v18 = vpop.f32.mrf.mxu0  ;;  %v7950_v16 = vcombine.low %v2047_v60, %v2051_v58  ;;  %v2115_v39 = vld [vmem:[#allocation14 + $0x230] sm:$0xff] }
 0x371   :  { %5465 = vmatpush2.bf16.msra.mxu1 %v8444_v12  ;;  %5490 = vmatpush1.bf16.msra.mxu0 %v7998_v7  ;;  %v7951_v12 = vcombine.high %v2047_v60, %v2051_v58  ;;  %v2167_v7 = vld [vmem:[#allocation14 + $0x3d0] sm:$0xff] }
 0x372   :  { %v5198_v22 = vpop.f32.mrf.mxu0  ;;  %5466 = vmatprep.subr.bf16.mxu1 %v8437_v0  ;;  %5491 = vmatprep.subr.bf16.mxu0 %v7991_v14  ;;  %v2171_v0 = vld [vmem:[#allocation14 + $0x3f0] sm:$0xff] }
 0x373   :  { %v2231_v14 = vld [vmem:[#allocation14 + $0x5d0] sm:$0xff]  ;;  %v8071_v18 = vcombine.high %v2167_v7, %v2171_v0  ;;  %v8070_v24 = vcombine.low %v2167_v7, %v2171_v0 }
 0x374   :  { %v2159_v22 = vld [vmem:[#allocation14 + $0x390] sm:$0xff]  ;;  %v8134_v26 = vcombine.low %v2231_v14, %v2235_v5 }
 0x375   :  { %5467 = vmatpush2.bf16.msra.mxu1 %v8436_v19  ;;  %5492 = vmatpush1.bf16.msra.mxu0 %v7990_v20  ;;  %v8135_v19 = vcombine.high %v2231_v14, %v2235_v5  ;;  %v2562_v20 = vrot.slane %v10292_v45, %v10203_v11  ;;  %v2175_v41 = vld [vmem:[#allocation14 + $0x410] sm:$0xff] }
 0x376   :  { %5468 = vmatprep.subr.bf16.mxu1 %v8429_v23  ;;  %5493 = vmatprep.subr.bf16.mxu0 %v7983_v61  ;;  %v2163_v23 = vld [vmem:[#allocation14 + $0x3b0] sm:$0xff] }
 0x377   :  { %v2223_v61 = vld [vmem:[#allocation14 + $0x590] sm:$0xff] }
 0x379   :  { %5469 = vmatpush2.bf16.msra.mxu1 %v8428_v29  ;;  %5494 = vmatpush1.bf16.msra.mxu0 %v7982_v36  ;;  %v8063_v29 = vcombine.high %v2159_v22, %v2163_v23  ;;  %v2151_v36 = vld [vmem:[#allocation14 + $0x350] sm:$0xff] }
 0x37a   :  { %5470 = vmatprep.subr.bf16.mxu1 %v8421_v37  ;;  %5495 = vmatprep.subr.bf16.mxu0 %v7975_v38  ;;  %v5194_v37 = vadd.f32 %v10287_v6, %v2562_v20  ;;  %v8127_v38 = vcombine.high %v2223_v61, %v2227_v62  ;;  %v8055_v6 = vcombine.high %v2151_v36, %v2155_v17 }
 0x37d   :  { %5471 = vmatpush2.bf16.msra.mxu1 %v8420_v44  ;;  %5496 = vmatpush1.bf16.msra.mxu0 %v7974_v35  ;;  %v8062_v44 = vcombine.low %v2159_v22, %v2163_v23  ;;  %v5196_v35 = vadd.f32 %v10290_v9, %v2566_v63  ;;  %v8054_v9 = vcombine.low %v2151_v36, %v2155_v17  ;;  %v2123_v63 = vld [vmem:[#allocation14 + $0x270] sm:$0xff] }
 0x37e   :  { %5472 = vmatprep.subr.bf16.mxu1 %v8413_v46  ;;  %5497 = vmatprep.subr.bf16.mxu0 %v7967_v47  ;;  %v8126_v47 = vcombine.low %v2223_v61, %v2227_v62  ;;  %v2119_v62 = vld [vmem:[#allocation14 + $0x250] sm:$0xff] }
 0x37f   :  { %v2111_v17 = vld [vmem:[#allocation14 + $0x210] sm:$0xff] }
 0x381   :  { %5473 = vmatpush2.bf16.msra.mxu1 %v8412_v57  ;;  %5498 = vmatpush1.bf16.msra.mxu0 %v7966_v52  ;;  %v2147_v57 = vld [vmem:[#allocation14 + $0x330] sm:$0xff] }
 0x382   :  { %5474 = vmatprep.subr.bf16.mxu1 %v8405_v53  ;;  %5499 = vmatprep.subr.bf16.mxu0 %v7959_v54  ;;  %v2207_v52 = vld [vmem:[#allocation14 + $0x510] sm:$0xff]  ;;  %v8047_v60 = vcombine.high %v2143_v32, %v2147_v57  ;;  %v8046_v7 = vcombine.low %v2143_v32, %v2147_v57 }
 0x383   :  { %v2211_v53 = vld [vmem:[#allocation14 + $0x530] sm:$0xff] }
 0x384   :  { %v8111_v58 = vcombine.high %v2207_v52, %v2211_v53  ;;  %v8110_v0 = vcombine.low %v2207_v52, %v2211_v53  ;;  %v2359_v32 = vld [vmem:[#allocation14 + $0x9d0] sm:$0xff]  ;;  %v8014_v52 = vcombine.low %v2111_v17, %v2115_v39 }
 0x385   :  { %5475 = vmatpush2.bf16.msra.mxu1 %v8404_v1  ;;  %5500 = vmatpush1.bf16.msra.mxu0 %v7958_v3  ;;  %v2135_v1 = vld [vmem:[#allocation14 + $0x2d0] sm:$0xff] }
 0x386   :  { %5476 = vmatprep.subr.bf16.mxu1 %v8397_v4  ;;  %5501 = vmatprep.subr.bf16.mxu0 %v7951_v12  ;;  %v2139_v3 = vld [vmem:[#allocation14 + $0x2f0] sm:$0xff] }
 0x387   :  { %v2199_v4 = vld [vmem:[#allocation14 + $0x4d0] sm:$0xff]  ;;  %v8039_v14 = vcombine.high %v2135_v1, %v2139_v3  ;;  %v8038_v20 = vcombine.low %v2135_v1, %v2139_v3 }
 0x388   :  { %v2203_v12 = vld [vmem:[#allocation14 + $0x4f0] sm:$0xff] }
 0x389   :  { %5477 = vmatpush2.bf16.msra.mxu1 %v8396_v15  ;;  %5502 = vmatpush1.bf16.msra.mxu0 %v7950_v16  ;;  %v8103_v5 = vcombine.high %v2199_v4, %v2203_v12  ;;  %v2127_v15 = vld [vmem:[#allocation14 + $0x290] sm:$0xff]  ;;  %v8102_v22 = vcombine.low %v2199_v4, %v2203_v12 }
 0x38a   :  { %5503 = vmatprep.subr.bf16.mxu0 %v8071_v18  ;;  %5528 = vmatprep.subr.bf16.mxu1 %v8135_v19  ;;  %v2131_v16 = vld [vmem:[#allocation14 + $0x2b0] sm:$0xff] }
 0x38b   :  { %v2191_v18 = vld [vmem:[#allocation14 + $0x490] sm:$0xff]  ;;  %v8031_v23 = vcombine.high %v2127_v15, %v2131_v16 }
 0x38c   :  { %5479 = vmatmul.mubr.bf16.vlgmr.msra.gmra.mxu1 %v10278_v51  ;;  %v5234_v42 = vpop.f32.mrf.mxu1  ;;  %v2195_v19 = vld [vmem:[#allocation14 + $0x4b0] sm:$0xff] }
 0x38d   :  { %v10301_v46 = vadd.f32 %v5234_v42, %v5194_v37  ;;  %5504 = vmatpush2.bf16.msra.mxu0 %v8070_v24  ;;  %5529 = vmatpush1.bf16.msra.mxu1 %v8134_v26  ;;  %v8095_v61 = vcombine.high %v2191_v18, %v2195_v19  ;;  %v2183_v24 = vld [vmem:[#allocation14 + $0x450] sm:$0xff]  ;;  %v8094_v36 = vcombine.low %v2191_v18, %v2195_v19 }
 0x38e   :  { %5560 = vmatprep.mubr.bf16.mxu1 %v10250_v30  ;;  %v5236_v48 = vpop.f32.mrf.mxu1  ;;  %5505 = vmatprep.subr.bf16.mxu0 %v8063_v29  ;;  %v2187_v26 = vld [vmem:[#allocation14 + $0x470] sm:$0xff]  ;;  %v8030_v29 = vcombine.low %v2127_v15, %v2131_v16  ;;  %v8023_v37 = vcombine.high %v2119_v62, %v2123_v63 }
 0x38f   :  { %v10304_v49 = vadd.f32 %v5236_v48, %v5196_v35  ;;  %5530 = vmatprep.subr.bf16.mxu1 %v8127_v38  ;;  %v8087_v38 = vcombine.high %v2183_v24, %v2187_v26  ;;  %v2179_v42 = vld [vmem:[#allocation14 + $0x430] sm:$0xff]  ;;  %v8086_v35 = vcombine.low %v2183_v24, %v2187_v26 }
 0x390   :  { %v5238_v54 = vpop.f32.mrf.mxu1  ;;  %v8079_v48 = vcombine.high %v2175_v41, %v2179_v42  ;;  %v2363_v57 = vld [vmem:[#allocation14 + $0x9f0] sm:$0xff]  ;;  %v8078_v53 = vcombine.low %v2175_v41, %v2179_v42 }
 0x391   :  { %5506 = vmatpush2.bf16.msra.mxu0 %v8062_v44  ;;  %5531 = vmatpush1.bf16.msra.mxu1 %v8126_v47  ;;  %v8022_v44 = vcombine.low %v2119_v62, %v2123_v63  ;;  %v8015_v47 = vcombine.high %v2111_v17, %v2115_v39  ;;  %v8262_v3 = vcombine.low %v2359_v32, %v2363_v57  ;;  %v2279_v12 = vld [vmem:[#allocation14 + $0x750] sm:$0xff] }
 0x392   :  { %v5239_v56 = vpop.f32.mrf.mxu1  ;;  %5507 = vmatprep.subr.bf16.mxu0 %v8055_v6  ;;  %5532 = vmatprep.subr.bf16.mxu1 %v8119_v28  ;;  %v2295_v6 = vld [vmem:[#allocation14 + $0x7d0] sm:$0xff] }
 0x393   :  { %v2299_v28 = vld [vmem:[#allocation14 + $0x7f0] sm:$0xff] }
 0x394   :  { %v8199_v54 = vcombine.high %v2295_v6, %v2299_v28  ;;  %v2291_v56 = vld [vmem:[#allocation14 + $0x7b0] sm:$0xff]  ;;  %v8198_v1 = vcombine.low %v2295_v6, %v2299_v28 }
 0x395   :  { %5508 = vmatpush2.bf16.msra.mxu0 %v8054_v9  ;;  %5533 = vmatpush1.bf16.msra.mxu1 %v8118_v55  ;;  %v8263_v9 = vcombine.high %v2359_v32, %v2363_v57  ;;  %v2287_v55 = vld [vmem:[#allocation14 + $0x790] sm:$0xff] }
 0x396   :  { %5509 = vmatprep.subr.bf16.mxu0 %v8047_v60  ;;  %5534 = vmatprep.subr.bf16.mxu1 %v8111_v58  ;;  %v2351_v60 = vld [vmem:[#allocation14 + $0x990] sm:$0xff]  ;;  %v8191_v4 = vcombine.high %v2287_v55, %v2291_v56  ;;  %v8190_v18 = vcombine.low %v2287_v55, %v2291_v56 }
 0x397   :  { %v2355_v58 = vld [vmem:[#allocation14 + $0x9b0] sm:$0xff] }
 0x398   :  { %v8254_v19 = vcombine.low %v2351_v60, %v2355_v58  ;;  %v2275_v63 = vld [vmem:[#allocation14 + $0x730] sm:$0xff] }
 0x399   :  { %5510 = vmatpush2.bf16.msra.mxu0 %v8046_v7  ;;  %5535 = vmatpush1.bf16.msra.mxu1 %v8110_v0  ;;  %v8255_v7 = vcombine.high %v2351_v60, %v2355_v58  ;;  %v2283_v0 = vld [vmem:[#allocation14 + $0x770] sm:$0xff] }
 0x39a   :  { %5511 = vmatprep.subr.bf16.mxu0 %v8039_v14  ;;  %5536 = vmatprep.subr.bf16.mxu1 %v8103_v5  ;;  %v2343_v14 = vld [vmem:[#allocation14 + $0x950] sm:$0xff] }
 0x39b   :  { %v2347_v5 = vld [vmem:[#allocation14 + $0x970] sm:$0xff] }
 0x39c   :  { %v2335_v24 = vld [vmem:[#allocation14 + $0x910] sm:$0xff] }
 0x39d   :  { %5512 = vmatpush2.bf16.msra.mxu0 %v8038_v20  ;;  %5537 = vmatpush1.bf16.msra.mxu1 %v8102_v22  ;;  %v8183_v22 = vcombine.high %v2279_v12, %v2283_v0  ;;  %v2339_v26 = vld [vmem:[#allocation14 + $0x930] sm:$0xff] }
 0x39e   :  { %5513 = vmatprep.subr.bf16.mxu0 %v8031_v23  ;;  %5538 = vmatprep.subr.bf16.mxu1 %v8095_v61  ;;  %v8247_v23 = vcombine.high %v2343_v14, %v2347_v5  ;;  %v2271_v61 = vld [vmem:[#allocation14 + $0x710] sm:$0xff]  ;;  %v8239_v17 = vcombine.high %v2335_v24, %v2339_v26 }
 0x39f   :  { %v2263_v39 = vld [vmem:[#allocation14 + $0x6d0] sm:$0xff] }
 0x3a0   :  { %v2267_v41 = vld [vmem:[#allocation14 + $0x6f0] sm:$0xff] }
 0x3a1   :  { %5514 = vmatpush2.bf16.msra.mxu0 %v8030_v29  ;;  %5539 = vmatpush1.bf16.msra.mxu1 %v8094_v36  ;;  %v8182_v29 = vcombine.low %v2279_v12, %v2283_v0  ;;  %v8246_v36 = vcombine.low %v2343_v14, %v2347_v5  ;;  %v2327_v42 = vld [vmem:[#allocation14 + $0x8d0] sm:$0xff] }
 0x3a2   :  { %5515 = vmatprep.subr.bf16.mxu0 %v8023_v37  ;;  %5540 = vmatprep.subr.bf16.mxu1 %v8087_v38  ;;  %v8175_v38 = vcombine.high %v2271_v61, %v2275_v63  ;;  %v2255_v6 = vld [vmem:[#allocation14 + $0x690] sm:$0xff] }
 0x3a3   :  { %v2259_v28 = vld [vmem:[#allocation14 + $0x6b0] sm:$0xff] }
 0x3a4   :  { %v2319_v32 = vld [vmem:[#allocation14 + $0x890] sm:$0xff] }
 0x3a5   :  { %5516 = vmatpush2.bf16.msra.mxu0 %v8022_v44  ;;  %5541 = vmatpush1.bf16.msra.mxu1 %v8086_v35  ;;  %v2331_v44 = vld [vmem:[#allocation14 + $0x8f0] sm:$0xff]  ;;  %v8238_v35 = vcombine.low %v2335_v24, %v2339_v26 }
 0x3a6   :  { %5517 = vmatprep.subr.bf16.mxu0 %v8015_v47  ;;  %5542 = vmatprep.subr.bf16.mxu1 %v8079_v48  ;;  %v8167_v47 = vcombine.high %v2263_v39, %v2267_v41  ;;  %v8231_v48 = vcombine.high %v2327_v42, %v2331_v44  ;;  %v2323_v57 = vld [vmem:[#allocation14 + $0x8b0] sm:$0xff] }
 0x3a7   :  { %v2247_v55 = vld [vmem:[#allocation14 + $0x650] sm:$0xff] }
 0x3a8   :  { %v2251_v56 = vld [vmem:[#allocation14 + $0x670] sm:$0xff] }
 0x3a9   :  { %5518 = vmatpush2.bf16.msra.mxu0 %v8014_v52  ;;  %5543 = vmatpush1.bf16.msra.mxu1 %v8078_v53  ;;  %v8166_v52 = vcombine.low %v2263_v39, %v2267_v41  ;;  %v8230_v53 = vcombine.low %v2327_v42, %v2331_v44  ;;  %v2311_v60 = vld [vmem:[#allocation14 + $0x850] sm:$0xff] }
 0x3aa   :  { %5544 = vmatprep.subr.bf16.mxu1 %v8199_v54  ;;  %5569 = vmatprep.subr.bf16.mxu0 %v8263_v9  ;;  %v8159_v54 = vcombine.high %v2255_v6, %v2259_v28  ;;  %v8223_v9 = vcombine.high %v2319_v32, %v2323_v57  ;;  %v2315_v58 = vld [vmem:[#allocation14 + $0x870] sm:$0xff] }
 0x3ab   :  { %v8215_v12 = vcombine.high %v2311_v60, %v2315_v58  ;;  %v2243_v0 = vld [vmem:[#allocation14 + $0x630] sm:$0xff] }
 0x3ac   :  { %v5275_v15 = vpop.f32.mrf.mxu0  ;;  %5520 = vmatmul.mubr.bf16.vlgmr.msra.gmra.mxu0 %v10216_v34  ;;  %v2303_v14 = vld [vmem:[#allocation14 + $0x810] sm:$0xff] }
 0x3ad   :  { %v10308_v16 = vadd.f32 %v5275_v15, %v10301_v46  ;;  %5545 = vmatpush2.bf16.msra.mxu1 %v8198_v1  ;;  %5570 = vmatpush1.bf16.msra.mxu0 %v8262_v3  ;;  %v8158_v1 = vcombine.low %v2255_v6, %v2259_v28  ;;  %v8222_v3 = vcombine.low %v2319_v32, %v2323_v57  ;;  %v2307_v5 = vld [vmem:[#allocation14 + $0x830] sm:$0xff] }
 0x3ae   :  { %5601 = vmatprep.mubr.bf16.mxu0 %v10231_v59  ;;  %v5277_v20 = vpop.f32.mrf.mxu0  ;;  %5546 = vmatprep.subr.bf16.mxu1 %v8191_v4  ;;  %v8151_v4 = vcombine.high %v2247_v55, %v2251_v56  ;;  %v8150_v15 = vcombine.low %v2247_v55, %v2251_v56  ;;  %v8206_v26 = vcombine.low %v2303_v14, %v2307_v5  ;;  %v2407_v44 = vld [vmem:[#allocation14 + $0xb50] sm:$0xff] }
 0x3af   :  { %v10312_v62 = vadd.f32 %v5277_v20, %v10304_v49  ;;  %5571 = vmatprep.subr.bf16.mxu0 %v8255_v7  ;;  %v8174_v49 = vcombine.low %v2271_v61, %v2275_v63  ;;  %v2239_v7 = vld [vmem:[#allocation14 + $0x610] sm:$0xff]  ;;  %v8207_v20 = vcombine.high %v2303_v14, %v2307_v5 }
 0x3b0   :  { %v5279_v46 = vpop.f32.mrf.mxu0  ;;  %v2487_v61 = vld [vmem:[#allocation14 + $0xdd0] sm:$0xff]  ;;  %v8142_v24 = vcombine.low %v2239_v7, %v2243_v0 }
 0x3b1   :  { %5547 = vmatpush2.bf16.msra.mxu1 %v8190_v18  ;;  %5572 = vmatpush1.bf16.msra.mxu0 %v8254_v19  ;;  %v8214_v18 = vcombine.low %v2311_v60, %v2315_v58  ;;  %v8143_v19 = vcombine.high %v2239_v7, %v2243_v0  ;;  %v2491_v63 = vld [vmem:[#allocation14 + $0xdf0] sm:$0xff] }
 0x3b2   :  { %v5280_v37 = vpop.f32.mrf.mxu0  ;;  %5548 = vmatprep.subr.bf16.mxu1 %v8183_v22  ;;  %5573 = vmatprep.subr.bf16.mxu0 %v8247_v23  ;;  %v2423_v22 = vld [vmem:[#allocation14 + $0xbd0] sm:$0xff]  ;;  %v8390_v41 = vcombine.low %v2487_v61, %v2491_v63 }
 0x3b3   :  { %v2427_v23 = vld [vmem:[#allocation14 + $0xbf0] sm:$0xff] }
 0x3b4   :  { %v8327_v46 = vcombine.high %v2423_v22, %v2427_v23  ;;  %v2419_v37 = vld [vmem:[#allocation14 + $0xbb0] sm:$0xff]  ;;  %v8326_v39 = vcombine.low %v2423_v22, %v2427_v23 }
 0x3b5   :  { %5549 = vmatpush2.bf16.msra.mxu1 %v8182_v29  ;;  %5574 = vmatpush1.bf16.msra.mxu0 %v8246_v36  ;;  %v8391_v29 = vcombine.high %v2487_v61, %v2491_v63  ;;  %v2415_v36 = vld [vmem:[#allocation14 + $0xb90] sm:$0xff] }
 0x3b6   :  { %5550 = vmatprep.subr.bf16.mxu1 %v8175_v38  ;;  %5575 = vmatprep.subr.bf16.mxu0 %v8239_v17  ;;  %v2479_v38 = vld [vmem:[#allocation14 + $0xd90] sm:$0xff]  ;;  %v8319_v42 = vcombine.high %v2415_v36, %v2419_v37  ;;  %v8318_v32 = vcombine.low %v2415_v36, %v2419_v37 }
 0x3b7   :  { %v2483_v17 = vld [vmem:[#allocation14 + $0xdb0] sm:$0xff] }
 0x3b8   :  { %v8382_v57 = vcombine.low %v2479_v38, %v2483_v17  ;;  %v2403_v56 = vld [vmem:[#allocation14 + $0xb30] sm:$0xff] }
 0x3b9   :  { %5551 = vmatpush2.bf16.msra.mxu1 %v8174_v49  ;;  %5576 = vmatpush1.bf16.msra.mxu0 %v8238_v35  ;;  %v8383_v49 = vcombine.high %v2479_v38, %v2483_v17  ;;  %v2411_v35 = vld [vmem:[#allocation14 + $0xb70] sm:$0xff] }
 0x3ba   :  { %5552 = vmatprep.subr.bf16.mxu1 %v8167_v47  ;;  %5577 = vmatprep.subr.bf16.mxu0 %v8231_v48  ;;  %v2471_v47 = vld [vmem:[#allocation14 + $0xd50] sm:$0xff] }
 0x3bb   :  { %v2475_v48 = vld [vmem:[#allocation14 + $0xd70] sm:$0xff] }
 0x3bc   :  { %v2463_v60 = vld [vmem:[#allocation14 + $0xd10] sm:$0xff] }
 0x3bd   :  { %5553 = vmatpush2.bf16.msra.mxu1 %v8166_v52  ;;  %5578 = vmatpush1.bf16.msra.mxu0 %v8230_v53  ;;  %v8311_v53 = vcombine.high %v2407_v44, %v2411_v35  ;;  %v2467_v58 = vld [vmem:[#allocation14 + $0xd30] sm:$0xff] }
 0x3be   :  { %5554 = vmatprep.subr.bf16.mxu1 %v8159_v54  ;;  %5579 = vmatprep.subr.bf16.mxu0 %v8223_v9  ;;  %v8375_v54 = vcombine.high %v2471_v47, %v2475_v48  ;;  %v2399_v9 = vld [vmem:[#allocation14 + $0xb10] sm:$0xff]  ;;  %v8367_v7 = vcombine.high %v2463_v60, %v2467_v58 }
 0x3bf   :  { %v2391_v0 = vld [vmem:[#allocation14 + $0xad0] sm:$0xff] }
 0x3c0   :  { %v2395_v14 = vld [vmem:[#allocation14 + $0xaf0] sm:$0xff] }
 0x3c1   :  { %5555 = vmatpush2.bf16.msra.mxu1 %v8158_v1  ;;  %5580 = vmatpush1.bf16.msra.mxu0 %v8222_v3  ;;  %v8310_v1 = vcombine.low %v2407_v44, %v2411_v35  ;;  %v8374_v3 = vcombine.low %v2471_v47, %v2475_v48  ;;  %v2455_v5 = vld [vmem:[#allocation14 + $0xcd0] sm:$0xff] }
 0x3c2   :  { %5556 = vmatprep.subr.bf16.mxu1 %v8151_v4  ;;  %5581 = vmatprep.subr.bf16.mxu0 %v8215_v12  ;;  %v8303_v12 = vcombine.high %v2399_v9, %v2403_v56  ;;  %v2383_v22 = vld [vmem:[#allocation14 + $0xa90] sm:$0xff] }
 0x3c3   :  { %v2387_v23 = vld [vmem:[#allocation14 + $0xab0] sm:$0xff] }
 0x3c4   :  { %v2447_v61 = vld [vmem:[#allocation14 + $0xc90] sm:$0xff] }
 0x3c5   :  { %5557 = vmatpush2.bf16.msra.mxu1 %v8150_v15  ;;  %5582 = vmatpush1.bf16.msra.mxu0 %v8214_v18  ;;  %v2459_v15 = vld [vmem:[#allocation14 + $0xcf0] sm:$0xff]  ;;  %v8366_v18 = vcombine.low %v2463_v60, %v2467_v58 }
 0x3c6   :  { %5558 = vmatprep.subr.bf16.mxu1 %v8143_v19  ;;  %5583 = vmatprep.subr.bf16.mxu0 %v8207_v20  ;;  %v8295_v19 = vcombine.high %v2391_v0, %v2395_v14  ;;  %v8359_v20 = vcombine.high %v2455_v5, %v2459_v15  ;;  %v2451_v63 = vld [vmem:[#allocation14 + $0xcb0] sm:$0xff] }
 0x3c7   :  { %v2375_v36 = vld [vmem:[#allocation14 + $0xa50] sm:$0xff] }
 0x3c8   :  { %v2379_v37 = vld [vmem:[#allocation14 + $0xa70] sm:$0xff] }
 0x3c9   :  { %5559 = vmatpush2.bf16.msra.mxu1 %v8142_v24  ;;  %5584 = vmatpush1.bf16.msra.mxu0 %v8206_v26  ;;  %v8294_v24 = vcombine.low %v2391_v0, %v2395_v14  ;;  %v8358_v26 = vcombine.low %v2455_v5, %v2459_v15  ;;  %v2439_v38 = vld [vmem:[#allocation14 + $0xc50] sm:$0xff] }
 0x3ca   :  { %5585 = vmatprep.subr.bf16.mxu0 %v8327_v46  ;;  %5610 = vmatprep.subr.bf16.mxu1 %v8391_v29  ;;  %v8287_v46 = vcombine.high %v2383_v22, %v2387_v23  ;;  %v8351_v29 = vcombine.high %v2447_v61, %v2451_v63  ;;  %v2443_v17 = vld [vmem:[#allocation14 + $0xc70] sm:$0xff] }
 0x3cb   :  { %v8343_v44 = vcombine.high %v2439_v38, %v2443_v17  ;;  %v2371_v35 = vld [vmem:[#allocation14 + $0xa30] sm:$0xff] }
 0x3cc   :  { %v5316_v6 = vpop.f32.mrf.mxu1  ;;  %5561 = vmatmul.mubr.bf16.vlgmr.msra.gmra.mxu1 %v10255_v50  ;;  %v2431_v47 = vld [vmem:[#allocation14 + $0xc10] sm:$0xff] }
 0x3cd   :  { %v10316_v28 = vadd.f32 %v5316_v6, %v10308_v16  ;;  %5586 = vmatpush2.bf16.msra.mxu0 %v8326_v39  ;;  %5611 = vmatpush1.bf16.msra.mxu1 %v8390_v41  ;;  %v8286_v39 = vcombine.low %v2383_v22, %v2387_v23  ;;  %v8350_v41 = vcombine.low %v2447_v61, %v2451_v63  ;;  %v2435_v48 = vld [vmem:[#allocation14 + $0xc30] sm:$0xff] }
 0x3ce   :  { %5642 = vmatprep.mubr.bf16.mxu1 %v10264_v21  ;;  %v5318_v52 = vpop.f32.mrf.mxu1  ;;  %5587 = vmatprep.subr.bf16.mxu0 %v8319_v42  ;;  %v8279_v42 = vcombine.high %v2375_v36, %v2379_v37  ;;  %v8278_v6 = vcombine.low %v2375_v36, %v2379_v37  ;;  %v8334_v58 = vcombine.low %v2431_v47, %v2435_v48  ;;  %v2535_v15 = vld [vmem:[#allocation14 + $0xf50] sm:$0xff]  ;;  %v2080_v36 = vld [vmem:[#allocation14 + $0x118] sm:$0xff] }
 0x3cf   :  { %v10320_v55 = vadd.f32 %v5318_v52, %v10312_v62  ;;  %5612 = vmatprep.subr.bf16.mxu1 %v8383_v49  ;;  %v8302_v62 = vcombine.low %v2399_v9, %v2403_v56  ;;  %v2367_v49 = vld [vmem:[#allocation14 + $0xa10] sm:$0xff]  ;;  %v8335_v52 = vcombine.high %v2431_v47, %v2435_v48  ;;  %v2104_v9 = vld [vmem:[#allocation14 + $0x1d8] sm:$0xff] }
 0x3d0   :  { %v5320_v16 = vpop.f32.mrf.mxu1  ;;  %v2108_v56 = vld [vmem:[#allocation14 + $0x1f8] sm:$0xff]  ;;  %v8270_v60 = vcombine.low %v2367_v49, %v2371_v35 }
 0x3d1   :  { %5588 = vmatpush2.bf16.msra.mxu0 %v8318_v32  ;;  %5613 = vmatpush1.bf16.msra.mxu1 %v8382_v57  ;;  %v8342_v32 = vcombine.low %v2439_v38, %v2443_v17  ;;  %v8271_v57 = vcombine.high %v2367_v49, %v2371_v35  ;;  %v8008_v14 = vcombine.low %v2104_v9, %v2108_v56  ;;  %v2084_v37 = vld [vmem:[#allocation14 + $0x138] sm:$0xff]  ;;  %v2523_v49 = vld [vmem:[#allocation14 + $0xef0] sm:$0xff] }
 0x3d2   :  { %v5321_v4 = vpop.f32.mrf.mxu1  ;;  %5589 = vmatprep.subr.bf16.mxu0 %v8311_v53  ;;  %5614 = vmatprep.subr.bf16.mxu1 %v8375_v54  ;;  %v2551_v53 = vld [vmem:[#allocation14 + $0xfd0] sm:$0xff]  ;;  %v2072_v35 = vld [vmem:[#allocation14 + $0xd8] sm:$0xff] }
 0x3d3   :  { %v2555_v54 = vld [vmem:[#allocation14 + $0xff0] sm:$0xff]  ;;  %v2076_v47 = vld [vmem:[#allocation14 + $0xf8] sm:$0xff] }
 0x3d4   :  { %v8455_v16 = vcombine.high %v2551_v53, %v2555_v54  ;;  %v2547_v4 = vld [vmem:[#allocation14 + $0xfb0] sm:$0xff]  ;;  %v8454_v0 = vcombine.low %v2551_v53, %v2555_v54  ;;  %v2064_v54 = vld [vmem:[#allocation14 + $0x98] sm:$0xff] }
 0x3d5   :  { %5590 = vmatpush2.bf16.msra.mxu0 %v8310_v1  ;;  %5615 = vmatpush1.bf16.msra.mxu1 %v8374_v3  ;;  %v8009_v1 = vcombine.high %v2104_v9, %v2108_v56  ;;  %v2543_v3 = vld [vmem:[#allocation14 + $0xf90] sm:$0xff]  ;;  %v2068_v9 = vld [vmem:[#allocation14 + $0xb8] sm:$0xff] }
 0x3d6   :  { %5591 = vmatprep.subr.bf16.mxu0 %v8303_v12  ;;  %5616 = vmatprep.subr.bf16.mxu1 %v8367_v7  ;;  %v2096_v12 = vld [vmem:[#allocation14 + $0x198] sm:$0xff]  ;;  %v8447_v5 = vcombine.high %v2543_v3, %v2547_v4  ;;  %v8446_v23 = vcombine.low %v2543_v3, %v2547_v4  ;;  %v2515_v53 = vld [vmem:[#allocation14 + $0xeb0] sm:$0xff] }
 0x3d7   :  { %v2100_v7 = vld [vmem:[#allocation14 + $0x1b8] sm:$0xff]  ;;  %v2507_v3 = vld [vmem:[#allocation14 + $0xe70] sm:$0xff] }
 0x3d8   :  { %v8000_v61 = vcombine.low %v2096_v12, %v2100_v7  ;;  %v2056_v4 = vld [vmem:[#allocation14 + $0x58] sm:$0xff] }
 0x3d9   :  { %5592 = vmatpush2.bf16.msra.mxu0 %v8302_v62  ;;  %5617 = vmatpush1.bf16.msra.mxu1 %v8366_v18  ;;  %v8001_v62 = vcombine.high %v2096_v12, %v2100_v7  ;;  %v2539_v18 = vld [vmem:[#allocation14 + $0xf70] sm:$0xff]  ;;  %v2060_v12 = vld [vmem:[#allocation14 + $0x78] sm:$0xff] }
 0x3da   :  { %5593 = vmatprep.subr.bf16.mxu0 %v8295_v19  ;;  %5618 = vmatprep.subr.bf16.mxu1 %v8359_v20  ;;  %v2088_v19 = vld [vmem:[#allocation14 + $0x158] sm:$0xff]  ;;  %v8438_v17 = vcombine.low %v2535_v15, %v2539_v18 }
 0x3db   :  { %v2092_v20 = vld [vmem:[#allocation14 + $0x178] sm:$0xff] }
 0x3dd   :  { %5594 = vmatpush2.bf16.msra.mxu0 %v8294_v24  ;;  %5619 = vmatpush1.bf16.msra.mxu1 %v8358_v26  ;;  %v8439_v24 = vcombine.high %v2535_v15, %v2539_v18  ;;  %v7993_v26 = vcombine.high %v2088_v19, %v2092_v20  ;;  %v2495_v15 = vld [vmem:[#allocation14 + $0xe10] sm:$0xff]  ;;  %v2048_v18 = vld [vmem:[#allocation14 + $0x18] sm:$0xff] }
 0x3de   :  { %5595 = vmatprep.subr.bf16.mxu0 %v8287_v46  ;;  %5620 = vmatprep.subr.bf16.mxu1 %v8351_v29  ;;  %v2527_v46 = vld [vmem:[#allocation14 + $0xf10] sm:$0xff] }
 0x3df   :  { %v2531_v29 = vld [vmem:[#allocation14 + $0xf30] sm:$0xff] }
 0x3e0   :  { %v8430_v48 = vcombine.low %v2527_v46, %v2531_v29 }
 0x3e1   :  { %5596 = vmatpush2.bf16.msra.mxu0 %v8286_v39  ;;  %5621 = vmatpush1.bf16.msra.mxu1 %v8350_v41  ;;  %v7992_v39 = vcombine.low %v2088_v19, %v2092_v20  ;;  %v2052_v19 = vld [vmem:[#allocation14 + $0x38] sm:$0xff] }
 0x3e2   :  { %5597 = vmatprep.subr.bf16.mxu0 %v8279_v42  ;;  %5622 = vmatprep.subr.bf16.mxu1 %v8343_v44  ;;  %v8431_v42 = vcombine.high %v2527_v46, %v2531_v29  ;;  %v2519_v44 = vld [vmem:[#allocation14 + $0xed0] sm:$0xff]  ;;  %v2172_v46 = vld [vmem:[#allocation14 + $0x3f8] sm:$0xff] }
 0x3e3   :  { %v8422_v56 = vcombine.low %v2519_v44, %v2523_v49  ;;  %v2232_v29 = vld [vmem:[#allocation14 + $0x5d8] sm:$0xff] }
 0x3e5   :  { %5598 = vmatpush2.bf16.msra.mxu0 %v8278_v6  ;;  %5623 = vmatpush1.bf16.msra.mxu1 %v8342_v32  ;;  %v7984_v6 = vcombine.low %v2080_v36, %v2084_v37  ;;  %v8423_v32 = vcombine.high %v2519_v44, %v2523_v49  ;;  %v2224_v44 = vld [vmem:[#allocation14 + $0x598] sm:$0xff] }
 0x3e6   :  { %5599 = vmatprep.subr.bf16.mxu0 %v8271_v57  ;;  %5624 = vmatprep.subr.bf16.mxu1 %v8335_v52  ;;  %v7977_v57 = vcombine.high %v2072_v35, %v2076_v47  ;;  %v2511_v52 = vld [vmem:[#allocation14 + $0xe90] sm:$0xff]  ;;  %v2228_v49 = vld [vmem:[#allocation14 + $0x5b8] sm:$0xff] }
 0x3e7   :  { %v8414_v7 = vcombine.low %v2511_v52, %v2515_v53 }
 0x3e9   :  { %5600 = vmatpush2.bf16.msra.mxu0 %v8270_v60  ;;  %5625 = vmatpush1.bf16.msra.mxu1 %v8334_v58  ;;  %v7976_v60 = vcombine.low %v2072_v35, %v2076_v47  ;;  %v8415_v58 = vcombine.high %v2511_v52, %v2515_v53  ;;  %v2574_v35 = vrot.slane %v10292_v45, %v10238_v8  ;;  %v2156_v53 = vld [vmem:[#allocation14 + $0x378] sm:$0xff] }
 0x3ea   :  { %5626 = vmatprep.subr.bf16.mxu1 %v8455_v16  ;;  %5651 = vmatprep.subr.bf16.mxu0 %v8009_v1  ;;  %v7969_v16 = vcombine.high %v2064_v54, %v2068_v9  ;;  %v2503_v1 = vld [vmem:[#allocation14 + $0xe50] sm:$0xff]  ;;  %v8129_v52 = vcombine.high %v2224_v44, %v2228_v49 }
 0x3eb   :  { %v8406_v20 = vcombine.low %v2503_v1, %v2507_v3 }
 0x3ec   :  { %v10322_v22 = vpop.f32.mrf.mxu0  ;;  %5602 = vmatmul.mubr.bf16.vlgmr.msra.gmra.mxu0 %v10273_v25 }
 0x3ed   :  { %5627 = vmatpush2.bf16.msra.mxu1 %v8454_v0  ;;  %5652 = vmatpush1.bf16.msra.mxu0 %v8008_v14  ;;  %v7968_v0 = vcombine.low %v2064_v54, %v2068_v9  ;;  %v8407_v14 = vcombine.high %v2503_v1, %v2507_v3  ;;  %v2216_v54 = vld [vmem:[#allocation14 + $0x558] sm:$0xff] }
 0x3ee   :  { %5683 = vmatprep.mubr.bf16.mxu0 %v10214_v33  ;;  %v10326_v63 = vpop.f32.mrf.mxu0  ;;  %5628 = vmatprep.subr.bf16.mxu1 %v8447_v5  ;;  %v7985_v33 = vcombine.high %v2080_v36, %v2084_v37  ;;  %v7961_v5 = vcombine.high %v2056_v4, %v2060_v12  ;;  %v2236_v36 = vld [vmem:[#allocation14 + $0x5f8] sm:$0xff] }
 0x3ef   :  { %5653 = vmatprep.subr.bf16.mxu0 %v8001_v62  ;;  %v2499_v62 = vld [vmem:[#allocation14 + $0xe30] sm:$0xff]  ;;  %v2220_v9 = vld [vmem:[#allocation14 + $0x578] sm:$0xff] }
 0x3f0   :  { %v5361_v38 = vpop.f32.mrf.mxu0  ;;  %v8398_v37 = vcombine.low %v2495_v15, %v2499_v62  ;;  %v8121_v3 = vcombine.high %v2216_v54, %v2220_v9 }
 0x3f1   :  { %5629 = vmatpush2.bf16.msra.mxu1 %v8446_v23  ;;  %5654 = vmatpush1.bf16.msra.mxu0 %v8000_v61  ;;  %v7960_v23 = vcombine.low %v2056_v4, %v2060_v12  ;;  %v8399_v61 = vcombine.high %v2495_v15, %v2499_v62  ;;  %v7952_v38 = vcombine.low %v2048_v18, %v2052_v19  ;;  %v2144_v4 = vld [vmem:[#allocation14 + $0x318] sm:$0xff] }
 0x3f2   :  { %v5362_v41 = vpop.f32.mrf.mxu0  ;;  %5630 = vmatprep.subr.bf16.mxu1 %v8439_v24  ;;  %5655 = vmatprep.subr.bf16.mxu0 %v7993_v26  ;;  %v7953_v24 = vcombine.high %v2048_v18, %v2052_v19  ;;  %v2168_v26 = vld [vmem:[#allocation14 + $0x3d8] sm:$0xff]  ;;  %v8120_v15 = vcombine.low %v2216_v54, %v2220_v9 }
 0x3f3   :  { %v2570_v41 = vrot.slane %v10292_v45, %v10235_v2  ;;  %v8072_v47 = vcombine.low %v2168_v26, %v2172_v46  ;;  %v5360_v45 = vadd.f32 %v10326_v63, %v2574_v35  ;;  %v2136_v19 = vld [vmem:[#allocation14 + $0x2d8] sm:$0xff] }
 0x3f4   :  { %v2184_v35 = vld [vmem:[#allocation14 + $0x458] sm:$0xff] }
 0x3f5   :  { %5631 = vmatpush2.bf16.msra.mxu1 %v8438_v17  ;;  %5656 = vmatpush1.bf16.msra.mxu0 %v7992_v39  ;;  %v8073_v17 = vcombine.high %v2168_v26, %v2172_v46  ;;  %v8137_v39 = vcombine.high %v2232_v29, %v2236_v36  ;;  %v2176_v54 = vld [vmem:[#allocation14 + $0x418] sm:$0xff] }
 0x3f6   :  { %5632 = vmatprep.subr.bf16.mxu1 %v8431_v42  ;;  %5657 = vmatprep.subr.bf16.mxu0 %v7985_v33  ;;  %v2160_v42 = vld [vmem:[#allocation14 + $0x398] sm:$0xff] }
 0x3f7   :  { %v2164_v33 = vld [vmem:[#allocation14 + $0x3b8] sm:$0xff] }
 0x3f8   :  { %v2180_v9 = vld [vmem:[#allocation14 + $0x438] sm:$0xff] }
 0x3f9   :  { %5633 = vmatpush2.bf16.msra.mxu1 %v8430_v48  ;;  %5658 = vmatpush1.bf16.msra.mxu0 %v7984_v6  ;;  %v8136_v48 = vcombine.low %v2232_v29, %v2236_v36  ;;  %v8065_v6 = vcombine.high %v2160_v42, %v2164_v33  ;;  %v2128_v36 = vld [vmem:[#allocation14 + $0x298] sm:$0xff] }
 0x3fa   :  { %5634 = vmatprep.subr.bf16.mxu1 %v8423_v32  ;;  %5659 = vmatprep.subr.bf16.mxu0 %v7977_v57  ;;  %v2152_v32 = vld [vmem:[#allocation14 + $0x358] sm:$0xff]  ;;  %v5358_v57 = vadd.f32 %v10322_v22, %v2570_v41 }
 0x3fb   :  { %v8057_v22 = vcombine.high %v2152_v32, %v2156_v53  ;;  %v8056_v63 = vcombine.low %v2152_v32, %v2156_v53  ;;  %v2116_v53 = vld [vmem:[#allocation14 + $0x238] sm:$0xff] }
 0x3fd   :  { %5635 = vmatpush2.bf16.msra.mxu1 %v8422_v56  ;;  %5660 = vmatpush1.bf16.msra.mxu0 %v7976_v60  ;;  %v8064_v60 = vcombine.low %v2160_v42, %v2164_v33 }
 0x3fe   :  { %5636 = vmatprep.subr.bf16.mxu1 %v8415_v58  ;;  %5661 = vmatprep.subr.bf16.mxu0 %v7969_v16  ;;  %v8128_v16 = vcombine.low %v2224_v44, %v2228_v49  ;;  %v2120_v44 = vld [vmem:[#allocation14 + $0x258] sm:$0xff] }
 0x3ff   :  { %v2124_v49 = vld [vmem:[#allocation14 + $0x278] sm:$0xff] }
 0x400   :  { %v8025_v32 = vcombine.high %v2120_v44, %v2124_v49 }
 0x401   :  { %5637 = vmatpush2.bf16.msra.mxu1 %v8414_v7  ;;  %5662 = vmatpush1.bf16.msra.mxu0 %v7968_v0  ;;  %v2148_v7 = vld [vmem:[#allocation14 + $0x338] sm:$0xff] }
 0x402   :  { %5638 = vmatprep.subr.bf16.mxu1 %v8407_v14  ;;  %5663 = vmatprep.subr.bf16.mxu0 %v7961_v5  ;;  %v2208_v0 = vld [vmem:[#allocation14 + $0x518] sm:$0xff] }
 0x403   :  { %v2212_v14 = vld [vmem:[#allocation14 + $0x538] sm:$0xff] }
 0x404   :  { %v8113_v18 = vcombine.high %v2208_v0, %v2212_v14  ;;  %v8112_v26 = vcombine.low %v2208_v0, %v2212_v14  ;;  %v8080_v0 = vcombine.low %v2176_v54, %v2180_v9 }
 0x405   :  { %5639 = vmatpush2.bf16.msra.mxu1 %v8406_v20  ;;  %5664 = vmatpush1.bf16.msra.mxu0 %v7960_v23  ;;  %v2140_v20 = vld [vmem:[#allocation14 + $0x2f8] sm:$0xff] }
 0x406   :  { %5640 = vmatprep.subr.bf16.mxu1 %v8399_v61  ;;  %5665 = vmatprep.subr.bf16.mxu0 %v7953_v24  ;;  %v2200_v23 = vld [vmem:[#allocation14 + $0x4d8] sm:$0xff]  ;;  %v8048_v24 = vcombine.low %v2144_v4, %v2148_v7  ;;  %v8041_v46 = vcombine.high %v2136_v19, %v2140_v20 }
 0x407   :  { %v2204_v61 = vld [vmem:[#allocation14 + $0x4f8] sm:$0xff] }
 0x408   :  { %v8105_v29 = vcombine.high %v2200_v23, %v2204_v61  ;;  %v8104_v41 = vcombine.low %v2200_v23, %v2204_v61  ;;  %v2280_v23 = vld [vmem:[#allocation14 + $0x758] sm:$0xff] }
 0x409   :  { %5641 = vmatpush2.bf16.msra.mxu1 %v8398_v37  ;;  %5666 = vmatpush1.bf16.msra.mxu0 %v7952_v38  ;;  %v2132_v37 = vld [vmem:[#allocation14 + $0x2b8] sm:$0xff] }
 0x40a   :  { %5667 = vmatprep.subr.bf16.mxu0 %v8073_v17  ;;  %5692 = vmatprep.subr.bf16.mxu1 %v8137_v39  ;;  %v2192_v38 = vld [vmem:[#allocation14 + $0x498] sm:$0xff]  ;;  %v8040_v39 = vcombine.low %v2136_v19, %v2140_v20  ;;  %v8033_v42 = vcombine.high %v2128_v36, %v2132_v37 }
 0x40b   :  { %v2196_v17 = vld [vmem:[#allocation14 + $0x4b8] sm:$0xff] }
 0x40c   :  { %v5398_v56 = vpop.f32.mrf.mxu1  ;;  %5643 = vmatmul.mubr.bf16.vlgmr.msra.gmra.mxu1 %v10278_v51  ;;  %v8097_v33 = vcombine.high %v2192_v38, %v2196_v17 }
 0x40d   :  { %v10335_v58 = vadd.f32 %v5398_v56, %v5358_v57  ;;  %5668 = vmatpush2.bf16.msra.mxu0 %v8072_v47  ;;  %5693 = vmatpush1.bf16.msra.mxu1 %v8136_v48  ;;  %v2188_v47 = vld [vmem:[#allocation14 + $0x478] sm:$0xff]  ;;  %v8032_v48 = vcombine.low %v2128_v36, %v2132_v37  ;;  %v8024_v56 = vcombine.low %v2120_v44, %v2124_v49 }
 0x40e   :  { %5724 = vmatprep.mubr.bf16.mxu1 %v10250_v30  ;;  %v5400_v1 = vpop.f32.mrf.mxu1  ;;  %5669 = vmatprep.subr.bf16.mxu0 %v8065_v6  ;;  %v8049_v30 = vcombine.high %v2144_v4, %v2148_v7  ;;  %v8096_v6 = vcombine.low %v2192_v38, %v2196_v17  ;;  %v8089_v57 = vcombine.high %v2184_v35, %v2188_v47  ;;  %v2364_v4 = vld [vmem:[#allocation14 + $0x9f8] sm:$0xff] }
 0x40f   :  { %v10338_v12 = vadd.f32 %v5400_v1, %v5360_v45  ;;  %5694 = vmatprep.subr.bf16.mxu1 %v8129_v52  ;;  %v2112_v52 = vld [vmem:[#allocation14 + $0x218] sm:$0xff] }
 0x410   :  { %v5402_v5 = vpop.f32.mrf.mxu1  ;;  %v8017_v45 = vcombine.high %v2112_v52, %v2116_v53  ;;  %v2296_v1 = vld [vmem:[#allocation14 + $0x7d8] sm:$0xff]  ;;  %v8016_v7 = vcombine.low %v2112_v52, %v2116_v53 }
 0x411   :  { %5670 = vmatpush2.bf16.msra.mxu0 %v8064_v60  ;;  %5695 = vmatpush1.bf16.msra.mxu1 %v8128_v16  ;;  %v8088_v60 = vcombine.low %v2184_v35, %v2188_v47  ;;  %v8081_v16 = vcombine.high %v2176_v54, %v2180_v9  ;;  %v2276_v44 = vld [vmem:[#allocation14 + $0x738] sm:$0xff] }
 0x412   :  { %v5403_v62 = vpop.f32.mrf.mxu1  ;;  %5671 = vmatprep.subr.bf16.mxu0 %v8057_v22  ;;  %5696 = vmatprep.subr.bf16.mxu1 %v8121_v3  ;;  %v2300_v22 = vld [vmem:[#allocation14 + $0x7f8] sm:$0xff] }
 0x413   :  { %v2360_v3 = vld [vmem:[#allocation14 + $0x9d8] sm:$0xff]  ;;  %v8201_v14 = vcombine.high %v2296_v1, %v2300_v22 }
 0x414   :  { %v8265_v5 = vcombine.high %v2360_v3, %v2364_v4  ;;  %v2352_v62 = vld [vmem:[#allocation14 + $0x998] sm:$0xff]  ;;  %v8264_v19 = vcombine.low %v2360_v3, %v2364_v4 }
 0x415   :  { %5672 = vmatpush2.bf16.msra.mxu0 %v8056_v63  ;;  %5697 = vmatpush1.bf16.msra.mxu1 %v8120_v15  ;;  %v2288_v63 = vld [vmem:[#allocation14 + $0x798] sm:$0xff] }
 0x416   :  { %5673 = vmatprep.subr.bf16.mxu0 %v8049_v30  ;;  %5698 = vmatprep.subr.bf16.mxu1 %v8113_v18  ;;  %v2292_v15 = vld [vmem:[#allocation14 + $0x7b8] sm:$0xff]  ;;  %v8200_v18 = vcombine.low %v2296_v1, %v2300_v22 }
 0x417   :  { %v2356_v30 = vld [vmem:[#allocation14 + $0x9b8] sm:$0xff]  ;;  %v8193_v20 = vcombine.high %v2288_v63, %v2292_v15  ;;  %v8192_v37 = vcombine.low %v2288_v63, %v2292_v15 }
 0x418   :  { %v8257_v61 = vcombine.high %v2352_v62, %v2356_v30  ;;  %v8256_v38 = vcombine.low %v2352_v62, %v2356_v30  ;;  %v2340_v49 = vld [vmem:[#allocation14 + $0x938] sm:$0xff] }
 0x419   :  { %5674 = vmatpush2.bf16.msra.mxu0 %v8048_v24  ;;  %5699 = vmatpush1.bf16.msra.mxu1 %v8112_v26  ;;  %v2284_v24 = vld [vmem:[#allocation14 + $0x778] sm:$0xff] }
 0x41a   :  { %5675 = vmatprep.subr.bf16.mxu0 %v8041_v46  ;;  %5700 = vmatprep.subr.bf16.mxu1 %v8105_v29  ;;  %v2344_v26 = vld [vmem:[#allocation14 + $0x958] sm:$0xff]  ;;  %v8184_v35 = vcombine.low %v2280_v23, %v2284_v24 }
 0x41b   :  { %v2348_v46 = vld [vmem:[#allocation14 + $0x978] sm:$0xff] }
 0x41c   :  { %v8248_v47 = vcombine.low %v2344_v26, %v2348_v46  ;;  %v2328_v52 = vld [vmem:[#allocation14 + $0x8d8] sm:$0xff] }
 0x41d   :  { %5676 = vmatpush2.bf16.msra.mxu0 %v8040_v39  ;;  %5701 = vmatpush1.bf16.msra.mxu1 %v8104_v41  ;;  %v8185_v39 = vcombine.high %v2280_v23, %v2284_v24  ;;  %v8249_v41 = vcombine.high %v2344_v26, %v2348_v46  ;;  %v2332_v53 = vld [vmem:[#allocation14 + $0x8f8] sm:$0xff] }
 0x41e   :  { %5677 = vmatprep.subr.bf16.mxu0 %v8033_v42  ;;  %5702 = vmatprep.subr.bf16.mxu1 %v8097_v33  ;;  %v2272_v42 = vld [vmem:[#allocation14 + $0x718] sm:$0xff]  ;;  %v8232_v3 = vcombine.low %v2328_v52, %v2332_v53 }
 0x41f   :  { %v2324_v1 = vld [vmem:[#allocation14 + $0x8b8] sm:$0xff] }
 0x420   :  { %v2316_v63 = vld [vmem:[#allocation14 + $0x878] sm:$0xff] }
 0x421   :  { %5678 = vmatpush2.bf16.msra.mxu0 %v8032_v48  ;;  %5703 = vmatpush1.bf16.msra.mxu1 %v8096_v6  ;;  %v2304_v23 = vld [vmem:[#allocation14 + $0x818] sm:$0xff] }
 0x422   :  { %5679 = vmatprep.subr.bf16.mxu0 %v8025_v32  ;;  %5704 = vmatprep.subr.bf16.mxu1 %v8089_v57  ;;  %v2264_v32 = vld [vmem:[#allocation14 + $0x6d8] sm:$0xff] }
 0x423   :  { %v2268_v57 = vld [vmem:[#allocation14 + $0x6f8] sm:$0xff] }
 0x424   :  { %v8169_v9 = vcombine.high %v2264_v32, %v2268_v57  ;;  %v8168_v22 = vcombine.low %v2264_v32, %v2268_v57  ;;  %v2408_v32 = vld [vmem:[#allocation14 + $0xb58] sm:$0xff] }
 0x425   :  { %5680 = vmatpush2.bf16.msra.mxu0 %v8024_v56  ;;  %5705 = vmatpush1.bf16.msra.mxu1 %v8088_v60  ;;  %v8233_v56 = vcombine.high %v2328_v52, %v2332_v53  ;;  %v2256_v60 = vld [vmem:[#allocation14 + $0x698] sm:$0xff] }
 0x426   :  { %5681 = vmatprep.subr.bf16.mxu0 %v8017_v45  ;;  %5706 = vmatprep.subr.bf16.mxu1 %v8081_v16  ;;  %v2260_v45 = vld [vmem:[#allocation14 + $0x6b8] sm:$0xff] }
 0x427   :  { %v2320_v16 = vld [vmem:[#allocation14 + $0x898] sm:$0xff]  ;;  %v8161_v4 = vcombine.high %v2256_v60, %v2260_v45  ;;  %v8160_v15 = vcombine.low %v2256_v60, %v2260_v45 }
 0x428   :  { %v8224_v62 = vcombine.low %v2320_v16, %v2324_v1  ;;  %v2412_v52 = vld [vmem:[#allocation14 + $0xb78] sm:$0xff] }
 0x429   :  { %5682 = vmatpush2.bf16.msra.mxu0 %v8016_v7  ;;  %5707 = vmatpush1.bf16.msra.mxu1 %v8080_v0  ;;  %v8225_v7 = vcombine.high %v2320_v16, %v2324_v1  ;;  %v2248_v0 = vld [vmem:[#allocation14 + $0x658] sm:$0xff]  ;;  %v8313_v16 = vcombine.high %v2408_v32, %v2412_v52 }
 0x42a   :  { %5708 = vmatprep.subr.bf16.mxu1 %v8201_v14  ;;  %5733 = vmatprep.subr.bf16.mxu0 %v8265_v5  ;;  %v2252_v14 = vld [vmem:[#allocation14 + $0x678] sm:$0xff] }
 0x42b   :  { %v2312_v5 = vld [vmem:[#allocation14 + $0x858] sm:$0xff]  ;;  %v8153_v30 = vcombine.high %v2248_v0, %v2252_v14  ;;  %v8152_v24 = vcombine.low %v2248_v0, %v2252_v14 }
 0x42c   :  { %v5439_v29 = vpop.f32.mrf.mxu0  ;;  %5684 = vmatmul.mubr.bf16.vlgmr.msra.gmra.mxu0 %v10216_v34  ;;  %v2336_v34 = vld [vmem:[#allocation14 + $0x918] sm:$0xff]  ;;  %v8216_v26 = vcombine.low %v2312_v5, %v2316_v63 }
 0x42d   :  { %v10342_v36 = vadd.f32 %v5439_v29, %v10335_v58  ;;  %5709 = vmatpush2.bf16.msra.mxu1 %v8200_v18  ;;  %5734 = vmatpush1.bf16.msra.mxu0 %v8264_v19  ;;  %v8241_v6 = vcombine.high %v2336_v34, %v2340_v49  ;;  %v8240_v54 = vcombine.low %v2336_v34, %v2340_v49  ;;  %v2240_v19 = vld [vmem:[#allocation14 + $0x618] sm:$0xff] }
 0x42e   :  { %5765 = vmatprep.mubr.bf16.mxu0 %v10231_v59  ;;  %v5441_v17 = vpop.f32.mrf.mxu0  ;;  %5710 = vmatprep.subr.bf16.mxu1 %v8193_v20  ;;  %v8177_v59 = vcombine.high %v2272_v42, %v2276_v44  ;;  %v8217_v18 = vcombine.high %v2312_v5, %v2316_v63  ;;  %v2244_v20 = vld [vmem:[#allocation14 + $0x638] sm:$0xff] }
 0x42f   :  { %v10346_v33 = vadd.f32 %v5441_v17, %v10338_v12  ;;  %5735 = vmatprep.subr.bf16.mxu0 %v8257_v61  ;;  %v8176_v12 = vcombine.low %v2272_v42, %v2276_v44  ;;  %v2308_v61 = vld [vmem:[#allocation14 + $0x838] sm:$0xff]  ;;  %v8145_v46 = vcombine.high %v2240_v19, %v2244_v20 }
 0x430   :  { %v5443_v58 = vpop.f32.mrf.mxu0  ;;  %v8209_v29 = vcombine.high %v2304_v23, %v2308_v61  ;;  %v2488_v17 = vld [vmem:[#allocation14 + $0xdd8] sm:$0xff]  ;;  %v8208_v42 = vcombine.low %v2304_v23, %v2308_v61 }
 0x431   :  { %5711 = vmatpush2.bf16.msra.mxu1 %v8192_v37  ;;  %5736 = vmatpush1.bf16.msra.mxu0 %v8256_v38  ;;  %v2424_v37 = vld [vmem:[#allocation14 + $0xbd8] sm:$0xff] }
 0x432   :  { %v5444_v48 = vpop.f32.mrf.mxu0  ;;  %5712 = vmatprep.subr.bf16.mxu1 %v8185_v39  ;;  %5737 = vmatprep.subr.bf16.mxu0 %v8249_v41  ;;  %v2428_v38 = vld [vmem:[#allocation14 + $0xbf8] sm:$0xff]  ;;  %v8144_v41 = vcombine.low %v2240_v19, %v2244_v20 }
 0x433   :  { %v2492_v39 = vld [vmem:[#allocation14 + $0xdf8] sm:$0xff]  ;;  %v8329_v44 = vcombine.high %v2424_v37, %v2428_v38  ;;  %v8328_v48 = vcombine.low %v2424_v37, %v2428_v38 }
 0x434   :  { %v8393_v34 = vcombine.high %v2488_v17, %v2492_v39  ;;  %v2416_v49 = vld [vmem:[#allocation14 + $0xb98] sm:$0xff] }
 0x435   :  { %5713 = vmatpush2.bf16.msra.mxu1 %v8184_v35  ;;  %5738 = vmatpush1.bf16.msra.mxu0 %v8248_v47  ;;  %v2420_v58 = vld [vmem:[#allocation14 + $0xbb8] sm:$0xff] }
 0x436   :  { %5714 = vmatprep.subr.bf16.mxu1 %v8177_v59  ;;  %5739 = vmatprep.subr.bf16.mxu0 %v8241_v6  ;;  %v2480_v35 = vld [vmem:[#allocation14 + $0xd98] sm:$0xff]  ;;  %v8392_v59 = vcombine.low %v2488_v17, %v2492_v39  ;;  %v8321_v6 = vcombine.high %v2416_v49, %v2420_v58 }
 0x437   :  { %v2484_v47 = vld [vmem:[#allocation14 + $0xdb8] sm:$0xff] }
 0x438   :  { %v8385_v57 = vcombine.high %v2480_v35, %v2484_v47  ;;  %v2472_v53 = vld [vmem:[#allocation14 + $0xd58] sm:$0xff]  ;;  %v8384_v60 = vcombine.low %v2480_v35, %v2484_v47 }
 0x439   :  { %5715 = vmatpush2.bf16.msra.mxu1 %v8176_v12  ;;  %5740 = vmatpush1.bf16.msra.mxu0 %v8240_v54  ;;  %v2476_v12 = vld [vmem:[#allocation14 + $0xd78] sm:$0xff] }
 0x43a   :  { %5716 = vmatprep.subr.bf16.mxu1 %v8169_v9  ;;  %5741 = vmatprep.subr.bf16.mxu0 %v8233_v56  ;;  %v8320_v56 = vcombine.low %v2416_v49, %v2420_v58  ;;  %v8377_v1 = vcombine.high %v2472_v53, %v2476_v12  ;;  %v8376_v0 = vcombine.low %v2472_v53, %v2476_v12  ;;  %v2392_v63 = vld [vmem:[#allocation14 + $0xad8] sm:$0xff] }
 0x43b   :  { %v2384_v61 = vld [vmem:[#allocation14 + $0xa98] sm:$0xff] }
 0x43c   :  { %v2376_v39 = vld [vmem:[#allocation14 + $0xa58] sm:$0xff] }
 0x43d   :  { %5717 = vmatpush2.bf16.msra.mxu1 %v8168_v22  ;;  %5742 = vmatpush1.bf16.msra.mxu0 %v8232_v3  ;;  %v2400_v22 = vld [vmem:[#allocation14 + $0xb18] sm:$0xff] }
 0x43e   :  { %5718 = vmatprep.subr.bf16.mxu1 %v8161_v4  ;;  %5743 = vmatprep.subr.bf16.mxu0 %v8225_v7  ;;  %v2404_v3 = vld [vmem:[#allocation14 + $0xb38] sm:$0xff] }
 0x43f   :  { %v2464_v4 = vld [vmem:[#allocation14 + $0xd18] sm:$0xff]  ;;  %v8305_v5 = vcombine.high %v2400_v22, %v2404_v3 }
 0x440   :  { %v2468_v7 = vld [vmem:[#allocation14 + $0xd38] sm:$0xff] }
 0x441   :  { %5719 = vmatpush2.bf16.msra.mxu1 %v8160_v15  ;;  %5744 = vmatpush1.bf16.msra.mxu0 %v8224_v62  ;;  %v2396_v15 = vld [vmem:[#allocation14 + $0xaf8] sm:$0xff]  ;;  %v8368_v19 = vcombine.low %v2464_v4, %v2468_v7 }
 0x442   :  { %5720 = vmatprep.subr.bf16.mxu1 %v8153_v30  ;;  %5745 = vmatprep.subr.bf16.mxu0 %v8217_v18  ;;  %v2456_v62 = vld [vmem:[#allocation14 + $0xcd8] sm:$0xff]  ;;  %v8304_v18 = vcombine.low %v2400_v22, %v2404_v3  ;;  %v8297_v20 = vcombine.high %v2392_v63, %v2396_v15 }
 0x443   :  { %v2460_v30 = vld [vmem:[#allocation14 + $0xcf8] sm:$0xff] }
 0x444   :  { %v8361_v23 = vcombine.high %v2456_v62, %v2460_v30  ;;  %v8360_v37 = vcombine.low %v2456_v62, %v2460_v30  ;;  %v2368_v47 = vld [vmem:[#allocation14 + $0xa18] sm:$0xff] }
 0x445   :  { %5721 = vmatpush2.bf16.msra.mxu1 %v8152_v24  ;;  %5746 = vmatpush1.bf16.msra.mxu0 %v8216_v26  ;;  %v2388_v24 = vld [vmem:[#allocation14 + $0xab8] sm:$0xff] }
 0x446   :  { %5722 = vmatprep.subr.bf16.mxu1 %v8145_v46  ;;  %5747 = vmatprep.subr.bf16.mxu0 %v8209_v29  ;;  %v2448_v26 = vld [vmem:[#allocation14 + $0xc98] sm:$0xff]  ;;  %v8296_v29 = vcombine.low %v2392_v63, %v2396_v15  ;;  %v8289_v38 = vcombine.high %v2384_v61, %v2388_v24 }
 0x447   :  { %v2452_v46 = vld [vmem:[#allocation14 + $0xcb8] sm:$0xff] }
 0x448   :  { %v8353_v17 = vcombine.high %v2448_v26, %v2452_v46  ;;  %v8352_v49 = vcombine.low %v2448_v26, %v2452_v46  ;;  %v2552_v12 = vld [vmem:[#allocation14 + $0xfd8] sm:$0xff] }
 0x449   :  { %5723 = vmatpush2.bf16.msra.mxu1 %v8144_v41  ;;  %5748 = vmatpush1.bf16.msra.mxu0 %v8208_v42  ;;  %v2380_v41 = vld [vmem:[#allocation14 + $0xa78] sm:$0xff] }
 0x44a   :  { %5749 = vmatprep.subr.bf16.mxu0 %v8329_v44  ;;  %5774 = vmatprep.subr.bf16.mxu1 %v8393_v34  ;;  %v2440_v42 = vld [vmem:[#allocation14 + $0xc58] sm:$0xff]  ;;  %v8288_v34 = vcombine.low %v2384_v61, %v2388_v24  ;;  %v8281_v58 = vcombine.high %v2376_v39, %v2380_v41 }
 0x44b   :  { %v2444_v44 = vld [vmem:[#allocation14 + $0xc78] sm:$0xff] }
 0x44c   :  { %v5480_v54 = vpop.f32.mrf.mxu1  ;;  %5725 = vmatmul.mubr.bf16.vlgmr.msra.gmra.mxu1 %v10255_v50  ;;  %v8345_v35 = vcombine.high %v2440_v42, %v2444_v44  ;;  %v2544_v22 = vld [vmem:[#allocation14 + $0xf98] sm:$0xff] }
 0x44d   :  { %v10350_v9 = vadd.f32 %v5480_v54, %v10342_v36  ;;  %5750 = vmatpush2.bf16.msra.mxu0 %v8328_v48  ;;  %5775 = vmatpush1.bf16.msra.mxu1 %v8392_v59  ;;  %v8312_v36 = vcombine.low %v2408_v32, %v2412_v52  ;;  %v2372_v48 = vld [vmem:[#allocation14 + $0xa38] sm:$0xff]  ;;  %v8280_v32 = vcombine.low %v2376_v39, %v2380_v41 }
 0x44e   :  { %5806 = vmatprep.mubr.bf16.mxu1 %v10264_v21  ;;  %v10353_v45 = vpop.f32.mrf.mxu1  ;;  %5751 = vmatprep.subr.bf16.mxu0 %v8321_v6  ;;  %v8369_v21 = vcombine.high %v2464_v4, %v2468_v7  ;;  %v2432_v59 = vld [vmem:[#allocation14 + $0xc18] sm:$0xff]  ;;  %v8273_v52 = vcombine.high %v2368_v47, %v2372_v48  ;;  %v5816_v4 = vmax.f32 %v10320_v55, 0.0 }
 0x44f   :  { %5776 = vmatprep.subr.bf16.mxu1 %v8385_v57  ;;  %v2436_v6 = vld [vmem:[#allocation14 + $0xc38] sm:$0xff]  ;;  %v8344_v57 = vcombine.low %v2440_v42, %v2444_v44 }
 0x450   :  { %v5484_v50 = vpop.f32.mrf.mxu1  ;;  %v8337_v53 = vcombine.high %v2432_v59, %v2436_v6  ;;  %v2556_v54 = vld [vmem:[#allocation14 + $0xff8] sm:$0xff] }
 0x451   :  { %5752 = vmatpush2.bf16.msra.mxu0 %v8320_v56  ;;  %5777 = vmatpush1.bf16.msra.mxu1 %v8384_v60  ;;  %v8272_v56 = vcombine.low %v2368_v47, %v2372_v48  ;;  %v8336_v60 = vcombine.low %v2432_v59, %v2436_v6  ;;  %v2548_v3 = vld [vmem:[#allocation14 + $0xfb8] sm:$0xff]  ;;  %v8456_v7 = vcombine.low %v2552_v12, %v2556_v54 }
 0x452   :  { %v5485_v14 = vpop.f32.mrf.mxu1  ;;  %5753 = vmatprep.subr.bf16.mxu0 %v8313_v16  ;;  %5778 = vmatprep.subr.bf16.mxu1 %v8377_v1  ;;  %v8457_v16 = vcombine.high %v2552_v12, %v2556_v54  ;;  %v9022_v1 = vld [vmem:[#allocation17 + $0xe4] ss:$16 sps:$4 sm:$0xff]   ;;  %v9020_v50 = vld [vmem:[#allocation17 + $0xe0] ss:$16 sps:$4 sm:$0xff]   ;;  %v8448_v15 = vcombine.low %v2544_v22, %v2548_v3 }
 0x453   :  { %v2536_v14 = vld [vmem:[#allocation14 + $0xf58] sm:$0xff] }
 0x454   :  { %v9023_v55 = vld [vmem:[#allocation17 + $0xc0] ss:$16 sps:$4 sm:$0xff]   ;;  %v9031_v46 = vld [vmem:[#allocation17 + $0x84] ss:$16 sps:$4 sm:$0xff]  }
 0x455   :  { %5754 = vmatpush2.bf16.msra.mxu0 %v8312_v36  ;;  %5779 = vmatpush1.bf16.msra.mxu1 %v8376_v0  ;;  %v8449_v36 = vcombine.high %v2544_v22, %v2548_v3  ;;  %v9025_v0 = vld [vmem:[#allocation17 + $0xc4] ss:$16 sps:$4 sm:$0xff]   ;;  %v9026_v24 = vld [vmem:[#allocation17 + $0xa0] ss:$16 sps:$4 sm:$0xff]  }
 0x456   :  { %5755 = vmatprep.subr.bf16.mxu0 %v8305_v5  ;;  %5780 = vmatprep.subr.bf16.mxu1 %v8369_v21  ;;  %v2540_v5 = vld [vmem:[#allocation14 + $0xf78] sm:$0xff]  ;;  %v10356_v21 = vpack.c.bf16 %v5816_v4, %v5816_v4 }
 0x457   :  { %v8441_v30 = vcombine.high %v2536_v14, %v2540_v5  ;;  %v8440_v61 = vcombine.low %v2536_v14, %v2540_v5  ;;  %v9034_v41 = vld [vmem:[#allocation17 + $0x64] ss:$16 sps:$4 sm:$0xff]   ;;  %v9035_v6 = vld [vmem:[#allocation17 + $0x40] ss:$16 sps:$4 sm:$0xff]  }
 0x458   :  { %v2512_v42 = vld [vmem:[#allocation14 + $0xe98] sm:$0xff] }
 0x459   :  { %5756 = vmatpush2.bf16.msra.mxu0 %v8304_v18  ;;  %5781 = vmatpush1.bf16.msra.mxu1 %v8368_v19  ;;  %v9028_v18 = vld [vmem:[#allocation17 + $0xa4] ss:$16 sps:$4 sm:$0xff]   ;;  %v9038_v54 = vld [vmem:[#allocation17 + $0x20] ss:$16 sps:$4 sm:$0xff]  }
 0x45a   :  { %5757 = vmatprep.subr.bf16.mxu0 %v8297_v20  ;;  %5782 = vmatprep.subr.bf16.mxu1 %v8361_v23  ;;  %v2528_v19 = vld [vmem:[#allocation14 + $0xf18] sm:$0xff] }
 0x45b   :  { %v2532_v20 = vld [vmem:[#allocation14 + $0xf38] sm:$0xff] }
 0x45c   :  { %v8433_v26 = vcombine.high %v2528_v19, %v2532_v20  ;;  %v2516_v44 = vld [vmem:[#allocation14 + $0xeb8] sm:$0xff] }
 0x45d   :  { %5758 = vmatpush2.bf16.msra.mxu0 %v8296_v29  ;;  %5783 = vmatpush1.bf16.msra.mxu1 %v8360_v37  ;;  %v2520_v29 = vld [vmem:[#allocation14 + $0xed8] sm:$0xff]  ;;  %v8416_v59 = vcombine.low %v2512_v42, %v2516_v44 }
 0x45e   :  { %5759 = vmatprep.subr.bf16.mxu0 %v8289_v38  ;;  %5784 = vmatprep.subr.bf16.mxu1 %v8353_v17  ;;  %v2524_v37 = vld [vmem:[#allocation14 + $0xef8] sm:$0xff]  ;;  %v8432_v38 = vcombine.low %v2528_v19, %v2532_v20 }
 0x45f   :  { %v9029_v17 = vld [vmem:[#allocation17 + $0x80] ss:$16 sps:$4 sm:$0xff]   ;;  %v8425_v39 = vcombine.high %v2520_v29, %v2524_v37  ;;  %v9046_v3 = vld [vmem:[#allocation17 + $0x1e4] ss:$16 sps:$4 sm:$0xff]  }
 0x460   :  { %v2504_v47 = vld [vmem:[#allocation14 + $0xe58] sm:$0xff] }
 0x461   :  { %5760 = vmatpush2.bf16.msra.mxu0 %v8288_v34  ;;  %5785 = vmatpush1.bf16.msra.mxu1 %v8352_v49  ;;  %v8424_v34 = vcombine.low %v2520_v29, %v2524_v37  ;;  %v9032_v49 = vld [vmem:[#allocation17 + $0x60] ss:$16 sps:$4 sm:$0xff]   ;;  %v9049_v4 = vld [vmem:[#allocation17 + $0x2e4] ss:$16 sps:$4 sm:$0xff]  }
 0x462   :  { %5761 = vmatprep.subr.bf16.mxu0 %v8281_v58  ;;  %5786 = vmatprep.subr.bf16.mxu1 %v8345_v35  ;;  %v8417_v58 = vcombine.high %v2512_v42, %v2516_v44  ;;  %v9037_v35 = vld [vmem:[#allocation17 + $0x44] ss:$16 sps:$4 sm:$0xff]   ;;  %v9041_v22 = vld [vmem:[#allocation17] ss:$16 sps:$4 sm:$0xff]  }
 0x463   :  { %v2508_v48 = vld [vmem:[#allocation14 + $0xe78] sm:$0xff] }
 0x464   :  { %v8408_v12 = vcombine.low %v2504_v47, %v2508_v48  ;;  %v9047_v14 = vld [vmem:[#allocation17 + $0x2e0] ss:$16 sps:$4 sm:$0xff]   ;;  %v9055_v5 = vld [vmem:[#allocation17 + $0x2c4] ss:$16 sps:$4 sm:$0xff]  }
 0x465   :  { %5762 = vmatpush2.bf16.msra.mxu0 %v8280_v32  ;;  %5787 = vmatpush1.bf16.msra.mxu1 %v8344_v57  ;;  %v8409_v32 = vcombine.high %v2504_v47, %v2508_v48  ;;  %v9040_v57 = vld [vmem:[#allocation17 + $0x24] ss:$16 sps:$4 sm:$0xff]   ;;  %v9065_v29 = vld [vmem:[#allocation17 + $0x280] ss:$16 sps:$4 sm:$0xff]  }
 0x466   :  { %5763 = vmatprep.subr.bf16.mxu0 %v8273_v52  ;;  %5788 = vmatprep.subr.bf16.mxu1 %v8337_v53  ;;  %v2496_v52 = vld [vmem:[#allocation14 + $0xe18] sm:$0xff] }
 0x467   :  { %v2500_v53 = vld [vmem:[#allocation14 + $0xe38] sm:$0xff] }
 0x468   :  { %v9058_v20 = vld [vmem:[#allocation17 + $0x1a4] ss:$16 sps:$4 sm:$0xff]   ;;  %v9074_v44 = vld [vmem:[#allocation17 + $0x140] ss:$16 sps:$4 sm:$0xff]  }
 0x469   :  { %5764 = vmatpush2.bf16.msra.mxu0 %v8272_v56  ;;  %5789 = vmatpush1.bf16.msra.mxu1 %v8336_v60  ;;  %v8401_v56 = vcombine.high %v2496_v52, %v2500_v53  ;;  %v9043_v60 = vld [vmem:[#allocation17 + $0x4] ss:$16 sps:$4 sm:$0xff]   ;;  %v9083_v47 = vld [vmem:[#allocation17 + $0x220] ss:$16 sps:$4 sm:$0xff]  }
 0x46a   :  { %5790 = vmatprep.subr.bf16.mxu1 %v8457_v16  ;;  %7389 = vmatprep.subr.bf16.mxu0 %v9022_v1  ;;  %v5483_v16 = vadd.f32 %v10353_v45, %v10346_v33  ;;  %v8400_v1 = vcombine.low %v2496_v52, %v2500_v53  ;;  %v9052_v33 = vld [vmem:[#allocation17 + $0x1c4] ss:$16 sps:$4 sm:$0xff]  }
 0x46b   :  { %v9070_v37 = vld [vmem:[#allocation17 + $0x164] ss:$16 sps:$4 sm:$0xff]  }
 0x46c   :  { %v10358_v63 = vpop.f32.mrf.mxu0  ;;  %5766 = vmatmul.mubr.bf16.vlgmr.msra.gmra.mxu0 %v10273_v25  ;;  %v9079_v42 = vld [vmem:[#allocation17 + $0x244] ss:$16 sps:$4 sm:$0xff]  }
 0x46d   :  { %5791 = vmatpush2.bf16.msra.mxu1 %v8456_v7  ;;  %7390 = vmatpush1.bf16.msra.mxu0 %v9020_v50  ;;  %v10366_v7 = vld [vmem:[#allocation16] sm:$0xff]  ;;  %v9088_v48 = vld [vmem:[#allocation17 + $0x104] ss:$16 sps:$4 sm:$0xff]  }
 0x46e   :  { %7421 = vmatprep.mubr.bf16.mxu0 %v10356_v21  ;;  %v10362_v62 = vpop.f32.mrf.mxu0  ;;  %5792 = vmatprep.subr.bf16.mxu1 %v8449_v36  ;;  %v2578_v50 = vrot.slane %v10366_v7, %v1999_v43  ;;  %v5818_v36 = vmax.f32 %v5483_v16, 0.0  ;;  %v9050_v43 = vld [vmem:[#allocation17 + $0x1c0] ss:$16 sps:$4 sm:$0xff]   ;;  %v9094_v52 = vld [vmem:[#allocation17 + $0x3e4] ss:$16 sps:$4 sm:$0xff]  }
 0x46f   :  { %7391 = vmatprep.subr.bf16.mxu0 %v9025_v0  ;;  %v9044_v0 = vld [vmem:[#allocation17 + $0x1e0] ss:$16 sps:$4 sm:$0xff]   ;;  %v9097_v53 = vld [vmem:[#allocation17 + $0x4e4] ss:$16 sps:$4 sm:$0xff]  }
 0x470   :  { %v5525_v23 = vpop.f32.mrf.mxu0  ;;  %v5522_v45 = vadd.f32 %v10358_v63, %v2578_v50  ;;  %v9103_v16 = vld [vmem:[#allocation17 + $0x4c4] ss:$16 sps:$4 sm:$0xff]  }
 0x471   :  { %5793 = vmatpush2.bf16.msra.mxu1 %v8448_v15  ;;  %7392 = vmatpush1.bf16.msra.mxu0 %v9023_v55  ;;  %v10372_v15 = vpack.c.bf16 %v5818_v36, %v5818_v36  ;;  %v9061_v23 = vld [vmem:[#allocation17 + $0x2a4] ss:$16 sps:$4 sm:$0xff]  }
 0x472   :  { %v5526_v25 = vpop.f32.mrf.mxu0  ;;  %5794 = vmatprep.subr.bf16.mxu1 %v8441_v30  ;;  %7393 = vmatprep.subr.bf16.mxu0 %v9028_v18  ;;  %v9053_v18 = vld [vmem:[#allocation17 + $0x2c0] ss:$16 sps:$4 sm:$0xff]   ;;  %v9109_v50 = vld [vmem:[#allocation17 + $0x4a4] ss:$16 sps:$4 sm:$0xff]  }
 0x473   :  { %v9064_v25 = vld [vmem:[#allocation17 + $0x184] ss:$16 sps:$4 sm:$0xff]  }
 0x475   :  { %5795 = vmatpush2.bf16.msra.mxu1 %v8440_v61  ;;  %7394 = vmatpush1.bf16.msra.mxu0 %v9026_v24  ;;  %v9056_v61 = vld [vmem:[#allocation17 + $0x1a0] ss:$16 sps:$4 sm:$0xff]  }
 0x476   :  { %5796 = vmatprep.subr.bf16.mxu1 %v8433_v26  ;;  %7395 = vmatprep.subr.bf16.mxu0 %v9031_v46  ;;  %v9059_v24 = vld [vmem:[#allocation17 + $0x2a0] ss:$16 sps:$4 sm:$0xff]   ;;  %v9067_v26 = vld [vmem:[#allocation17 + $0x284] ss:$16 sps:$4 sm:$0xff]  }
 0x477   :  { %v9062_v46 = vld [vmem:[#allocation17 + $0x180] ss:$16 sps:$4 sm:$0xff]  }
 0x479   :  { %5797 = vmatpush2.bf16.msra.mxu1 %v8432_v38  ;;  %7396 = vmatpush1.bf16.msra.mxu0 %v9029_v17  ;;  %v9073_v38 = vld [vmem:[#allocation17 + $0x264] ss:$16 sps:$4 sm:$0xff]   ;;  %v9068_v17 = vld [vmem:[#allocation17 + $0x160] ss:$16 sps:$4 sm:$0xff]  }
 0x47a   :  { %5798 = vmatprep.subr.bf16.mxu1 %v8425_v39  ;;  %7397 = vmatprep.subr.bf16.mxu0 %v9034_v41  ;;  %v9071_v39 = vld [vmem:[#allocation17 + $0x260] ss:$16 sps:$4 sm:$0xff]   ;;  %v9076_v41 = vld [vmem:[#allocation17 + $0x144] ss:$16 sps:$4 sm:$0xff]  }
 0x47d   :  { %5799 = vmatpush2.bf16.msra.mxu1 %v8424_v34  ;;  %7398 = vmatpush1.bf16.msra.mxu0 %v9032_v49  ;;  %v9077_v34 = vld [vmem:[#allocation17 + $0x240] ss:$16 sps:$4 sm:$0xff]   ;;  %v9082_v49 = vld [vmem:[#allocation17 + $0x124] ss:$16 sps:$4 sm:$0xff]  }
 0x47e   :  { %5800 = vmatprep.subr.bf16.mxu1 %v8417_v58  ;;  %7399 = vmatprep.subr.bf16.mxu0 %v9037_v35  ;;  %v9085_v58 = vld [vmem:[#allocation17 + $0x224] ss:$16 sps:$4 sm:$0xff]   ;;  %v9080_v35 = vld [vmem:[#allocation17 + $0x120] ss:$16 sps:$4 sm:$0xff]  }
 0x481   :  { %5801 = vmatpush2.bf16.msra.mxu1 %v8416_v59  ;;  %7400 = vmatpush1.bf16.msra.mxu0 %v9035_v6  ;;  %v9091_v59 = vld [vmem:[#allocation17 + $0x204] ss:$16 sps:$4 sm:$0xff]   ;;  %v9086_v6 = vld [vmem:[#allocation17 + $0x100] ss:$16 sps:$4 sm:$0xff]  }
 0x482   :  { %5802 = vmatprep.subr.bf16.mxu1 %v8409_v32  ;;  %7401 = vmatprep.subr.bf16.mxu0 %v9040_v57  ;;  %v9089_v32 = vld [vmem:[#allocation17 + $0x200] ss:$16 sps:$4 sm:$0xff]   ;;  %v5815_v57 = vmax.f32 %v10316_v28, 0.0 }
 0x483   :  { %v9098_v28 = vld [vmem:[#allocation17 + $0x3c0] ss:$16 sps:$4 sm:$0xff]  }
 0x485   :  { %5803 = vmatpush2.bf16.msra.mxu1 %v8408_v12  ;;  %7402 = vmatpush1.bf16.msra.mxu0 %v9038_v54  ;;  %v9092_v12 = vld [vmem:[#allocation17 + $0x3e0] ss:$16 sps:$4 sm:$0xff]  }
 0x486   :  { %5804 = vmatprep.subr.bf16.mxu1 %v8401_v56  ;;  %7403 = vmatprep.subr.bf16.mxu0 %v9043_v60  ;;  %v9095_v54 = vld [vmem:[#allocation17 + $0x4e0] ss:$16 sps:$4 sm:$0xff]   ;;  %v10381_v56 = vpack.c.bf16 %v5815_v57, %v5815_v57  ;;  %v9100_v60 = vld [vmem:[#allocation17 + $0x3c4] ss:$16 sps:$4 sm:$0xff]  }
 0x487   :  { %v9143_v57 = vld [vmem:[#allocation17 + $0x5c0] ss:$16 sps:$4 sm:$0xff]  }
 0x489   :  { %5805 = vmatpush2.bf16.msra.mxu1 %v8400_v1  ;;  %7404 = vmatpush1.bf16.msra.mxu0 %v9041_v22  ;;  %v9101_v22 = vld [vmem:[#allocation17 + $0x4c0] ss:$16 sps:$4 sm:$0xff]  }
 0x48a   :  { %7405 = vmatprep.subr.bf16.mxu0 %v9046_v3  ;;  %7430 = vmatprep.subr.bf16.mxu1 %v9049_v4  ;;  %v9106_v4 = vld [vmem:[#allocation17 + $0x3a4] ss:$16 sps:$4 sm:$0xff]  }
 0x48c   :  { %v5562_v55 = vpop.f32.mrf.mxu1  ;;  %5807 = vmatmul.mubr.bf16.vlgmr.msra.gmra.mxu1 %v10278_v51 }
 0x48d   :  { %v10375_v30 = vadd.f32 %v5562_v55, %v5522_v45  ;;  %7406 = vmatpush2.bf16.msra.mxu0 %v9044_v0  ;;  %7431 = vmatpush1.bf16.msra.mxu1 %v9047_v14  ;;  %v9104_v0 = vld [vmem:[#allocation17 + $0x3a0] ss:$16 sps:$4 sm:$0xff]   ;;  %v9112_v45 = vld [vmem:[#allocation17 + $0x384] ss:$16 sps:$4 sm:$0xff]  }
 0x48e   :  { %7462 = vmatprep.mubr.bf16.mxu1 %v10372_v15  ;;  %v10378_v19 = vpop.f32.mrf.mxu1  ;;  %7407 = vmatprep.subr.bf16.mxu0 %v9052_v33  ;;  %v9107_v14 = vld [vmem:[#allocation17 + $0x4a0] ss:$16 sps:$4 sm:$0xff]  }
 0x48f   :  { %7432 = vmatprep.subr.bf16.mxu1 %v9055_v5  ;;  %v9115_v5 = vld [vmem:[#allocation17 + $0x484] ss:$16 sps:$4 sm:$0xff]   ;;  %v9110_v55 = vld [vmem:[#allocation17 + $0x380] ss:$16 sps:$4 sm:$0xff]  }
 0x490   :  { %v5566_v63 = vpop.f32.mrf.mxu1 }
 0x491   :  { %7408 = vmatpush2.bf16.msra.mxu0 %v9050_v43  ;;  %7433 = vmatpush1.bf16.msra.mxu1 %v9053_v18  ;;  %v9113_v43 = vld [vmem:[#allocation17 + $0x480] ss:$16 sps:$4 sm:$0xff]   ;;  %v9118_v18 = vld [vmem:[#allocation17 + $0x364] ss:$16 sps:$4 sm:$0xff]  }
 0x492   :  { %v5567_v51 = vpop.f32.mrf.mxu1  ;;  %7409 = vmatprep.subr.bf16.mxu0 %v9058_v20  ;;  %7434 = vmatprep.subr.bf16.mxu1 %v9061_v23  ;;  %v9121_v20 = vld [vmem:[#allocation17 + $0x464] ss:$16 sps:$4 sm:$0xff]   ;;  %v9116_v23 = vld [vmem:[#allocation17 + $0x360] ss:$16 sps:$4 sm:$0xff]  }
 0x493   :  { %v9119_v63 = vld [vmem:[#allocation17 + $0x460] ss:$16 sps:$4 sm:$0xff]  }
 0x494   :  { %v9122_v51 = vld [vmem:[#allocation17 + $0x340] ss:$16 sps:$4 sm:$0xff]  }
 0x495   :  { %7410 = vmatpush2.bf16.msra.mxu0 %v9056_v61  ;;  %7435 = vmatpush1.bf16.msra.mxu1 %v9059_v24  ;;  %v9124_v61 = vld [vmem:[#allocation17 + $0x344] ss:$16 sps:$4 sm:$0xff]  }
 0x496   :  { %7411 = vmatprep.subr.bf16.mxu0 %v9064_v25  ;;  %7436 = vmatprep.subr.bf16.mxu1 %v9067_v26  ;;  %v9127_v24 = vld [vmem:[#allocation17 + $0x444] ss:$16 sps:$4 sm:$0xff]   ;;  %v9125_v25 = vld [vmem:[#allocation17 + $0x440] ss:$16 sps:$4 sm:$0xff]  }
 0x497   :  { %v9130_v26 = vld [vmem:[#allocation17 + $0x324] ss:$16 sps:$4 sm:$0xff]  }
 0x499   :  { %7412 = vmatpush2.bf16.msra.mxu0 %v9062_v46  ;;  %7437 = vmatpush1.bf16.msra.mxu1 %v9065_v29  ;;  %v9133_v46 = vld [vmem:[#allocation17 + $0x424] ss:$16 sps:$4 sm:$0xff]   ;;  %v9128_v29 = vld [vmem:[#allocation17 + $0x320] ss:$16 sps:$4 sm:$0xff]  }
 0x49a   :  { %7413 = vmatprep.subr.bf16.mxu0 %v9070_v37  ;;  %7438 = vmatprep.subr.bf16.mxu1 %v9073_v38  ;;  %v9131_v37 = vld [vmem:[#allocation17 + $0x420] ss:$16 sps:$4 sm:$0xff]   ;;  %v9136_v38 = vld [vmem:[#allocation17 + $0x304] ss:$16 sps:$4 sm:$0xff]  }
 0x49d   :  { %7414 = vmatpush2.bf16.msra.mxu0 %v9068_v17  ;;  %7439 = vmatpush1.bf16.msra.mxu1 %v9071_v39  ;;  %v9139_v17 = vld [vmem:[#allocation17 + $0x404] ss:$16 sps:$4 sm:$0xff]   ;;  %v2582_v39 = vrot.slane %v10366_v7, %v2003_v40 }
 0x49e   :  { %7415 = vmatprep.subr.bf16.mxu0 %v9076_v41  ;;  %7440 = vmatprep.subr.bf16.mxu1 %v9079_v42  ;;  %v9134_v41 = vld [vmem:[#allocation17 + $0x300] ss:$16 sps:$4 sm:$0xff]   ;;  %v9145_v40 = vld [vmem:[#allocation17 + $0x5c4] ss:$16 sps:$4 sm:$0xff]  }
 0x49f   :  { %v9137_v42 = vld [vmem:[#allocation17 + $0x400] ss:$16 sps:$4 sm:$0xff]  }
 0x4a1   :  { %7416 = vmatpush2.bf16.msra.mxu0 %v9074_v44  ;;  %7441 = vmatpush1.bf16.msra.mxu1 %v9077_v34  ;;  %v5817_v44 = vmax.f32 %v10350_v9, 0.0  ;;  %v9142_v34 = vld [vmem:[#allocation17 + $0x5e4] ss:$16 sps:$4 sm:$0xff]  }
 0x4a2   :  { %7417 = vmatprep.subr.bf16.mxu0 %v9082_v49  ;;  %7442 = vmatprep.subr.bf16.mxu1 %v9085_v58  ;;  %v9199_v49 = vld [vmem:[#allocation17 + $0x6e4] ss:$16 sps:$4 sm:$0xff]   ;;  %v5524_v58 = vadd.f32 %v10362_v62, %v2582_v39  ;;  %v9203_v62 = vld [vmem:[#allocation17 + $0x6c0] ss:$16 sps:$4 sm:$0xff]  }
 0x4a3   :  { %v9247_v39 = vld [vmem:[#allocation17 + $0x7e4] ss:$16 sps:$4 sm:$0xff]  }
 0x4a5   :  { %7418 = vmatpush2.bf16.msra.mxu0 %v9080_v35  ;;  %7443 = vmatpush1.bf16.msra.mxu1 %v9083_v47  ;;  %v9140_v35 = vld [vmem:[#allocation17 + $0x5e0] ss:$16 sps:$4 sm:$0xff]  }
 0x4a6   :  { %7419 = vmatprep.subr.bf16.mxu0 %v9088_v48  ;;  %7444 = vmatprep.subr.bf16.mxu1 %v9091_v59  ;;  %v9197_v47 = vld [vmem:[#allocation17 + $0x6e0] ss:$16 sps:$4 sm:$0xff]   ;;  %v10393_v48 = vpack.c.bf16 %v5817_v44, %v5817_v44  ;;  %v9205_v59 = vld [vmem:[#allocation17 + $0x6c4] ss:$16 sps:$4 sm:$0xff]  }
 0x4a7   :  { %v9253_v44 = vld [vmem:[#allocation17 + $0x7c4] ss:$16 sps:$4 sm:$0xff]  }
 0x4a9   :  { %7420 = vmatpush2.bf16.msra.mxu0 %v9086_v6  ;;  %7445 = vmatpush1.bf16.msra.mxu1 %v9089_v32  ;;  %v5565_v6 = vadd.f32 %v10378_v19, %v5524_v58 }
 0x4aa   :  { %7446 = vmatprep.subr.bf16.mxu1 %v9094_v52  ;;  %7471 = vmatprep.subr.bf16.mxu0 %v9097_v53  ;;  %v9148_v53 = vld [vmem:[#allocation17 + $0x5a4] ss:$16 sps:$4 sm:$0xff]  }
 0x4ac   :  { %v10383_v1 = vpop.f32.mrf.mxu0  ;;  %7422 = vmatmul.mubr.bf16.vlgmr.msra.gmra.mxu0 %v10381_v56 }
 0x4ad   :  { %7447 = vmatpush2.bf16.msra.mxu1 %v9092_v12  ;;  %7472 = vmatpush1.bf16.msra.mxu0 %v9095_v54  ;;  %v9211_v12 = vld [vmem:[#allocation17 + $0x6a4] ss:$16 sps:$4 sm:$0xff]  }
 0x4ae   :  { %v10386_v3 = vpop.f32.mrf.mxu0  ;;  %7448 = vmatprep.subr.bf16.mxu1 %v9100_v60  ;;  %7473 = vmatprep.subr.bf16.mxu0 %v9103_v16 }
 0x4af   :  { %v5606_v9 = vadd.f32 %v10386_v3, %v5565_v6  ;;  %v9170_v6 = vld [vmem:[#allocation17 + $0xa8] ss:$16 sps:$4 sm:$0xff]  }
 0x4b0   :  { %v5607_v36 = vpop.f32.mrf.mxu0 }
 0x4b1   :  { %7449 = vmatpush2.bf16.msra.mxu1 %v9098_v28  ;;  %7474 = vmatpush1.bf16.msra.mxu0 %v9101_v22  ;;  %v9146_v28 = vld [vmem:[#allocation17 + $0x5a0] ss:$16 sps:$4 sm:$0xff]   ;;  %v9151_v22 = vld [vmem:[#allocation17 + $0x584] ss:$16 sps:$4 sm:$0xff]  }
 0x4b2   :  { %v5608_v33 = vpop.f32.mrf.mxu0  ;;  %7450 = vmatprep.subr.bf16.mxu1 %v9106_v4  ;;  %7475 = vmatprep.subr.bf16.mxu0 %v9109_v50  ;;  %v9209_v4 = vld [vmem:[#allocation17 + $0x6a0] ss:$16 sps:$4 sm:$0xff]   ;;  %v9217_v50 = vld [vmem:[#allocation17 + $0x684] ss:$16 sps:$4 sm:$0xff]  }
 0x4b3   :  { %v9149_v36 = vld [vmem:[#allocation17 + $0x580] ss:$16 sps:$4 sm:$0xff]   ;;  %v9223_v33 = vld [vmem:[#allocation17 + $0x664] ss:$16 sps:$4 sm:$0xff]  }
 0x4b5   :  { %7451 = vmatpush2.bf16.msra.mxu1 %v9104_v0  ;;  %7476 = vmatpush1.bf16.msra.mxu0 %v9107_v14  ;;  %v9154_v0 = vld [vmem:[#allocation17 + $0x564] ss:$16 sps:$4 sm:$0xff]   ;;  %v9215_v14 = vld [vmem:[#allocation17 + $0x680] ss:$16 sps:$4 sm:$0xff]  }
 0x4b6   :  { %7452 = vmatprep.subr.bf16.mxu1 %v9112_v45  ;;  %7477 = vmatprep.subr.bf16.mxu0 %v9115_v5  ;;  %v9152_v45 = vld [vmem:[#allocation17 + $0x560] ss:$16 sps:$4 sm:$0xff]   ;;  %v9157_v5 = vld [vmem:[#allocation17 + $0x544] ss:$16 sps:$4 sm:$0xff]  }
 0x4b9   :  { %7453 = vmatpush2.bf16.msra.mxu1 %v9110_v55  ;;  %7478 = vmatpush1.bf16.msra.mxu0 %v9113_v43  ;;  %v9221_v55 = vld [vmem:[#allocation17 + $0x660] ss:$16 sps:$4 sm:$0xff]   ;;  %v9229_v43 = vld [vmem:[#allocation17 + $0x644] ss:$16 sps:$4 sm:$0xff]  }
 0x4ba   :  { %7454 = vmatprep.subr.bf16.mxu1 %v9118_v18  ;;  %7479 = vmatprep.subr.bf16.mxu0 %v9121_v20  ;;  %v9155_v18 = vld [vmem:[#allocation17 + $0x540] ss:$16 sps:$4 sm:$0xff]   ;;  %v9160_v20 = vld [vmem:[#allocation17 + $0x524] ss:$16 sps:$4 sm:$0xff]  }
 0x4bd   :  { %7455 = vmatpush2.bf16.msra.mxu1 %v9116_v23  ;;  %7480 = vmatpush1.bf16.msra.mxu0 %v9119_v63  ;;  %v9227_v23 = vld [vmem:[#allocation17 + $0x640] ss:$16 sps:$4 sm:$0xff]   ;;  %v9235_v63 = vld [vmem:[#allocation17 + $0x624] ss:$16 sps:$4 sm:$0xff]  }
 0x4be   :  { %7456 = vmatprep.subr.bf16.mxu1 %v9124_v61  ;;  %7481 = vmatprep.subr.bf16.mxu0 %v9127_v24  ;;  %v5604_v61 = vadd.f32 %v10383_v1, %v10375_v30  ;;  %v9158_v24 = vld [vmem:[#allocation17 + $0x520] ss:$16 sps:$4 sm:$0xff]   ;;  %v9164_v30 = vld [vmem:[#allocation17 + $0xe8] ss:$16 sps:$4 sm:$0xff]  }
 0x4c1   :  { %7457 = vmatpush2.bf16.msra.mxu1 %v9122_v51  ;;  %7482 = vmatpush1.bf16.msra.mxu0 %v9125_v25  ;;  %v9163_v25 = vld [vmem:[#allocation17 + $0x504] ss:$16 sps:$4 sm:$0xff]  }
 0x4c2   :  { %7458 = vmatprep.subr.bf16.mxu1 %v9130_v26  ;;  %7483 = vmatprep.subr.bf16.mxu0 %v9133_v46  ;;  %v9233_v26 = vld [vmem:[#allocation17 + $0x620] ss:$16 sps:$4 sm:$0xff]   ;;  %v9241_v46 = vld [vmem:[#allocation17 + $0x604] ss:$16 sps:$4 sm:$0xff]  }
 0x4c5   :  { %7459 = vmatpush2.bf16.msra.mxu1 %v9128_v29  ;;  %7484 = vmatpush1.bf16.msra.mxu0 %v9131_v37  ;;  %v9161_v29 = vld [vmem:[#allocation17 + $0x500] ss:$16 sps:$4 sm:$0xff]  }
 0x4c6   :  { %7460 = vmatprep.subr.bf16.mxu1 %v9136_v38  ;;  %7485 = vmatprep.subr.bf16.mxu0 %v9139_v17  ;;  %v9166_v38 = vld [vmem:[#allocation17 + $0xec] ss:$16 sps:$4 sm:$0xff]   ;;  %v9239_v17 = vld [vmem:[#allocation17 + $0x600] ss:$16 sps:$4 sm:$0xff]  }
 0x4c9   :  { %7461 = vmatpush2.bf16.msra.mxu1 %v9134_v41  ;;  %7486 = vmatpush1.bf16.msra.mxu0 %v9137_v42  ;;  %v9169_v41 = vld [vmem:[#allocation17 + $0xcc] ss:$16 sps:$4 sm:$0xff]   ;;  %v9245_v42 = vld [vmem:[#allocation17 + $0x7e0] ss:$16 sps:$4 sm:$0xff]  }
 0x4ca   :  { %7487 = vmatprep.subr.bf16.mxu0 %v9142_v34  ;;  %7512 = vmatprep.subr.bf16.mxu1 %v9199_v49  ;;  %v9167_v49 = vld [vmem:[#allocation17 + $0xc8] ss:$16 sps:$4 sm:$0xff]  }
 0x4cc   :  { %v5644_v32 = vpop.f32.mrf.mxu1  ;;  %7463 = vmatmul.mubr.bf16.vlgmr.msra.gmra.mxu1 %v10393_v48 }
 0x4cd   :  { %7488 = vmatpush2.bf16.msra.mxu0 %v9140_v35  ;;  %7513 = vmatpush1.bf16.msra.mxu1 %v9197_v47  ;;  %v5645_v51 = vadd.f32 %v5644_v32, %v5604_v61  ;;  %v9172_v35 = vld [vmem:[#allocation17 + $0xac] ss:$16 sps:$4 sm:$0xff]   ;;  %v9251_v47 = vld [vmem:[#allocation17 + $0x7c0] ss:$16 sps:$4 sm:$0xff]  }
 0x4ce   :  { %v5646_v52 = vpop.f32.mrf.mxu1  ;;  %7489 = vmatprep.subr.bf16.mxu0 %v9145_v40  ;;  %7514 = vmatprep.subr.bf16.mxu1 %v9205_v59  ;;  %v9259_v40 = vld [vmem:[#allocation17 + $0x7a4] ss:$16 sps:$4 sm:$0xff]  }
 0x4cf   :  { %v5647_v54 = vadd.f32 %v5646_v52, %v5606_v9  ;;  %v5819_v37 = vmax.f32 %v5645_v51, 0.0  ;;  %v9175_v9 = vld [vmem:[#allocation17 + $0x8c] ss:$16 sps:$4 sm:$0xff]  }
 0x4d0   :  { %v5648_v60 = vpop.f32.mrf.mxu1  ;;  %v9178_v52 = vld [vmem:[#allocation17 + $0x6c] ss:$16 sps:$4 sm:$0xff]  }
 0x4d1   :  { %v5820_v16 = vmax.f32 %v5647_v54, 0.0  ;;  %7490 = vmatpush2.bf16.msra.mxu0 %v9143_v57  ;;  %7515 = vmatpush1.bf16.msra.mxu1 %v9203_v62  ;;  %v10403_v1 = vpack.c.bf16 %v5819_v37, %v5819_v37  ;;  %v9257_v57 = vld [vmem:[#allocation17 + $0x7a0] ss:$16 sps:$4 sm:$0xff]   ;;  %v9265_v62 = vld [vmem:[#allocation17 + $0x784] ss:$16 sps:$4 sm:$0xff]  }
 0x4d2   :  { %v5649_v19 = vpop.f32.mrf.mxu1  ;;  %7491 = vmatprep.subr.bf16.mxu0 %v9148_v53  ;;  %7516 = vmatprep.subr.bf16.mxu1 %v9211_v12  ;;  %v9263_v53 = vld [vmem:[#allocation17 + $0x780] ss:$16 sps:$4 sm:$0xff]   ;;  %v9271_v12 = vld [vmem:[#allocation17 + $0x764] ss:$16 sps:$4 sm:$0xff]   ;;  %v9176_v54 = vld [vmem:[#allocation17 + $0x68] ss:$16 sps:$4 sm:$0xff]  }
 0x4d3   :  { %v10398_v3 = vpack.c.bf16 %v5820_v16, %v5820_v16  ;;  %v9181_v60 = vld [vmem:[#allocation17 + $0x4c] ss:$16 sps:$4 sm:$0xff]   ;;  %v9269_v16 = vld [vmem:[#allocation17 + $0x760] ss:$16 sps:$4 sm:$0xff]   ;;  %v9179_v19 = vld [vmem:[#allocation17 + $0x48] ss:$16 sps:$4 sm:$0xff]  }
 0x4d4   :  { %v9208_v37 = vld [vmem:[#allocation17 + $0x16c] ss:$16 sps:$4 sm:$0xff]  }
 0x4d5   :  { %7492 = vmatpush2.bf16.msra.mxu0 %v9146_v28  ;;  %7503 = vmatprep.mubr.bf16.mxu0 %v10398_v3  ;;  %v9277_v28 = vld [vmem:[#allocation17 + $0x744] ss:$16 sps:$4 sm:$0xff]  }
 0x4d6   :  { %7493 = vmatprep.subr.bf16.mxu0 %v9151_v22  ;;  %7517 = vmatpush1.bf16.msra.mxu1 %v9209_v4  ;;  %v9184_v22 = vld [vmem:[#allocation17 + $0x2c] ss:$16 sps:$4 sm:$0xff]   ;;  %v9275_v4 = vld [vmem:[#allocation17 + $0x740] ss:$16 sps:$4 sm:$0xff]  }
 0x4d7   :  { %7518 = vmatprep.subr.bf16.mxu1 %v9217_v50  ;;  %v9283_v50 = vld [vmem:[#allocation17 + $0x724] ss:$16 sps:$4 sm:$0xff]  }
 0x4d9   :  { %7494 = vmatpush2.bf16.msra.mxu0 %v9149_v36  ;;  %v9182_v36 = vld [vmem:[#allocation17 + $0x28] ss:$16 sps:$4 sm:$0xff]  }
 0x4da   :  { %7495 = vmatprep.subr.bf16.mxu0 %v9154_v0  ;;  %7519 = vmatpush1.bf16.msra.mxu1 %v9215_v14  ;;  %v9187_v0 = vld [vmem:[#allocation17 + $0xc] ss:$16 sps:$4 sm:$0xff]   ;;  %v9281_v14 = vld [vmem:[#allocation17 + $0x720] ss:$16 sps:$4 sm:$0xff]  }
 0x4db   :  { %7520 = vmatprep.subr.bf16.mxu1 %v9223_v33  ;;  %v9289_v33 = vld [vmem:[#allocation17 + $0x704] ss:$16 sps:$4 sm:$0xff]  }
 0x4dd   :  { %7496 = vmatpush2.bf16.msra.mxu0 %v9152_v45  ;;  %v9185_v45 = vld [vmem:[#allocation17 + $0x8] ss:$16 sps:$4 sm:$0xff]  }
 0x4de   :  { %7497 = vmatprep.subr.bf16.mxu0 %v9157_v5  ;;  %7521 = vmatpush1.bf16.msra.mxu1 %v9221_v55  ;;  %v9190_v5 = vld [vmem:[#allocation17 + $0x1ec] ss:$16 sps:$4 sm:$0xff]   ;;  %v9287_v55 = vld [vmem:[#allocation17 + $0x700] ss:$16 sps:$4 sm:$0xff]  }
 0x4df   :  { %7522 = vmatprep.subr.bf16.mxu1 %v9229_v43  ;;  %v9295_v43 = vld [vmem:[#allocation17 + $0x2ec] ss:$16 sps:$4 sm:$0xff]  }
 0x4e1   :  { %7498 = vmatpush2.bf16.msra.mxu0 %v9155_v18  ;;  %v9188_v18 = vld [vmem:[#allocation17 + $0x1e8] ss:$16 sps:$4 sm:$0xff]  }
 0x4e2   :  { %7499 = vmatprep.subr.bf16.mxu0 %v9160_v20  ;;  %7523 = vmatpush1.bf16.msra.mxu1 %v9227_v23  ;;  %v9193_v20 = vld [vmem:[#allocation17 + $0x1cc] ss:$16 sps:$4 sm:$0xff]  }
 0x4e3   :  { %7524 = vmatprep.subr.bf16.mxu1 %v9235_v63  ;;  %v9191_v63 = vld [vmem:[#allocation17 + $0x1c8] ss:$16 sps:$4 sm:$0xff]  }
 0x4e5   :  { %7500 = vmatpush2.bf16.msra.mxu0 %v9158_v24  ;;  %v9196_v24 = vld [vmem:[#allocation17 + $0x1ac] ss:$16 sps:$4 sm:$0xff]  }
 0x4e6   :  { %7501 = vmatprep.subr.bf16.mxu0 %v9163_v25  ;;  %7525 = vmatpush1.bf16.msra.mxu1 %v9233_v26  ;;  %v9194_v25 = vld [vmem:[#allocation17 + $0x1a8] ss:$16 sps:$4 sm:$0xff]  }
 0x4e7   :  { %7526 = vmatprep.subr.bf16.mxu1 %v9241_v46  ;;  %v9202_v46 = vld [vmem:[#allocation17 + $0x18c] ss:$16 sps:$4 sm:$0xff]  }
 0x4e9   :  { %7502 = vmatpush2.bf16.msra.mxu0 %v9161_v29  ;;  %v9200_v29 = vld [vmem:[#allocation17 + $0x188] ss:$16 sps:$4 sm:$0xff]  }
 0x4ea   :  { %7553 = vmatprep.subr.bf16.mxu0 %v9166_v38  ;;  %7527 = vmatpush1.bf16.msra.mxu1 %v9239_v17  ;;  %v9206_v38 = vld [vmem:[#allocation17 + $0x168] ss:$16 sps:$4 sm:$0xff]   ;;  %v9214_v17 = vld [vmem:[#allocation17 + $0x14c] ss:$16 sps:$4 sm:$0xff]  }
 0x4eb   :  { %7528 = vmatprep.subr.bf16.mxu1 %v9247_v39  ;;  %v9212_v39 = vld [vmem:[#allocation17 + $0x148] ss:$16 sps:$4 sm:$0xff]  }
 0x4ec   :  { %v10405_v34 = vpop.f32.mrf.mxu0  ;;  %7504 = vmatmul.mubr.bf16.vlgmr.msra.gmra.mxu0 %v10403_v1 }
 0x4ed   :  { %7554 = vmatpush1.bf16.msra.mxu0 %v9164_v30  ;;  %7585 = vmatprep.mubr.bf16.mxu0 %v10356_v21  ;;  %v9173_v21 = vld [vmem:[#allocation17 + $0x88] ss:$16 sps:$4 sm:$0xff]   ;;  %v9220_v30 = vld [vmem:[#allocation17 + $0x12c] ss:$16 sps:$4 sm:$0xff]  }
 0x4ee   :  { %v10409_v58 = vpop.f32.mrf.mxu0  ;;  %7555 = vmatprep.subr.bf16.mxu0 %v9169_v41  ;;  %7529 = vmatpush2.bf16.msra.mxu1 %v9245_v42  ;;  %v9218_v41 = vld [vmem:[#allocation17 + $0x128] ss:$16 sps:$4 sm:$0xff]   ;;  %v9226_v42 = vld [vmem:[#allocation17 + $0x10c] ss:$16 sps:$4 sm:$0xff]  }
 0x4ef   :  { %7530 = vmatprep.subr.bf16.mxu1 %v9253_v44  ;;  %v9224_v44 = vld [vmem:[#allocation17 + $0x108] ss:$16 sps:$4 sm:$0xff]  }
 0x4f0   :  { %v5689_v59 = vpop.f32.mrf.mxu0 }
 0x4f1   :  { %7556 = vmatpush1.bf16.msra.mxu0 %v9167_v49  ;;  %v9232_v49 = vld [vmem:[#allocation17 + $0x4ec] ss:$16 sps:$4 sm:$0xff]   ;;  %v9236_v59 = vld [vmem:[#allocation17 + $0x4c8] ss:$16 sps:$4 sm:$0xff]  }
 0x4f2   :  { %v5690_v32 = vpop.f32.mrf.mxu0  ;;  %7557 = vmatprep.subr.bf16.mxu0 %v9172_v35  ;;  %7531 = vmatpush2.bf16.msra.mxu1 %v9251_v47  ;;  %v9230_v35 = vld [vmem:[#allocation17 + $0x4e8] ss:$16 sps:$4 sm:$0xff]   ;;  %v9238_v47 = vld [vmem:[#allocation17 + $0x4cc] ss:$16 sps:$4 sm:$0xff]  }
 0x4f3   :  { %7532 = vmatprep.subr.bf16.mxu1 %v9259_v40  ;;  %v9244_v32 = vld [vmem:[#allocation17 + $0x4ac] ss:$16 sps:$4 sm:$0xff]  }
 0x4f5   :  { %7558 = vmatpush1.bf16.msra.mxu0 %v9170_v6 }
 0x4f6   :  { %7559 = vmatprep.subr.bf16.mxu0 %v9175_v9  ;;  %7533 = vmatpush2.bf16.msra.mxu1 %v9257_v57  ;;  %v9242_v57 = vld [vmem:[#allocation17 + $0x4a8] ss:$16 sps:$4 sm:$0xff]  }
 0x4f7   :  { %7534 = vmatprep.subr.bf16.mxu1 %v9265_v62 }
 0x4f9   :  { %7560 = vmatpush1.bf16.msra.mxu0 %v9173_v21  ;;  %v9250_v21 = vld [vmem:[#allocation17 + $0x48c] ss:$16 sps:$4 sm:$0xff]  }
 0x4fa   :  { %7561 = vmatprep.subr.bf16.mxu0 %v9178_v52  ;;  %7535 = vmatpush2.bf16.msra.mxu1 %v9263_v53  ;;  %v9248_v52 = vld [vmem:[#allocation17 + $0x488] ss:$16 sps:$4 sm:$0xff]   ;;  %v9256_v53 = vld [vmem:[#allocation17 + $0x46c] ss:$16 sps:$4 sm:$0xff]  }
 0x4fb   :  { %7536 = vmatprep.subr.bf16.mxu1 %v9271_v12  ;;  %v9254_v12 = vld [vmem:[#allocation17 + $0x468] ss:$16 sps:$4 sm:$0xff]  }
 0x4fd   :  { %7562 = vmatpush1.bf16.msra.mxu0 %v9176_v54  ;;  %v9268_v54 = vld [vmem:[#allocation17 + $0x42c] ss:$16 sps:$4 sm:$0xff]  }
 0x4fe   :  { %7563 = vmatprep.subr.bf16.mxu0 %v9181_v60  ;;  %7537 = vmatpush2.bf16.msra.mxu1 %v9269_v16  ;;  %v9266_v60 = vld [vmem:[#allocation17 + $0x428] ss:$16 sps:$4 sm:$0xff]   ;;  %v9274_v16 = vld [vmem:[#allocation17 + $0x40c] ss:$16 sps:$4 sm:$0xff]  }
 0x4ff   :  { %7538 = vmatprep.subr.bf16.mxu1 %v9277_v28  ;;  %v2586_v28 = vrot.slane %v10366_v7, %v2007_v27 }
 0x501   :  { %7564 = vmatpush1.bf16.msra.mxu0 %v9179_v19  ;;  %v2590_v19 = vrot.slane %v10366_v7, %v2011_v31  ;;  %v9284_v7 = vld [vmem:[#allocation17 + $0x5c8] ss:$16 sps:$4 sm:$0xff]  }
 0x502   :  { %7565 = vmatprep.subr.bf16.mxu0 %v9184_v22  ;;  %7539 = vmatpush2.bf16.msra.mxu1 %v9275_v4  ;;  %v9272_v22 = vld [vmem:[#allocation17 + $0x408] ss:$16 sps:$4 sm:$0xff]   ;;  %v9280_v4 = vld [vmem:[#allocation17 + $0x5ec] ss:$16 sps:$4 sm:$0xff]  }
 0x503   :  { %7540 = vmatprep.subr.bf16.mxu1 %v9283_v50  ;;  %v5686_v50 = vadd.f32 %v10405_v34, %v2586_v28  ;;  %v9340_v28 = vld [vmem:[#allocation17 + $0x3ac] ss:$16 sps:$4 sm:$0xff]  }
 0x505   :  { %7566 = vmatpush1.bf16.msra.mxu0 %v9182_v36  ;;  %v5688_v36 = vadd.f32 %v10409_v58, %v2590_v19  ;;  %v9338_v19 = vld [vmem:[#allocation17 + $0x3a8] ss:$16 sps:$4 sm:$0xff]  }
 0x506   :  { %7567 = vmatprep.subr.bf16.mxu0 %v9187_v0  ;;  %7541 = vmatpush2.bf16.msra.mxu1 %v9281_v14  ;;  %v9278_v14 = vld [vmem:[#allocation17 + $0x5e8] ss:$16 sps:$4 sm:$0xff]  }
 0x507   :  { %7542 = vmatprep.subr.bf16.mxu1 %v9289_v33  ;;  %v9286_v33 = vld [vmem:[#allocation17 + $0x5cc] ss:$16 sps:$4 sm:$0xff]  }
 0x509   :  { %7568 = vmatpush1.bf16.msra.mxu0 %v9185_v45 }
 0x50a   :  { %7569 = vmatprep.subr.bf16.mxu0 %v9190_v5  ;;  %7543 = vmatpush2.bf16.msra.mxu1 %v9287_v55 }
 0x50b   :  { %7594 = vmatprep.subr.bf16.mxu1 %v9295_v43  ;;  %v9292_v43 = vld [vmem:[#allocation17 + $0x5ac] ss:$16 sps:$4 sm:$0xff]  }
 0x50c   :  { %v10411_v23 = vpop.f32.mrf.mxu1 }
 0x50d   :  { %7570 = vmatpush2.bf16.msra.mxu0 %v9188_v18  ;;  %v5727_v0 = vadd.f32 %v10411_v23, %v5686_v50  ;;  %v9290_v23 = vld [vmem:[#allocation17 + $0x5a8] ss:$16 sps:$4 sm:$0xff]  }
 0x50e   :  { %v10413_v61 = vpop.f32.mrf.mxu1  ;;  %7571 = vmatprep.subr.bf16.mxu0 %v9193_v20  ;;  %v9344_v50 = vld [vmem:[#allocation17 + $0x368] ss:$16 sps:$4 sm:$0xff]  }
 0x50f   :  { %v5729_v27 = vadd.f32 %v10413_v61, %v5688_v36  ;;  %v9293_v61 = vld [vmem:[#allocation17 + $0x2e8] ss:$16 sps:$4 sm:$0xff]   ;;  %v10435_v36 = vld [vmem:[#allocation19] sm:$0xf] }
 0x510   :  { %v5730_v51 = vpop.f32.mrf.mxu1 }
 0x511   :  { %7572 = vmatpush2.bf16.msra.mxu0 %v9191_v63 }
 0x512   :  { %v5731_v26 = vpop.f32.mrf.mxu1  ;;  %7573 = vmatprep.subr.bf16.mxu0 %v9196_v24  ;;  %v9298_v24 = vld [vmem:[#allocation17 + $0x58c] ss:$16 sps:$4 sm:$0xff]  }
 0x513   :  { %v9301_v26 = vld [vmem:[#allocation17 + $0x2cc] ss:$16 sps:$4 sm:$0xff]  }
 0x515   :  { %7574 = vmatpush2.bf16.msra.mxu0 %v9194_v25 }
 0x516   :  { %7575 = vmatprep.subr.bf16.mxu0 %v9202_v46  ;;  %v9296_v46 = vld [vmem:[#allocation17 + $0x588] ss:$16 sps:$4 sm:$0xff]  }
 0x519   :  { %7576 = vmatpush2.bf16.msra.mxu0 %v9200_v29  ;;  %v9304_v29 = vld [vmem:[#allocation17 + $0x56c] ss:$16 sps:$4 sm:$0xff]  }
 0x51a   :  { %7577 = vmatprep.subr.bf16.mxu0 %v9208_v37  ;;  %v9299_v37 = vld [vmem:[#allocation17 + $0x2c8] ss:$16 sps:$4 sm:$0xff]  }
 0x51d   :  { %7578 = vmatpush2.bf16.msra.mxu0 %v9206_v38  ;;  %v9307_v38 = vld [vmem:[#allocation17 + $0x2ac] ss:$16 sps:$4 sm:$0xff]  }
 0x51e   :  { %7579 = vmatprep.subr.bf16.mxu0 %v9214_v17  ;;  %v9302_v17 = vld [vmem:[#allocation17 + $0x568] ss:$16 sps:$4 sm:$0xff]  }
 0x521   :  { %7580 = vmatpush2.bf16.msra.mxu0 %v9212_v39  ;;  %v9310_v39 = vld [vmem:[#allocation17 + $0x54c] ss:$16 sps:$4 sm:$0xff]  }
 0x522   :  { %7581 = vmatprep.subr.bf16.mxu0 %v9220_v30  ;;  %v9305_v30 = vld [vmem:[#allocation17 + $0x2a8] ss:$16 sps:$4 sm:$0xff]  }
 0x525   :  { %7582 = vmatpush2.bf16.msra.mxu0 %v9218_v41  ;;  %v9313_v41 = vld [vmem:[#allocation17 + $0x28c] ss:$16 sps:$4 sm:$0xff]  }
 0x526   :  { %7583 = vmatprep.subr.bf16.mxu0 %v9226_v42  ;;  %v9308_v42 = vld [vmem:[#allocation17 + $0x548] ss:$16 sps:$4 sm:$0xff]  }
 0x529   :  { %7584 = vmatpush2.bf16.msra.mxu0 %v9224_v44  ;;  %v9316_v44 = vld [vmem:[#allocation17 + $0x52c] ss:$16 sps:$4 sm:$0xff]  }
 0x52a   :  { %7635 = vmatprep.subr.bf16.mxu0 %v9232_v49  ;;  %v9311_v49 = vld [vmem:[#allocation17 + $0x288] ss:$16 sps:$4 sm:$0xff]  }
 0x52c   :  { %v5767_v40 = vpop.f32.mrf.mxu0  ;;  %7586 = vmatmul.mubr.bf16.vlgmr.msra.gmra.mxu0 %v10381_v56  ;;  %v9262_v56 = vld [vmem:[#allocation17 + $0x44c] ss:$16 sps:$4 sm:$0xff]  }
 0x52d   :  { %7636 = vmatpush1.bf16.msra.mxu0 %v9230_v35  ;;  %7667 = vmatprep.mubr.bf16.mxu0 %v10398_v3  ;;  %v9260_v3 = vld [vmem:[#allocation17 + $0x448] ss:$16 sps:$4 sm:$0xff]   ;;  %v5768_v45 = vadd.f32 %v5767_v40, %v5727_v0  ;;  %v9319_v35 = vld [vmem:[#allocation17 + $0x26c] ss:$16 sps:$4 sm:$0xff]  }
 0x52e   :  { %v5769_v6 = vpop.f32.mrf.mxu0  ;;  %7637 = vmatprep.subr.bf16.mxu0 %v9238_v47  ;;  %v9322_v47 = vld [vmem:[#allocation17 + $0x50c] ss:$16 sps:$4 sm:$0xff]   ;;  %v9317_v40 = vld [vmem:[#allocation17 + $0x268] ss:$16 sps:$4 sm:$0xff]  }
 0x52f   :  { %v5770_v5 = vadd.f32 %v5769_v6, %v5729_v27  ;;  %v9320_v6 = vld [vmem:[#allocation17 + $0x508] ss:$16 sps:$4 sm:$0xff]   ;;  %v9349_v0 = vld [vmem:[#allocation17 + $0x34c] ss:$16 sps:$4 sm:$0xff]  }
 0x530   :  { %v5771_v9 = vpop.f32.mrf.mxu0  ;;  %v9352_v27 = vld [vmem:[#allocation17 + $0x32c] ss:$16 sps:$4 sm:$0xff]  }
 0x531   :  { %7638 = vmatpush1.bf16.msra.mxu0 %v9236_v59  ;;  %v9325_v59 = vld [vmem:[#allocation17 + $0x24c] ss:$16 sps:$4 sm:$0xff]  }
 0x532   :  { %v5772_v62 = vpop.f32.mrf.mxu0  ;;  %7639 = vmatprep.subr.bf16.mxu0 %v9244_v32  ;;  %v9323_v32 = vld [vmem:[#allocation17 + $0x248] ss:$16 sps:$4 sm:$0xff]   ;;  %v9328_v9 = vld [vmem:[#allocation17 + $0x22c] ss:$16 sps:$4 sm:$0xff]  }
 0x535   :  { %7640 = vmatpush1.bf16.msra.mxu0 %v9242_v57  ;;  %v9326_v57 = vld [vmem:[#allocation17 + $0x228] ss:$16 sps:$4 sm:$0xff]  }
 0x536   :  { %7641 = vmatprep.subr.bf16.mxu0 %v9250_v21  ;;  %v9331_v21 = vld [vmem:[#allocation17 + $0x20c] ss:$16 sps:$4 sm:$0xff]  }
 0x539   :  { %7642 = vmatpush1.bf16.msra.mxu0 %v9248_v52 }
 0x53a   :  { %7643 = vmatprep.subr.bf16.mxu0 %v9256_v53  ;;  %v9329_v53 = vld [vmem:[#allocation17 + $0x208] ss:$16 sps:$4 sm:$0xff]  }
 0x53d   :  { %7644 = vmatpush1.bf16.msra.mxu0 %v9254_v12 }
 0x53e   :  { %7645 = vmatprep.subr.bf16.mxu0 %v9262_v56  ;;  %v9334_v56 = vld [vmem:[#allocation17 + $0x3ec] ss:$16 sps:$4 sm:$0xff]  }
 0x541   :  { %7646 = vmatpush1.bf16.msra.mxu0 %v9260_v3 }
 0x542   :  { %7647 = vmatprep.subr.bf16.mxu0 %v9268_v54  ;;  %v9332_v54 = vld [vmem:[#allocation17 + $0x3e8] ss:$16 sps:$4 sm:$0xff]  }
 0x545   :  { %7648 = vmatpush1.bf16.msra.mxu0 %v9266_v60  ;;  %v9337_v60 = vld [vmem:[#allocation17 + $0x3cc] ss:$16 sps:$4 sm:$0xff]  }
 0x546   :  { %7649 = vmatprep.subr.bf16.mxu0 %v9274_v16  ;;  %v9335_v16 = vld [vmem:[#allocation17 + $0x3c8] ss:$16 sps:$4 sm:$0xff]  }
 0x549   :  { %7650 = vmatpush1.bf16.msra.mxu0 %v9272_v22  ;;  %v9341_v22 = vld [vmem:[#allocation17 + $0x388] ss:$16 sps:$4 sm:$0xff]  }
 0x54a   :  { %7651 = vmatprep.subr.bf16.mxu0 %v9280_v4  ;;  %v9346_v4 = vld [vmem:[#allocation17 + $0x36c] ss:$16 sps:$4 sm:$0xff]  }
 0x54c   :  { %v5808_v10 = vpop.f32.mrf.mxu1 }
 0x54d   :  { %v5809_v31 = vadd.f32 %v5808_v10, %v5768_v45  ;;  %7652 = vmatpush2.bf16.msra.mxu0 %v9278_v14  ;;  %v6092_v14 = vrot.slane %v10435_v36, %v10203_v11  ;;  %v6096_v45 = vrot.slane %v10435_v36, %v10208_v13 }
 0x54e   :  { %v5810_v55 = vpop.f32.mrf.mxu1  ;;  %7653 = vmatprep.subr.bf16.mxu0 %v9286_v33  ;;  %v9347_v33 = vld [vmem:[#allocation17 + $0x348] ss:$16 sps:$4 sm:$0xff]  }
 0x54f   :  { %v5811_v34 = vadd.f32 %v5810_v55, %v5770_v5  ;;  %v5821_v18 = vmax.f32 %v5809_v31, 0.0  ;;  %v9350_v5 = vld [vmem:[#allocation17 + $0x328] ss:$16 sps:$4 sm:$0xff]  }
 0x550   :  { %v5812_v58 = vpop.f32.mrf.mxu1 }
 0x551   :  { %v5822_v20 = vmax.f32 %v5811_v34, 0.0  ;;  %7654 = vmatpush2.bf16.msra.mxu0 %v9284_v7  ;;  %v10429_v25 = vpack.c.bf16 %v5821_v18, %v5821_v18  ;;  %v9355_v7 = vld [vmem:[#allocation17 + $0x30c] ss:$16 sps:$4 sm:$0xff]   ;;  %v9353_v58 = vld [vmem:[#allocation17 + $0x308] ss:$16 sps:$4 sm:$0xff]  }
 0x552   :  { %v5813_v63 = vpop.f32.mrf.mxu1  ;;  %7655 = vmatprep.subr.bf16.mxu0 %v9292_v43 }
 0x553   :  { %v10427_v51 = vpack.c.bf16 %v5822_v20, %v5822_v20 }
 0x555   :  { %7544 = vmatprep.mubr.bf16.mxu1 %v10427_v51  ;;  %7656 = vmatpush2.bf16.msra.mxu0 %v9290_v23  ;;  %v9358_v23 = vld [vmem:[#allocation17 + $0x6ec] ss:$16 sps:$4 sm:$0xff]  }
 0x556   :  { %7545 = vmatmul.mubr.bf16.vlgmr.msra.gmra.mxu1 %v10429_v25  ;;  %7657 = vmatprep.subr.bf16.mxu0 %v9298_v24  ;;  %v9356_v24 = vld [vmem:[#allocation17 + $0x6e8] ss:$16 sps:$4 sm:$0xff]  }
 0x557   :  { %7595 = vmatpush1.bf16.msra.mxu1 %v9293_v61  ;;  %7626 = vmatprep.mubr.bf16.mxu1 %v10372_v15  ;;  %v9314_v15 = vld [vmem:[#allocation17 + $0x528] ss:$16 sps:$4 sm:$0xff]   ;;  %v9361_v61 = vld [vmem:[#allocation17 + $0x6cc] ss:$16 sps:$4 sm:$0xff]  }
 0x558   :  { %7596 = vmatprep.subr.bf16.mxu1 %v9301_v26  ;;  %v9359_v26 = vld [vmem:[#allocation17 + $0x6c8] ss:$16 sps:$4 sm:$0xff]  }
 0x559   :  { %7658 = vmatpush2.bf16.msra.mxu0 %v9296_v46  ;;  %v9364_v46 = vld [vmem:[#allocation17 + $0x6ac] ss:$16 sps:$4 sm:$0xff]  }
 0x55a   :  { %7659 = vmatprep.subr.bf16.mxu0 %v9304_v29  ;;  %v9362_v29 = vld [vmem:[#allocation17 + $0x6a8] ss:$16 sps:$4 sm:$0xff]  }
 0x55b   :  { %7597 = vmatpush1.bf16.msra.mxu1 %v9299_v37  ;;  %v9367_v37 = vld [vmem:[#allocation17 + $0x68c] ss:$16 sps:$4 sm:$0xff]  }
 0x55c   :  { %7598 = vmatprep.subr.bf16.mxu1 %v9307_v38  ;;  %v9365_v38 = vld [vmem:[#allocation17 + $0x688] ss:$16 sps:$4 sm:$0xff]  }
 0x55d   :  { %7660 = vmatpush2.bf16.msra.mxu0 %v9302_v17  ;;  %v9370_v17 = vld [vmem:[#allocation17 + $0x66c] ss:$16 sps:$4 sm:$0xff]  }
 0x55e   :  { %7661 = vmatprep.subr.bf16.mxu0 %v9310_v39  ;;  %v9368_v39 = vld [vmem:[#allocation17 + $0x668] ss:$16 sps:$4 sm:$0xff]  }
 0x55f   :  { %7599 = vmatpush1.bf16.msra.mxu1 %v9305_v30  ;;  %v9373_v30 = vld [vmem:[#allocation17 + $0x64c] ss:$16 sps:$4 sm:$0xff]  }
 0x560   :  { %7600 = vmatprep.subr.bf16.mxu1 %v9313_v41  ;;  %v9376_v41 = vld [vmem:[#allocation17 + $0x62c] ss:$16 sps:$4 sm:$0xff]  }
 0x561   :  { %7662 = vmatpush2.bf16.msra.mxu0 %v9308_v42 }
 0x562   :  { %7663 = vmatprep.subr.bf16.mxu0 %v9316_v44  ;;  %v9379_v44 = vld [vmem:[#allocation17 + $0x60c] ss:$16 sps:$4 sm:$0xff]  }
 0x563   :  { %7601 = vmatpush1.bf16.msra.mxu1 %v9311_v49 }
 0x564   :  { %7602 = vmatprep.subr.bf16.mxu1 %v9319_v35 }
 0x565   :  { %7664 = vmatpush2.bf16.msra.mxu0 %v9314_v15 }
 0x566   :  { %7665 = vmatprep.subr.bf16.mxu0 %v9322_v47  ;;  %v9377_v47 = vld [vmem:[#allocation17 + $0x608] ss:$16 sps:$4 sm:$0xff]  }
 0x567   :  { %7603 = vmatpush1.bf16.msra.mxu1 %v9317_v40 }
 0x568   :  { %7604 = vmatprep.subr.bf16.mxu1 %v9325_v59  ;;  %v9382_v59 = vld [vmem:[#allocation17 + $0x7ec] ss:$16 sps:$4 sm:$0xff]  }
 0x569   :  { %7666 = vmatpush2.bf16.msra.mxu0 %v9320_v6 }
 0x56b   :  { %7605 = vmatpush1.bf16.msra.mxu1 %v9323_v32  ;;  %v9380_v32 = vld [vmem:[#allocation17 + $0x7e8] ss:$16 sps:$4 sm:$0xff]  }
 0x56c   :  { %v7423_v62 = vpop.f32.mrf.mxu0  ;;  %7668 = vmatmul.mubr.bf16.vlgmr.msra.gmra.mxu0 %v10403_v1  ;;  %7606 = vmatprep.subr.bf16.mxu1 %v9328_v9  ;;  %v9343_v1 = vld [vmem:[#allocation17 + $0x38c] ss:$16 sps:$4 sm:$0xff]  }
 0x56d   :  { %v7424_v10 = vadd.f32 %v7423_v62, %v6092_v14  ;;  %v9385_v9 = vld [vmem:[#allocation17 + $0x7cc] ss:$16 sps:$4 sm:$0xff]   ;;  %v7721_v14 = vld [vmem:[#allocation20] sm:$0xf] }
 0x56e   :  { %v7425_v52 = vpop.f32.mrf.mxu0  ;;  %v9388_v62 = vld [vmem:[#allocation17 + $0x7ac] ss:$16 sps:$4 sm:$0xff]  }
 0x56f   :  { %7607 = vmatpush1.bf16.msra.mxu1 %v9326_v57  ;;  %v7426_v55 = vadd.f32 %v7425_v52, %v6096_v45  ;;  %v9383_v57 = vld [vmem:[#allocation17 + $0x7c8] ss:$16 sps:$4 sm:$0xff]   ;;  %v9391_v52 = vld [vmem:[#allocation17 + $0x78c] ss:$16 sps:$4 sm:$0xff]  }
 0x570   :  { %v7427_v12 = vpop.f32.mrf.mxu0  ;;  %7608 = vmatprep.subr.bf16.mxu1 %v9331_v21  ;;  %v9386_v21 = vld [vmem:[#allocation17 + $0x7a8] ss:$16 sps:$4 sm:$0xff]  }
 0x571   :  { %v9394_v12 = vld [vmem:[#allocation17 + $0x76c] ss:$16 sps:$4 sm:$0xff]  }
 0x572   :  { %v7428_v3 = vpop.f32.mrf.mxu0 }
 0x573   :  { %7609 = vmatpush1.bf16.msra.mxu1 %v9329_v53  ;;  %v9389_v53 = vld [vmem:[#allocation17 + $0x788] ss:$16 sps:$4 sm:$0xff]   ;;  %v9397_v3 = vld [vmem:[#allocation17 + $0x74c] ss:$16 sps:$4 sm:$0xff]  }
 0x574   :  { %7610 = vmatprep.subr.bf16.mxu1 %v9334_v56  ;;  %v9392_v56 = vld [vmem:[#allocation17 + $0x768] ss:$16 sps:$4 sm:$0xff]  }
 0x577   :  { %7611 = vmatpush2.bf16.msra.mxu1 %v9332_v54  ;;  %v9395_v54 = vld [vmem:[#allocation17 + $0x748] ss:$16 sps:$4 sm:$0xff]  }
 0x578   :  { %7612 = vmatprep.subr.bf16.mxu1 %v9337_v60  ;;  %v9400_v60 = vld [vmem:[#allocation17 + $0x72c] ss:$16 sps:$4 sm:$0xff]  }
 0x57b   :  { %7613 = vmatpush2.bf16.msra.mxu1 %v9335_v16  ;;  %v9398_v16 = vld [vmem:[#allocation17 + $0x728] ss:$16 sps:$4 sm:$0xff]  }
 0x57c   :  { %7614 = vmatprep.subr.bf16.mxu1 %v9340_v28  ;;  %v9403_v28 = vld [vmem:[#allocation17 + $0x70c] ss:$16 sps:$4 sm:$0xff]  }
 0x57f   :  { %7615 = vmatpush2.bf16.msra.mxu1 %v9338_v19  ;;  %v9401_v19 = vld [vmem:[#allocation17 + $0x708] ss:$16 sps:$4 sm:$0xff]  }
 0x580   :  { %7616 = vmatprep.subr.bf16.mxu1 %v9343_v1 }
 0x583   :  { %7617 = vmatpush2.bf16.msra.mxu1 %v9341_v22 }
 0x584   :  { %7618 = vmatprep.subr.bf16.mxu1 %v9346_v4 }
 0x587   :  { %7619 = vmatpush2.bf16.msra.mxu1 %v9344_v50 }
 0x588   :  { %7620 = vmatprep.subr.bf16.mxu1 %v9349_v0 }
 0x58b   :  { %7621 = vmatpush2.bf16.msra.mxu1 %v9347_v33 }
 0x58c   :  { %v7464_v31 = vpop.f32.mrf.mxu1  ;;  %7622 = vmatprep.subr.bf16.mxu1 %v9352_v27 }
 0x58d   :  { %v7465_v43 = vadd.f32 %v7464_v31, %v7424_v10  ;;  %v7726_v10 = vrot.slane %v7721_v14, %v10203_v11  ;;  %v7730_v31 = vrot.slane %v7721_v14, %v10208_v13 }
 0x58e   :  { %v7466_v34 = vpop.f32.mrf.mxu1 }
 0x58f   :  { %v7467_v18 = vadd.f32 %v7466_v34, %v7426_v55  ;;  %7623 = vmatpush2.bf16.msra.mxu1 %v9350_v5 }
 0x590   :  { %v7468_v20 = vpop.f32.mrf.mxu1  ;;  %7624 = vmatprep.subr.bf16.mxu1 %v9355_v7 }
 0x592   :  { %v7469_v63 = vpop.f32.mrf.mxu1 }
 0x593   :  { %7625 = vmatpush2.bf16.msra.mxu1 %v9353_v58 }
 0x594   :  { %7676 = vmatprep.subr.bf16.mxu1 %v9358_v23 }
 0x596   :  { %7627 = vmatmul.mubr.bf16.vlgmr.msra.gmra.mxu1 %v10393_v48  ;;  %v9371_v48 = vld [vmem:[#allocation17 + $0x648] ss:$16 sps:$4 sm:$0xff]  }
 0x597   :  { %7677 = vmatpush1.bf16.msra.mxu1 %v9356_v24  ;;  %7708 = vmatprep.mubr.bf16.mxu1 %v10427_v51  ;;  %v9374_v51 = vld [vmem:[#allocation17 + $0x628] ss:$16 sps:$4 sm:$0xff]   ;;  %v6100_v24 = vrot.slane %v10435_v36, %v10235_v2 }
 0x598   :  { %7678 = vmatprep.subr.bf16.mxu1 %v9361_v61  ;;  %v6104_v61 = vrot.slane %v10435_v36, %v10238_v8 }
 0x59b   :  { %7679 = vmatpush1.bf16.msra.mxu1 %v9359_v26 }
 0x59c   :  { %7680 = vmatprep.subr.bf16.mxu1 %v9364_v46 }
 0x59f   :  { %7681 = vmatpush1.bf16.msra.mxu1 %v9362_v29 }
 0x5a0   :  { %7682 = vmatprep.subr.bf16.mxu1 %v9367_v37 }
 0x5a3   :  { %7683 = vmatpush1.bf16.msra.mxu1 %v9365_v38 }
 0x5a4   :  { %7684 = vmatprep.subr.bf16.mxu1 %v9370_v17 }
 0x5a7   :  { %7685 = vmatpush1.bf16.msra.mxu1 %v9368_v39 }
 0x5a8   :  { %7686 = vmatprep.subr.bf16.mxu1 %v9373_v30 }
 0x5ab   :  { %7687 = vmatpush1.bf16.msra.mxu1 %v9371_v48 }
 0x5ac   :  { %v7505_v42 = vpop.f32.mrf.mxu0  ;;  %7688 = vmatprep.subr.bf16.mxu1 %v9376_v41 }
 0x5ad   :  { %v7506_v49 = vadd.f32 %v7505_v42, %v7465_v43 }
 0x5ae   :  { %v7507_v35 = vpop.f32.mrf.mxu0 }
 0x5af   :  { %v7508_v15 = vadd.f32 %v7507_v35, %v7467_v18  ;;  %7689 = vmatpush1.bf16.msra.mxu1 %v9374_v51  ;;  %v7734_v51 = vrot.slane %v7721_v14, %v10235_v2  ;;  %v7738_v35 = vrot.slane %v7721_v14, %v10238_v8 }
 0x5b0   :  { %v7509_v40 = vpop.f32.mrf.mxu0  ;;  %7690 = vmatprep.subr.bf16.mxu1 %v9379_v44 }
 0x5b2   :  { %v7510_v6 = vpop.f32.mrf.mxu0 }
 0x5b3   :  { %7691 = vmatpush1.bf16.msra.mxu1 %v9377_v47 }
 0x5b4   :  { %7692 = vmatprep.subr.bf16.mxu1 %v9382_v59 }
 0x5b7   :  { %7693 = vmatpush2.bf16.msra.mxu1 %v9380_v32 }
 0x5b8   :  { %7694 = vmatprep.subr.bf16.mxu1 %v9385_v9  ;;  %v8714_v9 = vld [vmem:[#allocation2] ss:$0 sm:$0xff] }
 0x5bb   :  { %7695 = vmatpush2.bf16.msra.mxu1 %v9383_v57 }
 0x5bc   :  { %7696 = vmatprep.subr.bf16.mxu1 %v9388_v62 }
 0x5bf   :  { %7697 = vmatpush2.bf16.msra.mxu1 %v9386_v21 }
 0x5c0   :  { %7698 = vmatprep.subr.bf16.mxu1 %v9391_v52 }
 0x5c3   :  { %7699 = vmatpush2.bf16.msra.mxu1 %v9389_v53 }
 0x5c4   :  { %7700 = vmatprep.subr.bf16.mxu1 %v9394_v12 }
 0x5c7   :  { %7701 = vmatpush2.bf16.msra.mxu1 %v9392_v56 }
 0x5c8   :  { %7702 = vmatprep.subr.bf16.mxu1 %v9397_v3 }
 0x5cb   :  { %7703 = vmatpush2.bf16.msra.mxu1 %v9395_v54 }
 0x5cc   :  { %7704 = vmatprep.subr.bf16.mxu1 %v9400_v60 }
 0x5cf   :  { %7705 = vmatpush2.bf16.msra.mxu1 %v9398_v16 }
 0x5d0   :  { %7706 = vmatprep.subr.bf16.mxu1 %v9403_v28 }
 0x5d3   :  { %7707 = vmatpush2.bf16.msra.mxu1 %v9401_v19 }
 0x5d6   :  { %7709 = vmatmul.mubr.bf16.vlgmr.msra.gmra.mxu1 %v10429_v25 }
 0x5ec   :  { %v7587_v1 = vpop.f32.mrf.mxu0 }
 0x5ed   :  { %v7588_v11 = vadd.f32 %v7587_v1, %v6100_v24 }
 0x5ee   :  { %v7589_v22 = vpop.f32.mrf.mxu0 }
 0x5ef   :  { %v7590_v46 = vadd.f32 %v7589_v22, %v6104_v61 }
 0x5f0   :  { %v7591_v4 = vpop.f32.mrf.mxu0 }
 0x5f2   :  { %v7592_v50 = vpop.f32.mrf.mxu0 }
 0x616   :  { %v7546_v0 = vpop.f32.mrf.mxu1 }
 0x617   :  { %v7547_v33 = vadd.f32 %v7546_v0, %v7506_v49 }
 0x618   :  { %v7548_v27 = vpop.f32.mrf.mxu1 }
 0x619   :  { %v7717_v45 = vmax.f32 %v7547_v33, 0.0  ;;  %v7549_v5 = vadd.f32 %v7548_v27, %v7508_v15 }
 0x61a   :  { %v7550_v7 = vpop.f32.mrf.mxu1 }
 0x61b   :  { %v7718_v55 = vmax.f32 %v7549_v5, 0.0  ;;  %v7743_v34 = vmul.f32 %v7726_v10, %v7717_v45 }
 0x61c   :  { %v7551_v43 = vpop.f32.mrf.mxu1 }
 0x61d   :  { %v7744_v18 = vmul.f32 %v7730_v31, %v7718_v55 }
 0x61f   :  { %v7747_v25 = vadd.f32 %v7744_v18, %v7743_v34 }
 0x62c   :  { %v7669_v58 = vpop.f32.mrf.mxu0 }
 0x62e   :  { %v7671_v20 = vpop.f32.mrf.mxu0 }
 0x630   :  { %v7673_v23 = vpop.f32.mrf.mxu0 }
 0x632   :  { %v7674_v63 = vpop.f32.mrf.mxu0 }
 0x656   :  { %v7628_v26 = vpop.f32.mrf.mxu1 }
 0x657   :  { %v7629_v13 = vadd.f32 %v7628_v26, %v7588_v11 }
 0x658   :  { %v7630_v29 = vpop.f32.mrf.mxu1 }
 0x659   :  { %v7631_v37 = vadd.f32 %v7630_v29, %v7590_v46  ;;  %v7670_v38 = vadd.f32 %v7669_v58, %v7629_v13 }
 0x65a   :  { %v7632_v17 = vpop.f32.mrf.mxu1 }
 0x65b   :  { %v7672_v39 = vadd.f32 %v7671_v20, %v7631_v37 }
 0x65c   :  { %v7633_v30 = vpop.f32.mrf.mxu1 }
 0x696   :  { %v7710_v48 = vpop.f32.mrf.mxu1 }
 0x697   :  { %v7711_v41 = vadd.f32 %v7710_v48, %v7670_v38 }
 0x698   :  { %v7712_v42 = vpop.f32.mrf.mxu1 }
 0x699   :  { %v7719_v44 = vmax.f32 %v7711_v41, 0.0  ;;  %v7713_v49 = vadd.f32 %v7712_v42, %v7672_v39 }
 0x69a   :  { %v7714_v36 = vpop.f32.mrf.mxu1 }
 0x69b   :  { %v7745_v15 = vmul.f32 %v7734_v51, %v7719_v44  ;;  %v7720_v47 = vmax.f32 %v7713_v49, 0.0 }
 0x69c   :  { %v7715_v40 = vpop.f32.mrf.mxu1 }
 0x69d   :  { %v7746_v59 = vmul.f32 %v7738_v35, %v7720_v47  ;;  %v7748_v6 = vadd.f32 %v7747_v25, %v7745_v15 }
 0x69f   :  { %v7749_v32 = vadd.f32 %v7748_v6, %v7746_v59 }
 0x6a1   :  { %7750 = vadd.xlane.f32.xlu0 %v7749_v32 }
 0x72a   :  { %v7751_v57 = vpop.xlane.xlu0 %7750 }
 0x72b   :  { %v7759_v62 = vadd.f32 %v8714_v9, %v7751_v57 }
 0x72d   :  { %v7760_v21 = vmax.f32 %v7759_v62, 0.0 }
 0x72f   :  { %7762 = vst.msk [vmem:[%s10470_s15] sm:$0xff] %vm7761_vm3, %v7760_v21 }
 0x730   :  { %7767 = vsyncpa [#allocation4], 1 }
 0x731   :  { %7768 = vsyncpa [#allocation6], 1 }
 0x732   :  { %7769 = vsyncpa [#allocation9], 1 }
 0x733   :  { %7770 = vsyncpa [#allocation12], 1 }
 0x734   :  { %7771 = vsyncpa [#allocation15], 1 }
 0x735   :  { %7772 = vsyncpa [#allocation18], 1 }
 0x736   :  { %7773 = vsyncpa [#allocation21], 1 }

// kernel: tpu_custom_call.1
= control target key start
LH: loop header
LB: loop body
LE: loop exit
PB: predicated region body
PF: predicated region fallthrough
CT: control target
= control target key end

     0   :  { %s10455_s0 = inlined_call_operand.hbm [shape: bf16[8,1024], index: 0, kind: input, shape index: {}]   ;;  %s10456_s1 = inlined_call_operand.hbm [shape: bf16[8,768], index: 1, kind: input, shape index: {}]   ;;  %s10457_s2 = inlined_call_operand.vmem [shape: bf16[1024,32], index: 2, kind: input, shape index: {}]   ;;  %s10458_s3 = inlined_call_operand.hbm [shape: f32[1,32], index: 3, kind: input, shape index: {}]   ;;  %s10459_s4 = inlined_call_operand.vmem [shape: bf16[768,24], index: 4, kind: input, shape index: {}]   ;;  %s10460_s5 = inlined_call_operand.hbm [shape: f32[1,24], index: 5, kind: input, shape index: {}]   ;;  %s10461_s6 = inlined_call_operand.hbm [shape: bf16[32,1024], index: 6, kind: input, shape index: {}]   ;;  %s10462_s7 = inlined_call_operand.hbm [shape: bf16[24,1024], index: 7, kind: input, shape index: {}]   ;;  %s10463_s8 = inlined_call_operand.hbm [shape: f32[1,1024], index: 8, kind: input, shape index: {}]   ;;  %s10464_s9 = inlined_call_operand.hbm [shape: bf16[1024,1024], index: 9, kind: input, shape index: {}]   ;;  %s10465_s10 = inlined_call_operand.hbm [shape: f32[1,1024], index: 10, kind: input, shape index: {}]   ;;  %s10466_s11 = inlined_call_operand.hbm [shape: bf16[1024,512], index: 11, kind: input, shape index: {}]   ;;  %s10467_s12 = inlined_call_operand.hbm [shape: f32[1,512], index: 12, kind: input, shape index: {}]   ;;  %s10468_s13 = inlined_call_operand.hbm [shape: f32[1,512], index: 13, kind: input, shape index: {}]   ;;  %s10469_s14 = inlined_call_operand.<no memory space> [shape: f32[1,1], index: 14, kind: input, shape index: {}]   ;;  %s10470_s15 = inlined_call_operand.vmem [shape: f32[8,1], index: 15, kind: output, shape index: {}]  }
   0x1   :  { %v20_v0 = vstv %s10469_s14 }
   0x2   :  { %21 = vst [vmem:[#allocation2] sm:$0x1] %v20_v0 }
   0x3   :  { %22 = vsyncpa [#allocation4], 0 }
   0x4   :  { %23 = vsyncpa [#allocation6], 0 }
   0x5   :  { %24 = vsyncpa [#allocation9], 0 }
   0x6   :  { %25 = vsyncpa [#allocation12], 0 }
   0x7   :  { %26 = vsyncpa [#allocation15], 0 }
   0x8   :  { %27 = vsyncpa [#allocation18], 0 }
   0x9   :  { %28 = vsyncpa [#allocation21], 0  ;;  %s9659_s20 = smov [#allocation5]   ;;  %s9660_s22 = smov [#allocation8]  }
   0xa   :  { %s45_s21 = sshll.u32 %s9659_s20, 4  ;;  %s69_s23 = sshll.u32 %s9660_s22, 4  ;;  %s46_s21 = int_to_ptr.vmem [resolvable:$true] %s45_s21  ;;  %s70_s23 = int_to_ptr.vmem [resolvable:$true] %s69_s23 }
   0xb   :  { %s9413_s24 = scalar_lea.vmem %s46_s21, 384  ;;  %p9418_p1 = scmp.lt.s32.totalorder %s46_s21, %s46_s21 }
   0xc   :  { %p9414_p0 = scmp.ne.s32.totalorder %s46_s21, %s9413_s24  ;;  %p9419_p2 = scmp.lt.s32.totalorder %s9413_s24, %s9413_s24 }
   0xe   :  { %p9420_p3 = por %p9419_p2, %p9418_p1 }
  0x10   :  { %p9421_p4 = pnand %p9420_p3, %p9414_p0 }
  0x12   :  { %9424 = shalt.err (!%p9421_p4)
}
  0x13   :  { %48 = dma.hbm_to_vmem [thread:$0]  %s10456_s1, 384, %s46_s21, [#allocation6]  }
  0x14   :  { %s9433_s26 = scalar_lea.vmem %s70_s23, 16  ;;  %s9437_s27 = scalar_lea.vmem %s70_s23, 32 }
  0x15   :  { %p9434_p5 = scmp.ne.s32.totalorder %s70_s23, %s9433_s26  ;;  %p9438_p6 = scmp.lt.s32.totalorder %s70_s23, %s70_s23 }
  0x16   :  { %p9439_p7 = scmp.lt.s32.totalorder %s9437_s27, %s9433_s26 }
  0x18   :  { %p9440_p8 = por %p9439_p7, %p9438_p6 }
  0x1a   :  { %p9441_p9 = pnand %p9440_p8, %p9434_p5 }
  0x1c   :  { %9444 = shalt.err (!%p9441_p9)
}
  0x1d   :  { %72 = dma.hbm_to_vmem [thread:$0]  %s10460_s5, 16, %s70_s23, [#allocation9]  }
  0x1e   :  { %s9661_s30 = smov [#allocation11]   ;;  %s9662_s17 = smov [#allocation14]  }
  0x1f   :  { %s90_s16 = sshll.u32 %s9661_s30, 4  ;;  %s112_s18 = sshll.u32 %s9662_s17, 4  ;;  %s91_s16 = int_to_ptr.vmem [resolvable:$true] %s90_s16  ;;  %s113_s18 = int_to_ptr.vmem [resolvable:$true] %s112_s18 }
  0x20   :  { %s9453_s19 = scalar_lea.vmem %s91_s16, 1536  ;;  %p9458_p11 = scmp.lt.s32.totalorder %s91_s16, %s91_s16 }
  0x21   :  { %p9454_p10 = scmp.ne.s32.totalorder %s91_s16, %s9453_s19  ;;  %p9459_p12 = scmp.lt.s32.totalorder %s9453_s19, %s9453_s19 }
  0x23   :  { %p9460_p13 = por %p9459_p12, %p9458_p11 }
  0x25   :  { %p9461_p0 = pnand %p9460_p13, %p9454_p10 }
  0x27   :  { %9464 = shalt.err (!%p9461_p0)
}
  0x28   :  { %s9663_s1 = smov 512   ;;  %s9664_s20 = smov 32  }
  0x29   :  { %96 = dma.hbm_to_vmem [thread:$0]  %s10462_s7, 1536, %s91_s16, [#allocation12], %s9663_s1, %s9663_s1, %s9664_s20  }
  0x2a   :  { %s9473_s22 = scalar_lea.vmem %s113_s18, 65536  ;;  %p9478_p2 = scmp.lt.s32.totalorder %s113_s18, %s113_s18 }
  0x2b   :  { %p9474_p1 = scmp.ne.s32.totalorder %s113_s18, %s9473_s22  ;;  %p9479_p3 = scmp.lt.s32.totalorder %s9473_s22, %s9473_s22 }
  0x2d   :  { %p9480_p4 = por %p9479_p3, %p9478_p2 }
  0x2f   :  { %p9481_p5 = pnand %p9480_p4, %p9474_p1 }
  0x31   :  { %9484 = shalt.err (!%p9481_p5)
}
  0x32   :  { %118 = dma.hbm_to_vmem [thread:$0]  %s10464_s9, 65536, %s113_s18, [#allocation15], %s9663_s1, %s9663_s1, %s9664_s20  }
  0x33   :  { %s9665_s14 = smov [#allocation17]  }
  0x34   :  { %s134_s25 = sshll.u32 %s9665_s14, 4  ;;  %s135_s25 = int_to_ptr.vmem [resolvable:$true] %s134_s25 }
  0x35   :  { %s9493_s26 = scalar_lea.vmem %s135_s25, 32768  ;;  %p9498_p7 = scmp.lt.s32.totalorder %s135_s25, %s135_s25 }
  0x36   :  { %p9494_p6 = scmp.ne.s32.totalorder %s135_s25, %s9493_s26  ;;  %p9499_p8 = scmp.lt.s32.totalorder %s9493_s26, %s9493_s26 }
  0x38   :  { %p9500_p9 = por %p9499_p8, %p9498_p7 }
  0x3a   :  { %p9501_p10 = pnand %p9500_p9, %p9494_p6 }
  0x3c   :  { %9504 = shalt.err (!%p9501_p10)
}
  0x3d   :  { %s9666_s7 = smov 256   ;;  %s9667_s27 = smov 16  }
  0x3e   :  { %140 = dma.hbm_to_vmem [thread:$0]  %s10466_s11, 32768, %s135_s25, [#allocation18], %s9666_s7, %s9666_s7, %s9667_s27  }
  0x3f   :  { %s9668_s30 = smov [#allocation3]   ;;  %s9669_s9 = smov [#allocation7]  }
  0x40   :  { %s35_s16 = sshll.u32 %s9668_s30, 4  ;;  %s57_s17 = sshll.u32 %s9669_s9, 4  ;;  %s36_s16 = int_to_ptr.vmem [resolvable:$true] %s35_s16  ;;  %s58_s17 = int_to_ptr.vmem [resolvable:$true] %s57_s17 }
  0x41   :  { %s9513_s18 = scalar_lea.vmem %s36_s16, 512  ;;  %p9518_p12 = scmp.lt.s32.totalorder %s36_s16, %s36_s16 }
  0x42   :  { %p9514_p11 = scmp.ne.s32.totalorder %s36_s16, %s9513_s18  ;;  %p9519_p13 = scmp.lt.s32.totalorder %s9513_s18, %s9513_s18 }
  0x44   :  { %p9520_p0 = por %p9519_p13, %p9518_p12 }
  0x46   :  { %p9521_p1 = pnand %p9520_p0, %p9514_p11 }
  0x48   :  { %9524 = shalt.err (!%p9521_p1)
}
  0x49   :  { %38 = dma.hbm_to_vmem [thread:$0]  %s10455_s0, 512, %s36_s16, [#allocation4]  }
  0x4a   :  { %s9533_s5 = scalar_lea.vmem %s58_s17, 16  ;;  %s9537_s11 = scalar_lea.vmem %s58_s17, 32 }
  0x4b   :  { %p9534_p2 = scmp.ne.s32.totalorder %s58_s17, %s9533_s5  ;;  %p9538_p3 = scmp.lt.s32.totalorder %s58_s17, %s58_s17 }
  0x4c   :  { %p9539_p4 = scmp.lt.s32.totalorder %s9537_s11, %s9533_s5 }
  0x4e   :  { %p9540_p5 = por %p9539_p4, %p9538_p3 }
  0x50   :  { %p9541_p6 = pnand %p9540_p5, %p9534_p2 }
  0x52   :  { %9544 = shalt.err (!%p9541_p6)
}
  0x53   :  { %60 = dma.hbm_to_vmem [thread:$0]  %s10458_s3, 16, %s58_s17, [#allocation6]  }
  0x54   :  { %s9670_s24 = smov [#allocation10]   ;;  %s9671_s25 = smov [#allocation13]  }
  0x55   :  { %s78_s14 = sshll.u32 %s9670_s24, 4  ;;  %s103_s26 = sshll.u32 %s9671_s25, 4  ;;  %s79_s14 = int_to_ptr.vmem [resolvable:$true] %s78_s14  ;;  %s104_s26 = int_to_ptr.vmem [resolvable:$true] %s103_s26 }
  0x56   :  { %s9553_s7 = scalar_lea.vmem %s79_s14, 2048  ;;  %p9558_p8 = scmp.lt.s32.totalorder %s79_s14, %s79_s14 }
  0x57   :  { %p9554_p7 = scmp.ne.s32.totalorder %s79_s14, %s9553_s7  ;;  %p9559_p9 = scmp.lt.s32.totalorder %s9553_s7, %s9553_s7 }
  0x59   :  { %p9560_p10 = por %p9559_p9, %p9558_p8 }
  0x5b   :  { %p9561_p11 = pnand %p9560_p10, %p9554_p7 }
  0x5d   :  { %9564 = shalt.err (!%p9561_p11)
}
  0x5e   :  { %84 = dma.hbm_to_vmem [thread:$0]  %s10461_s6, 2048, %s79_s14, [#allocation9], %s9663_s1, %s9663_s1, %s9664_s20  }
  0x5f   :  { %s9573_s3 = scalar_lea.vmem %s104_s26, 128  ;;  %p9578_p13 = scmp.lt.s32.totalorder %s104_s26, %s104_s26 }
  0x60   :  { %p9574_p12 = scmp.ne.s32.totalorder %s104_s26, %s9573_s3  ;;  %p9579_p0 = scmp.lt.s32.totalorder %s9573_s3, %s9573_s3 }
  0x62   :  { %p9580_p1 = por %p9579_p0, %p9578_p13 }
  0x64   :  { %p9581_p2 = pnand %p9580_p1, %p9574_p12 }
  0x66   :  { %9584 = shalt.err (!%p9581_p2)
}
  0x67   :  { %106 = dma.hbm_to_vmem [thread:$0]  %s10463_s8, 128, %s104_s26, [#allocation12]  }
  0x68   :  { %s9672_s30 = smov [#allocation16]   ;;  %s9673_s9 = smov [#allocation19]  }
  0x69   :  { %s125_s16 = sshll.u32 %s9672_s30, 4  ;;  %s147_s17 = sshll.u32 %s9673_s9, 4  ;;  %s126_s16 = int_to_ptr.vmem [resolvable:$true] %s125_s16  ;;  %s148_s17 = int_to_ptr.vmem [resolvable:$true] %s147_s17 }
  0x6a   :  { %s9593_s18 = scalar_lea.vmem %s126_s16, 128  ;;  %p9598_p4 = scmp.lt.s32.totalorder %s126_s16, %s126_s16 }
  0x6b   :  { %p9594_p3 = scmp.ne.s32.totalorder %s126_s16, %s9593_s18  ;;  %p9599_p5 = scmp.lt.s32.totalorder %s9593_s18, %s9593_s18 }
  0x6d   :  { %p9600_p6 = por %p9599_p5, %p9598_p4 }
  0x6f   :  { %p9601_p7 = pnand %p9600_p6, %p9594_p3 }
  0x71   :  { %9604 = shalt.err (!%p9601_p7)
}
  0x72   :  { %128 = dma.hbm_to_vmem [thread:$0]  %s10465_s10, 128, %s126_s16, [#allocation15]  }
  0x73   :  { %s9613_s20 = scalar_lea.vmem %s148_s17, 64  ;;  %p9618_p9 = scmp.lt.s32.totalorder %s148_s17, %s148_s17 }
  0x74   :  { %p9614_p8 = scmp.ne.s32.totalorder %s148_s17, %s9613_s20  ;;  %p9619_p10 = scmp.lt.s32.totalorder %s9613_s20, %s9613_s20 }
  0x76   :  { %p9620_p11 = por %p9619_p10, %p9618_p9 }
  0x78   :  { %p9621_p12 = pnand %p9620_p11, %p9614_p8 }
  0x7a   :  { %9624 = shalt.err (!%p9621_p12)
}
  0x7b   :  { %150 = dma.hbm_to_vmem [thread:$0]  %s10467_s12, 64, %s148_s17, [#allocation18]  }
  0x7c   :  { %s9674_s21 = smov [#allocation20]  }
  0x7d   :  { %s157_s5 = sshll.u32 %s9674_s21, 4  ;;  %s158_s5 = int_to_ptr.vmem [resolvable:$true] %s157_s5 }
  0x7e   :  { %s9633_s11 = scalar_lea.vmem %s158_s5, 64  ;;  %p9638_p0 = scmp.lt.s32.totalorder %s158_s5, %s158_s5 }
  0x7f   :  { %p9634_p13 = scmp.ne.s32.totalorder %s158_s5, %s9633_s11  ;;  %p9639_p1 = scmp.lt.s32.totalorder %s9633_s11, %s9633_s11 }
  0x81   :  { %p9640_p2 = por %p9639_p1, %p9638_p0 }
  0x83   :  { %p9641_p3 = pnand %p9640_p2, %p9634_p13 }
  0x85   :  { %9644 = shalt.err (!%p9641_p3)
}
  0x86   :  { %160 = dma.hbm_to_vmem [thread:$0]  %s10468_s13, 64, %s158_s5, [#allocation21]  }
  0x87   :  { %9645 = dma.done.wait [#allocation4], 512  }
  0x88   :  { %9646 = vsyncadd [#allocation4], 4294966784 }
  0x89   :  { %9647 = dma.done.wait [#allocation6], 400  }
  0x8a   :  { %9648 = vsyncadd [#allocation6], 4294966896 }
  0x8b   :  { %9649 = dma.done.wait [#allocation9], 2064  }
  0x8c   :  { %9650 = vsyncadd [#allocation9], 4294965232 }
  0x8d   :  { %9651 = dma.done.wait [#allocation12], 1664  }
  0x8e   :  { %9652 = vsyncadd [#allocation12], 4294965632 }
  0x8f   :  { %9653 = dma.done.wait [#allocation15], 65664  }
  0x90   :  { %9654 = vsyncadd [#allocation15], 4294901632 }
  0x91   :  { %9655 = dma.done.wait [#allocation18], 32832  }
  0x92   :  { %9656 = vsyncadd [#allocation18], 4294934464 }
  0x93   :  { %9657 = dma.done.wait [#allocation21], 64  }
  0x94   :  { %9658 = vsyncadd [#allocation21], 4294967232  ;;  %v8886_v1 = vld [vmem:[%s10457_s2 + $0x78] sm:$0xff]   ;;  %v8890_v5 = vld [vmem:[%s10457_s2 + $0x70] sm:$0xff]   ;;  %vm1542_vm0 = vcmask 1043456   ;;  %vm1811_vm1 = vcmask 261120  }
  0x95   :  { %v8887_v2 = vld [vmem:[%s10457_s2 + $0x38] sm:$0xff]   ;;  %8715 = vmatprep.subr.bf16.mxu0 %v8886_v1  ;;  %v8891_v6 = vld [vmem:[%s10457_s2 + $0x30] sm:$0xff]   ;;  %v8894_v9 = vld [vmem:[%s10457_s2 + $0x68] sm:$0xff]   ;;  %vm1538_vm2 = vcmask 195584   ;;  %vm7761_vm3 = vcmask 7168  }
  0x96   :  { %v8888_v3 = vld [vmem:[%s10457_s2 + $0xf8] sm:$0xff]   ;;  %8716 = vmatpush3.bf16.msra.mxu0 %v8887_v2  ;;  %v8892_v7 = vld [vmem:[%s10457_s2 + $0xf0] sm:$0xff]   ;;  %v8895_v10 = vld [vmem:[%s10457_s2 + $0x28] sm:$0xff]  }
  0x97   :  { %v8889_v4 = vld [vmem:[%s10457_s2 + $0xb8] sm:$0xff]   ;;  %8737 = vmatprep.subr.bf16.mxu1 %v8888_v3  ;;  %8717 = vmatprep.subr.bf16.mxu0 %v8890_v5  ;;  %v8893_v8 = vld [vmem:[%s10457_s2 + $0xb0] sm:$0xff]   ;;  %v8896_v11 = vld [vmem:[%s10457_s2 + $0xe8] sm:$0xff]  }
  0x98   :  { %8738 = vmatpush3.bf16.msra.mxu1 %v8889_v4  ;;  %v8897_v12 = vld [vmem:[%s10457_s2 + $0xa8] sm:$0xff]   ;;  %v8898_v13 = vld [vmem:[%s10457_s2 + $0x60] sm:$0xff]   ;;  %v8902_v17 = vld [vmem:[%s10457_s2 + $0x58] sm:$0xff]  }
  0x99   :  { %8739 = vmatprep.subr.bf16.mxu1 %v8892_v7  ;;  %v8899_v14 = vld [vmem:[%s10457_s2 + $0x20] sm:$0xff]   ;;  %v8903_v18 = vld [vmem:[%s10457_s2 + $0x18] sm:$0xff]   ;;  %v8906_v21 = vld [vmem:[%s10457_s2 + $0x50] sm:$0xff]  }
  0x9a   :  { %8718 = vmatpush3.bf16.msra.mxu0 %v8891_v6  ;;  %v8900_v15 = vld [vmem:[%s10457_s2 + $0xe0] sm:$0xff]   ;;  %v8904_v19 = vld [vmem:[%s10457_s2 + $0xd8] sm:$0xff]   ;;  %v8907_v22 = vld [vmem:[%s10457_s2 + $0x10] sm:$0xff]  }
  0x9b   :  { %8719 = vmatprep.subr.bf16.mxu0 %v8894_v9  ;;  %v8901_v16 = vld [vmem:[%s10457_s2 + $0xa0] sm:$0xff]   ;;  %v8905_v20 = vld [vmem:[%s10457_s2 + $0x98] sm:$0xff]   ;;  %v8908_v23 = vld [vmem:[%s10457_s2 + $0xd0] sm:$0xff]  }
  0x9c   :  { %8740 = vmatpush3.bf16.msra.mxu1 %v8893_v8  ;;  %v8909_v24 = vld [vmem:[%s10457_s2 + $0x90] sm:$0xff]   ;;  %v8910_v25 = vld [vmem:[%s10457_s2 + $0x48] sm:$0xff]   ;;  %v8914_v29 = vld [vmem:[%s10457_s2 + $0x40] sm:$0xff]  }
  0x9d   :  { %8741 = vmatprep.subr.bf16.mxu1 %v8896_v11  ;;  %v8911_v26 = vld [vmem:[%s10457_s2 + $0x8] sm:$0xff]   ;;  %v8915_v30 = vld [vmem:[%s10457_s2] sm:$0xff]   ;;  %v8920_v36 = vld [vmem:[%s10457_s2 + $0x178] sm:$0xff]  }
  0x9e   :  { %8720 = vmatpush3.bf16.msra.mxu0 %v8895_v10  ;;  %v8912_v27 = vld [vmem:[%s10457_s2 + $0xc8] sm:$0xff]   ;;  %v8916_v31 = vld [vmem:[%s10457_s2 + $0xc0] sm:$0xff]   ;;  %v8923_v40 = vld [vmem:[%s10457_s2 + $0x138] sm:$0xff]  }
  0x9f   :  { %8721 = vmatprep.subr.bf16.mxu0 %v8898_v13  ;;  %v8913_v28 = vld [vmem:[%s10457_s2 + $0x88] sm:$0xff]   ;;  %v8919_v35 = vld [vmem:[%s10457_s2 + $0x80] sm:$0xff]   ;;  %v8924_v41 = vld [vmem:[%s10457_s2 + $0x1f8] sm:$0xff]  }
  0xa0   :  { %8742 = vmatpush3.bf16.msra.mxu1 %v8897_v12  ;;  %v200_v32 = vld [vmem:[#allocation3] sm:$0xff]  ;;  %v201_v37 = vld [vmem:[#allocation3 + $0x8] sm:$0xff]  ;;  %v8925_v42 = vld [vmem:[%s10457_s2 + $0x1b8] sm:$0xff]  }
  0xa1   :  { %8743 = vmatprep.subr.bf16.mxu1 %v8900_v15  ;;  %v7775_v33 = vcombine.low %v200_v32, %v200_v32  ;;  %v7776_v34 = vcombine.high %v200_v32, %v200_v32  ;;  %v7777_v38 = vcombine.low %v201_v37, %v201_v37  ;;  %v7778_v39 = vcombine.high %v201_v37, %v201_v37  ;;  %v8926_v43 = vld [vmem:[%s10457_s2 + $0x170] sm:$0xff]   ;;  %v8930_v47 = vld [vmem:[%s10457_s2 + $0x168] sm:$0xff]   ;;  %v8934_v51 = vld [vmem:[%s10457_s2 + $0x160] sm:$0xff]  }
  0xa2   :  { %8722 = vmatpush3.bf16.msra.mxu0 %v8899_v14  ;;  %v8927_v44 = vld [vmem:[%s10457_s2 + $0x130] sm:$0xff]   ;;  %v8931_v48 = vld [vmem:[%s10457_s2 + $0x128] sm:$0xff]   ;;  %v8935_v52 = vld [vmem:[%s10457_s2 + $0x120] sm:$0xff]  }
  0xa3   :  { %8723 = vmatprep.subr.bf16.mxu0 %v8902_v17  ;;  %783 = vmatprep.mubr.bf16.mxu0 %v7776_v34  ;;  %v8928_v45 = vld [vmem:[%s10457_s2 + $0x1f0] sm:$0xff]   ;;  %v8932_v49 = vld [vmem:[%s10457_s2 + $0x1e8] sm:$0xff]   ;;  %v8936_v53 = vld [vmem:[%s10457_s2 + $0x1e0] sm:$0xff]  }
  0xa4   :  { %8744 = vmatpush3.bf16.msra.mxu1 %v8901_v16  ;;  %823 = vmatprep.mubr.bf16.mxu1 %v7778_v39  ;;  %v8929_v46 = vld [vmem:[%s10457_s2 + $0x1b0] sm:$0xff]   ;;  %v8933_v50 = vld [vmem:[%s10457_s2 + $0x1a8] sm:$0xff]   ;;  %v8937_v54 = vld [vmem:[%s10457_s2 + $0x1a0] sm:$0xff]  }
  0xa5   :  { %8745 = vmatprep.subr.bf16.mxu1 %v8904_v19  ;;  %v8938_v55 = vld [vmem:[%s10457_s2 + $0x158] sm:$0xff]   ;;  %v8942_v59 = vld [vmem:[%s10457_s2 + $0x150] sm:$0xff]   ;;  %v8946_v63 = vld [vmem:[%s10457_s2 + $0x148] sm:$0xff]  }
  0xa6   :  { %8724 = vmatpush3.bf16.msra.mxu0 %v8903_v18  ;;  %v8939_v56 = vld [vmem:[%s10457_s2 + $0x118] sm:$0xff]   ;;  %v8943_v60 = vld [vmem:[%s10457_s2 + $0x110] sm:$0xff]   ;;  %v8947_v0 = vld [vmem:[%s10457_s2 + $0x108] sm:$0xff]  }
  0xa7   :  { %8725 = vmatprep.subr.bf16.mxu0 %v8906_v21  ;;  %v8940_v57 = vld [vmem:[%s10457_s2 + $0x1d8] sm:$0xff]   ;;  %v8944_v61 = vld [vmem:[%s10457_s2 + $0x1d0] sm:$0xff]   ;;  %v8948_v1 = vld [vmem:[%s10457_s2 + $0x1c8] sm:$0xff]  }
  0xa8   :  { %8746 = vmatpush3.bf16.msra.mxu1 %v8905_v20  ;;  %v8941_v58 = vld [vmem:[%s10457_s2 + $0x198] sm:$0xff]   ;;  %v8945_v62 = vld [vmem:[%s10457_s2 + $0x190] sm:$0xff]   ;;  %v8949_v2 = vld [vmem:[%s10457_s2 + $0x188] sm:$0xff]  }
  0xa9   :  { %8747 = vmatprep.subr.bf16.mxu1 %v8908_v23  ;;  %v8950_v3 = vld [vmem:[%s10457_s2 + $0x140] sm:$0xff]   ;;  %v202_v6 = vld [vmem:[#allocation3 + $0x10] sm:$0xff]  ;;  %v8966_v21 = vld [vmem:[%s10459_s4 + $0x68] sm:$0xff]  }
  0xaa   :  { %8726 = vmatpush3.bf16.msra.mxu0 %v8907_v22  ;;  %v8951_v4 = vld [vmem:[%s10457_s2 + $0x100] sm:$0xff]   ;;  %v7779_v7 = vcombine.low %v202_v6, %v202_v6  ;;  %v7780_v8 = vcombine.high %v202_v6, %v202_v6  ;;  %v8956_v10 = vld [vmem:[%s10459_s4 + $0x78] sm:$0xff]   ;;  %v8962_v17 = vld [vmem:[%s10459_s4 + $0x70] sm:$0xff]  }
  0xab   :  { %8727 = vmatprep.subr.bf16.mxu0 %v8910_v25  ;;  %v8952_v5 = vld [vmem:[%s10457_s2 + $0x1c0] sm:$0xff]   ;;  %v8959_v14 = vld [vmem:[%s10459_s4 + $0x38] sm:$0xff]   ;;  %v8963_v18 = vld [vmem:[%s10459_s4 + $0x30] sm:$0xff]  }
  0xac   :  { %8748 = vmatpush3.bf16.msra.mxu1 %v8909_v24  ;;  %v8955_v9 = vld [vmem:[%s10457_s2 + $0x180] sm:$0xff]   ;;  %v8960_v15 = vld [vmem:[%s10459_s4 + $0xf8] sm:$0xff]   ;;  %v8964_v19 = vld [vmem:[%s10459_s4 + $0xf0] sm:$0xff]  }
  0xad   :  { %8749 = vmatprep.subr.bf16.mxu1 %v8912_v27  ;;  %v203_v11 = vld [vmem:[#allocation3 + $0x18] sm:$0xff]  ;;  %v8965_v20 = vld [vmem:[%s10459_s4 + $0xb0] sm:$0xff]   ;;  %v8967_v22 = vld [vmem:[%s10459_s4 + $0x28] sm:$0xff]  }
  0xae   :  { %8728 = vmatpush3.bf16.msra.mxu0 %v8911_v26  ;;  %v7781_v12 = vcombine.low %v203_v11, %v203_v11  ;;  %v7782_v13 = vcombine.high %v203_v11, %v203_v11  ;;  %v8961_v16 = vld [vmem:[%s10459_s4 + $0xb8] sm:$0xff]   ;;  %v8968_v23 = vld [vmem:[%s10459_s4 + $0xe8] sm:$0xff]   ;;  %v8970_v25 = vld [vmem:[%s10459_s4 + $0x60] sm:$0xff]  }
  0xaf   :  { %8729 = vmatprep.subr.bf16.mxu0 %v8914_v29  ;;  %v8969_v24 = vld [vmem:[%s10459_s4 + $0xa8] sm:$0xff]   ;;  %v8971_v26 = vld [vmem:[%s10459_s4 + $0x20] sm:$0xff]   ;;  %v8974_v29 = vld [vmem:[%s10459_s4 + $0x58] sm:$0xff]  }
  0xb0   :  { %8750 = vmatpush3.bf16.msra.mxu1 %v8913_v28  ;;  %v8972_v27 = vld [vmem:[%s10459_s4 + $0xe0] sm:$0xff]   ;;  %v8977_v32 = vld [vmem:[%s10459_s4 + $0x98] sm:$0xff]   ;;  %v8979_v34 = vld [vmem:[%s10459_s4 + $0x10] sm:$0xff]  }
  0xb1   :  { %8751 = vmatprep.subr.bf16.mxu1 %v8916_v31  ;;  %v8973_v28 = vld [vmem:[%s10459_s4 + $0xa0] sm:$0xff]   ;;  %v8976_v31 = vld [vmem:[%s10459_s4 + $0xd8] sm:$0xff]   ;;  %v8982_v37 = vld [vmem:[%s10459_s4 + $0x48] sm:$0xff]  }
  0xb2   :  { %8730 = vmatpush3.bf16.msra.mxu0 %v8915_v30  ;;  %v8975_v30 = vld [vmem:[%s10459_s4 + $0x18] sm:$0xff]   ;;  %v8984_v39 = vld [vmem:[%s10459_s4 + $0xc8] sm:$0xff]  }
  0xb3   :  { %8759 = vmatprep.subr.bf16.mxu0 %v8920_v36  ;;  %v8981_v36 = vld [vmem:[%s10459_s4 + $0x90] sm:$0xff]   ;;  %v1457_v6 = vld [vmem:[#allocation10 + $0x40] sm:$0xff] }
  0xb4   :  { %8752 = vmatpush3.bf16.msra.mxu1 %v8919_v35  ;;  %v8980_v35 = vld [vmem:[%s10459_s4 + $0xd0] sm:$0xff]   ;;  %v1453_v11 = vld [vmem:[#allocation10 + $0x20] sm:$0xff] }
  0xb5   :  { %784 = vmatmul.mubr.bf16.vlgmr.msra.gmra.mxu0 %v7775_v33  ;;  %8781 = vmatprep.subr.bf16.mxu1 %v8924_v41  ;;  %v8978_v33 = vld [vmem:[%s10459_s4 + $0x50] sm:$0xff]   ;;  %v8986_v41 = vld [vmem:[%s10459_s4 + $0x40] sm:$0xff]  }
  0xb6   :  { %8760 = vmatpush3.bf16.msra.mxu0 %v8923_v40  ;;  %863 = vmatprep.mubr.bf16.mxu0 %v7780_v8  ;;  %v8985_v40 = vld [vmem:[%s10459_s4 + $0x88] sm:$0xff]  }
  0xb7   :  { %824 = vmatmul.mubr.bf16.vlgmr.msra.gmra.mxu1 %v7777_v38  ;;  %8761 = vmatprep.subr.bf16.mxu0 %v8926_v43  ;;  %v8983_v38 = vld [vmem:[%s10459_s4 + $0x8] sm:$0xff]   ;;  %v8988_v43 = vld [vmem:[%s10459_s4 + $0xc0] sm:$0xff]  }
  0xb8   :  { %8782 = vmatpush3.bf16.msra.mxu1 %v8925_v42  ;;  %903 = vmatprep.mubr.bf16.mxu1 %v7782_v13  ;;  %v8987_v42 = vld [vmem:[%s10459_s4] sm:$0xff]  }
  0xb9   :  { %8783 = vmatprep.subr.bf16.mxu1 %v8928_v45 }
  0xba   :  { %8762 = vmatpush3.bf16.msra.mxu0 %v8927_v44  ;;  %v912_v44 = vld [vmem:[#allocation5] sm:$0xff] }
  0xbb   :  { %8763 = vmatprep.subr.bf16.mxu0 %v8930_v47  ;;  %v7848_v45 = vcombine.low %v912_v44, %v912_v44  ;;  %v8991_v47 = vld [vmem:[%s10459_s4 + $0x80] sm:$0xff]  }
  0xbc   :  { %8784 = vmatpush3.bf16.msra.mxu1 %v8929_v46  ;;  %v7849_v46 = vcombine.high %v912_v44, %v912_v44 }
  0xbd   :  { %8785 = vmatprep.subr.bf16.mxu1 %v8932_v49  ;;  %v913_v49 = vld [vmem:[#allocation5 + $0x8] sm:$0xff] }
  0xbe   :  { %8764 = vmatpush3.bf16.msra.mxu0 %v8931_v48  ;;  %v8992_v48 = vld [vmem:[%s10459_s4 + $0x178] sm:$0xff]  }
  0xbf   :  { %8765 = vmatprep.subr.bf16.mxu0 %v8934_v51  ;;  %v7851_v51 = vcombine.high %v913_v49, %v913_v49 }
  0xc0   :  { %8786 = vmatpush3.bf16.msra.mxu1 %v8933_v50  ;;  %v7850_v50 = vcombine.low %v913_v49, %v913_v49 }
  0xc1   :  { %8787 = vmatprep.subr.bf16.mxu1 %v8936_v53  ;;  %v8996_v53 = vld [vmem:[%s10459_s4 + $0x170] sm:$0xff]  }
  0xc2   :  { %8766 = vmatpush3.bf16.msra.mxu0 %v8935_v52  ;;  %v8995_v52 = vld [vmem:[%s10459_s4 + $0x138] sm:$0xff]  }
  0xc3   :  { %8767 = vmatprep.subr.bf16.mxu0 %v8938_v55  ;;  %v8998_v55 = vld [vmem:[%s10459_s4 + $0x168] sm:$0xff]  }
  0xc4   :  { %8788 = vmatpush3.bf16.msra.mxu1 %v8937_v54  ;;  %v8997_v54 = vld [vmem:[%s10459_s4 + $0x130] sm:$0xff]  }
  0xc5   :  { %8789 = vmatprep.subr.bf16.mxu1 %v8940_v57  ;;  %v9000_v57 = vld [vmem:[%s10459_s4 + $0x160] sm:$0xff]  }
  0xc6   :  { %8768 = vmatpush3.bf16.msra.mxu0 %v8939_v56  ;;  %v8999_v56 = vld [vmem:[%s10459_s4 + $0x128] sm:$0xff]  }
  0xc7   :  { %8769 = vmatprep.subr.bf16.mxu0 %v8942_v59  ;;  %v9002_v59 = vld [vmem:[%s10459_s4 + $0x158] sm:$0xff]  }
  0xc8   :  { %8790 = vmatpush3.bf16.msra.mxu1 %v8941_v58  ;;  %v9001_v58 = vld [vmem:[%s10459_s4 + $0x120] sm:$0xff]  }
  0xc9   :  { %8791 = vmatprep.subr.bf16.mxu1 %v8944_v61  ;;  %v9004_v61 = vld [vmem:[%s10459_s4 + $0x150] sm:$0xff]  }
  0xca   :  { %8770 = vmatpush3.bf16.msra.mxu0 %v8943_v60  ;;  %v9003_v60 = vld [vmem:[%s10459_s4 + $0x118] sm:$0xff]  }
  0xcb   :  { %8771 = vmatprep.subr.bf16.mxu0 %v8946_v63  ;;  %v9005_v63 = vld [vmem:[%s10459_s4 + $0x110] sm:$0xff]  }
  0xcc   :  { %8792 = vmatpush3.bf16.msra.mxu1 %v8945_v62  ;;  %v914_v62 = vld [vmem:[#allocation5 + $0x10] sm:$0xff] }
  0xcd   :  { %8793 = vmatprep.subr.bf16.mxu1 %v8948_v1  ;;  %v9006_v1 = vld [vmem:[%s10459_s4 + $0x148] sm:$0xff]  }
  0xce   :  { %8772 = vmatpush3.bf16.msra.mxu0 %v8947_v0  ;;  %v7853_v0 = vcombine.high %v914_v62, %v914_v62 }
  0xcf   :  { %8773 = vmatprep.subr.bf16.mxu0 %v8950_v3  ;;  %v9008_v3 = vld [vmem:[%s10459_s4 + $0x140] sm:$0xff]  }
  0xd0   :  { %8794 = vmatpush3.bf16.msra.mxu1 %v8949_v2  ;;  %v9007_v2 = vld [vmem:[%s10459_s4 + $0x108] sm:$0xff]  }
  0xd1   :  { %8795 = vmatprep.subr.bf16.mxu1 %v8952_v5  ;;  %v7852_v5 = vcombine.low %v914_v62, %v914_v62 }
  0xd2   :  { %8774 = vmatpush3.bf16.msra.mxu0 %v8951_v4  ;;  %v9009_v4 = vld [vmem:[%s10459_s4 + $0x100] sm:$0xff]  }
  0xd3   :  { %8803 = vmatprep.subr.bf16.mxu0 %v8956_v10  ;;  %v1449_v10 = vld [vmem:[#allocation10] sm:$0xff] }
  0xd4   :  { %8796 = vmatpush3.bf16.msra.mxu1 %v8955_v9  ;;  %v7926_v13 = vcombine.low %v1449_v10, %v1453_v11 }
  0xd5   :  { %864 = vmatmul.mubr.bf16.vlgmr.msra.gmra.mxu0 %v7779_v7  ;;  %8825 = vmatprep.subr.bf16.mxu1 %v8960_v15  ;;  %v1461_v7 = vld [vmem:[#allocation10 + $0x60] sm:$0xff]  ;;  %v1463_v15 = vld [vmem:[#allocation10 + $0x70] sm:$0xff] }
  0xd6   :  { %8804 = vmatpush3.bf16.msra.mxu0 %v8959_v14  ;;  %1359 = vmatprep.mubr.bf16.mxu0 %v7849_v46  ;;  %v7935_v8 = vcombine.high %v1457_v6, %v1461_v7  ;;  %v7934_v9 = vcombine.low %v1457_v6, %v1461_v7  ;;  %v1459_v14 = vld [vmem:[#allocation10 + $0x50] sm:$0xff] }
  0xd7   :  { %904 = vmatmul.mubr.bf16.vlgmr.msra.gmra.mxu1 %v7781_v12  ;;  %8805 = vmatprep.subr.bf16.mxu0 %v8962_v17  ;;  %v7927_v12 = vcombine.high %v1449_v10, %v1453_v11  ;;  %v9675_v17 = vmov 0  }
  0xd8   :  { %8826 = vmatpush3.bf16.msra.mxu1 %v8961_v16  ;;  %1399 = vmatprep.mubr.bf16.mxu1 %v7851_v51  ;;  %v7939_v16 = vcombine.high %v1459_v14, %v1463_v15 }
  0xd9   :  { %8827 = vmatprep.subr.bf16.mxu1 %v8964_v19  ;;  %v1474_v19 = vld [vmem:[#allocation11 + $0x40] sm:$0xff] }
  0xda   :  { %8806 = vmatpush3.bf16.msra.mxu0 %v8963_v18  ;;  %v7938_v18 = vcombine.low %v1459_v14, %v1463_v15 }
  0xdb   :  { %8807 = vmatprep.subr.bf16.mxu0 %v8966_v21  ;;  %v7910_v21 = vcombine.low %v1474_v19, %v1474_v19 }
  0xdc   :  { %8828 = vmatpush3.bf16.msra.mxu1 %v8965_v20  ;;  %v7911_v20 = vcombine.high %v1474_v19, %v1474_v19 }
  0xdd   :  { %8829 = vmatprep.subr.bf16.mxu1 %v8968_v23  ;;  %v1466_v23 = vld [vmem:[#allocation11] sm:$0xff] }
  0xde   :  { %8808 = vmatpush3.bf16.msra.mxu0 %v8967_v22  ;;  %v1544_v22 = vsel %vm1542_vm0, %v7910_v21, 0 }
  0xdf   :  { %8809 = vmatprep.subr.bf16.mxu0 %v8970_v25 }
  0xe0   :  { %8830 = vmatpush3.bf16.msra.mxu1 %v8969_v24  ;;  %v1470_v24 = vld [vmem:[#allocation11 + $0x20] sm:$0xff] }
  0xe1   :  { %8831 = vmatprep.subr.bf16.mxu1 %v8972_v27  ;;  %v7903_v25 = vcombine.high %v1466_v23, %v1470_v24  ;;  %v10144_v27 = vld [vmem:[#allocation11 + $0x48] sm:$0xff] }
  0xe2   :  { %8810 = vmatpush3.bf16.msra.mxu0 %v8971_v26  ;;  %v7902_v26 = vcombine.low %v1466_v23, %v1470_v24  ;;  %v7912_v14 = vcombine.low %v10144_v27, %v10144_v27  ;;  %v1476_v23 = vld [vmem:[#allocation11 + $0x50] sm:$0xff] }
  0xe3   :  { %8811 = vmatprep.subr.bf16.mxu0 %v8974_v29 }
  0xe4   :  { %8832 = vmatpush3.bf16.msra.mxu1 %v8973_v28  ;;  %v7913_v28 = vcombine.high %v10144_v27, %v10144_v27  ;;  %v1550_v21 = vsel %vm1542_vm0, %v7912_v14, 0  ;;  %v1468_v27 = vld [vmem:[#allocation11 + $0x10] sm:$0xff]  ;;  %v2057_v14 = vld [vmem:[#allocation14 + $0x60] sm:$0xff] }
  0xe5   :  { %8833 = vmatprep.subr.bf16.mxu1 %v8976_v31 }
  0xe6   :  { %8812 = vmatpush3.bf16.msra.mxu0 %v8975_v30 }
  0xe7   :  { %8813 = vmatprep.subr.bf16.mxu0 %v8978_v33 }
  0xe8   :  { %8834 = vmatpush3.bf16.msra.mxu1 %v8977_v32 }
  0xe9   :  { %8835 = vmatprep.subr.bf16.mxu1 %v8980_v35 }
  0xea   :  { %8814 = vmatpush3.bf16.msra.mxu0 %v8979_v34 }
  0xeb   :  { %8815 = vmatprep.subr.bf16.mxu0 %v8982_v37 }
  0xec   :  { %8836 = vmatpush3.bf16.msra.mxu1 %v8981_v36 }
  0xed   :  { %8837 = vmatprep.subr.bf16.mxu1 %v8984_v39 }
  0xee   :  { %8816 = vmatpush3.bf16.msra.mxu0 %v8983_v38  ;;  %v7774_v38 = vld [vmem:[#allocation7] ss:$0 sm:$0xff] }
  0xef   :  { %8817 = vmatprep.subr.bf16.mxu0 %v8986_v41 }
  0xf0   :  { %8838 = vmatpush3.bf16.msra.mxu1 %v8985_v40 }
  0xf1   :  { %8839 = vmatprep.subr.bf16.mxu1 %v8988_v43 }
  0xf2   :  { %8818 = vmatpush3.bf16.msra.mxu0 %v8987_v42 }
  0xf3   :  { %8847 = vmatprep.subr.bf16.mxu0 %v8992_v48 }
  0xf4   :  { %8840 = vmatpush3.bf16.msra.mxu1 %v8991_v47 }
  0xf5   :  { %1360 = vmatmul.mubr.bf16.vlgmr.msra.gmra.mxu0 %v7848_v45  ;;  %7918 = vmatprep.subr.msk.bf16.mxu1 %vm1542_vm0, %v7911_v20 }
  0xf6   :  { %8848 = vmatpush3.bf16.msra.mxu0 %v8995_v52  ;;  %1439 = vmatprep.mubr.bf16.mxu0 %v7853_v0 }
  0xf7   :  { %1400 = vmatmul.mubr.bf16.vlgmr.msra.gmra.mxu1 %v7850_v50  ;;  %8849 = vmatprep.subr.bf16.mxu0 %v8996_v53  ;;  %v1451_v53 = vld [vmem:[#allocation10 + $0x10] sm:$0xff] }
  0xf8   :  { %1599 = vmatprep.mubr.bf16.mxu1 %v9675_v17  ;;  %1580 = vmatpush1.bf16.msra.mxu1 %v1544_v22 }
  0xf9   :  { %1581 = vmatprep.subr.bf16.mxu1 %v7903_v25  ;;  %v7915_v25 = vcombine.high %v1476_v23, %v1476_v23 }
  0xfa   :  { %8850 = vmatpush3.bf16.msra.mxu0 %v8997_v54  ;;  %v1455_v54 = vld [vmem:[#allocation10 + $0x30] sm:$0xff] }
  0xfb   :  { %8851 = vmatprep.subr.bf16.mxu0 %v8998_v55 }
  0xfc   :  { %1582 = vmatpush1.bf16.msra.mxu1 %v7902_v26  ;;  %v7914_v26 = vcombine.low %v1476_v23, %v1476_v23  ;;  %v2233_v23 = vld [vmem:[#allocation14 + $0x5e0] sm:$0xff] }
  0xfd   :  { %7920 = vmatprep.subr.msk.bf16.mxu1 %vm1542_vm0, %v7913_v28  ;;  %v1472_v28 = vld [vmem:[#allocation11 + $0x30] sm:$0xff] }
  0xfe   :  { %8852 = vmatpush3.bf16.msra.mxu0 %v8999_v56 }
  0xff   :  { %8853 = vmatprep.subr.bf16.mxu0 %v9000_v57 }
 0x102   :  { %8854 = vmatpush3.bf16.msra.mxu0 %v9001_v58  ;;  %v7931_v58 = vcombine.high %v1451_v53, %v1455_v54 }
 0x103   :  { %8855 = vmatprep.subr.bf16.mxu0 %v9002_v59  ;;  %v7930_v59 = vcombine.low %v1451_v53, %v1455_v54 }
 0x106   :  { %8856 = vmatpush3.bf16.msra.mxu0 %v9003_v60 }
 0x107   :  { %8857 = vmatprep.subr.bf16.mxu0 %v9004_v61 }
 0x10a   :  { %8858 = vmatpush3.bf16.msra.mxu0 %v9005_v63 }
 0x10b   :  { %8859 = vmatprep.subr.bf16.mxu0 %v9006_v1 }
 0x10e   :  { %8860 = vmatpush3.bf16.msra.mxu0 %v9007_v2 }
 0x10f   :  { %8861 = vmatprep.subr.bf16.mxu0 %v9008_v3 }
 0x112   :  { %8862 = vmatpush3.bf16.msra.mxu0 %v9009_v4 }
 0x113   :  { %1827 = vmatprep.subr.bf16.mxu0 %v7935_v8 }
 0x115   :  { %1440 = vmatmul.mubr.bf16.vlgmr.msra.gmra.mxu0 %v7852_v5  ;;  %v7847_v5 = vld [vmem:[#allocation8] ss:$0 sm:$0xff] }
 0x116   :  { %1828 = vmatpush1.bf16.msra.mxu0 %v7934_v9  ;;  %1847 = vmatprep.mubr.bf16.mxu0 %v9675_v17 }
 0x117   :  { %1829 = vmatprep.subr.bf16.mxu0 %v7927_v12 }
 0x11a   :  { %1830 = vmatpush1.bf16.msra.mxu0 %v7926_v13 }
 0x11b   :  { %1909 = vmatprep.subr.bf16.mxu0 %v7939_v16  ;;  %v1467_v16 = vld [vmem:[#allocation11 + $0x8] sm:$0xff] }
 0x175   :  { %v8731_v29 = vpop.f32.mrf.mxu0 }
 0x177   :  { %v8732_v30 = vpop.f32.mrf.mxu0  ;;  %v8753_v31 = vpop.f32.mrf.mxu1 }
 0x178   :  { %v8733_v37 = vadd.f32 %v8732_v30, %v8731_v29  ;;  %v1556_v29 = vsel %vm1542_vm0, %v7914_v26, 0  ;;  %v7907_v30 = vcombine.high %v1468_v27, %v1472_v28 }
 0x179   :  { %v8734_v32 = vpop.f32.mrf.mxu0  ;;  %v8754_v33 = vpop.f32.mrf.mxu1 }
 0x17a   :  { %v786_v39 = vadd.f32 %v8733_v37, %v7774_v38  ;;  %v8755_v40 = vadd.f32 %v8754_v33, %v8753_v31  ;;  %v1477_v31 = vld [vmem:[#allocation11 + $0x58] sm:$0xff]  ;;  %v2101_v32 = vld [vmem:[#allocation14 + $0x1c0] sm:$0xff] }
 0x17b   :  { %v8735_v34 = vpop.f32.mrf.mxu0  ;;  %v8756_v35 = vpop.f32.mrf.mxu1  ;;  %v2105_v33 = vld [vmem:[#allocation14 + $0x1e0] sm:$0xff]  ;;  %v7916_v37 = vcombine.low %v1477_v31, %v1477_v31 }
 0x17c   :  { %v826_v43 = vadd.f32 %v8755_v40, %v786_v39  ;;  %v7906_v34 = vcombine.low %v1468_v27, %v1472_v28  ;;  %v8003_v35 = vcombine.high %v2101_v32, %v2105_v33  ;;  %v8002_v38 = vcombine.low %v2101_v32, %v2105_v33  ;;  %v1469_v39 = vld [vmem:[#allocation11 + $0x18] sm:$0xff]  ;;  %v2165_v27 = vld [vmem:[#allocation14 + $0x3c0] sm:$0xff] }
 0x17d   :  { %v8757_v36 = vpop.f32.mrf.mxu1  ;;  %v1473_v40 = vld [vmem:[#allocation11 + $0x38] sm:$0xff]  ;;  %v2169_v28 = vld [vmem:[#allocation14 + $0x3e0] sm:$0xff] }
 0x17e   :  { %v7917_v36 = vcombine.high %v1477_v31, %v1477_v31  ;;  %v2225_v31 = vld [vmem:[#allocation14 + $0x5a0] sm:$0xff]  ;;  %v8067_v33 = vcombine.high %v2165_v27, %v2169_v28 }
 0x195   :  { %v8775_v41 = vpop.f32.mrf.mxu0 }
 0x197   :  { %v8776_v42 = vpop.f32.mrf.mxu0  ;;  %v8797_v45 = vpop.f32.mrf.mxu1 }
 0x198   :  { %v8777_v44 = vadd.f32 %v8776_v42, %v8775_v41  ;;  %v2093_v41 = vld [vmem:[#allocation14 + $0x180] sm:$0xff] }
 0x199   :  { %v8778_v46 = vpop.f32.mrf.mxu0  ;;  %v8798_v48 = vpop.f32.mrf.mxu1  ;;  %v2097_v42 = vld [vmem:[#allocation14 + $0x1a0] sm:$0xff] }
 0x19a   :  { %v866_v47 = vadd.f32 %v8777_v44, %v826_v43  ;;  %v8799_v49 = vadd.f32 %v8798_v48, %v8797_v45  ;;  %v7995_v43 = vcombine.high %v2093_v41, %v2097_v42  ;;  %v1562_v44 = vsel %vm1542_vm0, %v7916_v37, 0  ;;  %v1462_v48 = vld [vmem:[#allocation10 + $0x68] sm:$0xff] }
 0x19b   :  { %v8779_v50 = vpop.f32.mrf.mxu0  ;;  %v8800_v51 = vpop.f32.mrf.mxu1  ;;  %v7909_v45 = vcombine.high %v1469_v39, %v1473_v40  ;;  %v7994_v46 = vcombine.low %v2093_v41, %v2097_v42  ;;  %v2149_v42 = vld [vmem:[#allocation14 + $0x340] sm:$0xff] }
 0x19c   :  { %v906_v52 = vadd.f32 %v8799_v49, %v866_v47  ;;  %v1458_v47 = vld [vmem:[#allocation10 + $0x48] sm:$0xff] }
 0x19d   :  { %v8801_v55 = vpop.f32.mrf.mxu1  ;;  %v2085_v49 = vld [vmem:[#allocation14 + $0x140] sm:$0xff] }
 0x19e   :  { %v911_v56 = vmax.f32 %v906_v52, 0.0  ;;  %v2089_v50 = vld [vmem:[#allocation14 + $0x160] sm:$0xff]  ;;  %v7908_v52 = vcombine.low %v1469_v39, %v1473_v40  ;;  %v8066_v39 = vcombine.low %v2165_v27, %v2169_v28 }
 0x19f   :  { %v2077_v51 = vld [vmem:[#allocation14 + $0x100] sm:$0xff]  ;;  %v7986_v53 = vcombine.low %v2085_v49, %v2089_v50  ;;  %v7987_v54 = vcombine.high %v2085_v49, %v2089_v50 }
 0x1a0   :  { %v10149_v57 = vpack.c.bf16 %v911_v56, %v911_v56  ;;  %v2081_v55 = vld [vmem:[#allocation14 + $0x120] sm:$0xff]  ;;  %v7937_v56 = vcombine.high %v1458_v47, %v1462_v48 }
 0x1a1   :  { %v2145_v50 = vld [vmem:[#allocation14 + $0x320] sm:$0xff] }
 0x1a2   :  { %7942 = vmatmul.mubr.msk.bf16.vlgmr.msra.gmra.mxu0 %vm1811_vm1, %v10149_v57  ;;  %v2297_v27 = vld [vmem:[#allocation14 + $0x7e0] sm:$0xff] }
 0x1a3   :  { %1910 = vmatpush1.bf16.msra.mxu0 %v7938_v18  ;;  %1929 = vmatprep.mubr.bf16.mxu0 %v9675_v17  ;;  %v1471_v18 = vld [vmem:[#allocation11 + $0x28] sm:$0xff] }
 0x1a4   :  { %1911 = vmatprep.subr.bf16.mxu0 %v7931_v58  ;;  %v7905_v22 = vcombine.high %v1467_v16, %v1471_v18  ;;  %v7904_v24 = vcombine.low %v1467_v16, %v1471_v18  ;;  %v1450_v58 = vld [vmem:[#allocation10 + $0x8] sm:$0xff] }
 0x1a5   :  { %v10182_v28 = vld [vmem:[#allocation14 + $0x9c0] sm:$0xff] }
 0x1a7   :  { %1912 = vmatpush1.bf16.msra.mxu0 %v7930_v59  ;;  %v7979_v59 = vcombine.high %v2077_v51, %v2081_v55 }
 0x1a8   :  { %5159 = vmatprep.subr.bf16.mxu0 %v8003_v35  ;;  %v2157_v35 = vld [vmem:[#allocation14 + $0x380] sm:$0xff] }
 0x1aa   :  { %7944 = vmatmul.mubr.msk.bf16.vlgmr.msra.gmra.mxu0 %vm1811_vm1, %v10149_v57 }
 0x1ab   :  { %5160 = vmatpush1.bf16.msra.mxu0 %v8002_v38  ;;  %v2213_v38 = vld [vmem:[#allocation14 + $0x540] sm:$0xff] }
 0x1ac   :  { %5161 = vmatprep.subr.bf16.mxu0 %v7995_v43  ;;  %v2153_v43 = vld [vmem:[#allocation14 + $0x360] sm:$0xff] }
 0x1af   :  { %5162 = vmatpush1.bf16.msra.mxu0 %v7994_v46  ;;  %v2209_v46 = vld [vmem:[#allocation14 + $0x520] sm:$0xff] }
 0x1b0   :  { %5163 = vmatprep.subr.bf16.mxu0 %v7987_v54  ;;  %v8050_v54 = vcombine.low %v2149_v42, %v2153_v43 }
 0x1b3   :  { %5164 = vmatpush1.bf16.msra.mxu0 %v7986_v53  ;;  %v2201_v53 = vld [vmem:[#allocation14 + $0x4e0] sm:$0xff] }
 0x1b4   :  { %5165 = vmatprep.subr.bf16.mxu0 %v7979_v59  ;;  %v2137_v59 = vld [vmem:[#allocation14 + $0x2e0] sm:$0xff] }
 0x1b5   :  { %v8819_v60 = vpop.f32.mrf.mxu0 }
 0x1b7   :  { %v8820_v61 = vpop.f32.mrf.mxu0  ;;  %v8841_v62 = vpop.f32.mrf.mxu1 }
 0x1b8   :  { %v8821_v4 = vadd.f32 %v8820_v61, %v8819_v60  ;;  %v1454_v60 = vld [vmem:[#allocation10 + $0x28] sm:$0xff] }
 0x1b9   :  { %v8822_v63 = vpop.f32.mrf.mxu0  ;;  %v8842_v0 = vpop.f32.mrf.mxu1  ;;  %v2069_v61 = vld [vmem:[#allocation14 + $0xc0] sm:$0xff] }
 0x1ba   :  { %v1362_v6 = vadd.f32 %v8821_v4, %v7847_v5  ;;  %v8843_v7 = vadd.f32 %v8842_v0, %v8841_v62  ;;  %v2073_v62 = vld [vmem:[#allocation14 + $0xe0] sm:$0xff]  ;;  %v7978_v63 = vcombine.low %v2077_v51, %v2081_v55  ;;  %v7936_v0 = vcombine.low %v1458_v47, %v1462_v48  ;;  %v1460_v5 = vld [vmem:[#allocation10 + $0x58] sm:$0xff] }
 0x1bb   :  { %v8823_v1 = vpop.f32.mrf.mxu0  ;;  %v8844_v2 = vpop.f32.mrf.mxu1  ;;  %v2065_v4 = vld [vmem:[#allocation14 + $0xa0] sm:$0xff]  ;;  %v8051_v48 = vcombine.high %v2149_v42, %v2153_v43 }
 0x1bc   :  { %v1402_v10 = vadd.f32 %v8843_v7, %v1362_v6  ;;  %v7929_v1 = vcombine.high %v1450_v58, %v1454_v60  ;;  %v7971_v2 = vcombine.high %v2069_v61, %v2073_v62  ;;  %v1464_v6 = vld [vmem:[#allocation10 + $0x78] sm:$0xff]  ;;  %5166 = vmatpush1.bf16.msra.mxu0 %v7978_v63  ;;  %v7970_v7 = vcombine.low %v2069_v61, %v2073_v62  ;;  %v2189_v61 = vld [vmem:[#allocation14 + $0x480] sm:$0xff] }
 0x1bd   :  { %v8845_v3 = vpop.f32.mrf.mxu1  ;;  %v7940_v16 = vcombine.low %v1460_v5, %v1464_v6  ;;  %v2193_v62 = vld [vmem:[#allocation14 + $0x4a0] sm:$0xff] }
 0x1be   :  { %v2061_v3 = vld [vmem:[#allocation14 + $0x80] sm:$0xff]  ;;  %5167 = vmatprep.subr.bf16.mxu0 %v7971_v2 }
 0x1bf   :  { %v2125_v2 = vld [vmem:[#allocation14 + $0x280] sm:$0xff] }
 0x1c0   :  { %5168 = vmatpush1.bf16.msra.mxu0 %v7970_v7  ;;  %v8090_v7 = vcombine.low %v2189_v61, %v2193_v62  ;;  %v2273_v42 = vld [vmem:[#allocation14 + $0x720] sm:$0xff] }
 0x1d5   :  { %v8863_v8 = vpop.f32.mrf.mxu0 }
 0x1d7   :  { %v8864_v9 = vpop.f32.mrf.mxu0 }
 0x1d8   :  { %v8865_v11 = vadd.f32 %v8864_v9, %v8863_v8  ;;  %v7928_v8 = vcombine.low %v1450_v58, %v1454_v60  ;;  %v7963_v9 = vcombine.high %v2061_v3, %v2065_v4  ;;  %v2133_v58 = vld [vmem:[#allocation14 + $0x2c0] sm:$0xff] }
 0x1d9   :  { %v8866_v12 = vpop.f32.mrf.mxu0 }
 0x1da   :  { %v1442_v13 = vadd.f32 %v8865_v11, %v1402_v10  ;;  %v7941_v10 = vcombine.high %v1460_v5, %v1464_v6  ;;  %v1452_v11 = vld [vmem:[#allocation10 + $0x18] sm:$0xff]  ;;  %5169 = vmatprep.subr.bf16.mxu0 %v7963_v9  ;;  %v8034_v5 = vcombine.low %v2133_v58, %v2137_v59  ;;  %v2117_v9 = vld [vmem:[#allocation14 + $0x240] sm:$0xff] }
 0x1db   :  { %v8867_v15 = vpop.f32.mrf.mxu0  ;;  %v1456_v12 = vld [vmem:[#allocation10 + $0x38] sm:$0xff] }
 0x1dc   :  { %v1447_v19 = vmax.f32 %v1442_v13, 0.0  ;;  %v2053_v13 = vld [vmem:[#allocation14 + $0x40] sm:$0xff]  ;;  %v7962_v15 = vcombine.low %v2061_v3, %v2065_v4  ;;  %v7933_v18 = vcombine.high %v1452_v11, %v1456_v12  ;;  %v8091_v4 = vcombine.high %v2189_v61, %v2193_v62 }
 0x1dd   :  { %v2129_v3 = vld [vmem:[#allocation14 + $0x2a0] sm:$0xff] }
 0x1de   :  { %v10158_v20 = vpack.c.bf16 %v1447_v19, %v1447_v19  ;;  %v7955_v19 = vcombine.high %v2053_v13, %v2057_v14  ;;  %5170 = vmatpush1.bf16.msra.mxu0 %v7962_v15  ;;  %v8027_v6 = vcombine.high %v2125_v2, %v2129_v3  ;;  %v10190_v61 = vld [vmem:[#allocation14 + $0xdc0] sm:$0xff] }
 0x1df   :  { %v10192_v62 = vld [vmem:[#allocation14 + $0xde0] sm:$0xff] }
 0x1e0   :  { %7919 = vmatmul.mubr.msk.bf16.vlgmr.msra.gmra.mxu1 %vm1538_vm2, %v10158_v20  ;;  %5171 = vmatprep.subr.bf16.mxu0 %v7955_v19  ;;  %v2113_v19 = vld [vmem:[#allocation14 + $0x220] sm:$0xff] }
 0x1e1   :  { %1621 = vmatpush1.bf16.msra.mxu1 %v1550_v21  ;;  %1640 = vmatprep.mubr.bf16.mxu1 %v9675_v17  ;;  %v2049_v21 = vld [vmem:[#allocation14 + $0x20] sm:$0xff] }
 0x1e2   :  { %1622 = vmatprep.subr.bf16.mxu1 %v7905_v22  ;;  %v2229_v22 = vld [vmem:[#allocation14 + $0x5c0] sm:$0xff] }
 0x1e5   :  { %1623 = vmatpush1.bf16.msra.mxu1 %v7904_v24  ;;  %v7954_v24 = vcombine.low %v2053_v13, %v2057_v14  ;;  %v2185_v13 = vld [vmem:[#allocation14 + $0x460] sm:$0xff] }
 0x1e6   :  { %7922 = vmatprep.subr.msk.bf16.mxu1 %vm1542_vm0, %v7915_v25  ;;  %v7932_v25 = vcombine.low %v1452_v11, %v1456_v12  ;;  %v2181_v12 = vld [vmem:[#allocation14 + $0x440] sm:$0xff] }
 0x1e7   :  { %5172 = vmatpush1.bf16.msra.mxu0 %v7954_v24  ;;  %v8082_v15 = vcombine.low %v2181_v12, %v2185_v13 }
 0x1e8   :  { %7921 = vmatmul.mubr.msk.bf16.vlgmr.msra.gmra.mxu1 %vm1538_vm2, %v10158_v20 }
 0x1e9   :  { %1662 = vmatpush1.bf16.msra.mxu1 %v1556_v29  ;;  %1681 = vmatprep.mubr.bf16.mxu1 %v9675_v17  ;;  %v8131_v29 = vcombine.high %v2229_v22, %v2233_v23 }
 0x1ea   :  { %1663 = vmatprep.subr.bf16.mxu1 %v7907_v30  ;;  %v2221_v30 = vld [vmem:[#allocation14 + $0x580] sm:$0xff] }
 0x1eb   :  { %v8123_v37 = vcombine.high %v2221_v30, %v2225_v31  ;;  %v8122_v41 = vcombine.low %v2221_v30, %v2225_v31  ;;  %v10184_v30 = vld [vmem:[#allocation14 + $0x9e0] sm:$0xff] }
 0x1ed   :  { %1664 = vmatpush1.bf16.msra.mxu1 %v7906_v34  ;;  %v8130_v34 = vcombine.low %v2229_v22, %v2233_v23  ;;  %v2177_v22 = vld [vmem:[#allocation14 + $0x420] sm:$0xff] }
 0x1ee   :  { %7924 = vmatprep.subr.msk.bf16.mxu1 %vm1542_vm0, %v7917_v36  ;;  %v2161_v36 = vld [vmem:[#allocation14 + $0x3a0] sm:$0xff] }
 0x1ef   :  { %v8059_v40 = vcombine.high %v2157_v35, %v2161_v36  ;;  %v8058_v47 = vcombine.low %v2157_v35, %v2161_v36  ;;  %v2289_v35 = vld [vmem:[#allocation14 + $0x7a0] sm:$0xff] }
 0x1f0   :  { %7923 = vmatmul.mubr.msk.bf16.vlgmr.msra.gmra.mxu1 %vm1538_vm2, %v10158_v20 }
 0x1f1   :  { %1703 = vmatpush1.bf16.msra.mxu1 %v1562_v44  ;;  %1722 = vmatprep.mubr.bf16.mxu1 %v9675_v17 }
 0x1f2   :  { %1704 = vmatprep.subr.bf16.mxu1 %v7909_v45  ;;  %v2205_v45 = vld [vmem:[#allocation14 + $0x500] sm:$0xff] }
 0x1f3   :  { %v8107_v51 = vcombine.high %v2205_v45, %v2209_v46 }
 0x1f5   :  { %1705 = vmatpush1.bf16.msra.mxu1 %v7908_v52  ;;  %v2197_v52 = vld [vmem:[#allocation14 + $0x4c0] sm:$0xff] }
 0x1f6   :  { %1868 = vmatprep.subr.bf16.mxu1 %v7937_v56  ;;  %v8106_v56 = vcombine.low %v2205_v45, %v2209_v46  ;;  %v8099_v60 = vcombine.high %v2197_v52, %v2201_v53  ;;  %v2261_v45 = vld [vmem:[#allocation14 + $0x6c0] sm:$0xff] }
 0x1f7   :  { %v2265_v46 = vld [vmem:[#allocation14 + $0x6e0] sm:$0xff] }
 0x1f8   :  { %7925 = vmatmul.mubr.msk.bf16.vlgmr.msra.gmra.mxu1 %vm1538_vm2, %v10158_v20  ;;  %v2045_v20 = vld [vmem:[#allocation14] sm:$0xff] }
 0x1f9   :  { %1869 = vmatpush1.bf16.msra.mxu1 %v7936_v0  ;;  %1888 = vmatprep.mubr.bf16.mxu1 %v9675_v17  ;;  %v7947_v26 = vcombine.high %v2045_v20, %v2049_v21  ;;  %v7946_v32 = vcombine.low %v2045_v20, %v2049_v21  ;;  %v8035_v0 = vcombine.high %v2133_v58, %v2137_v59  ;;  %v2173_v20 = vld [vmem:[#allocation14 + $0x400] sm:$0xff] }
 0x1fa   :  { %1870 = vmatprep.subr.bf16.mxu1 %v7929_v1  ;;  %v8098_v1 = vcombine.low %v2197_v52, %v2201_v53  ;;  %v8074_v24 = vcombine.low %v2173_v20, %v2177_v22  ;;  %v2245_v52 = vld [vmem:[#allocation14 + $0x640] sm:$0xff] }
 0x1fb   :  { %5173 = vmatprep.subr.bf16.mxu0 %v7947_v26  ;;  %v2293_v26 = vld [vmem:[#allocation14 + $0x7c0] sm:$0xff] }
 0x1fc   :  { %5174 = vmatpush1.bf16.msra.mxu0 %v7946_v32  ;;  %v8194_v31 = vcombine.low %v2293_v26, %v2297_v27  ;;  %v8258_v32 = vcombine.low %v10182_v28, %v10184_v30  ;;  %v2249_v53 = vld [vmem:[#allocation14 + $0x660] sm:$0xff] }
 0x1fd   :  { %1871 = vmatpush1.bf16.msra.mxu1 %v7928_v8  ;;  %5175 = vmatprep.subr.bf16.mxu0 %v8067_v33  ;;  %v8026_v8 = vcombine.low %v2125_v2, %v2129_v3  ;;  %v8259_v33 = vcombine.high %v10182_v28, %v10184_v30  ;;  %v2241_v58 = vld [vmem:[#allocation14 + $0x620] sm:$0xff] }
 0x1fe   :  { %1950 = vmatprep.subr.bf16.mxu1 %v7941_v10  ;;  %v2121_v10 = vld [vmem:[#allocation14 + $0x260] sm:$0xff] }
 0x1ff   :  { %v8019_v11 = vcombine.high %v2117_v9, %v2121_v10  ;;  %v8018_v14 = vcombine.low %v2117_v9, %v2121_v10  ;;  %v1981_v9 = vlaneseq }
 0x200   :  { %7943 = vmatmul.mubr.msk.bf16.vlgmr.msra.gmra.mxu1 %vm1811_vm1, %v10149_v57  ;;  %5176 = vmatpush2.bf16.msra.mxu0 %v8066_v39 }
 0x201   :  { %1951 = vmatpush1.bf16.msra.mxu1 %v7940_v16  ;;  %1970 = vmatprep.mubr.bf16.mxu1 %v9675_v17  ;;  %v2217_v17 = vld [vmem:[#allocation14 + $0x560] sm:$0xff]  ;;  %v8083_v16 = vcombine.high %v2181_v12, %v2185_v13  ;;  %v10200_v10 = vshrl.u32 %v1981_v9, 7  ;;  %v10205_v12 = vld [vmem:[#allocation13] sm:$0xff] }
 0x202   :  { %1952 = vmatprep.subr.bf16.mxu1 %v7933_v18  ;;  %v8115_v44 = vcombine.high %v2213_v38, %v2217_v17  ;;  %5177 = vmatprep.subr.bf16.mxu0 %v8059_v40  ;;  %v8114_v49 = vcombine.low %v2213_v38, %v2217_v17  ;;  %v2109_v18 = vld [vmem:[#allocation14 + $0x200] sm:$0xff] }
 0x203   :  { %v8011_v21 = vcombine.high %v2109_v18, %v2113_v19  ;;  %v8010_v23 = vcombine.low %v2109_v18, %v2113_v19  ;;  %v2277_v38 = vld [vmem:[#allocation14 + $0x740] sm:$0xff]  ;;  %v10208_v13 = vsub.s32 1, %v10200_v10 }
 0x204   :  { %5178 = vmatpush2.bf16.msra.mxu0 %v8058_v47  ;;  %v2281_v17 = vld [vmem:[#allocation14 + $0x760] sm:$0xff]  ;;  %v8162_v47 = vcombine.low %v2261_v45, %v2265_v46 }
 0x205   :  { %1953 = vmatpush1.bf16.msra.mxu1 %v7932_v25  ;;  %5179 = vmatprep.subr.bf16.mxu0 %v8051_v48  ;;  %v8075_v25 = vcombine.high %v2173_v20, %v2177_v22  ;;  %v8179_v39 = vcombine.high %v2277_v38, %v2281_v17  ;;  %v8178_v40 = vcombine.low %v2277_v38, %v2281_v17  ;;  %v2345_v38 = vld [vmem:[#allocation14 + $0x960] sm:$0xff] }
 0x206   :  { %5200 = vmatprep.subr.bf16.mxu1 %v8131_v29  ;;  %v8195_v29 = vcombine.high %v2293_v26, %v2297_v27  ;;  %v8163_v48 = vcombine.high %v2261_v45, %v2265_v46  ;;  %v1988_v18 = vrot.slane %v10205_v12, %v10208_v13  ;;  %v2349_v27 = vld [vmem:[#allocation14 + $0x980] sm:$0xff] }
 0x208   :  { %7945 = vmatmul.mubr.msk.bf16.vlgmr.msra.gmra.mxu1 %vm1811_vm1, %v10149_v57  ;;  %v2141_v57 = vld [vmem:[#allocation14 + $0x300] sm:$0xff]  ;;  %5180 = vmatpush2.bf16.msra.mxu0 %v8050_v54  ;;  %v8147_v54 = vcombine.high %v2245_v52, %v2249_v53 }
 0x209   :  { %5201 = vmatpush1.bf16.msra.mxu1 %v8130_v34  ;;  %v8043_v55 = vcombine.high %v2141_v57, %v2145_v50  ;;  %v8042_v63 = vcombine.low %v2141_v57, %v2145_v50  ;;  %v2285_v34 = vld [vmem:[#allocation14 + $0x780] sm:$0xff] }
 0x20a   :  { %5202 = vmatprep.subr.bf16.mxu1 %v8123_v37  ;;  %v8186_v36 = vcombine.low %v2285_v34, %v2289_v35  ;;  %v8187_v37 = vcombine.high %v2285_v34, %v2289_v35  ;;  %v2257_v57 = vld [vmem:[#allocation14 + $0x6a0] sm:$0xff] }
 0x20b   :  { %5181 = vmatprep.subr.bf16.mxu0 %v8043_v55  ;;  %v8146_v55 = vcombine.low %v2245_v52, %v2249_v53 }
 0x20c   :  { %5182 = vmatpush2.bf16.msra.mxu0 %v8042_v63  ;;  %v8386_v63 = vcombine.low %v10190_v61, %v10192_v62 }
 0x20d   :  { %5203 = vmatpush1.bf16.msra.mxu1 %v8122_v41  ;;  %5183 = vmatprep.subr.bf16.mxu0 %v8035_v0  ;;  %v2269_v41 = vld [vmem:[#allocation14 + $0x700] sm:$0xff]  ;;  %v8387_v0 = vcombine.high %v10190_v61, %v10192_v62 }
 0x20e   :  { %5204 = vmatprep.subr.bf16.mxu1 %v8115_v44  ;;  %v8171_v43 = vcombine.high %v2269_v41, %v2273_v42  ;;  %v8170_v44 = vcombine.low %v2269_v41, %v2273_v42 }
 0x210   :  { %5184 = vmatpush2.bf16.msra.mxu0 %v8034_v5 }
 0x211   :  { %5205 = vmatpush1.bf16.msra.mxu1 %v8114_v49  ;;  %5185 = vmatprep.subr.bf16.mxu0 %v8027_v6  ;;  %v2253_v49 = vld [vmem:[#allocation14 + $0x680] sm:$0xff] }
 0x212   :  { %5206 = vmatprep.subr.bf16.mxu1 %v8107_v51  ;;  %v8154_v50 = vcombine.low %v2253_v49, %v2257_v57  ;;  %v8155_v51 = vcombine.high %v2253_v49, %v2257_v57  ;;  %v2329_v49 = vld [vmem:[#allocation14 + $0x8e0] sm:$0xff] }
 0x214   :  { %5186 = vmatpush2.bf16.msra.mxu0 %v8026_v8 }
 0x215   :  { %5207 = vmatpush1.bf16.msra.mxu1 %v8106_v56  ;;  %5187 = vmatprep.subr.bf16.mxu0 %v8019_v11  ;;  %v2237_v56 = vld [vmem:[#allocation14 + $0x600] sm:$0xff]  ;;  %v10203_v11 = vsub.s32 0, %v10200_v10 }
 0x216   :  { %5208 = vmatprep.subr.bf16.mxu1 %v8099_v60  ;;  %v8139_v59 = vcombine.high %v2237_v56, %v2241_v58  ;;  %v8138_v60 = vcombine.low %v2237_v56, %v2241_v58  ;;  %v2321_v56 = vld [vmem:[#allocation14 + $0x8a0] sm:$0xff] }
 0x218   :  { %5188 = vmatpush2.bf16.msra.mxu0 %v8018_v14  ;;  %v1984_v14 = vrot.slane %v10205_v12, %v10203_v11 }
 0x219   :  { %5209 = vmatpush1.bf16.msra.mxu1 %v8098_v1  ;;  %5189 = vmatprep.subr.bf16.mxu0 %v8011_v21 }
 0x21a   :  { %5210 = vmatprep.subr.bf16.mxu1 %v8091_v4 }
 0x21c   :  { %5190 = vmatpush2.bf16.msra.mxu0 %v8010_v23 }
 0x21d   :  { %5211 = vmatpush1.bf16.msra.mxu1 %v8090_v7  ;;  %5241 = vmatprep.subr.bf16.mxu0 %v8259_v33 }
 0x21e   :  { %5212 = vmatprep.subr.bf16.mxu1 %v8083_v16 }
 0x221   :  { %5213 = vmatpush1.bf16.msra.mxu1 %v8082_v15 }
 0x222   :  { %5214 = vmatprep.subr.bf16.mxu1 %v8075_v25 }
 0x225   :  { %5215 = vmatpush1.bf16.msra.mxu1 %v8074_v24 }
 0x226   :  { %5216 = vmatprep.subr.bf16.mxu1 %v8195_v29  ;;  %v2353_v29 = vld [vmem:[#allocation14 + $0x9a0] sm:$0xff] }
 0x229   :  { %5217 = vmatpush2.bf16.msra.mxu1 %v8194_v31 }
 0x22a   :  { %5218 = vmatprep.subr.bf16.mxu1 %v8187_v37  ;;  %v2341_v37 = vld [vmem:[#allocation14 + $0x940] sm:$0xff] }
 0x22b   :  { %v8243_v42 = vcombine.high %v2341_v37, %v2345_v38 }
 0x22d   :  { %5219 = vmatpush2.bf16.msra.mxu1 %v8186_v36  ;;  %v8251_v36 = vcombine.high %v2349_v27, %v2353_v29 }
 0x22e   :  { %5220 = vmatprep.subr.bf16.mxu1 %v8179_v39  ;;  %v8250_v39 = vcombine.low %v2349_v27, %v2353_v29  ;;  %v2007_v27 = vsub.s32 6, %v10200_v10  ;;  %v2421_v29 = vld [vmem:[#allocation14 + $0xbc0] sm:$0xff] }
 0x231   :  { %5221 = vmatpush2.bf16.msra.mxu1 %v8178_v40  ;;  %v2003_v40 = vsub.s32 5, %v10200_v10 }
 0x232   :  { %5222 = vmatprep.subr.bf16.mxu1 %v8171_v43  ;;  %v2333_v43 = vld [vmem:[#allocation14 + $0x900] sm:$0xff] }
 0x233   :  { %v2004_v46 = vrot.slane %v10205_v12, %v2003_v40 }
 0x235   :  { %5223 = vmatpush2.bf16.msra.mxu1 %v8170_v44  ;;  %v2337_v44 = vld [vmem:[#allocation14 + $0x920] sm:$0xff] }
 0x236   :  { %5224 = vmatprep.subr.bf16.mxu1 %v8163_v48  ;;  %v8235_v28 = vcombine.high %v2333_v43, %v2337_v44 }
 0x239   :  { %5225 = vmatpush2.bf16.msra.mxu1 %v8162_v47  ;;  %v8242_v47 = vcombine.low %v2341_v37, %v2345_v38 }
 0x23a   :  { %5226 = vmatprep.subr.bf16.mxu1 %v8155_v51  ;;  %v8234_v51 = vcombine.low %v2333_v43, %v2337_v44  ;;  %v2413_v43 = vld [vmem:[#allocation14 + $0xb80] sm:$0xff] }
 0x23d   :  { %5227 = vmatpush2.bf16.msra.mxu1 %v8154_v50 }
 0x23e   :  { %5228 = vmatprep.subr.bf16.mxu1 %v8147_v54 }
 0x241   :  { %5229 = vmatpush2.bf16.msra.mxu1 %v8146_v55  ;;  %v2317_v55 = vld [vmem:[#allocation14 + $0x880] sm:$0xff] }
 0x242   :  { %5230 = vmatprep.subr.bf16.mxu1 %v8139_v59 }
 0x245   :  { %5231 = vmatpush2.bf16.msra.mxu1 %v8138_v60 }
 0x246   :  { %5282 = vmatprep.subr.bf16.mxu1 %v8387_v0 }
 0x262   :  { %v1849_v1 = vpop.f32.mrf.mxu0 }
 0x264   :  { %v1851_v2 = vpop.f32.mrf.mxu0 }
 0x266   :  { %v1853_v3 = vpop.f32.mrf.mxu0 }
 0x267   :  { %v2309_v3 = vld [vmem:[#allocation14 + $0x840] sm:$0xff] }
 0x268   :  { %v1854_v4 = vpop.f32.mrf.mxu0 }
 0x269   :  { %v2313_v4 = vld [vmem:[#allocation14 + $0x860] sm:$0xff] }
 0x26a   :  { %v10198_v5 = vpop.f32.mrf.mxu0 }
 0x26c   :  { %v1933_v6 = vpop.f32.mrf.mxu0 }
 0x26e   :  { %v1935_v7 = vpop.f32.mrf.mxu0 }
 0x26f   :  { %v8218_v7 = vcombine.low %v2317_v55, %v2321_v56 }
 0x270   :  { %v1936_v8 = vpop.f32.mrf.mxu0 }
 0x271   :  { %v10238_v8 = vsub.s32 3, %v10200_v10 }
 0x2a0   :  { %v1601_v15 = vpop.f32.mrf.mxu1 }
 0x2a1   :  { %v1850_v16 = vadd.f32 %v1849_v1, %v1601_v15  ;;  %v8219_v1 = vcombine.high %v2317_v55, %v2321_v56 }
 0x2a2   :  { %v1603_v19 = vpop.f32.mrf.mxu1 }
 0x2a3   :  { %v2021_v20 = vadd.f32 %v1984_v14, %v1850_v16  ;;  %v1852_v21 = vadd.f32 %v1851_v2, %v1603_v19  ;;  %v10235_v2 = vsub.s32 2, %v10200_v10  ;;  %v8211_v14 = vcombine.high %v2309_v3, %v2313_v4  ;;  %v2301_v16 = vld [vmem:[#allocation14 + $0x800] sm:$0xff] }
 0x2a4   :  { %v1605_v22 = vpop.f32.mrf.mxu1 }
 0x2a5   :  { %v2022_v23 = vadd.f32 %v1988_v18, %v1852_v21  ;;  %v2029_v24 = vmax.f32 %v2021_v20, 0.0  ;;  %v1992_v15 = vrot.slane %v10205_v12, %v10235_v2  ;;  %v2305_v18 = vld [vmem:[#allocation14 + $0x820] sm:$0xff]  ;;  %v1996_v21 = vrot.slane %v10205_v12, %v10238_v8 }
 0x2a6   :  { %v1606_v25 = vpop.f32.mrf.mxu1  ;;  %v8210_v22 = vcombine.low %v2309_v3, %v2313_v4 }
 0x2a7   :  { %v2030_v26 = vmax.f32 %v2022_v23, 0.0  ;;  %v10216_v34 = vpack.c.bf16 %v2029_v24, %v2029_v24  ;;  %v8203_v24 = vcombine.high %v2301_v16, %v2305_v18 }
 0x2a8   :  { %v1642_v31 = vpop.f32.mrf.mxu1 }
 0x2a9   :  { %v10214_v33 = vpack.c.bf16 %v2030_v26, %v2030_v26 }
 0x2aa   :  { %v10218_v35 = vpop.f32.mrf.mxu1 }
 0x2ab   :  { %5191 = vmatprep.mubr.bf16.mxu0 %v10214_v33 }
 0x2ac   :  { %v1646_v17 = vpop.f32.mrf.mxu1  ;;  %5192 = vmatmul.mubr.bf16.vlgmr.msra.gmra.mxu0 %v10216_v34 }
 0x2ad   :  { %5242 = vmatpush1.bf16.msra.mxu0 %v8258_v32  ;;  %v2325_v32 = vld [vmem:[#allocation14 + $0x8c0] sm:$0xff]  ;;  %v8202_v17 = vcombine.low %v2301_v16, %v2305_v18 }
 0x2ae   :  { %v1647_v41 = vpop.f32.mrf.mxu1  ;;  %5243 = vmatprep.subr.bf16.mxu0 %v8251_v36  ;;  %v8227_v53 = vcombine.high %v2325_v32, %v2329_v49  ;;  %v8226_v60 = vcombine.low %v2325_v32, %v2329_v49  ;;  %v2425_v36 = vld [vmem:[#allocation14 + $0xbe0] sm:$0xff] }
 0x2af   :  { %v2401_v18 = vld [vmem:[#allocation14 + $0xb20] sm:$0xff] }
 0x2b0   :  { %v10226_v45 = vpop.f32.mrf.mxu1 }
 0x2b1   :  { %5244 = vmatpush1.bf16.msra.mxu0 %v8250_v39 }
 0x2b2   :  { %v1685_v48 = vpop.f32.mrf.mxu1  ;;  %5245 = vmatprep.subr.bf16.mxu0 %v8243_v42  ;;  %v8323_v42 = vcombine.high %v2421_v29, %v2425_v36 }
 0x2b3   :  { %v1934_v30 = vadd.f32 %v1933_v6, %v1685_v48  ;;  %v2481_v48 = vld [vmem:[#allocation14 + $0xda0] sm:$0xff] }
 0x2b4   :  { %v1687_v57 = vpop.f32.mrf.mxu1 }
 0x2b5   :  { %v2026_v50 = vadd.f32 %v2004_v46, %v1934_v30  ;;  %5246 = vmatpush1.bf16.msra.mxu0 %v8242_v47  ;;  %v2417_v46 = vld [vmem:[#allocation14 + $0xba0] sm:$0xff]  ;;  %v8322_v57 = vcombine.low %v2421_v29, %v2425_v36 }
 0x2b6   :  { %v1688_v52 = vpop.f32.mrf.mxu1  ;;  %5247 = vmatprep.subr.bf16.mxu0 %v8235_v28  ;;  %v2477_v47 = vld [vmem:[#allocation14 + $0xd80] sm:$0xff] }
 0x2b7   :  { %v2034_v54 = vmax.f32 %v2026_v50, 0.0  ;;  %v8315_v52 = vcombine.high %v2413_v43, %v2417_v46 }
 0x2b8   :  { %v1724_v58 = vpop.f32.mrf.mxu1 }
 0x2b9   :  { %v10231_v59 = vpack.c.bf16 %v2034_v54, %v2034_v54  ;;  %5248 = vmatpush1.bf16.msra.mxu0 %v8234_v51  ;;  %v2405_v54 = vld [vmem:[#allocation14 + $0xb40] sm:$0xff] }
 0x2ba   :  { %v1726_v0 = vpop.f32.mrf.mxu1  ;;  %5249 = vmatprep.subr.bf16.mxu0 %v8227_v53  ;;  %v8379_v53 = vcombine.high %v2477_v47, %v2481_v48 }
 0x2bb   :  { %5273 = vmatprep.mubr.bf16.mxu0 %v10231_v59 }
 0x2bc   :  { %v1728_v6 = vpop.f32.mrf.mxu1 }
 0x2bd   :  { %5250 = vmatpush1.bf16.msra.mxu0 %v8226_v60  ;;  %v2409_v60 = vld [vmem:[#allocation14 + $0xb60] sm:$0xff]  ;;  %v8314_v6 = vcombine.low %v2413_v43, %v2417_v46  ;;  %v1999_v43 = vsub.s32 4, %v10200_v10 }
 0x2be   :  { %v1729_v9 = vpop.f32.mrf.mxu1  ;;  %5251 = vmatprep.subr.bf16.mxu0 %v8219_v1  ;;  %v2473_v1 = vld [vmem:[#allocation14 + $0xd60] sm:$0xff] }
 0x2c0   :  { %v1890_v19 = vpop.f32.mrf.mxu1 }
 0x2c1   :  { %v1891_v20 = vadd.f32 %v1890_v19, %v1642_v31  ;;  %5252 = vmatpush1.bf16.msra.mxu0 %v8218_v7  ;;  %v2011_v31 = vsub.s32 7, %v10200_v10  ;;  %v8378_v7 = vcombine.low %v2477_v47, %v2481_v48  ;;  %v2461_v19 = vld [vmem:[#allocation14 + $0xd00] sm:$0xff] }
 0x2c2   :  { %v1892_v23 = vpop.f32.mrf.mxu1  ;;  %5253 = vmatprep.subr.bf16.mxu0 %v8211_v14  ;;  %v2373_v48 = vld [vmem:[#allocation14 + $0xa40] sm:$0xff] }
 0x2c3   :  { %v2023_v25 = vadd.f32 %v1992_v15, %v1891_v20  ;;  %v1893_v26 = vadd.f32 %v1892_v23, %v10218_v35  ;;  %v2008_v35 = vrot.slane %v10205_v12, %v2007_v27  ;;  %v2012_v49 = vrot.slane %v10205_v12, %v2011_v31  ;;  %v2397_v15 = vld [vmem:[#allocation14 + $0xb00] sm:$0xff] }
 0x2c4   :  { %v1894_v37 = vpop.f32.mrf.mxu1  ;;  %v2465_v20 = vld [vmem:[#allocation14 + $0xd20] sm:$0xff]  ;;  %v8299_v61 = vcombine.high %v2397_v15, %v2401_v18  ;;  %v8298_v29 = vcombine.low %v2397_v15, %v2401_v18 }
 0x2c5   :  { %v2024_v38 = vadd.f32 %v1996_v21, %v1893_v26  ;;  %5254 = vmatpush1.bf16.msra.mxu0 %v8210_v22  ;;  %v2031_v39 = vmax.f32 %v2023_v25, 0.0  ;;  %v8306_v22 = vcombine.low %v2405_v54, %v2409_v60  ;;  %v8363_v62 = vcombine.high %v2461_v19, %v2465_v20  ;;  %v2453_v25 = vld [vmem:[#allocation14 + $0xcc0] sm:$0xff] }
 0x2c6   :  { %v1895_v41 = vpop.f32.mrf.mxu1  ;;  %5255 = vmatprep.subr.bf16.mxu0 %v8203_v24  ;;  %v2393_v24 = vld [vmem:[#allocation14 + $0xae0] sm:$0xff]  ;;  %v8362_v36 = vcombine.low %v2461_v19, %v2465_v20 }
 0x2c7   :  { %v2032_v44 = vmax.f32 %v2024_v38, 0.0  ;;  %v10255_v50 = vpack.c.bf16 %v2031_v39, %v2031_v39  ;;  %v2457_v26 = vld [vmem:[#allocation14 + $0xce0] sm:$0xff] }
 0x2c8   :  { %v1972_v28 = vpop.f32.mrf.mxu1  ;;  %v8355_v38 = vcombine.high %v2453_v25, %v2457_v26  ;;  %v2385_v39 = vld [vmem:[#allocation14 + $0xaa0] sm:$0xff] }
 0x2c9   :  { %v10250_v30 = vpack.c.bf16 %v2032_v44, %v2032_v44  ;;  %v1973_v32 = vadd.f32 %v1972_v28, %v1724_v58  ;;  %5256 = vmatpush1.bf16.msra.mxu0 %v8202_v17  ;;  %v2469_v58 = vld [vmem:[#allocation14 + $0xd40] sm:$0xff] }
 0x2ca   :  { %v1974_v51 = vpop.f32.mrf.mxu1  ;;  %5257 = vmatprep.subr.bf16.mxu0 %v8323_v42  ;;  %v8371_v14 = vcombine.high %v2469_v58, %v2473_v1  ;;  %v8370_v23 = vcombine.low %v2469_v58, %v2473_v1  ;;  %v2381_v17 = vld [vmem:[#allocation14 + $0xa80] sm:$0xff] }
 0x2cb   :  { %v10257_v55 = vadd.f32 %v2008_v35, %v1973_v32  ;;  %v1975_v56 = vadd.f32 %v1974_v51, %v1726_v0  ;;  %5232 = vmatprep.mubr.bf16.mxu1 %v10250_v30  ;;  %v8307_v0 = vcombine.high %v2405_v54, %v2409_v60  ;;  %v2445_v41 = vld [vmem:[#allocation14 + $0xc80] sm:$0xff]  ;;  %v8354_v35 = vcombine.low %v2453_v25, %v2457_v26 }
 0x2cc   :  { %v1976_v3 = vpop.f32.mrf.mxu1  ;;  %5233 = vmatmul.mubr.bf16.vlgmr.msra.gmra.mxu1 %v10255_v50  ;;  %v2449_v42 = vld [vmem:[#allocation14 + $0xca0] sm:$0xff]  ;;  %v8283_v46 = vcombine.high %v2381_v17, %v2385_v39  ;;  %v8282_v51 = vcombine.low %v2381_v17, %v2385_v39  ;;  %v2090_v17 = vld [vmem:[#allocation14 + $0x168] sm:$0xff] }
 0x2cd   :  { %v2028_v4 = vadd.f32 %v2012_v49, %v1975_v56  ;;  %5258 = vmatpush2.bf16.msra.mxu0 %v8322_v57  ;;  %5283 = vmatpush1.bf16.msra.mxu1 %v8386_v63  ;;  %v2389_v63 = vld [vmem:[#allocation14 + $0xac0] sm:$0xff]  ;;  %v8347_v47 = vcombine.high %v2445_v41, %v2449_v42  ;;  %v2000_v57 = vrot.slane %v10205_v12, %v1999_v43 }
 0x2ce   :  { %v1977_v9 = vpop.f32.mrf.mxu1  ;;  %5259 = vmatprep.subr.bf16.mxu0 %v8315_v52  ;;  %5284 = vmatprep.subr.bf16.mxu1 %v8379_v53  ;;  %v8291_v37 = vcombine.high %v2389_v63, %v2393_v24  ;;  %v8290_v44 = vcombine.low %v2389_v63, %v2393_v24  ;;  %v2377_v28 = vld [vmem:[#allocation14 + $0xa60] sm:$0xff]  ;;  %v8346_v52 = vcombine.low %v2445_v41, %v2449_v42 }
 0x2cf   :  { %v2036_v16 = vmax.f32 %v2028_v4, 0.0  ;;  %v2437_v32 = vld [vmem:[#allocation14 + $0xc40] sm:$0xff]  ;;  %v1932_v53 = vadd.f32 %v10198_v5, %v10226_v45  ;;  %v8275_v54 = vcombine.high %v2373_v48, %v2377_v28  ;;  %v8274_v4 = vcombine.low %v2373_v48, %v2377_v28  ;;  %v2102_v5 = vld [vmem:[#allocation14 + $0x1c8] sm:$0xff] }
 0x2d0   :  { %v2441_v49 = vld [vmem:[#allocation14 + $0xc60] sm:$0xff]  ;;  %v2106_v45 = vld [vmem:[#allocation14 + $0x1e8] sm:$0xff] }
 0x2d1   :  { %v10264_v21 = vpack.c.bf16 %v2036_v16, %v2036_v16  ;;  %5260 = vmatpush2.bf16.msra.mxu0 %v8314_v6  ;;  %5285 = vmatpush1.bf16.msra.mxu1 %v8378_v7  ;;  %v8339_v56 = vcombine.high %v2437_v32, %v2441_v49  ;;  %v2365_v60 = vld [vmem:[#allocation14 + $0xa00] sm:$0xff]  ;;  %v8338_v6 = vcombine.low %v2437_v32, %v2441_v49  ;;  %v2082_v48 = vld [vmem:[#allocation14 + $0x128] sm:$0xff] }
 0x2d2   :  { %5261 = vmatprep.subr.bf16.mxu0 %v8307_v0  ;;  %5286 = vmatprep.subr.bf16.mxu1 %v8371_v14  ;;  %v2369_v58 = vld [vmem:[#allocation14 + $0xa20] sm:$0xff]  ;;  %v2025_v12 = vadd.f32 %v2000_v57, %v1932_v53  ;;  %v8005_v20 = vcombine.high %v2102_v5, %v2106_v45  ;;  %v8004_v24 = vcombine.low %v2102_v5, %v2106_v45  ;;  %v2070_v53 = vld [vmem:[#allocation14 + $0xc8] sm:$0xff] }
 0x2d3   :  { %5314 = vmatprep.mubr.bf16.mxu1 %v10264_v21  ;;  %v2429_v1 = vld [vmem:[#allocation14 + $0xc00] sm:$0xff]  ;;  %v8267_v7 = vcombine.high %v2365_v60, %v2369_v58  ;;  %v8266_v15 = vcombine.low %v2365_v60, %v2369_v58 }
 0x2d4   :  { %v2433_v3 = vld [vmem:[#allocation14 + $0xc20] sm:$0xff]  ;;  %v2033_v18 = vmax.f32 %v2025_v12, 0.0  ;;  %v2066_v12 = vld [vmem:[#allocation14 + $0xa8] sm:$0xff] }
 0x2d5   :  { %5262 = vmatpush2.bf16.msra.mxu0 %v8306_v22  ;;  %5287 = vmatpush1.bf16.msra.mxu1 %v8370_v23  ;;  %v8331_v9 = vcombine.high %v2429_v1, %v2433_v3  ;;  %v2549_v0 = vld [vmem:[#allocation14 + $0xfc0] sm:$0xff]  ;;  %v8330_v16 = vcombine.low %v2429_v1, %v2433_v3 }
 0x2d6   :  { %5263 = vmatprep.subr.bf16.mxu0 %v8299_v61  ;;  %5288 = vmatprep.subr.bf16.mxu1 %v8363_v62  ;;  %v2553_v14 = vld [vmem:[#allocation14 + $0xfe0] sm:$0xff]  ;;  %v2094_v61 = vld [vmem:[#allocation14 + $0x188] sm:$0xff]  ;;  %v10273_v25 = vpack.c.bf16 %v2033_v18, %v2033_v18 }
 0x2d7   :  { %v8451_v19 = vcombine.high %v2549_v0, %v2553_v14  ;;  %v2541_v22 = vld [vmem:[#allocation14 + $0xf80] sm:$0xff]  ;;  %v2098_v62 = vld [vmem:[#allocation14 + $0x1a8] sm:$0xff]  ;;  %v8450_v63 = vcombine.low %v2549_v0, %v2553_v14 }
 0x2d8   :  { %v2545_v23 = vld [vmem:[#allocation14 + $0xfa0] sm:$0xff]  ;;  %v7996_v41 = vcombine.low %v2094_v61, %v2098_v62 }
 0x2d9   :  { %5264 = vmatpush2.bf16.msra.mxu0 %v8298_v29  ;;  %5289 = vmatpush1.bf16.msra.mxu1 %v8362_v36  ;;  %v8443_v26 = vcombine.high %v2541_v22, %v2545_v23  ;;  %v2533_v29 = vld [vmem:[#allocation14 + $0xf40] sm:$0xff]  ;;  %v7997_v36 = vcombine.high %v2094_v61, %v2098_v62  ;;  %v8442_v39 = vcombine.low %v2541_v22, %v2545_v23  ;;  %v2046_v62 = vld [vmem:[#allocation14 + $0x8] sm:$0xff] }
 0x2da   :  { %5265 = vmatprep.subr.bf16.mxu0 %v8291_v37  ;;  %5290 = vmatprep.subr.bf16.mxu1 %v8355_v38  ;;  %v2537_v37 = vld [vmem:[#allocation14 + $0xf60] sm:$0xff]  ;;  %v2086_v38 = vld [vmem:[#allocation14 + $0x148] sm:$0xff] }
 0x2db   :  { %v8435_v42 = vcombine.high %v2533_v29, %v2537_v37  ;;  %v8434_v28 = vcombine.low %v2533_v29, %v2537_v37  ;;  %v7988_v32 = vcombine.low %v2086_v38, %v2090_v17  ;;  %v2509_v3 = vld [vmem:[#allocation14 + $0xe80] sm:$0xff]  ;;  %v2166_v37 = vld [vmem:[#allocation14 + $0x3c8] sm:$0xff] }
 0x2dc   :  { %v2501_v5 = vld [vmem:[#allocation14 + $0xe40] sm:$0xff] }
 0x2dd   :  { %5266 = vmatpush2.bf16.msra.mxu0 %v8290_v44  ;;  %5291 = vmatpush1.bf16.msra.mxu1 %v8354_v35  ;;  %v7989_v44 = vcombine.high %v2086_v38, %v2090_v17  ;;  %v2525_v35 = vld [vmem:[#allocation14 + $0xf00] sm:$0xff]  ;;  %v2170_v38 = vld [vmem:[#allocation14 + $0x3e8] sm:$0xff] }
 0x2de   :  { %5267 = vmatprep.subr.bf16.mxu0 %v8283_v46  ;;  %5292 = vmatprep.subr.bf16.mxu1 %v8347_v47  ;;  %v2529_v46 = vld [vmem:[#allocation14 + $0xf20] sm:$0xff]  ;;  %v2078_v47 = vld [vmem:[#allocation14 + $0x108] sm:$0xff] }
 0x2df   :  { %v8427_v49 = vcombine.high %v2525_v35, %v2529_v46  ;;  %v7981_v57 = vcombine.high %v2078_v47, %v2082_v48  ;;  %v7980_v60 = vcombine.low %v2078_v47, %v2082_v48  ;;  %v2505_v45 = vld [vmem:[#allocation14 + $0xe60] sm:$0xff]  ;;  %v2230_v17 = vld [vmem:[#allocation14 + $0x5c8] sm:$0xff] }
 0x2e0   :  { %v2493_v23 = vld [vmem:[#allocation14 + $0xe00] sm:$0xff]  ;;  %v2158_v47 = vld [vmem:[#allocation14 + $0x388] sm:$0xff] }
 0x2e1   :  { %5268 = vmatpush2.bf16.msra.mxu0 %v8282_v51  ;;  %5293 = vmatpush1.bf16.msra.mxu1 %v8346_v52  ;;  %v2517_v51 = vld [vmem:[#allocation14 + $0xec0] sm:$0xff]  ;;  %v2162_v48 = vld [vmem:[#allocation14 + $0x3a8] sm:$0xff] }
 0x2e2   :  { %5269 = vmatprep.subr.bf16.mxu0 %v8275_v54  ;;  %5294 = vmatprep.subr.bf16.mxu1 %v8339_v56  ;;  %v2521_v52 = vld [vmem:[#allocation14 + $0xee0] sm:$0xff]  ;;  %v2074_v54 = vld [vmem:[#allocation14 + $0xe8] sm:$0xff]  ;;  %v8426_v56 = vcombine.low %v2525_v35, %v2529_v46  ;;  %v8069_v35 = vcombine.high %v2166_v37, %v2170_v38 }
 0x2e3   :  { %v8419_v58 = vcombine.high %v2517_v51, %v2521_v52  ;;  %v7973_v1 = vcombine.high %v2070_v53, %v2074_v54  ;;  %v2497_v61 = vld [vmem:[#allocation14 + $0xe20] sm:$0xff] }
 0x2e4   :  { %v8395_v29 = vcombine.high %v2493_v23, %v2497_v61 }
 0x2e5   :  { %5270 = vmatpush2.bf16.msra.mxu0 %v8274_v4  ;;  %5295 = vmatpush1.bf16.msra.mxu1 %v8338_v6  ;;  %v2513_v4 = vld [vmem:[#allocation14 + $0xea0] sm:$0xff]  ;;  %v2062_v6 = vld [vmem:[#allocation14 + $0x88] sm:$0xff] }
 0x2e6   :  { %5271 = vmatprep.subr.bf16.mxu0 %v8267_v7  ;;  %5296 = vmatprep.subr.bf16.mxu1 %v8331_v9  ;;  %v8418_v7 = vcombine.low %v2517_v51, %v2521_v52  ;;  %v7972_v9 = vcombine.low %v2070_v53, %v2074_v54  ;;  %v8411_v0 = vcombine.high %v2509_v3, %v2513_v4  ;;  %v2150_v53 = vld [vmem:[#allocation14 + $0x348] sm:$0xff] }
 0x2e7   :  { %v7965_v14 = vcombine.high %v2062_v6, %v2066_v12  ;;  %v8410_v18 = vcombine.low %v2509_v3, %v2513_v4  ;;  %v8061_v52 = vcombine.high %v2158_v47, %v2162_v48 }
 0x2e9   :  { %5272 = vmatpush2.bf16.msra.mxu0 %v8266_v15  ;;  %5297 = vmatpush1.bf16.msra.mxu1 %v8330_v16  ;;  %v2054_v15 = vld [vmem:[#allocation14 + $0x48] sm:$0xff] }
 0x2ea   :  { %5298 = vmatprep.subr.bf16.mxu1 %v8451_v19  ;;  %5323 = vmatprep.subr.bf16.mxu0 %v8005_v20  ;;  %v2058_v16 = vld [vmem:[#allocation14 + $0x68] sm:$0xff]  ;;  %v7964_v19 = vcombine.low %v2062_v6, %v2066_v12  ;;  %v8403_v20 = vcombine.high %v2501_v5, %v2505_v45 }
 0x2eb   :  { %v7957_v22 = vcombine.high %v2054_v15, %v2058_v16  ;;  %v2142_v6 = vld [vmem:[#allocation14 + $0x308] sm:$0xff] }
 0x2ec   :  { %5274 = vmatmul.mubr.bf16.vlgmr.msra.gmra.mxu0 %v10273_v25  ;;  %v2146_v12 = vld [vmem:[#allocation14 + $0x328] sm:$0xff] }
 0x2ed   :  { %5299 = vmatpush2.bf16.msra.mxu1 %v8450_v63  ;;  %5324 = vmatpush1.bf16.msra.mxu0 %v8004_v24  ;;  %v2050_v63 = vld [vmem:[#allocation14 + $0x28] sm:$0xff]  ;;  %v8402_v24 = vcombine.low %v2501_v5, %v2505_v45  ;;  %v8045_v5 = vcombine.high %v2142_v6, %v2146_v12 }
 0x2ee   :  { %5355 = vmatprep.mubr.bf16.mxu0 %v10214_v33  ;;  %5300 = vmatprep.subr.bf16.mxu1 %v8443_v26  ;;  %v7956_v26 = vcombine.low %v2054_v15, %v2058_v16  ;;  %v2134_v15 = vld [vmem:[#allocation14 + $0x2c8] sm:$0xff] }
 0x2ef   :  { %5325 = vmatprep.subr.bf16.mxu0 %v7997_v36  ;;  %v7949_v36 = vcombine.high %v2046_v62, %v2050_v63  ;;  %v2138_v16 = vld [vmem:[#allocation14 + $0x2e8] sm:$0xff] }
 0x2f1   :  { %5301 = vmatpush2.bf16.msra.mxu1 %v8442_v39  ;;  %5326 = vmatpush1.bf16.msra.mxu0 %v7996_v41  ;;  %v2234_v39 = vld [vmem:[#allocation14 + $0x5e8] sm:$0xff]  ;;  %v8394_v41 = vcombine.low %v2493_v23, %v2497_v61  ;;  %v8037_v23 = vcombine.high %v2134_v15, %v2138_v16 }
 0x2f2   :  { %5302 = vmatprep.subr.bf16.mxu1 %v8435_v42  ;;  %5327 = vmatprep.subr.bf16.mxu0 %v7989_v44  ;;  %v7948_v42 = vcombine.low %v2046_v62, %v2050_v63  ;;  %v2035_v44 = vmax.f32 %v10257_v55, 0.0  ;;  %v8133_v46 = vcombine.high %v2230_v17, %v2234_v39  ;;  %v2154_v55 = vld [vmem:[#allocation14 + $0x368] sm:$0xff] }
 0x2f3   :  { %v8053_v3 = vcombine.high %v2150_v53, %v2154_v55  ;;  %v2126_v62 = vld [vmem:[#allocation14 + $0x288] sm:$0xff] }
 0x2f4   :  { %v10278_v51 = vpack.c.bf16 %v2035_v44, %v2035_v44  ;;  %v2130_v63 = vld [vmem:[#allocation14 + $0x2a8] sm:$0xff] }
 0x2f5   :  { %5303 = vmatpush2.bf16.msra.mxu1 %v8434_v28  ;;  %5328 = vmatpush1.bf16.msra.mxu0 %v7988_v32  ;;  %v2222_v28 = vld [vmem:[#allocation14 + $0x588] sm:$0xff]  ;;  %v8028_v44 = vcombine.low %v2126_v62, %v2130_v63 }
 0x2f6   :  { %5304 = vmatprep.subr.bf16.mxu1 %v8427_v49  ;;  %5329 = vmatprep.subr.bf16.mxu0 %v7981_v57  ;;  %v2226_v32 = vld [vmem:[#allocation14 + $0x5a8] sm:$0xff]  ;;  %v8068_v49 = vcombine.low %v2166_v37, %v2170_v38  ;;  %v8132_v57 = vcombine.low %v2230_v17, %v2234_v39  ;;  %v8029_v37 = vcombine.high %v2126_v62, %v2130_v63 }
 0x2f7   :  { %v8125_v54 = vcombine.high %v2222_v28, %v2226_v32  ;;  %v2118_v17 = vld [vmem:[#allocation14 + $0x248] sm:$0xff] }
 0x2f8   :  { %v2122_v39 = vld [vmem:[#allocation14 + $0x268] sm:$0xff] }
 0x2f9   :  { %5305 = vmatpush2.bf16.msra.mxu1 %v8426_v56  ;;  %5330 = vmatpush1.bf16.msra.mxu0 %v7980_v60  ;;  %v2214_v56 = vld [vmem:[#allocation14 + $0x548] sm:$0xff] }
 0x2fa   :  { %5306 = vmatprep.subr.bf16.mxu1 %v8419_v58  ;;  %5331 = vmatprep.subr.bf16.mxu0 %v7973_v1  ;;  %v2218_v60 = vld [vmem:[#allocation14 + $0x568] sm:$0xff]  ;;  %v8060_v58 = vcombine.low %v2158_v47, %v2162_v48  ;;  %v8124_v1 = vcombine.low %v2222_v28, %v2226_v32 }
 0x2fb   :  { %v8117_v4 = vcombine.high %v2214_v56, %v2218_v60  ;;  %v2110_v48 = vld [vmem:[#allocation14 + $0x208] sm:$0xff] }
 0x2fc   :  { %v2114_v28 = vld [vmem:[#allocation14 + $0x228] sm:$0xff] }
 0x2fd   :  { %5307 = vmatpush2.bf16.msra.mxu1 %v8418_v7  ;;  %5332 = vmatpush1.bf16.msra.mxu0 %v7972_v9  ;;  %v2206_v7 = vld [vmem:[#allocation14 + $0x508] sm:$0xff] }
 0x2fe   :  { %5308 = vmatprep.subr.bf16.mxu1 %v8411_v0  ;;  %5333 = vmatprep.subr.bf16.mxu0 %v7965_v14  ;;  %v2210_v9 = vld [vmem:[#allocation14 + $0x528] sm:$0xff]  ;;  %v8052_v0 = vcombine.low %v2150_v53, %v2154_v55  ;;  %v8116_v14 = vcombine.low %v2214_v56, %v2218_v60  ;;  %v8013_v53 = vcombine.high %v2110_v48, %v2114_v28 }
 0x2ff   :  { %v8109_v45 = vcombine.high %v2206_v7, %v2210_v9  ;;  %v2174_v32 = vld [vmem:[#allocation14 + $0x408] sm:$0xff] }
 0x300   :  { %v2294_v55 = vld [vmem:[#allocation14 + $0x7c8] sm:$0xff] }
 0x301   :  { %5309 = vmatpush2.bf16.msra.mxu1 %v8410_v18  ;;  %5334 = vmatpush1.bf16.msra.mxu0 %v7964_v19  ;;  %v2198_v18 = vld [vmem:[#allocation14 + $0x4c8] sm:$0xff] }
 0x302   :  { %5310 = vmatprep.subr.bf16.mxu1 %v8403_v20  ;;  %5335 = vmatprep.subr.bf16.mxu0 %v7957_v22  ;;  %v2202_v19 = vld [vmem:[#allocation14 + $0x4e8] sm:$0xff]  ;;  %v8044_v20 = vcombine.low %v2142_v6, %v2146_v12  ;;  %v8108_v22 = vcombine.low %v2206_v7, %v2210_v9 }
 0x303   :  { %v8101_v61 = vcombine.high %v2198_v18, %v2202_v19  ;;  %v2298_v56 = vld [vmem:[#allocation14 + $0x7e8] sm:$0xff] }
 0x304   :  { %v2358_v60 = vld [vmem:[#allocation14 + $0x9c8] sm:$0xff] }
 0x305   :  { %5311 = vmatpush2.bf16.msra.mxu1 %v8402_v24  ;;  %5336 = vmatpush1.bf16.msra.mxu0 %v7956_v26  ;;  %v2190_v24 = vld [vmem:[#allocation14 + $0x488] sm:$0xff] }
 0x306   :  { %5312 = vmatprep.subr.bf16.mxu1 %v8395_v29  ;;  %5337 = vmatprep.subr.bf16.mxu0 %v7949_v36  ;;  %v2194_v26 = vld [vmem:[#allocation14 + $0x4a8] sm:$0xff]  ;;  %v8036_v29 = vcombine.low %v2134_v15, %v2138_v16  ;;  %v8100_v36 = vcombine.low %v2198_v18, %v2202_v19 }
 0x307   :  { %v8093_v38 = vcombine.high %v2190_v24, %v2194_v26  ;;  %v2286_v12 = vld [vmem:[#allocation14 + $0x788] sm:$0xff] }
 0x308   :  { %v2290_v7 = vld [vmem:[#allocation14 + $0x7a8] sm:$0xff] }
 0x309   :  { %5313 = vmatpush2.bf16.msra.mxu1 %v8394_v41  ;;  %5338 = vmatpush1.bf16.msra.mxu0 %v7948_v42  ;;  %v2182_v41 = vld [vmem:[#allocation14 + $0x448] sm:$0xff] }
 0x30a   :  { %5339 = vmatprep.subr.bf16.mxu0 %v8069_v35  ;;  %5364 = vmatprep.subr.bf16.mxu1 %v8133_v46  ;;  %v2186_v42 = vld [vmem:[#allocation14 + $0x468] sm:$0xff]  ;;  %v8092_v35 = vcombine.low %v2190_v24, %v2194_v26  ;;  %v8021_v46 = vcombine.high %v2118_v17, %v2122_v39 }
 0x30b   :  { %v8085_v47 = vcombine.high %v2182_v41, %v2186_v42  ;;  %v2350_v9 = vld [vmem:[#allocation14 + $0x988] sm:$0xff] }
 0x30c   :  { %5315 = vmatmul.mubr.bf16.vlgmr.msra.gmra.mxu1 %v10278_v51  ;;  %v2278_v15 = vld [vmem:[#allocation14 + $0x748] sm:$0xff] }
 0x30d   :  { %5340 = vmatpush2.bf16.msra.mxu0 %v8068_v49  ;;  %5365 = vmatpush1.bf16.msra.mxu1 %v8132_v57  ;;  %v2178_v49 = vld [vmem:[#allocation14 + $0x428] sm:$0xff]  ;;  %v8020_v57 = vcombine.low %v2118_v17, %v2122_v39 }
 0x30e   :  { %5396 = vmatprep.mubr.bf16.mxu1 %v10250_v30  ;;  %5341 = vmatprep.subr.bf16.mxu0 %v8061_v52  ;;  %v8084_v52 = vcombine.low %v2182_v41, %v2186_v42  ;;  %v2282_v18 = vld [vmem:[#allocation14 + $0x768] sm:$0xff] }
 0x30f   :  { %5366 = vmatprep.subr.bf16.mxu1 %v8125_v54  ;;  %v8077_v54 = vcombine.high %v2174_v32, %v2178_v49  ;;  %v2342_v19 = vld [vmem:[#allocation14 + $0x948] sm:$0xff] }
 0x310   :  { %v2270_v63 = vld [vmem:[#allocation14 + $0x708] sm:$0xff] }
 0x311   :  { %5342 = vmatpush2.bf16.msra.mxu0 %v8060_v58  ;;  %5367 = vmatpush1.bf16.msra.mxu1 %v8124_v1  ;;  %v2362_v58 = vld [vmem:[#allocation14 + $0x9e8] sm:$0xff]  ;;  %v8012_v1 = vcombine.low %v2110_v48, %v2114_v28 }
 0x312   :  { %5343 = vmatprep.subr.bf16.mxu0 %v8053_v3  ;;  %5368 = vmatprep.subr.bf16.mxu1 %v8117_v4  ;;  %v8076_v3 = vcombine.low %v2174_v32, %v2178_v49  ;;  %v8197_v4 = vcombine.high %v2294_v55, %v2298_v56  ;;  %v8261_v6 = vcombine.high %v2358_v60, %v2362_v58  ;;  %v2274_v24 = vld [vmem:[#allocation14 + $0x728] sm:$0xff] }
 0x313   :  { %v2334_v26 = vld [vmem:[#allocation14 + $0x908] sm:$0xff] }
 0x314   :  { %v2262_v39 = vld [vmem:[#allocation14 + $0x6c8] sm:$0xff] }
 0x315   :  { %5344 = vmatpush2.bf16.msra.mxu0 %v8052_v0  ;;  %5369 = vmatpush1.bf16.msra.mxu1 %v8116_v14  ;;  %v2354_v0 = vld [vmem:[#allocation14 + $0x9a8] sm:$0xff]  ;;  %v8196_v14 = vcombine.low %v2294_v55, %v2298_v56 }
 0x316   :  { %5345 = vmatprep.subr.bf16.mxu0 %v8045_v5  ;;  %5370 = vmatprep.subr.bf16.mxu1 %v8109_v45  ;;  %v8260_v5 = vcombine.low %v2358_v60, %v2362_v58  ;;  %v8189_v45 = vcombine.high %v2286_v12, %v2290_v7  ;;  %v8253_v16 = vcombine.high %v2350_v9, %v2354_v0  ;;  %v2266_v41 = vld [vmem:[#allocation14 + $0x6e8] sm:$0xff] }
 0x317   :  { %v2326_v42 = vld [vmem:[#allocation14 + $0x8c8] sm:$0xff] }
 0x318   :  { %v2254_v28 = vld [vmem:[#allocation14 + $0x688] sm:$0xff] }
 0x319   :  { %5346 = vmatpush2.bf16.msra.mxu0 %v8044_v20  ;;  %5371 = vmatpush1.bf16.msra.mxu1 %v8108_v22  ;;  %v2346_v20 = vld [vmem:[#allocation14 + $0x968] sm:$0xff]  ;;  %v8188_v22 = vcombine.low %v2286_v12, %v2290_v7 }
 0x31a   :  { %5347 = vmatprep.subr.bf16.mxu0 %v8037_v23  ;;  %5372 = vmatprep.subr.bf16.mxu1 %v8101_v61  ;;  %v8252_v23 = vcombine.low %v2350_v9, %v2354_v0  ;;  %v8181_v61 = vcombine.high %v2278_v15, %v2282_v18  ;;  %v8245_v62 = vcombine.high %v2342_v19, %v2346_v20  ;;  %v2258_v32 = vld [vmem:[#allocation14 + $0x6a8] sm:$0xff] }
 0x31b   :  { %v2318_v49 = vld [vmem:[#allocation14 + $0x888] sm:$0xff] }
 0x31c   :  { %v2246_v56 = vld [vmem:[#allocation14 + $0x648] sm:$0xff] }
 0x31d   :  { %5348 = vmatpush2.bf16.msra.mxu0 %v8036_v29  ;;  %5373 = vmatpush1.bf16.msra.mxu1 %v8100_v36  ;;  %v2338_v29 = vld [vmem:[#allocation14 + $0x928] sm:$0xff]  ;;  %v8180_v36 = vcombine.low %v2278_v15, %v2282_v18 }
 0x31e   :  { %5349 = vmatprep.subr.bf16.mxu0 %v8029_v37  ;;  %5374 = vmatprep.subr.bf16.mxu1 %v8093_v38  ;;  %v8244_v37 = vcombine.low %v2342_v19, %v2346_v20  ;;  %v8173_v38 = vcombine.high %v2270_v63, %v2274_v24  ;;  %v8237_v17 = vcombine.high %v2334_v26, %v2338_v29  ;;  %v2250_v60 = vld [vmem:[#allocation14 + $0x668] sm:$0xff] }
 0x31f   :  { %v2310_v58 = vld [vmem:[#allocation14 + $0x848] sm:$0xff] }
 0x320   :  { %v2238_v7 = vld [vmem:[#allocation14 + $0x608] sm:$0xff] }
 0x321   :  { %5350 = vmatpush2.bf16.msra.mxu0 %v8028_v44  ;;  %5375 = vmatpush1.bf16.msra.mxu1 %v8092_v35  ;;  %v2330_v44 = vld [vmem:[#allocation14 + $0x8e8] sm:$0xff]  ;;  %v8172_v35 = vcombine.low %v2270_v63, %v2274_v24 }
 0x322   :  { %5351 = vmatprep.subr.bf16.mxu0 %v8021_v46  ;;  %5376 = vmatprep.subr.bf16.mxu1 %v8085_v47  ;;  %v8236_v46 = vcombine.low %v2334_v26, %v2338_v29  ;;  %v8165_v47 = vcombine.high %v2262_v39, %v2266_v41  ;;  %v8229_v48 = vcombine.high %v2326_v42, %v2330_v44  ;;  %v2242_v9 = vld [vmem:[#allocation14 + $0x628] sm:$0xff] }
 0x323   :  { %v2302_v0 = vld [vmem:[#allocation14 + $0x808] sm:$0xff]  ;;  %v8141_v15 = vcombine.high %v2238_v7, %v2242_v9 }
 0x324   :  { %v2422_v18 = vld [vmem:[#allocation14 + $0xbc8] sm:$0xff] }
 0x325   :  { %5352 = vmatpush2.bf16.msra.mxu0 %v8020_v57  ;;  %5377 = vmatpush1.bf16.msra.mxu1 %v8084_v52  ;;  %v2322_v57 = vld [vmem:[#allocation14 + $0x8a8] sm:$0xff]  ;;  %v8164_v52 = vcombine.low %v2262_v39, %v2266_v41 }
 0x326   :  { %5353 = vmatprep.subr.bf16.mxu0 %v8013_v53  ;;  %5378 = vmatprep.subr.bf16.mxu1 %v8077_v54  ;;  %v8228_v53 = vcombine.low %v2326_v42, %v2330_v44  ;;  %v8157_v54 = vcombine.high %v2254_v28, %v2258_v32  ;;  %v8221_v55 = vcombine.high %v2318_v49, %v2322_v57  ;;  %v2426_v19 = vld [vmem:[#allocation14 + $0xbe8] sm:$0xff] }
 0x327   :  { %v2486_v20 = vld [vmem:[#allocation14 + $0xdc8] sm:$0xff] }
 0x328   :  { %v2414_v24 = vld [vmem:[#allocation14 + $0xb88] sm:$0xff] }
 0x329   :  { %5354 = vmatpush2.bf16.msra.mxu0 %v8012_v1  ;;  %5379 = vmatpush1.bf16.msra.mxu1 %v8076_v3  ;;  %v2314_v1 = vld [vmem:[#allocation14 + $0x868] sm:$0xff]  ;;  %v8156_v3 = vcombine.low %v2254_v28, %v2258_v32 }
 0x32a   :  { %5380 = vmatprep.subr.bf16.mxu1 %v8197_v4  ;;  %5405 = vmatprep.subr.bf16.mxu0 %v8261_v6  ;;  %v8220_v4 = vcombine.low %v2318_v49, %v2322_v57  ;;  %v8149_v6 = vcombine.high %v2246_v56, %v2250_v60  ;;  %v8213_v12 = vcombine.high %v2310_v58, %v2314_v1  ;;  %v2418_v26 = vld [vmem:[#allocation14 + $0xba8] sm:$0xff] }
 0x32b   :  { %v2478_v29 = vld [vmem:[#allocation14 + $0xd88] sm:$0xff] }
 0x32c   :  { %5356 = vmatmul.mubr.bf16.vlgmr.msra.gmra.mxu0 %v10216_v34  ;;  %v2406_v39 = vld [vmem:[#allocation14 + $0xb48] sm:$0xff] }
 0x32d   :  { %5381 = vmatpush2.bf16.msra.mxu1 %v8196_v14  ;;  %5406 = vmatpush1.bf16.msra.mxu0 %v8260_v5  ;;  %v2306_v14 = vld [vmem:[#allocation14 + $0x828] sm:$0xff]  ;;  %v8148_v5 = vcombine.low %v2246_v56, %v2250_v60 }
 0x32e   :  { %5437 = vmatprep.mubr.bf16.mxu0 %v10231_v59  ;;  %5382 = vmatprep.subr.bf16.mxu1 %v8189_v45  ;;  %v8212_v45 = vcombine.low %v2310_v58, %v2314_v1  ;;  %v2410_v42 = vld [vmem:[#allocation14 + $0xb68] sm:$0xff] }
 0x32f   :  { %5407 = vmatprep.subr.bf16.mxu0 %v8253_v16  ;;  %v8205_v16 = vcombine.high %v2302_v0, %v2306_v14  ;;  %v2470_v44 = vld [vmem:[#allocation14 + $0xd48] sm:$0xff] }
 0x330   :  { %v2398_v32 = vld [vmem:[#allocation14 + $0xb08] sm:$0xff] }
 0x331   :  { %5383 = vmatpush2.bf16.msra.mxu1 %v8188_v22  ;;  %5408 = vmatpush1.bf16.msra.mxu0 %v8252_v23  ;;  %v2490_v22 = vld [vmem:[#allocation14 + $0xde8] sm:$0xff]  ;;  %v8140_v23 = vcombine.low %v2238_v7, %v2242_v9 }
 0x332   :  { %5384 = vmatprep.subr.bf16.mxu1 %v8181_v61  ;;  %5409 = vmatprep.subr.bf16.mxu0 %v8245_v62  ;;  %v8204_v61 = vcombine.low %v2302_v0, %v2306_v14  ;;  %v8325_v62 = vcombine.high %v2422_v18, %v2426_v19  ;;  %v8389_v63 = vcombine.high %v2486_v20, %v2490_v22  ;;  %v2402_v49 = vld [vmem:[#allocation14 + $0xb28] sm:$0xff] }
 0x333   :  { %v2462_v57 = vld [vmem:[#allocation14 + $0xd08] sm:$0xff] }
 0x334   :  { %v2390_v60 = vld [vmem:[#allocation14 + $0xac8] sm:$0xff] }
 0x335   :  { %5385 = vmatpush2.bf16.msra.mxu1 %v8180_v36  ;;  %5410 = vmatpush1.bf16.msra.mxu0 %v8244_v37  ;;  %v2482_v36 = vld [vmem:[#allocation14 + $0xda8] sm:$0xff]  ;;  %v8324_v37 = vcombine.low %v2422_v18, %v2426_v19 }
 0x336   :  { %5386 = vmatprep.subr.bf16.mxu1 %v8173_v38  ;;  %5411 = vmatprep.subr.bf16.mxu0 %v8237_v17  ;;  %v8388_v38 = vcombine.low %v2486_v20, %v2490_v22  ;;  %v8317_v17 = vcombine.high %v2414_v24, %v2418_v26  ;;  %v8381_v41 = vcombine.high %v2478_v29, %v2482_v36  ;;  %v2394_v58 = vld [vmem:[#allocation14 + $0xae8] sm:$0xff] }
 0x337   :  { %v2454_v1 = vld [vmem:[#allocation14 + $0xcc8] sm:$0xff] }
 0x338   :  { %v2382_v9 = vld [vmem:[#allocation14 + $0xa88] sm:$0xff] }
 0x339   :  { %5387 = vmatpush2.bf16.msra.mxu1 %v8172_v35  ;;  %5412 = vmatpush1.bf16.msra.mxu0 %v8236_v46  ;;  %v2474_v35 = vld [vmem:[#allocation14 + $0xd68] sm:$0xff]  ;;  %v8316_v46 = vcombine.low %v2414_v24, %v2418_v26 }
 0x33a   :  { %5388 = vmatprep.subr.bf16.mxu1 %v8165_v47  ;;  %5413 = vmatprep.subr.bf16.mxu0 %v8229_v48  ;;  %v8380_v47 = vcombine.low %v2478_v29, %v2482_v36  ;;  %v8309_v48 = vcombine.high %v2406_v39, %v2410_v42  ;;  %v8373_v28 = vcombine.high %v2470_v44, %v2474_v35  ;;  %v2386_v0 = vld [vmem:[#allocation14 + $0xaa8] sm:$0xff] }
 0x33b   :  { %v2446_v14 = vld [vmem:[#allocation14 + $0xc88] sm:$0xff] }
 0x33c   :  { %v2374_v19 = vld [vmem:[#allocation14 + $0xa48] sm:$0xff] }
 0x33d   :  { %5389 = vmatpush2.bf16.msra.mxu1 %v8164_v52  ;;  %5414 = vmatpush1.bf16.msra.mxu0 %v8228_v53  ;;  %v2466_v52 = vld [vmem:[#allocation14 + $0xd28] sm:$0xff]  ;;  %v8308_v53 = vcombine.low %v2406_v39, %v2410_v42 }
 0x33e   :  { %5390 = vmatprep.subr.bf16.mxu1 %v8157_v54  ;;  %5415 = vmatprep.subr.bf16.mxu0 %v8221_v55  ;;  %v8372_v54 = vcombine.low %v2470_v44, %v2474_v35  ;;  %v8301_v55 = vcombine.high %v2398_v32, %v2402_v49  ;;  %v8365_v56 = vcombine.high %v2462_v57, %v2466_v52  ;;  %v2378_v20 = vld [vmem:[#allocation14 + $0xa68] sm:$0xff]  ;;  %v2103_v35 = vld [vmem:[#allocation14 + $0x1d0] sm:$0xff] }
 0x33f   :  { %v2438_v22 = vld [vmem:[#allocation14 + $0xc48] sm:$0xff] }
 0x340   :  { %v2366_v26 = vld [vmem:[#allocation14 + $0xa08] sm:$0xff] }
 0x341   :  { %5391 = vmatpush2.bf16.msra.mxu1 %v8156_v3  ;;  %5416 = vmatpush1.bf16.msra.mxu0 %v8220_v4  ;;  %v2458_v3 = vld [vmem:[#allocation14 + $0xce8] sm:$0xff]  ;;  %v8300_v4 = vcombine.low %v2398_v32, %v2402_v49 }
 0x342   :  { %5392 = vmatprep.subr.bf16.mxu1 %v8149_v6  ;;  %5417 = vmatprep.subr.bf16.mxu0 %v8213_v12  ;;  %v8364_v6 = vcombine.low %v2462_v57, %v2466_v52  ;;  %v8293_v12 = vcombine.high %v2390_v60, %v2394_v58  ;;  %v8357_v7 = vcombine.high %v2454_v1, %v2458_v3  ;;  %v2370_v29 = vld [vmem:[#allocation14 + $0xa28] sm:$0xff]  ;;  %v2095_v52 = vld [vmem:[#allocation14 + $0x190] sm:$0xff] }
 0x343   :  { %v2430_v36 = vld [vmem:[#allocation14 + $0xc08] sm:$0xff]  ;;  %v8269_v39 = vcombine.high %v2366_v26, %v2370_v29 }
 0x344   :  { %v2550_v42 = vld [vmem:[#allocation14 + $0xfc8] sm:$0xff] }
 0x345   :  { %5393 = vmatpush2.bf16.msra.mxu1 %v8148_v5  ;;  %5418 = vmatpush1.bf16.msra.mxu0 %v8212_v45  ;;  %v2450_v5 = vld [vmem:[#allocation14 + $0xca8] sm:$0xff]  ;;  %v8292_v45 = vcombine.low %v2390_v60, %v2394_v58 }
 0x346   :  { %5394 = vmatprep.subr.bf16.mxu1 %v8141_v15  ;;  %5419 = vmatprep.subr.bf16.mxu0 %v8205_v16  ;;  %v8356_v15 = vcombine.low %v2454_v1, %v2458_v3  ;;  %v8285_v16 = vcombine.high %v2382_v9, %v2386_v0  ;;  %v8349_v18 = vcombine.high %v2446_v14, %v2450_v5  ;;  %v2554_v44 = vld [vmem:[#allocation14 + $0xfe8] sm:$0xff]  ;;  %v2087_v3 = vld [vmem:[#allocation14 + $0x150] sm:$0xff] }
 0x347   :  { %v2542_v49 = vld [vmem:[#allocation14 + $0xf88] sm:$0xff] }
 0x348   :  { %v2546_v57 = vld [vmem:[#allocation14 + $0xfa8] sm:$0xff] }
 0x349   :  { %5395 = vmatpush2.bf16.msra.mxu1 %v8140_v23  ;;  %5420 = vmatpush1.bf16.msra.mxu0 %v8204_v61  ;;  %v2442_v23 = vld [vmem:[#allocation14 + $0xc68] sm:$0xff]  ;;  %v8284_v61 = vcombine.low %v2382_v9, %v2386_v0 }
 0x34a   :  { %5421 = vmatprep.subr.bf16.mxu0 %v8325_v62  ;;  %5446 = vmatprep.subr.bf16.mxu1 %v8389_v63  ;;  %v8348_v62 = vcombine.low %v2446_v14, %v2450_v5  ;;  %v8277_v63 = vcombine.high %v2374_v19, %v2378_v20  ;;  %v8341_v24 = vcombine.high %v2438_v22, %v2442_v23  ;;  %v2534_v60 = vld [vmem:[#allocation14 + $0xf48] sm:$0xff] }
 0x34b   :  { %v2538_v1 = vld [vmem:[#allocation14 + $0xf68] sm:$0xff] }
 0x34c   :  { %5397 = vmatmul.mubr.bf16.vlgmr.msra.gmra.mxu1 %v10255_v50  ;;  %v8437_v0 = vcombine.high %v2534_v60, %v2538_v1  ;;  %v2526_v5 = vld [vmem:[#allocation14 + $0xf08] sm:$0xff] }
 0x34d   :  { %5422 = vmatpush2.bf16.msra.mxu0 %v8324_v37  ;;  %5447 = vmatpush1.bf16.msra.mxu1 %v8388_v38  ;;  %v2434_v37 = vld [vmem:[#allocation14 + $0xc28] sm:$0xff]  ;;  %v8276_v38 = vcombine.low %v2374_v19, %v2378_v20  ;;  %v8436_v19 = vcombine.low %v2534_v60, %v2538_v1  ;;  %v2047_v60 = vld [vmem:[#allocation14 + $0x10] sm:$0xff] }
 0x34e   :  { %5478 = vmatprep.mubr.bf16.mxu1 %v10264_v21  ;;  %5423 = vmatprep.subr.bf16.mxu0 %v8317_v17  ;;  %v8340_v17 = vcombine.low %v2438_v22, %v2442_v23 }
 0x34f   :  { %5448 = vmatprep.subr.bf16.mxu1 %v8381_v41  ;;  %v8333_v41 = vcombine.high %v2430_v36, %v2434_v37 }
 0x351   :  { %5424 = vmatpush2.bf16.msra.mxu0 %v8316_v46  ;;  %5449 = vmatpush1.bf16.msra.mxu1 %v8380_v47  ;;  %v2107_v46 = vld [vmem:[#allocation14 + $0x1f0] sm:$0xff]  ;;  %v8268_v47 = vcombine.low %v2366_v26, %v2370_v29 }
 0x352   :  { %5425 = vmatprep.subr.bf16.mxu0 %v8309_v48  ;;  %5450 = vmatprep.subr.bf16.mxu1 %v8373_v28  ;;  %v8332_v48 = vcombine.low %v2430_v36, %v2434_v37  ;;  %v8453_v28 = vcombine.high %v2550_v42, %v2554_v44  ;;  %v8007_v32 = vcombine.high %v2103_v35, %v2107_v46  ;;  %v2075_v26 = vld [vmem:[#allocation14 + $0xf0] sm:$0xff] }
 0x355   :  { %5426 = vmatpush2.bf16.msra.mxu0 %v8308_v53  ;;  %5451 = vmatpush1.bf16.msra.mxu1 %v8372_v54  ;;  %v2099_v53 = vld [vmem:[#allocation14 + $0x1b0] sm:$0xff]  ;;  %v8452_v54 = vcombine.low %v2550_v42, %v2554_v44 }
 0x356   :  { %5427 = vmatprep.subr.bf16.mxu0 %v8301_v55  ;;  %5452 = vmatprep.subr.bf16.mxu1 %v8365_v56  ;;  %v8006_v55 = vcombine.low %v2103_v35, %v2107_v46  ;;  %v8445_v56 = vcombine.high %v2542_v49, %v2546_v57  ;;  %v7999_v58 = vcombine.high %v2095_v52, %v2099_v53  ;;  %v2067_v42 = vld [vmem:[#allocation14 + $0xb0] sm:$0xff] }
 0x359   :  { %5428 = vmatpush2.bf16.msra.mxu0 %v8300_v4  ;;  %5453 = vmatpush1.bf16.msra.mxu1 %v8364_v6  ;;  %v2091_v4 = vld [vmem:[#allocation14 + $0x170] sm:$0xff] }
 0x35a   :  { %5429 = vmatprep.subr.bf16.mxu0 %v8293_v12  ;;  %5454 = vmatprep.subr.bf16.mxu1 %v8357_v7  ;;  %v8444_v12 = vcombine.low %v2542_v49, %v2546_v57  ;;  %v7998_v7 = vcombine.low %v2095_v52, %v2099_v53  ;;  %v7991_v14 = vcombine.high %v2087_v3, %v2091_v4  ;;  %v2059_v49 = vld [vmem:[#allocation14 + $0x70] sm:$0xff] }
 0x35b   :  { %v7990_v20 = vcombine.low %v2087_v3, %v2091_v4 }
 0x35d   :  { %5430 = vmatpush2.bf16.msra.mxu0 %v8292_v45  ;;  %5455 = vmatpush1.bf16.msra.mxu1 %v8356_v15  ;;  %v2530_v45 = vld [vmem:[#allocation14 + $0xf28] sm:$0xff]  ;;  %v2079_v15 = vld [vmem:[#allocation14 + $0x110] sm:$0xff] }
 0x35e   :  { %5431 = vmatprep.subr.bf16.mxu0 %v8285_v16  ;;  %5456 = vmatprep.subr.bf16.mxu1 %v8349_v18  ;;  %v2083_v16 = vld [vmem:[#allocation14 + $0x130] sm:$0xff]  ;;  %v8429_v23 = vcombine.high %v2526_v5, %v2530_v45  ;;  %v8428_v29 = vcombine.low %v2526_v5, %v2530_v45  ;;  %v10292_v45 = vld [vmem:[#allocation16] sm:$0xff] }
 0x35f   :  { %v7982_v36 = vcombine.low %v2079_v15, %v2083_v16  ;;  %v2235_v5 = vld [vmem:[#allocation14 + $0x5f0] sm:$0xff] }
 0x361   :  { %5432 = vmatpush2.bf16.msra.mxu0 %v8284_v61  ;;  %5457 = vmatpush1.bf16.msra.mxu1 %v8348_v62  ;;  %v7983_v61 = vcombine.high %v2079_v15, %v2083_v16  ;;  %v2518_v62 = vld [vmem:[#allocation14 + $0xec8] sm:$0xff] }
 0x362   :  { %5433 = vmatprep.subr.bf16.mxu0 %v8277_v63  ;;  %5458 = vmatprep.subr.bf16.mxu1 %v8341_v24  ;;  %v2522_v63 = vld [vmem:[#allocation14 + $0xee8] sm:$0xff]  ;;  %v2071_v24 = vld [vmem:[#allocation14 + $0xd0] sm:$0xff] }
 0x363   :  { %v8421_v37 = vcombine.high %v2518_v62, %v2522_v63  ;;  %v8420_v44 = vcombine.low %v2518_v62, %v2522_v63  ;;  %v7974_v35 = vcombine.low %v2071_v24, %v2075_v26  ;;  %v2227_v62 = vld [vmem:[#allocation14 + $0x5b0] sm:$0xff]  ;;  %v2566_v63 = vrot.slane %v10292_v45, %v10208_v13 }
 0x365   :  { %5434 = vmatpush2.bf16.msra.mxu0 %v8276_v38  ;;  %5459 = vmatpush1.bf16.msra.mxu1 %v8340_v17  ;;  %v7975_v38 = vcombine.high %v2071_v24, %v2075_v26  ;;  %v2510_v17 = vld [vmem:[#allocation14 + $0xe88] sm:$0xff] }
 0x366   :  { %5435 = vmatprep.subr.bf16.mxu0 %v8269_v39  ;;  %5460 = vmatprep.subr.bf16.mxu1 %v8333_v41  ;;  %v2514_v39 = vld [vmem:[#allocation14 + $0xea8] sm:$0xff]  ;;  %v2063_v41 = vld [vmem:[#allocation14 + $0x90] sm:$0xff] }
 0x367   :  { %v8413_v46 = vcombine.high %v2510_v17, %v2514_v39  ;;  %v8412_v57 = vcombine.low %v2510_v17, %v2514_v39  ;;  %v7966_v52 = vcombine.low %v2063_v41, %v2067_v42  ;;  %v2155_v17 = vld [vmem:[#allocation14 + $0x370] sm:$0xff] }
 0x368   :  { %v2215_v39 = vld [vmem:[#allocation14 + $0x550] sm:$0xff] }
 0x369   :  { %5436 = vmatpush2.bf16.msra.mxu0 %v8268_v47  ;;  %5461 = vmatpush1.bf16.msra.mxu1 %v8332_v48  ;;  %v7967_v47 = vcombine.high %v2063_v41, %v2067_v42  ;;  %v2502_v48 = vld [vmem:[#allocation14 + $0xe48] sm:$0xff]  ;;  %v2219_v41 = vld [vmem:[#allocation14 + $0x570] sm:$0xff] }
 0x36a   :  { %5462 = vmatprep.subr.bf16.mxu1 %v8453_v28  ;;  %5487 = vmatprep.subr.bf16.mxu0 %v8007_v32  ;;  %v2506_v28 = vld [vmem:[#allocation14 + $0xe68] sm:$0xff]  ;;  %v2055_v32 = vld [vmem:[#allocation14 + $0x50] sm:$0xff] }
 0x36b   :  { %v8405_v53 = vcombine.high %v2502_v48, %v2506_v28  ;;  %v8404_v1 = vcombine.low %v2502_v48, %v2506_v28  ;;  %v7958_v3 = vcombine.low %v2055_v32, %v2059_v49  ;;  %v8119_v28 = vcombine.high %v2215_v39, %v2219_v41 }
 0x36c   :  { %5438 = vmatmul.mubr.bf16.vlgmr.msra.gmra.mxu0 %v10273_v25  ;;  %v10287_v6 = vpop.f32.mrf.mxu0 }
 0x36d   :  { %5463 = vmatpush2.bf16.msra.mxu1 %v8452_v54  ;;  %5488 = vmatpush1.bf16.msra.mxu0 %v8006_v55  ;;  %v7959_v54 = vcombine.high %v2055_v32, %v2059_v49  ;;  %v2494_v55 = vld [vmem:[#allocation14 + $0xe08] sm:$0xff]  ;;  %v2143_v32 = vld [vmem:[#allocation14 + $0x310] sm:$0xff] }
 0x36e   :  { %5519 = vmatprep.mubr.bf16.mxu0 %v10214_v33  ;;  %v10290_v9 = vpop.f32.mrf.mxu0  ;;  %5464 = vmatprep.subr.bf16.mxu1 %v8445_v56  ;;  %v2498_v56 = vld [vmem:[#allocation14 + $0xe28] sm:$0xff] }
 0x36f   :  { %5489 = vmatprep.subr.bf16.mxu0 %v7999_v58  ;;  %v2051_v58 = vld [vmem:[#allocation14 + $0x30] sm:$0xff]  ;;  %v8397_v4 = vcombine.high %v2494_v55, %v2498_v56  ;;  %v8396_v15 = vcombine.low %v2494_v55, %v2498_v56  ;;  %v8118_v55 = vcombine.low %v2215_v39, %v2219_v41 }
 0x370   :  { %v5197_v18 = vpop.f32.mrf.mxu0  ;;  %v7950_v16 = vcombine.low %v2047_v60, %v2051_v58  ;;  %v2115_v39 = vld [vmem:[#allocation14 + $0x230] sm:$0xff] }
 0x371   :  { %5465 = vmatpush2.bf16.msra.mxu1 %v8444_v12  ;;  %5490 = vmatpush1.bf16.msra.mxu0 %v7998_v7  ;;  %v7951_v12 = vcombine.high %v2047_v60, %v2051_v58  ;;  %v2167_v7 = vld [vmem:[#allocation14 + $0x3d0] sm:$0xff] }
 0x372   :  { %v5198_v22 = vpop.f32.mrf.mxu0  ;;  %5466 = vmatprep.subr.bf16.mxu1 %v8437_v0  ;;  %5491 = vmatprep.subr.bf16.mxu0 %v7991_v14  ;;  %v2171_v0 = vld [vmem:[#allocation14 + $0x3f0] sm:$0xff] }
 0x373   :  { %v2231_v14 = vld [vmem:[#allocation14 + $0x5d0] sm:$0xff]  ;;  %v8071_v18 = vcombine.high %v2167_v7, %v2171_v0  ;;  %v8070_v24 = vcombine.low %v2167_v7, %v2171_v0 }
 0x374   :  { %v2159_v22 = vld [vmem:[#allocation14 + $0x390] sm:$0xff]  ;;  %v8134_v26 = vcombine.low %v2231_v14, %v2235_v5 }
 0x375   :  { %5467 = vmatpush2.bf16.msra.mxu1 %v8436_v19  ;;  %5492 = vmatpush1.bf16.msra.mxu0 %v7990_v20  ;;  %v8135_v19 = vcombine.high %v2231_v14, %v2235_v5  ;;  %v2562_v20 = vrot.slane %v10292_v45, %v10203_v11  ;;  %v2175_v41 = vld [vmem:[#allocation14 + $0x410] sm:$0xff] }
 0x376   :  { %5468 = vmatprep.subr.bf16.mxu1 %v8429_v23  ;;  %5493 = vmatprep.subr.bf16.mxu0 %v7983_v61  ;;  %v2163_v23 = vld [vmem:[#allocation14 + $0x3b0] sm:$0xff] }
 0x377   :  { %v2223_v61 = vld [vmem:[#allocation14 + $0x590] sm:$0xff] }
 0x379   :  { %5469 = vmatpush2.bf16.msra.mxu1 %v8428_v29  ;;  %5494 = vmatpush1.bf16.msra.mxu0 %v7982_v36  ;;  %v8063_v29 = vcombine.high %v2159_v22, %v2163_v23  ;;  %v2151_v36 = vld [vmem:[#allocation14 + $0x350] sm:$0xff] }
 0x37a   :  { %5470 = vmatprep.subr.bf16.mxu1 %v8421_v37  ;;  %5495 = vmatprep.subr.bf16.mxu0 %v7975_v38  ;;  %v5194_v37 = vadd.f32 %v10287_v6, %v2562_v20  ;;  %v8127_v38 = vcombine.high %v2223_v61, %v2227_v62  ;;  %v8055_v6 = vcombine.high %v2151_v36, %v2155_v17 }
 0x37d   :  { %5471 = vmatpush2.bf16.msra.mxu1 %v8420_v44  ;;  %5496 = vmatpush1.bf16.msra.mxu0 %v7974_v35  ;;  %v8062_v44 = vcombine.low %v2159_v22, %v2163_v23  ;;  %v5196_v35 = vadd.f32 %v10290_v9, %v2566_v63  ;;  %v8054_v9 = vcombine.low %v2151_v36, %v2155_v17  ;;  %v2123_v63 = vld [vmem:[#allocation14 + $0x270] sm:$0xff] }
 0x37e   :  { %5472 = vmatprep.subr.bf16.mxu1 %v8413_v46  ;;  %5497 = vmatprep.subr.bf16.mxu0 %v7967_v47  ;;  %v8126_v47 = vcombine.low %v2223_v61, %v2227_v62  ;;  %v2119_v62 = vld [vmem:[#allocation14 + $0x250] sm:$0xff] }
 0x37f   :  { %v2111_v17 = vld [vmem:[#allocation14 + $0x210] sm:$0xff] }
 0x381   :  { %5473 = vmatpush2.bf16.msra.mxu1 %v8412_v57  ;;  %5498 = vmatpush1.bf16.msra.mxu0 %v7966_v52  ;;  %v2147_v57 = vld [vmem:[#allocation14 + $0x330] sm:$0xff] }
 0x382   :  { %5474 = vmatprep.subr.bf16.mxu1 %v8405_v53  ;;  %5499 = vmatprep.subr.bf16.mxu0 %v7959_v54  ;;  %v2207_v52 = vld [vmem:[#allocation14 + $0x510] sm:$0xff]  ;;  %v8047_v60 = vcombine.high %v2143_v32, %v2147_v57  ;;  %v8046_v7 = vcombine.low %v2143_v32, %v2147_v57 }
 0x383   :  { %v2211_v53 = vld [vmem:[#allocation14 + $0x530] sm:$0xff] }
 0x384   :  { %v8111_v58 = vcombine.high %v2207_v52, %v2211_v53  ;;  %v8110_v0 = vcombine.low %v2207_v52, %v2211_v53  ;;  %v2359_v32 = vld [vmem:[#allocation14 + $0x9d0] sm:$0xff]  ;;  %v8014_v52 = vcombine.low %v2111_v17, %v2115_v39 }
 0x385   :  { %5475 = vmatpush2.bf16.msra.mxu1 %v8404_v1  ;;  %5500 = vmatpush1.bf16.msra.mxu0 %v7958_v3  ;;  %v2135_v1 = vld [vmem:[#allocation14 + $0x2d0] sm:$0xff] }
 0x386   :  { %5476 = vmatprep.subr.bf16.mxu1 %v8397_v4  ;;  %5501 = vmatprep.subr.bf16.mxu0 %v7951_v12  ;;  %v2139_v3 = vld [vmem:[#allocation14 + $0x2f0] sm:$0xff] }
 0x387   :  { %v2199_v4 = vld [vmem:[#allocation14 + $0x4d0] sm:$0xff]  ;;  %v8039_v14 = vcombine.high %v2135_v1, %v2139_v3  ;;  %v8038_v20 = vcombine.low %v2135_v1, %v2139_v3 }
 0x388   :  { %v2203_v12 = vld [vmem:[#allocation14 + $0x4f0] sm:$0xff] }
 0x389   :  { %5477 = vmatpush2.bf16.msra.mxu1 %v8396_v15  ;;  %5502 = vmatpush1.bf16.msra.mxu0 %v7950_v16  ;;  %v8103_v5 = vcombine.high %v2199_v4, %v2203_v12  ;;  %v2127_v15 = vld [vmem:[#allocation14 + $0x290] sm:$0xff]  ;;  %v8102_v22 = vcombine.low %v2199_v4, %v2203_v12 }
 0x38a   :  { %5503 = vmatprep.subr.bf16.mxu0 %v8071_v18  ;;  %5528 = vmatprep.subr.bf16.mxu1 %v8135_v19  ;;  %v2131_v16 = vld [vmem:[#allocation14 + $0x2b0] sm:$0xff] }
 0x38b   :  { %v2191_v18 = vld [vmem:[#allocation14 + $0x490] sm:$0xff]  ;;  %v8031_v23 = vcombine.high %v2127_v15, %v2131_v16 }
 0x38c   :  { %5479 = vmatmul.mubr.bf16.vlgmr.msra.gmra.mxu1 %v10278_v51  ;;  %v5234_v42 = vpop.f32.mrf.mxu1  ;;  %v2195_v19 = vld [vmem:[#allocation14 + $0x4b0] sm:$0xff] }
 0x38d   :  { %v10301_v46 = vadd.f32 %v5234_v42, %v5194_v37  ;;  %5504 = vmatpush2.bf16.msra.mxu0 %v8070_v24  ;;  %5529 = vmatpush1.bf16.msra.mxu1 %v8134_v26  ;;  %v8095_v61 = vcombine.high %v2191_v18, %v2195_v19  ;;  %v2183_v24 = vld [vmem:[#allocation14 + $0x450] sm:$0xff]  ;;  %v8094_v36 = vcombine.low %v2191_v18, %v2195_v19 }
 0x38e   :  { %5560 = vmatprep.mubr.bf16.mxu1 %v10250_v30  ;;  %v5236_v48 = vpop.f32.mrf.mxu1  ;;  %5505 = vmatprep.subr.bf16.mxu0 %v8063_v29  ;;  %v2187_v26 = vld [vmem:[#allocation14 + $0x470] sm:$0xff]  ;;  %v8030_v29 = vcombine.low %v2127_v15, %v2131_v16  ;;  %v8023_v37 = vcombine.high %v2119_v62, %v2123_v63 }
 0x38f   :  { %v10304_v49 = vadd.f32 %v5236_v48, %v5196_v35  ;;  %5530 = vmatprep.subr.bf16.mxu1 %v8127_v38  ;;  %v8087_v38 = vcombine.high %v2183_v24, %v2187_v26  ;;  %v2179_v42 = vld [vmem:[#allocation14 + $0x430] sm:$0xff]  ;;  %v8086_v35 = vcombine.low %v2183_v24, %v2187_v26 }
 0x390   :  { %v5238_v54 = vpop.f32.mrf.mxu1  ;;  %v8079_v48 = vcombine.high %v2175_v41, %v2179_v42  ;;  %v2363_v57 = vld [vmem:[#allocation14 + $0x9f0] sm:$0xff]  ;;  %v8078_v53 = vcombine.low %v2175_v41, %v2179_v42 }
 0x391   :  { %5506 = vmatpush2.bf16.msra.mxu0 %v8062_v44  ;;  %5531 = vmatpush1.bf16.msra.mxu1 %v8126_v47  ;;  %v8022_v44 = vcombine.low %v2119_v62, %v2123_v63  ;;  %v8015_v47 = vcombine.high %v2111_v17, %v2115_v39  ;;  %v8262_v3 = vcombine.low %v2359_v32, %v2363_v57  ;;  %v2279_v12 = vld [vmem:[#allocation14 + $0x750] sm:$0xff] }
 0x392   :  { %v5239_v56 = vpop.f32.mrf.mxu1  ;;  %5507 = vmatprep.subr.bf16.mxu0 %v8055_v6  ;;  %5532 = vmatprep.subr.bf16.mxu1 %v8119_v28  ;;  %v2295_v6 = vld [vmem:[#allocation14 + $0x7d0] sm:$0xff] }
 0x393   :  { %v2299_v28 = vld [vmem:[#allocation14 + $0x7f0] sm:$0xff] }
 0x394   :  { %v8199_v54 = vcombine.high %v2295_v6, %v2299_v28  ;;  %v2291_v56 = vld [vmem:[#allocation14 + $0x7b0] sm:$0xff]  ;;  %v8198_v1 = vcombine.low %v2295_v6, %v2299_v28 }
 0x395   :  { %5508 = vmatpush2.bf16.msra.mxu0 %v8054_v9  ;;  %5533 = vmatpush1.bf16.msra.mxu1 %v8118_v55  ;;  %v8263_v9 = vcombine.high %v2359_v32, %v2363_v57  ;;  %v2287_v55 = vld [vmem:[#allocation14 + $0x790] sm:$0xff] }
 0x396   :  { %5509 = vmatprep.subr.bf16.mxu0 %v8047_v60  ;;  %5534 = vmatprep.subr.bf16.mxu1 %v8111_v58  ;;  %v2351_v60 = vld [vmem:[#allocation14 + $0x990] sm:$0xff]  ;;  %v8191_v4 = vcombine.high %v2287_v55, %v2291_v56  ;;  %v8190_v18 = vcombine.low %v2287_v55, %v2291_v56 }
 0x397   :  { %v2355_v58 = vld [vmem:[#allocation14 + $0x9b0] sm:$0xff] }
 0x398   :  { %v8254_v19 = vcombine.low %v2351_v60, %v2355_v58  ;;  %v2275_v63 = vld [vmem:[#allocation14 + $0x730] sm:$0xff] }
 0x399   :  { %5510 = vmatpush2.bf16.msra.mxu0 %v8046_v7  ;;  %5535 = vmatpush1.bf16.msra.mxu1 %v8110_v0  ;;  %v8255_v7 = vcombine.high %v2351_v60, %v2355_v58  ;;  %v2283_v0 = vld [vmem:[#allocation14 + $0x770] sm:$0xff] }
 0x39a   :  { %5511 = vmatprep.subr.bf16.mxu0 %v8039_v14  ;;  %5536 = vmatprep.subr.bf16.mxu1 %v8103_v5  ;;  %v2343_v14 = vld [vmem:[#allocation14 + $0x950] sm:$0xff] }
 0x39b   :  { %v2347_v5 = vld [vmem:[#allocation14 + $0x970] sm:$0xff] }
 0x39c   :  { %v2335_v24 = vld [vmem:[#allocation14 + $0x910] sm:$0xff] }
 0x39d   :  { %5512 = vmatpush2.bf16.msra.mxu0 %v8038_v20  ;;  %5537 = vmatpush1.bf16.msra.mxu1 %v8102_v22  ;;  %v8183_v22 = vcombine.high %v2279_v12, %v2283_v0  ;;  %v2339_v26 = vld [vmem:[#allocation14 + $0x930] sm:$0xff] }
 0x39e   :  { %5513 = vmatprep.subr.bf16.mxu0 %v8031_v23  ;;  %5538 = vmatprep.subr.bf16.mxu1 %v8095_v61  ;;  %v8247_v23 = vcombine.high %v2343_v14, %v2347_v5  ;;  %v2271_v61 = vld [vmem:[#allocation14 + $0x710] sm:$0xff]  ;;  %v8239_v17 = vcombine.high %v2335_v24, %v2339_v26 }
 0x39f   :  { %v2263_v39 = vld [vmem:[#allocation14 + $0x6d0] sm:$0xff] }
 0x3a0   :  { %v2267_v41 = vld [vmem:[#allocation14 + $0x6f0] sm:$0xff] }
 0x3a1   :  { %5514 = vmatpush2.bf16.msra.mxu0 %v8030_v29  ;;  %5539 = vmatpush1.bf16.msra.mxu1 %v8094_v36  ;;  %v8182_v29 = vcombine.low %v2279_v12, %v2283_v0  ;;  %v8246_v36 = vcombine.low %v2343_v14, %v2347_v5  ;;  %v2327_v42 = vld [vmem:[#allocation14 + $0x8d0] sm:$0xff] }
 0x3a2   :  { %5515 = vmatprep.subr.bf16.mxu0 %v8023_v37  ;;  %5540 = vmatprep.subr.bf16.mxu1 %v8087_v38  ;;  %v8175_v38 = vcombine.high %v2271_v61, %v2275_v63  ;;  %v2255_v6 = vld [vmem:[#allocation14 + $0x690] sm:$0xff] }
 0x3a3   :  { %v2259_v28 = vld [vmem:[#allocation14 + $0x6b0] sm:$0xff] }
 0x3a4   :  { %v2319_v32 = vld [vmem:[#allocation14 + $0x890] sm:$0xff] }
 0x3a5   :  { %5516 = vmatpush2.bf16.msra.mxu0 %v8022_v44  ;;  %5541 = vmatpush1.bf16.msra.mxu1 %v8086_v35  ;;  %v2331_v44 = vld [vmem:[#allocation14 + $0x8f0] sm:$0xff]  ;;  %v8238_v35 = vcombine.low %v2335_v24, %v2339_v26 }
 0x3a6   :  { %5517 = vmatprep.subr.bf16.mxu0 %v8015_v47  ;;  %5542 = vmatprep.subr.bf16.mxu1 %v8079_v48  ;;  %v8167_v47 = vcombine.high %v2263_v39, %v2267_v41  ;;  %v8231_v48 = vcombine.high %v2327_v42, %v2331_v44  ;;  %v2323_v57 = vld [vmem:[#allocation14 + $0x8b0] sm:$0xff] }
 0x3a7   :  { %v2247_v55 = vld [vmem:[#allocation14 + $0x650] sm:$0xff] }
 0x3a8   :  { %v2251_v56 = vld [vmem:[#allocation14 + $0x670] sm:$0xff] }
 0x3a9   :  { %5518 = vmatpush2.bf16.msra.mxu0 %v8014_v52  ;;  %5543 = vmatpush1.bf16.msra.mxu1 %v8078_v53  ;;  %v8166_v52 = vcombine.low %v2263_v39, %v2267_v41  ;;  %v8230_v53 = vcombine.low %v2327_v42, %v2331_v44  ;;  %v2311_v60 = vld [vmem:[#allocation14 + $0x850] sm:$0xff] }
 0x3aa   :  { %5544 = vmatprep.subr.bf16.mxu1 %v8199_v54  ;;  %5569 = vmatprep.subr.bf16.mxu0 %v8263_v9  ;;  %v8159_v54 = vcombine.high %v2255_v6, %v2259_v28  ;;  %v8223_v9 = vcombine.high %v2319_v32, %v2323_v57  ;;  %v2315_v58 = vld [vmem:[#allocation14 + $0x870] sm:$0xff] }
 0x3ab   :  { %v8215_v12 = vcombine.high %v2311_v60, %v2315_v58  ;;  %v2243_v0 = vld [vmem:[#allocation14 + $0x630] sm:$0xff] }
 0x3ac   :  { %v5275_v15 = vpop.f32.mrf.mxu0  ;;  %5520 = vmatmul.mubr.bf16.vlgmr.msra.gmra.mxu0 %v10216_v34  ;;  %v2303_v14 = vld [vmem:[#allocation14 + $0x810] sm:$0xff] }
 0x3ad   :  { %v10308_v16 = vadd.f32 %v5275_v15, %v10301_v46  ;;  %5545 = vmatpush2.bf16.msra.mxu1 %v8198_v1  ;;  %5570 = vmatpush1.bf16.msra.mxu0 %v8262_v3  ;;  %v8158_v1 = vcombine.low %v2255_v6, %v2259_v28  ;;  %v8222_v3 = vcombine.low %v2319_v32, %v2323_v57  ;;  %v2307_v5 = vld [vmem:[#allocation14 + $0x830] sm:$0xff] }
 0x3ae   :  { %5601 = vmatprep.mubr.bf16.mxu0 %v10231_v59  ;;  %v5277_v20 = vpop.f32.mrf.mxu0  ;;  %5546 = vmatprep.subr.bf16.mxu1 %v8191_v4  ;;  %v8151_v4 = vcombine.high %v2247_v55, %v2251_v56  ;;  %v8150_v15 = vcombine.low %v2247_v55, %v2251_v56  ;;  %v8206_v26 = vcombine.low %v2303_v14, %v2307_v5  ;;  %v2407_v44 = vld [vmem:[#allocation14 + $0xb50] sm:$0xff] }
 0x3af   :  { %v10312_v62 = vadd.f32 %v5277_v20, %v10304_v49  ;;  %5571 = vmatprep.subr.bf16.mxu0 %v8255_v7  ;;  %v8174_v49 = vcombine.low %v2271_v61, %v2275_v63  ;;  %v2239_v7 = vld [vmem:[#allocation14 + $0x610] sm:$0xff]  ;;  %v8207_v20 = vcombine.high %v2303_v14, %v2307_v5 }
 0x3b0   :  { %v5279_v46 = vpop.f32.mrf.mxu0  ;;  %v2487_v61 = vld [vmem:[#allocation14 + $0xdd0] sm:$0xff]  ;;  %v8142_v24 = vcombine.low %v2239_v7, %v2243_v0 }
 0x3b1   :  { %5547 = vmatpush2.bf16.msra.mxu1 %v8190_v18  ;;  %5572 = vmatpush1.bf16.msra.mxu0 %v8254_v19  ;;  %v8214_v18 = vcombine.low %v2311_v60, %v2315_v58  ;;  %v8143_v19 = vcombine.high %v2239_v7, %v2243_v0  ;;  %v2491_v63 = vld [vmem:[#allocation14 + $0xdf0] sm:$0xff] }
 0x3b2   :  { %v5280_v37 = vpop.f32.mrf.mxu0  ;;  %5548 = vmatprep.subr.bf16.mxu1 %v8183_v22  ;;  %5573 = vmatprep.subr.bf16.mxu0 %v8247_v23  ;;  %v2423_v22 = vld [vmem:[#allocation14 + $0xbd0] sm:$0xff]  ;;  %v8390_v41 = vcombine.low %v2487_v61, %v2491_v63 }
 0x3b3   :  { %v2427_v23 = vld [vmem:[#allocation14 + $0xbf0] sm:$0xff] }
 0x3b4   :  { %v8327_v46 = vcombine.high %v2423_v22, %v2427_v23  ;;  %v2419_v37 = vld [vmem:[#allocation14 + $0xbb0] sm:$0xff]  ;;  %v8326_v39 = vcombine.low %v2423_v22, %v2427_v23 }
 0x3b5   :  { %5549 = vmatpush2.bf16.msra.mxu1 %v8182_v29  ;;  %5574 = vmatpush1.bf16.msra.mxu0 %v8246_v36  ;;  %v8391_v29 = vcombine.high %v2487_v61, %v2491_v63  ;;  %v2415_v36 = vld [vmem:[#allocation14 + $0xb90] sm:$0xff] }
 0x3b6   :  { %5550 = vmatprep.subr.bf16.mxu1 %v8175_v38  ;;  %5575 = vmatprep.subr.bf16.mxu0 %v8239_v17  ;;  %v2479_v38 = vld [vmem:[#allocation14 + $0xd90] sm:$0xff]  ;;  %v8319_v42 = vcombine.high %v2415_v36, %v2419_v37  ;;  %v8318_v32 = vcombine.low %v2415_v36, %v2419_v37 }
 0x3b7   :  { %v2483_v17 = vld [vmem:[#allocation14 + $0xdb0] sm:$0xff] }
 0x3b8   :  { %v8382_v57 = vcombine.low %v2479_v38, %v2483_v17  ;;  %v2403_v56 = vld [vmem:[#allocation14 + $0xb30] sm:$0xff] }
 0x3b9   :  { %5551 = vmatpush2.bf16.msra.mxu1 %v8174_v49  ;;  %5576 = vmatpush1.bf16.msra.mxu0 %v8238_v35  ;;  %v8383_v49 = vcombine.high %v2479_v38, %v2483_v17  ;;  %v2411_v35 = vld [vmem:[#allocation14 + $0xb70] sm:$0xff] }
 0x3ba   :  { %5552 = vmatprep.subr.bf16.mxu1 %v8167_v47  ;;  %5577 = vmatprep.subr.bf16.mxu0 %v8231_v48  ;;  %v2471_v47 = vld [vmem:[#allocation14 + $0xd50] sm:$0xff] }
 0x3bb   :  { %v2475_v48 = vld [vmem:[#allocation14 + $0xd70] sm:$0xff] }
 0x3bc   :  { %v2463_v60 = vld [vmem:[#allocation14 + $0xd10] sm:$0xff] }
 0x3bd   :  { %5553 = vmatpush2.bf16.msra.mxu1 %v8166_v52  ;;  %5578 = vmatpush1.bf16.msra.mxu0 %v8230_v53  ;;  %v8311_v53 = vcombine.high %v2407_v44, %v2411_v35  ;;  %v2467_v58 = vld [vmem:[#allocation14 + $0xd30] sm:$0xff] }
 0x3be   :  { %5554 = vmatprep.subr.bf16.mxu1 %v8159_v54  ;;  %5579 = vmatprep.subr.bf16.mxu0 %v8223_v9  ;;  %v8375_v54 = vcombine.high %v2471_v47, %v2475_v48  ;;  %v2399_v9 = vld [vmem:[#allocation14 + $0xb10] sm:$0xff]  ;;  %v8367_v7 = vcombine.high %v2463_v60, %v2467_v58 }
 0x3bf   :  { %v2391_v0 = vld [vmem:[#allocation14 + $0xad0] sm:$0xff] }
 0x3c0   :  { %v2395_v14 = vld [vmem:[#allocation14 + $0xaf0] sm:$0xff] }
 0x3c1   :  { %5555 = vmatpush2.bf16.msra.mxu1 %v8158_v1  ;;  %5580 = vmatpush1.bf16.msra.mxu0 %v8222_v3  ;;  %v8310_v1 = vcombine.low %v2407_v44, %v2411_v35  ;;  %v8374_v3 = vcombine.low %v2471_v47, %v2475_v48  ;;  %v2455_v5 = vld [vmem:[#allocation14 + $0xcd0] sm:$0xff] }
 0x3c2   :  { %5556 = vmatprep.subr.bf16.mxu1 %v8151_v4  ;;  %5581 = vmatprep.subr.bf16.mxu0 %v8215_v12  ;;  %v8303_v12 = vcombine.high %v2399_v9, %v2403_v56  ;;  %v2383_v22 = vld [vmem:[#allocation14 + $0xa90] sm:$0xff] }
 0x3c3   :  { %v2387_v23 = vld [vmem:[#allocation14 + $0xab0] sm:$0xff] }
 0x3c4   :  { %v2447_v61 = vld [vmem:[#allocation14 + $0xc90] sm:$0xff] }
 0x3c5   :  { %5557 = vmatpush2.bf16.msra.mxu1 %v8150_v15  ;;  %5582 = vmatpush1.bf16.msra.mxu0 %v8214_v18  ;;  %v2459_v15 = vld [vmem:[#allocation14 + $0xcf0] sm:$0xff]  ;;  %v8366_v18 = vcombine.low %v2463_v60, %v2467_v58 }
 0x3c6   :  { %5558 = vmatprep.subr.bf16.mxu1 %v8143_v19  ;;  %5583 = vmatprep.subr.bf16.mxu0 %v8207_v20  ;;  %v8295_v19 = vcombine.high %v2391_v0, %v2395_v14  ;;  %v8359_v20 = vcombine.high %v2455_v5, %v2459_v15  ;;  %v2451_v63 = vld [vmem:[#allocation14 + $0xcb0] sm:$0xff] }
 0x3c7   :  { %v2375_v36 = vld [vmem:[#allocation14 + $0xa50] sm:$0xff] }
 0x3c8   :  { %v2379_v37 = vld [vmem:[#allocation14 + $0xa70] sm:$0xff] }
 0x3c9   :  { %5559 = vmatpush2.bf16.msra.mxu1 %v8142_v24  ;;  %5584 = vmatpush1.bf16.msra.mxu0 %v8206_v26  ;;  %v8294_v24 = vcombine.low %v2391_v0, %v2395_v14  ;;  %v8358_v26 = vcombine.low %v2455_v5, %v2459_v15  ;;  %v2439_v38 = vld [vmem:[#allocation14 + $0xc50] sm:$0xff] }
 0x3ca   :  { %5585 = vmatprep.subr.bf16.mxu0 %v8327_v46  ;;  %5610 = vmatprep.subr.bf16.mxu1 %v8391_v29  ;;  %v8287_v46 = vcombine.high %v2383_v22, %v2387_v23  ;;  %v8351_v29 = vcombine.high %v2447_v61, %v2451_v63  ;;  %v2443_v17 = vld [vmem:[#allocation14 + $0xc70] sm:$0xff] }
 0x3cb   :  { %v8343_v44 = vcombine.high %v2439_v38, %v2443_v17  ;;  %v2371_v35 = vld [vmem:[#allocation14 + $0xa30] sm:$0xff] }
 0x3cc   :  { %v5316_v6 = vpop.f32.mrf.mxu1  ;;  %5561 = vmatmul.mubr.bf16.vlgmr.msra.gmra.mxu1 %v10255_v50  ;;  %v2431_v47 = vld [vmem:[#allocation14 + $0xc10] sm:$0xff] }
 0x3cd   :  { %v10316_v28 = vadd.f32 %v5316_v6, %v10308_v16  ;;  %5586 = vmatpush2.bf16.msra.mxu0 %v8326_v39  ;;  %5611 = vmatpush1.bf16.msra.mxu1 %v8390_v41  ;;  %v8286_v39 = vcombine.low %v2383_v22, %v2387_v23  ;;  %v8350_v41 = vcombine.low %v2447_v61, %v2451_v63  ;;  %v2435_v48 = vld [vmem:[#allocation14 + $0xc30] sm:$0xff] }
 0x3ce   :  { %5642 = vmatprep.mubr.bf16.mxu1 %v10264_v21  ;;  %v5318_v52 = vpop.f32.mrf.mxu1  ;;  %5587 = vmatprep.subr.bf16.mxu0 %v8319_v42  ;;  %v8279_v42 = vcombine.high %v2375_v36, %v2379_v37  ;;  %v8278_v6 = vcombine.low %v2375_v36, %v2379_v37  ;;  %v8334_v58 = vcombine.low %v2431_v47, %v2435_v48  ;;  %v2535_v15 = vld [vmem:[#allocation14 + $0xf50] sm:$0xff]  ;;  %v2080_v36 = vld [vmem:[#allocation14 + $0x118] sm:$0xff] }
 0x3cf   :  { %v10320_v55 = vadd.f32 %v5318_v52, %v10312_v62  ;;  %5612 = vmatprep.subr.bf16.mxu1 %v8383_v49  ;;  %v8302_v62 = vcombine.low %v2399_v9, %v2403_v56  ;;  %v2367_v49 = vld [vmem:[#allocation14 + $0xa10] sm:$0xff]  ;;  %v8335_v52 = vcombine.high %v2431_v47, %v2435_v48  ;;  %v2104_v9 = vld [vmem:[#allocation14 + $0x1d8] sm:$0xff] }
 0x3d0   :  { %v5320_v16 = vpop.f32.mrf.mxu1  ;;  %v2108_v56 = vld [vmem:[#allocation14 + $0x1f8] sm:$0xff]  ;;  %v8270_v60 = vcombine.low %v2367_v49, %v2371_v35 }
 0x3d1   :  { %5588 = vmatpush2.bf16.msra.mxu0 %v8318_v32  ;;  %5613 = vmatpush1.bf16.msra.mxu1 %v8382_v57  ;;  %v8342_v32 = vcombine.low %v2439_v38, %v2443_v17  ;;  %v8271_v57 = vcombine.high %v2367_v49, %v2371_v35  ;;  %v8008_v14 = vcombine.low %v2104_v9, %v2108_v56  ;;  %v2084_v37 = vld [vmem:[#allocation14 + $0x138] sm:$0xff]  ;;  %v2523_v49 = vld [vmem:[#allocation14 + $0xef0] sm:$0xff] }
 0x3d2   :  { %v5321_v4 = vpop.f32.mrf.mxu1  ;;  %5589 = vmatprep.subr.bf16.mxu0 %v8311_v53  ;;  %5614 = vmatprep.subr.bf16.mxu1 %v8375_v54  ;;  %v2551_v53 = vld [vmem:[#allocation14 + $0xfd0] sm:$0xff]  ;;  %v2072_v35 = vld [vmem:[#allocation14 + $0xd8] sm:$0xff] }
 0x3d3   :  { %v2555_v54 = vld [vmem:[#allocation14 + $0xff0] sm:$0xff]  ;;  %v2076_v47 = vld [vmem:[#allocation14 + $0xf8] sm:$0xff] }
 0x3d4   :  { %v8455_v16 = vcombine.high %v2551_v53, %v2555_v54  ;;  %v2547_v4 = vld [vmem:[#allocation14 + $0xfb0] sm:$0xff]  ;;  %v8454_v0 = vcombine.low %v2551_v53, %v2555_v54  ;;  %v2064_v54 = vld [vmem:[#allocation14 + $0x98] sm:$0xff] }
 0x3d5   :  { %5590 = vmatpush2.bf16.msra.mxu0 %v8310_v1  ;;  %5615 = vmatpush1.bf16.msra.mxu1 %v8374_v3  ;;  %v8009_v1 = vcombine.high %v2104_v9, %v2108_v56  ;;  %v2543_v3 = vld [vmem:[#allocation14 + $0xf90] sm:$0xff]  ;;  %v2068_v9 = vld [vmem:[#allocation14 + $0xb8] sm:$0xff] }
 0x3d6   :  { %5591 = vmatprep.subr.bf16.mxu0 %v8303_v12  ;;  %5616 = vmatprep.subr.bf16.mxu1 %v8367_v7  ;;  %v2096_v12 = vld [vmem:[#allocation14 + $0x198] sm:$0xff]  ;;  %v8447_v5 = vcombine.high %v2543_v3, %v2547_v4  ;;  %v8446_v23 = vcombine.low %v2543_v3, %v2547_v4  ;;  %v2515_v53 = vld [vmem:[#allocation14 + $0xeb0] sm:$0xff] }
 0x3d7   :  { %v2100_v7 = vld [vmem:[#allocation14 + $0x1b8] sm:$0xff]  ;;  %v2507_v3 = vld [vmem:[#allocation14 + $0xe70] sm:$0xff] }
 0x3d8   :  { %v8000_v61 = vcombine.low %v2096_v12, %v2100_v7  ;;  %v2056_v4 = vld [vmem:[#allocation14 + $0x58] sm:$0xff] }
 0x3d9   :  { %5592 = vmatpush2.bf16.msra.mxu0 %v8302_v62  ;;  %5617 = vmatpush1.bf16.msra.mxu1 %v8366_v18  ;;  %v8001_v62 = vcombine.high %v2096_v12, %v2100_v7  ;;  %v2539_v18 = vld [vmem:[#allocation14 + $0xf70] sm:$0xff]  ;;  %v2060_v12 = vld [vmem:[#allocation14 + $0x78] sm:$0xff] }
 0x3da   :  { %5593 = vmatprep.subr.bf16.mxu0 %v8295_v19  ;;  %5618 = vmatprep.subr.bf16.mxu1 %v8359_v20  ;;  %v2088_v19 = vld [vmem:[#allocation14 + $0x158] sm:$0xff]  ;;  %v8438_v17 = vcombine.low %v2535_v15, %v2539_v18 }
 0x3db   :  { %v2092_v20 = vld [vmem:[#allocation14 + $0x178] sm:$0xff] }
 0x3dd   :  { %5594 = vmatpush2.bf16.msra.mxu0 %v8294_v24  ;;  %5619 = vmatpush1.bf16.msra.mxu1 %v8358_v26  ;;  %v8439_v24 = vcombine.high %v2535_v15, %v2539_v18  ;;  %v7993_v26 = vcombine.high %v2088_v19, %v2092_v20  ;;  %v2495_v15 = vld [vmem:[#allocation14 + $0xe10] sm:$0xff]  ;;  %v2048_v18 = vld [vmem:[#allocation14 + $0x18] sm:$0xff] }
 0x3de   :  { %5595 = vmatprep.subr.bf16.mxu0 %v8287_v46  ;;  %5620 = vmatprep.subr.bf16.mxu1 %v8351_v29  ;;  %v2527_v46 = vld [vmem:[#allocation14 + $0xf10] sm:$0xff] }
 0x3df   :  { %v2531_v29 = vld [vmem:[#allocation14 + $0xf30] sm:$0xff] }
 0x3e0   :  { %v8430_v48 = vcombine.low %v2527_v46, %v2531_v29 }
 0x3e1   :  { %5596 = vmatpush2.bf16.msra.mxu0 %v8286_v39  ;;  %5621 = vmatpush1.bf16.msra.mxu1 %v8350_v41  ;;  %v7992_v39 = vcombine.low %v2088_v19, %v2092_v20  ;;  %v2052_v19 = vld [vmem:[#allocation14 + $0x38] sm:$0xff] }
 0x3e2   :  { %5597 = vmatprep.subr.bf16.mxu0 %v8279_v42  ;;  %5622 = vmatprep.subr.bf16.mxu1 %v8343_v44  ;;  %v8431_v42 = vcombine.high %v2527_v46, %v2531_v29  ;;  %v2519_v44 = vld [vmem:[#allocation14 + $0xed0] sm:$0xff]  ;;  %v2172_v46 = vld [vmem:[#allocation14 + $0x3f8] sm:$0xff] }
 0x3e3   :  { %v8422_v56 = vcombine.low %v2519_v44, %v2523_v49  ;;  %v2232_v29 = vld [vmem:[#allocation14 + $0x5d8] sm:$0xff] }
 0x3e5   :  { %5598 = vmatpush2.bf16.msra.mxu0 %v8278_v6  ;;  %5623 = vmatpush1.bf16.msra.mxu1 %v8342_v32  ;;  %v7984_v6 = vcombine.low %v2080_v36, %v2084_v37  ;;  %v8423_v32 = vcombine.high %v2519_v44, %v2523_v49  ;;  %v2224_v44 = vld [vmem:[#allocation14 + $0x598] sm:$0xff] }
 0x3e6   :  { %5599 = vmatprep.subr.bf16.mxu0 %v8271_v57  ;;  %5624 = vmatprep.subr.bf16.mxu1 %v8335_v52  ;;  %v7977_v57 = vcombine.high %v2072_v35, %v2076_v47  ;;  %v2511_v52 = vld [vmem:[#allocation14 + $0xe90] sm:$0xff]  ;;  %v2228_v49 = vld [vmem:[#allocation14 + $0x5b8] sm:$0xff] }
 0x3e7   :  { %v8414_v7 = vcombine.low %v2511_v52, %v2515_v53 }
 0x3e9   :  { %5600 = vmatpush2.bf16.msra.mxu0 %v8270_v60  ;;  %5625 = vmatpush1.bf16.msra.mxu1 %v8334_v58  ;;  %v7976_v60 = vcombine.low %v2072_v35, %v2076_v47  ;;  %v8415_v58 = vcombine.high %v2511_v52, %v2515_v53  ;;  %v2574_v35 = vrot.slane %v10292_v45, %v10238_v8  ;;  %v2156_v53 = vld [vmem:[#allocation14 + $0x378] sm:$0xff] }
 0x3ea   :  { %5626 = vmatprep.subr.bf16.mxu1 %v8455_v16  ;;  %5651 = vmatprep.subr.bf16.mxu0 %v8009_v1  ;;  %v7969_v16 = vcombine.high %v2064_v54, %v2068_v9  ;;  %v2503_v1 = vld [vmem:[#allocation14 + $0xe50] sm:$0xff]  ;;  %v8129_v52 = vcombine.high %v2224_v44, %v2228_v49 }
 0x3eb   :  { %v8406_v20 = vcombine.low %v2503_v1, %v2507_v3 }
 0x3ec   :  { %v10322_v22 = vpop.f32.mrf.mxu0  ;;  %5602 = vmatmul.mubr.bf16.vlgmr.msra.gmra.mxu0 %v10273_v25 }
 0x3ed   :  { %5627 = vmatpush2.bf16.msra.mxu1 %v8454_v0  ;;  %5652 = vmatpush1.bf16.msra.mxu0 %v8008_v14  ;;  %v7968_v0 = vcombine.low %v2064_v54, %v2068_v9  ;;  %v8407_v14 = vcombine.high %v2503_v1, %v2507_v3  ;;  %v2216_v54 = vld [vmem:[#allocation14 + $0x558] sm:$0xff] }
 0x3ee   :  { %5683 = vmatprep.mubr.bf16.mxu0 %v10214_v33  ;;  %v10326_v63 = vpop.f32.mrf.mxu0  ;;  %5628 = vmatprep.subr.bf16.mxu1 %v8447_v5  ;;  %v7985_v33 = vcombine.high %v2080_v36, %v2084_v37  ;;  %v7961_v5 = vcombine.high %v2056_v4, %v2060_v12  ;;  %v2236_v36 = vld [vmem:[#allocation14 + $0x5f8] sm:$0xff] }
 0x3ef   :  { %5653 = vmatprep.subr.bf16.mxu0 %v8001_v62  ;;  %v2499_v62 = vld [vmem:[#allocation14 + $0xe30] sm:$0xff]  ;;  %v2220_v9 = vld [vmem:[#allocation14 + $0x578] sm:$0xff] }
 0x3f0   :  { %v5361_v38 = vpop.f32.mrf.mxu0  ;;  %v8398_v37 = vcombine.low %v2495_v15, %v2499_v62  ;;  %v8121_v3 = vcombine.high %v2216_v54, %v2220_v9 }
 0x3f1   :  { %5629 = vmatpush2.bf16.msra.mxu1 %v8446_v23  ;;  %5654 = vmatpush1.bf16.msra.mxu0 %v8000_v61  ;;  %v7960_v23 = vcombine.low %v2056_v4, %v2060_v12  ;;  %v8399_v61 = vcombine.high %v2495_v15, %v2499_v62  ;;  %v7952_v38 = vcombine.low %v2048_v18, %v2052_v19  ;;  %v2144_v4 = vld [vmem:[#allocation14 + $0x318] sm:$0xff] }
 0x3f2   :  { %v5362_v41 = vpop.f32.mrf.mxu0  ;;  %5630 = vmatprep.subr.bf16.mxu1 %v8439_v24  ;;  %5655 = vmatprep.subr.bf16.mxu0 %v7993_v26  ;;  %v7953_v24 = vcombine.high %v2048_v18, %v2052_v19  ;;  %v2168_v26 = vld [vmem:[#allocation14 + $0x3d8] sm:$0xff]  ;;  %v8120_v15 = vcombine.low %v2216_v54, %v2220_v9 }
 0x3f3   :  { %v2570_v41 = vrot.slane %v10292_v45, %v10235_v2  ;;  %v8072_v47 = vcombine.low %v2168_v26, %v2172_v46  ;;  %v5360_v45 = vadd.f32 %v10326_v63, %v2574_v35  ;;  %v2136_v19 = vld [vmem:[#allocation14 + $0x2d8] sm:$0xff] }
 0x3f4   :  { %v2184_v35 = vld [vmem:[#allocation14 + $0x458] sm:$0xff] }
 0x3f5   :  { %5631 = vmatpush2.bf16.msra.mxu1 %v8438_v17  ;;  %5656 = vmatpush1.bf16.msra.mxu0 %v7992_v39  ;;  %v8073_v17 = vcombine.high %v2168_v26, %v2172_v46  ;;  %v8137_v39 = vcombine.high %v2232_v29, %v2236_v36  ;;  %v2176_v54 = vld [vmem:[#allocation14 + $0x418] sm:$0xff] }
 0x3f6   :  { %5632 = vmatprep.subr.bf16.mxu1 %v8431_v42  ;;  %5657 = vmatprep.subr.bf16.mxu0 %v7985_v33  ;;  %v2160_v42 = vld [vmem:[#allocation14 + $0x398] sm:$0xff] }
 0x3f7   :  { %v2164_v33 = vld [vmem:[#allocation14 + $0x3b8] sm:$0xff] }
 0x3f8   :  { %v2180_v9 = vld [vmem:[#allocation14 + $0x438] sm:$0xff] }
 0x3f9   :  { %5633 = vmatpush2.bf16.msra.mxu1 %v8430_v48  ;;  %5658 = vmatpush1.bf16.msra.mxu0 %v7984_v6  ;;  %v8136_v48 = vcombine.low %v2232_v29, %v2236_v36  ;;  %v8065_v6 = vcombine.high %v2160_v42, %v2164_v33  ;;  %v2128_v36 = vld [vmem:[#allocation14 + $0x298] sm:$0xff] }
 0x3fa   :  { %5634 = vmatprep.subr.bf16.mxu1 %v8423_v32  ;;  %5659 = vmatprep.subr.bf16.mxu0 %v7977_v57  ;;  %v2152_v32 = vld [vmem:[#allocation14 + $0x358] sm:$0xff]  ;;  %v5358_v57 = vadd.f32 %v10322_v22, %v2570_v41 }
 0x3fb   :  { %v8057_v22 = vcombine.high %v2152_v32, %v2156_v53  ;;  %v8056_v63 = vcombine.low %v2152_v32, %v2156_v53  ;;  %v2116_v53 = vld [vmem:[#allocation14 + $0x238] sm:$0xff] }
 0x3fd   :  { %5635 = vmatpush2.bf16.msra.mxu1 %v8422_v56  ;;  %5660 = vmatpush1.bf16.msra.mxu0 %v7976_v60  ;;  %v8064_v60 = vcombine.low %v2160_v42, %v2164_v33 }
 0x3fe   :  { %5636 = vmatprep.subr.bf16.mxu1 %v8415_v58  ;;  %5661 = vmatprep.subr.bf16.mxu0 %v7969_v16  ;;  %v8128_v16 = vcombine.low %v2224_v44, %v2228_v49  ;;  %v2120_v44 = vld [vmem:[#allocation14 + $0x258] sm:$0xff] }
 0x3ff   :  { %v2124_v49 = vld [vmem:[#allocation14 + $0x278] sm:$0xff] }
 0x400   :  { %v8025_v32 = vcombine.high %v2120_v44, %v2124_v49 }
 0x401   :  { %5637 = vmatpush2.bf16.msra.mxu1 %v8414_v7  ;;  %5662 = vmatpush1.bf16.msra.mxu0 %v7968_v0  ;;  %v2148_v7 = vld [vmem:[#allocation14 + $0x338] sm:$0xff] }
 0x402   :  { %5638 = vmatprep.subr.bf16.mxu1 %v8407_v14  ;;  %5663 = vmatprep.subr.bf16.mxu0 %v7961_v5  ;;  %v2208_v0 = vld [vmem:[#allocation14 + $0x518] sm:$0xff] }
 0x403   :  { %v2212_v14 = vld [vmem:[#allocation14 + $0x538] sm:$0xff] }
 0x404   :  { %v8113_v18 = vcombine.high %v2208_v0, %v2212_v14  ;;  %v8112_v26 = vcombine.low %v2208_v0, %v2212_v14  ;;  %v8080_v0 = vcombine.low %v2176_v54, %v2180_v9 }
 0x405   :  { %5639 = vmatpush2.bf16.msra.mxu1 %v8406_v20  ;;  %5664 = vmatpush1.bf16.msra.mxu0 %v7960_v23  ;;  %v2140_v20 = vld [vmem:[#allocation14 + $0x2f8] sm:$0xff] }
 0x406   :  { %5640 = vmatprep.subr.bf16.mxu1 %v8399_v61  ;;  %5665 = vmatprep.subr.bf16.mxu0 %v7953_v24  ;;  %v2200_v23 = vld [vmem:[#allocation14 + $0x4d8] sm:$0xff]  ;;  %v8048_v24 = vcombine.low %v2144_v4, %v2148_v7  ;;  %v8041_v46 = vcombine.high %v2136_v19, %v2140_v20 }
 0x407   :  { %v2204_v61 = vld [vmem:[#allocation14 + $0x4f8] sm:$0xff] }
 0x408   :  { %v8105_v29 = vcombine.high %v2200_v23, %v2204_v61  ;;  %v8104_v41 = vcombine.low %v2200_v23, %v2204_v61  ;;  %v2280_v23 = vld [vmem:[#allocation14 + $0x758] sm:$0xff] }
 0x409   :  { %5641 = vmatpush2.bf16.msra.mxu1 %v8398_v37  ;;  %5666 = vmatpush1.bf16.msra.mxu0 %v7952_v38  ;;  %v2132_v37 = vld [vmem:[#allocation14 + $0x2b8] sm:$0xff] }
 0x40a   :  { %5667 = vmatprep.subr.bf16.mxu0 %v8073_v17  ;;  %5692 = vmatprep.subr.bf16.mxu1 %v8137_v39  ;;  %v2192_v38 = vld [vmem:[#allocation14 + $0x498] sm:$0xff]  ;;  %v8040_v39 = vcombine.low %v2136_v19, %v2140_v20  ;;  %v8033_v42 = vcombine.high %v2128_v36, %v2132_v37 }
 0x40b   :  { %v2196_v17 = vld [vmem:[#allocation14 + $0x4b8] sm:$0xff] }
 0x40c   :  { %v5398_v56 = vpop.f32.mrf.mxu1  ;;  %5643 = vmatmul.mubr.bf16.vlgmr.msra.gmra.mxu1 %v10278_v51  ;;  %v8097_v33 = vcombine.high %v2192_v38, %v2196_v17 }
 0x40d   :  { %v10335_v58 = vadd.f32 %v5398_v56, %v5358_v57  ;;  %5668 = vmatpush2.bf16.msra.mxu0 %v8072_v47  ;;  %5693 = vmatpush1.bf16.msra.mxu1 %v8136_v48  ;;  %v2188_v47 = vld [vmem:[#allocation14 + $0x478] sm:$0xff]  ;;  %v8032_v48 = vcombine.low %v2128_v36, %v2132_v37  ;;  %v8024_v56 = vcombine.low %v2120_v44, %v2124_v49 }
 0x40e   :  { %5724 = vmatprep.mubr.bf16.mxu1 %v10250_v30  ;;  %v5400_v1 = vpop.f32.mrf.mxu1  ;;  %5669 = vmatprep.subr.bf16.mxu0 %v8065_v6  ;;  %v8049_v30 = vcombine.high %v2144_v4, %v2148_v7  ;;  %v8096_v6 = vcombine.low %v2192_v38, %v2196_v17  ;;  %v8089_v57 = vcombine.high %v2184_v35, %v2188_v47  ;;  %v2364_v4 = vld [vmem:[#allocation14 + $0x9f8] sm:$0xff] }
 0x40f   :  { %v10338_v12 = vadd.f32 %v5400_v1, %v5360_v45  ;;  %5694 = vmatprep.subr.bf16.mxu1 %v8129_v52  ;;  %v2112_v52 = vld [vmem:[#allocation14 + $0x218] sm:$0xff] }
 0x410   :  { %v5402_v5 = vpop.f32.mrf.mxu1  ;;  %v8017_v45 = vcombine.high %v2112_v52, %v2116_v53  ;;  %v2296_v1 = vld [vmem:[#allocation14 + $0x7d8] sm:$0xff]  ;;  %v8016_v7 = vcombine.low %v2112_v52, %v2116_v53 }
 0x411   :  { %5670 = vmatpush2.bf16.msra.mxu0 %v8064_v60  ;;  %5695 = vmatpush1.bf16.msra.mxu1 %v8128_v16  ;;  %v8088_v60 = vcombine.low %v2184_v35, %v2188_v47  ;;  %v8081_v16 = vcombine.high %v2176_v54, %v2180_v9  ;;  %v2276_v44 = vld [vmem:[#allocation14 + $0x738] sm:$0xff] }
 0x412   :  { %v5403_v62 = vpop.f32.mrf.mxu1  ;;  %5671 = vmatprep.subr.bf16.mxu0 %v8057_v22  ;;  %5696 = vmatprep.subr.bf16.mxu1 %v8121_v3  ;;  %v2300_v22 = vld [vmem:[#allocation14 + $0x7f8] sm:$0xff] }
 0x413   :  { %v2360_v3 = vld [vmem:[#allocation14 + $0x9d8] sm:$0xff]  ;;  %v8201_v14 = vcombine.high %v2296_v1, %v2300_v22 }
 0x414   :  { %v8265_v5 = vcombine.high %v2360_v3, %v2364_v4  ;;  %v2352_v62 = vld [vmem:[#allocation14 + $0x998] sm:$0xff]  ;;  %v8264_v19 = vcombine.low %v2360_v3, %v2364_v4 }
 0x415   :  { %5672 = vmatpush2.bf16.msra.mxu0 %v8056_v63  ;;  %5697 = vmatpush1.bf16.msra.mxu1 %v8120_v15  ;;  %v2288_v63 = vld [vmem:[#allocation14 + $0x798] sm:$0xff] }
 0x416   :  { %5673 = vmatprep.subr.bf16.mxu0 %v8049_v30  ;;  %5698 = vmatprep.subr.bf16.mxu1 %v8113_v18  ;;  %v2292_v15 = vld [vmem:[#allocation14 + $0x7b8] sm:$0xff]  ;;  %v8200_v18 = vcombine.low %v2296_v1, %v2300_v22 }
 0x417   :  { %v2356_v30 = vld [vmem:[#allocation14 + $0x9b8] sm:$0xff]  ;;  %v8193_v20 = vcombine.high %v2288_v63, %v2292_v15  ;;  %v8192_v37 = vcombine.low %v2288_v63, %v2292_v15 }
 0x418   :  { %v8257_v61 = vcombine.high %v2352_v62, %v2356_v30  ;;  %v8256_v38 = vcombine.low %v2352_v62, %v2356_v30  ;;  %v2340_v49 = vld [vmem:[#allocation14 + $0x938] sm:$0xff] }
 0x419   :  { %5674 = vmatpush2.bf16.msra.mxu0 %v8048_v24  ;;  %5699 = vmatpush1.bf16.msra.mxu1 %v8112_v26  ;;  %v2284_v24 = vld [vmem:[#allocation14 + $0x778] sm:$0xff] }
 0x41a   :  { %5675 = vmatprep.subr.bf16.mxu0 %v8041_v46  ;;  %5700 = vmatprep.subr.bf16.mxu1 %v8105_v29  ;;  %v2344_v26 = vld [vmem:[#allocation14 + $0x958] sm:$0xff]  ;;  %v8184_v35 = vcombine.low %v2280_v23, %v2284_v24 }
 0x41b   :  { %v2348_v46 = vld [vmem:[#allocation14 + $0x978] sm:$0xff] }
 0x41c   :  { %v8248_v47 = vcombine.low %v2344_v26, %v2348_v46  ;;  %v2328_v52 = vld [vmem:[#allocation14 + $0x8d8] sm:$0xff] }
 0x41d   :  { %5676 = vmatpush2.bf16.msra.mxu0 %v8040_v39  ;;  %5701 = vmatpush1.bf16.msra.mxu1 %v8104_v41  ;;  %v8185_v39 = vcombine.high %v2280_v23, %v2284_v24  ;;  %v8249_v41 = vcombine.high %v2344_v26, %v2348_v46  ;;  %v2332_v53 = vld [vmem:[#allocation14 + $0x8f8] sm:$0xff] }
 0x41e   :  { %5677 = vmatprep.subr.bf16.mxu0 %v8033_v42  ;;  %5702 = vmatprep.subr.bf16.mxu1 %v8097_v33  ;;  %v2272_v42 = vld [vmem:[#allocation14 + $0x718] sm:$0xff]  ;;  %v8232_v3 = vcombine.low %v2328_v52, %v2332_v53 }
 0x41f   :  { %v2324_v1 = vld [vmem:[#allocation14 + $0x8b8] sm:$0xff] }
 0x420   :  { %v2316_v63 = vld [vmem:[#allocation14 + $0x878] sm:$0xff] }
 0x421   :  { %5678 = vmatpush2.bf16.msra.mxu0 %v8032_v48  ;;  %5703 = vmatpush1.bf16.msra.mxu1 %v8096_v6  ;;  %v2304_v23 = vld [vmem:[#allocation14 + $0x818] sm:$0xff] }
 0x422   :  { %5679 = vmatprep.subr.bf16.mxu0 %v8025_v32  ;;  %5704 = vmatprep.subr.bf16.mxu1 %v8089_v57  ;;  %v2264_v32 = vld [vmem:[#allocation14 + $0x6d8] sm:$0xff] }
 0x423   :  { %v2268_v57 = vld [vmem:[#allocation14 + $0x6f8] sm:$0xff] }
 0x424   :  { %v8169_v9 = vcombine.high %v2264_v32, %v2268_v57  ;;  %v8168_v22 = vcombine.low %v2264_v32, %v2268_v57  ;;  %v2408_v32 = vld [vmem:[#allocation14 + $0xb58] sm:$0xff] }
 0x425   :  { %5680 = vmatpush2.bf16.msra.mxu0 %v8024_v56  ;;  %5705 = vmatpush1.bf16.msra.mxu1 %v8088_v60  ;;  %v8233_v56 = vcombine.high %v2328_v52, %v2332_v53  ;;  %v2256_v60 = vld [vmem:[#allocation14 + $0x698] sm:$0xff] }
 0x426   :  { %5681 = vmatprep.subr.bf16.mxu0 %v8017_v45  ;;  %5706 = vmatprep.subr.bf16.mxu1 %v8081_v16  ;;  %v2260_v45 = vld [vmem:[#allocation14 + $0x6b8] sm:$0xff] }
 0x427   :  { %v2320_v16 = vld [vmem:[#allocation14 + $0x898] sm:$0xff]  ;;  %v8161_v4 = vcombine.high %v2256_v60, %v2260_v45  ;;  %v8160_v15 = vcombine.low %v2256_v60, %v2260_v45 }
 0x428   :  { %v8224_v62 = vcombine.low %v2320_v16, %v2324_v1  ;;  %v2412_v52 = vld [vmem:[#allocation14 + $0xb78] sm:$0xff] }
 0x429   :  { %5682 = vmatpush2.bf16.msra.mxu0 %v8016_v7  ;;  %5707 = vmatpush1.bf16.msra.mxu1 %v8080_v0  ;;  %v8225_v7 = vcombine.high %v2320_v16, %v2324_v1  ;;  %v2248_v0 = vld [vmem:[#allocation14 + $0x658] sm:$0xff]  ;;  %v8313_v16 = vcombine.high %v2408_v32, %v2412_v52 }
 0x42a   :  { %5708 = vmatprep.subr.bf16.mxu1 %v8201_v14  ;;  %5733 = vmatprep.subr.bf16.mxu0 %v8265_v5  ;;  %v2252_v14 = vld [vmem:[#allocation14 + $0x678] sm:$0xff] }
 0x42b   :  { %v2312_v5 = vld [vmem:[#allocation14 + $0x858] sm:$0xff]  ;;  %v8153_v30 = vcombine.high %v2248_v0, %v2252_v14  ;;  %v8152_v24 = vcombine.low %v2248_v0, %v2252_v14 }
 0x42c   :  { %v5439_v29 = vpop.f32.mrf.mxu0  ;;  %5684 = vmatmul.mubr.bf16.vlgmr.msra.gmra.mxu0 %v10216_v34  ;;  %v2336_v34 = vld [vmem:[#allocation14 + $0x918] sm:$0xff]  ;;  %v8216_v26 = vcombine.low %v2312_v5, %v2316_v63 }
 0x42d   :  { %v10342_v36 = vadd.f32 %v5439_v29, %v10335_v58  ;;  %5709 = vmatpush2.bf16.msra.mxu1 %v8200_v18  ;;  %5734 = vmatpush1.bf16.msra.mxu0 %v8264_v19  ;;  %v8241_v6 = vcombine.high %v2336_v34, %v2340_v49  ;;  %v8240_v54 = vcombine.low %v2336_v34, %v2340_v49  ;;  %v2240_v19 = vld [vmem:[#allocation14 + $0x618] sm:$0xff] }
 0x42e   :  { %5765 = vmatprep.mubr.bf16.mxu0 %v10231_v59  ;;  %v5441_v17 = vpop.f32.mrf.mxu0  ;;  %5710 = vmatprep.subr.bf16.mxu1 %v8193_v20  ;;  %v8177_v59 = vcombine.high %v2272_v42, %v2276_v44  ;;  %v8217_v18 = vcombine.high %v2312_v5, %v2316_v63  ;;  %v2244_v20 = vld [vmem:[#allocation14 + $0x638] sm:$0xff] }
 0x42f   :  { %v10346_v33 = vadd.f32 %v5441_v17, %v10338_v12  ;;  %5735 = vmatprep.subr.bf16.mxu0 %v8257_v61  ;;  %v8176_v12 = vcombine.low %v2272_v42, %v2276_v44  ;;  %v2308_v61 = vld [vmem:[#allocation14 + $0x838] sm:$0xff]  ;;  %v8145_v46 = vcombine.high %v2240_v19, %v2244_v20 }
 0x430   :  { %v5443_v58 = vpop.f32.mrf.mxu0  ;;  %v8209_v29 = vcombine.high %v2304_v23, %v2308_v61  ;;  %v2488_v17 = vld [vmem:[#allocation14 + $0xdd8] sm:$0xff]  ;;  %v8208_v42 = vcombine.low %v2304_v23, %v2308_v61 }
 0x431   :  { %5711 = vmatpush2.bf16.msra.mxu1 %v8192_v37  ;;  %5736 = vmatpush1.bf16.msra.mxu0 %v8256_v38  ;;  %v2424_v37 = vld [vmem:[#allocation14 + $0xbd8] sm:$0xff] }
 0x432   :  { %v5444_v48 = vpop.f32.mrf.mxu0  ;;  %5712 = vmatprep.subr.bf16.mxu1 %v8185_v39  ;;  %5737 = vmatprep.subr.bf16.mxu0 %v8249_v41  ;;  %v2428_v38 = vld [vmem:[#allocation14 + $0xbf8] sm:$0xff]  ;;  %v8144_v41 = vcombine.low %v2240_v19, %v2244_v20 }
 0x433   :  { %v2492_v39 = vld [vmem:[#allocation14 + $0xdf8] sm:$0xff]  ;;  %v8329_v44 = vcombine.high %v2424_v37, %v2428_v38  ;;  %v8328_v48 = vcombine.low %v2424_v37, %v2428_v38 }
 0x434   :  { %v8393_v34 = vcombine.high %v2488_v17, %v2492_v39  ;;  %v2416_v49 = vld [vmem:[#allocation14 + $0xb98] sm:$0xff] }
 0x435   :  { %5713 = vmatpush2.bf16.msra.mxu1 %v8184_v35  ;;  %5738 = vmatpush1.bf16.msra.mxu0 %v8248_v47  ;;  %v2420_v58 = vld [vmem:[#allocation14 + $0xbb8] sm:$0xff] }
 0x436   :  { %5714 = vmatprep.subr.bf16.mxu1 %v8177_v59  ;;  %5739 = vmatprep.subr.bf16.mxu0 %v8241_v6  ;;  %v2480_v35 = vld [vmem:[#allocation14 + $0xd98] sm:$0xff]  ;;  %v8392_v59 = vcombine.low %v2488_v17, %v2492_v39  ;;  %v8321_v6 = vcombine.high %v2416_v49, %v2420_v58 }
 0x437   :  { %v2484_v47 = vld [vmem:[#allocation14 + $0xdb8] sm:$0xff] }
 0x438   :  { %v8385_v57 = vcombine.high %v2480_v35, %v2484_v47  ;;  %v2472_v53 = vld [vmem:[#allocation14 + $0xd58] sm:$0xff]  ;;  %v8384_v60 = vcombine.low %v2480_v35, %v2484_v47 }
 0x439   :  { %5715 = vmatpush2.bf16.msra.mxu1 %v8176_v12  ;;  %5740 = vmatpush1.bf16.msra.mxu0 %v8240_v54  ;;  %v2476_v12 = vld [vmem:[#allocation14 + $0xd78] sm:$0xff] }
 0x43a   :  { %5716 = vmatprep.subr.bf16.mxu1 %v8169_v9  ;;  %5741 = vmatprep.subr.bf16.mxu0 %v8233_v56  ;;  %v8320_v56 = vcombine.low %v2416_v49, %v2420_v58  ;;  %v8377_v1 = vcombine.high %v2472_v53, %v2476_v12  ;;  %v8376_v0 = vcombine.low %v2472_v53, %v2476_v12  ;;  %v2392_v63 = vld [vmem:[#allocation14 + $0xad8] sm:$0xff] }
 0x43b   :  { %v2384_v61 = vld [vmem:[#allocation14 + $0xa98] sm:$0xff] }
 0x43c   :  { %v2376_v39 = vld [vmem:[#allocation14 + $0xa58] sm:$0xff] }
 0x43d   :  { %5717 = vmatpush2.bf16.msra.mxu1 %v8168_v22  ;;  %5742 = vmatpush1.bf16.msra.mxu0 %v8232_v3  ;;  %v2400_v22 = vld [vmem:[#allocation14 + $0xb18] sm:$0xff] }
 0x43e   :  { %5718 = vmatprep.subr.bf16.mxu1 %v8161_v4  ;;  %5743 = vmatprep.subr.bf16.mxu0 %v8225_v7  ;;  %v2404_v3 = vld [vmem:[#allocation14 + $0xb38] sm:$0xff] }
 0x43f   :  { %v2464_v4 = vld [vmem:[#allocation14 + $0xd18] sm:$0xff]  ;;  %v8305_v5 = vcombine.high %v2400_v22, %v2404_v3 }
 0x440   :  { %v2468_v7 = vld [vmem:[#allocation14 + $0xd38] sm:$0xff] }
 0x441   :  { %5719 = vmatpush2.bf16.msra.mxu1 %v8160_v15  ;;  %5744 = vmatpush1.bf16.msra.mxu0 %v8224_v62  ;;  %v2396_v15 = vld [vmem:[#allocation14 + $0xaf8] sm:$0xff]  ;;  %v8368_v19 = vcombine.low %v2464_v4, %v2468_v7 }
 0x442   :  { %5720 = vmatprep.subr.bf16.mxu1 %v8153_v30  ;;  %5745 = vmatprep.subr.bf16.mxu0 %v8217_v18  ;;  %v2456_v62 = vld [vmem:[#allocation14 + $0xcd8] sm:$0xff]  ;;  %v8304_v18 = vcombine.low %v2400_v22, %v2404_v3  ;;  %v8297_v20 = vcombine.high %v2392_v63, %v2396_v15 }
 0x443   :  { %v2460_v30 = vld [vmem:[#allocation14 + $0xcf8] sm:$0xff] }
 0x444   :  { %v8361_v23 = vcombine.high %v2456_v62, %v2460_v30  ;;  %v8360_v37 = vcombine.low %v2456_v62, %v2460_v30  ;;  %v2368_v47 = vld [vmem:[#allocation14 + $0xa18] sm:$0xff] }
 0x445   :  { %5721 = vmatpush2.bf16.msra.mxu1 %v8152_v24  ;;  %5746 = vmatpush1.bf16.msra.mxu0 %v8216_v26  ;;  %v2388_v24 = vld [vmem:[#allocation14 + $0xab8] sm:$0xff] }
 0x446   :  { %5722 = vmatprep.subr.bf16.mxu1 %v8145_v46  ;;  %5747 = vmatprep.subr.bf16.mxu0 %v8209_v29  ;;  %v2448_v26 = vld [vmem:[#allocation14 + $0xc98] sm:$0xff]  ;;  %v8296_v29 = vcombine.low %v2392_v63, %v2396_v15  ;;  %v8289_v38 = vcombine.high %v2384_v61, %v2388_v24 }
 0x447   :  { %v2452_v46 = vld [vmem:[#allocation14 + $0xcb8] sm:$0xff] }
 0x448   :  { %v8353_v17 = vcombine.high %v2448_v26, %v2452_v46  ;;  %v8352_v49 = vcombine.low %v2448_v26, %v2452_v46  ;;  %v2552_v12 = vld [vmem:[#allocation14 + $0xfd8] sm:$0xff] }
 0x449   :  { %5723 = vmatpush2.bf16.msra.mxu1 %v8144_v41  ;;  %5748 = vmatpush1.bf16.msra.mxu0 %v8208_v42  ;;  %v2380_v41 = vld [vmem:[#allocation14 + $0xa78] sm:$0xff] }
 0x44a   :  { %5749 = vmatprep.subr.bf16.mxu0 %v8329_v44  ;;  %5774 = vmatprep.subr.bf16.mxu1 %v8393_v34  ;;  %v2440_v42 = vld [vmem:[#allocation14 + $0xc58] sm:$0xff]  ;;  %v8288_v34 = vcombine.low %v2384_v61, %v2388_v24  ;;  %v8281_v58 = vcombine.high %v2376_v39, %v2380_v41 }
 0x44b   :  { %v2444_v44 = vld [vmem:[#allocation14 + $0xc78] sm:$0xff] }
 0x44c   :  { %v5480_v54 = vpop.f32.mrf.mxu1  ;;  %5725 = vmatmul.mubr.bf16.vlgmr.msra.gmra.mxu1 %v10255_v50  ;;  %v8345_v35 = vcombine.high %v2440_v42, %v2444_v44  ;;  %v2544_v22 = vld [vmem:[#allocation14 + $0xf98] sm:$0xff] }
 0x44d   :  { %v10350_v9 = vadd.f32 %v5480_v54, %v10342_v36  ;;  %5750 = vmatpush2.bf16.msra.mxu0 %v8328_v48  ;;  %5775 = vmatpush1.bf16.msra.mxu1 %v8392_v59  ;;  %v8312_v36 = vcombine.low %v2408_v32, %v2412_v52  ;;  %v2372_v48 = vld [vmem:[#allocation14 + $0xa38] sm:$0xff]  ;;  %v8280_v32 = vcombine.low %v2376_v39, %v2380_v41 }
 0x44e   :  { %5806 = vmatprep.mubr.bf16.mxu1 %v10264_v21  ;;  %v10353_v45 = vpop.f32.mrf.mxu1  ;;  %5751 = vmatprep.subr.bf16.mxu0 %v8321_v6  ;;  %v8369_v21 = vcombine.high %v2464_v4, %v2468_v7  ;;  %v2432_v59 = vld [vmem:[#allocation14 + $0xc18] sm:$0xff]  ;;  %v8273_v52 = vcombine.high %v2368_v47, %v2372_v48  ;;  %v5816_v4 = vmax.f32 %v10320_v55, 0.0 }
 0x44f   :  { %5776 = vmatprep.subr.bf16.mxu1 %v8385_v57  ;;  %v2436_v6 = vld [vmem:[#allocation14 + $0xc38] sm:$0xff]  ;;  %v8344_v57 = vcombine.low %v2440_v42, %v2444_v44 }
 0x450   :  { %v5484_v50 = vpop.f32.mrf.mxu1  ;;  %v8337_v53 = vcombine.high %v2432_v59, %v2436_v6  ;;  %v2556_v54 = vld [vmem:[#allocation14 + $0xff8] sm:$0xff] }
 0x451   :  { %5752 = vmatpush2.bf16.msra.mxu0 %v8320_v56  ;;  %5777 = vmatpush1.bf16.msra.mxu1 %v8384_v60  ;;  %v8272_v56 = vcombine.low %v2368_v47, %v2372_v48  ;;  %v8336_v60 = vcombine.low %v2432_v59, %v2436_v6  ;;  %v2548_v3 = vld [vmem:[#allocation14 + $0xfb8] sm:$0xff]  ;;  %v8456_v7 = vcombine.low %v2552_v12, %v2556_v54 }
 0x452   :  { %v5485_v14 = vpop.f32.mrf.mxu1  ;;  %5753 = vmatprep.subr.bf16.mxu0 %v8313_v16  ;;  %5778 = vmatprep.subr.bf16.mxu1 %v8377_v1  ;;  %v8457_v16 = vcombine.high %v2552_v12, %v2556_v54  ;;  %v9022_v1 = vld [vmem:[#allocation17 + $0xe4] ss:$16 sps:$4 sm:$0xff]   ;;  %v9020_v50 = vld [vmem:[#allocation17 + $0xe0] ss:$16 sps:$4 sm:$0xff]   ;;  %v8448_v15 = vcombine.low %v2544_v22, %v2548_v3 }
 0x453   :  { %v2536_v14 = vld [vmem:[#allocation14 + $0xf58] sm:$0xff] }
 0x454   :  { %v9023_v55 = vld [vmem:[#allocation17 + $0xc0] ss:$16 sps:$4 sm:$0xff]   ;;  %v9031_v46 = vld [vmem:[#allocation17 + $0x84] ss:$16 sps:$4 sm:$0xff]  }
 0x455   :  { %5754 = vmatpush2.bf16.msra.mxu0 %v8312_v36  ;;  %5779 = vmatpush1.bf16.msra.mxu1 %v8376_v0  ;;  %v8449_v36 = vcombine.high %v2544_v22, %v2548_v3  ;;  %v9025_v0 = vld [vmem:[#allocation17 + $0xc4] ss:$16 sps:$4 sm:$0xff]   ;;  %v9026_v24 = vld [vmem:[#allocation17 + $0xa0] ss:$16 sps:$4 sm:$0xff]  }
 0x456   :  { %5755 = vmatprep.subr.bf16.mxu0 %v8305_v5  ;;  %5780 = vmatprep.subr.bf16.mxu1 %v8369_v21  ;;  %v2540_v5 = vld [vmem:[#allocation14 + $0xf78] sm:$0xff]  ;;  %v10356_v21 = vpack.c.bf16 %v5816_v4, %v5816_v4 }
 0x457   :  { %v8441_v30 = vcombine.high %v2536_v14, %v2540_v5  ;;  %v8440_v61 = vcombine.low %v2536_v14, %v2540_v5  ;;  %v9034_v41 = vld [vmem:[#allocation17 + $0x64] ss:$16 sps:$4 sm:$0xff]   ;;  %v9035_v6 = vld [vmem:[#allocation17 + $0x40] ss:$16 sps:$4 sm:$0xff]  }
 0x458   :  { %v2512_v42 = vld [vmem:[#allocation14 + $0xe98] sm:$0xff] }
 0x459   :  { %5756 = vmatpush2.bf16.msra.mxu0 %v8304_v18  ;;  %5781 = vmatpush1.bf16.msra.mxu1 %v8368_v19  ;;  %v9028_v18 = vld [vmem:[#allocation17 + $0xa4] ss:$16 sps:$4 sm:$0xff]   ;;  %v9038_v54 = vld [vmem:[#allocation17 + $0x20] ss:$16 sps:$4 sm:$0xff]  }
 0x45a   :  { %5757 = vmatprep.subr.bf16.mxu0 %v8297_v20  ;;  %5782 = vmatprep.subr.bf16.mxu1 %v8361_v23  ;;  %v2528_v19 = vld [vmem:[#allocation14 + $0xf18] sm:$0xff] }
 0x45b   :  { %v2532_v20 = vld [vmem:[#allocation14 + $0xf38] sm:$0xff] }
 0x45c   :  { %v8433_v26 = vcombine.high %v2528_v19, %v2532_v20  ;;  %v2516_v44 = vld [vmem:[#allocation14 + $0xeb8] sm:$0xff] }
 0x45d   :  { %5758 = vmatpush2.bf16.msra.mxu0 %v8296_v29  ;;  %5783 = vmatpush1.bf16.msra.mxu1 %v8360_v37  ;;  %v2520_v29 = vld [vmem:[#allocation14 + $0xed8] sm:$0xff]  ;;  %v8416_v59 = vcombine.low %v2512_v42, %v2516_v44 }
 0x45e   :  { %5759 = vmatprep.subr.bf16.mxu0 %v8289_v38  ;;  %5784 = vmatprep.subr.bf16.mxu1 %v8353_v17  ;;  %v2524_v37 = vld [vmem:[#allocation14 + $0xef8] sm:$0xff]  ;;  %v8432_v38 = vcombine.low %v2528_v19, %v2532_v20 }
 0x45f   :  { %v9029_v17 = vld [vmem:[#allocation17 + $0x80] ss:$16 sps:$4 sm:$0xff]   ;;  %v8425_v39 = vcombine.high %v2520_v29, %v2524_v37  ;;  %v9046_v3 = vld [vmem:[#allocation17 + $0x1e4] ss:$16 sps:$4 sm:$0xff]  }
 0x460   :  { %v2504_v47 = vld [vmem:[#allocation14 + $0xe58] sm:$0xff] }
 0x461   :  { %5760 = vmatpush2.bf16.msra.mxu0 %v8288_v34  ;;  %5785 = vmatpush1.bf16.msra.mxu1 %v8352_v49  ;;  %v8424_v34 = vcombine.low %v2520_v29, %v2524_v37  ;;  %v9032_v49 = vld [vmem:[#allocation17 + $0x60] ss:$16 sps:$4 sm:$0xff]   ;;  %v9049_v4 = vld [vmem:[#allocation17 + $0x2e4] ss:$16 sps:$4 sm:$0xff]  }
 0x462   :  { %5761 = vmatprep.subr.bf16.mxu0 %v8281_v58  ;;  %5786 = vmatprep.subr.bf16.mxu1 %v8345_v35  ;;  %v8417_v58 = vcombine.high %v2512_v42, %v2516_v44  ;;  %v9037_v35 = vld [vmem:[#allocation17 + $0x44] ss:$16 sps:$4 sm:$0xff]   ;;  %v9041_v22 = vld [vmem:[#allocation17] ss:$16 sps:$4 sm:$0xff]  }
 0x463   :  { %v2508_v48 = vld [vmem:[#allocation14 + $0xe78] sm:$0xff] }
 0x464   :  { %v8408_v12 = vcombine.low %v2504_v47, %v2508_v48  ;;  %v9047_v14 = vld [vmem:[#allocation17 + $0x2e0] ss:$16 sps:$4 sm:$0xff]   ;;  %v9055_v5 = vld [vmem:[#allocation17 + $0x2c4] ss:$16 sps:$4 sm:$0xff]  }
 0x465   :  { %5762 = vmatpush2.bf16.msra.mxu0 %v8280_v32  ;;  %5787 = vmatpush1.bf16.msra.mxu1 %v8344_v57  ;;  %v8409_v32 = vcombine.high %v2504_v47, %v2508_v48  ;;  %v9040_v57 = vld [vmem:[#allocation17 + $0x24] ss:$16 sps:$4 sm:$0xff]   ;;  %v9065_v29 = vld [vmem:[#allocation17 + $0x280] ss:$16 sps:$4 sm:$0xff]  }
 0x466   :  { %5763 = vmatprep.subr.bf16.mxu0 %v8273_v52  ;;  %5788 = vmatprep.subr.bf16.mxu1 %v8337_v53  ;;  %v2496_v52 = vld [vmem:[#allocation14 + $0xe18] sm:$0xff] }
 0x467   :  { %v2500_v53 = vld [vmem:[#allocation14 + $0xe38] sm:$0xff] }
 0x468   :  { %v9058_v20 = vld [vmem:[#allocation17 + $0x1a4] ss:$16 sps:$4 sm:$0xff]   ;;  %v9074_v44 = vld [vmem:[#allocation17 + $0x140] ss:$16 sps:$4 sm:$0xff]  }
 0x469   :  { %5764 = vmatpush2.bf16.msra.mxu0 %v8272_v56  ;;  %5789 = vmatpush1.bf16.msra.mxu1 %v8336_v60  ;;  %v8401_v56 = vcombine.high %v2496_v52, %v2500_v53  ;;  %v9043_v60 = vld [vmem:[#allocation17 + $0x4] ss:$16 sps:$4 sm:$0xff]   ;;  %v9083_v47 = vld [vmem:[#allocation17 + $0x220] ss:$16 sps:$4 sm:$0xff]  }
 0x46a   :  { %5790 = vmatprep.subr.bf16.mxu1 %v8457_v16  ;;  %7389 = vmatprep.subr.bf16.mxu0 %v9022_v1  ;;  %v5483_v16 = vadd.f32 %v10353_v45, %v10346_v33  ;;  %v8400_v1 = vcombine.low %v2496_v52, %v2500_v53  ;;  %v9052_v33 = vld [vmem:[#allocation17 + $0x1c4] ss:$16 sps:$4 sm:$0xff]  }
 0x46b   :  { %v9070_v37 = vld [vmem:[#allocation17 + $0x164] ss:$16 sps:$4 sm:$0xff]  }
 0x46c   :  { %v10358_v63 = vpop.f32.mrf.mxu0  ;;  %5766 = vmatmul.mubr.bf16.vlgmr.msra.gmra.mxu0 %v10273_v25  ;;  %v9079_v42 = vld [vmem:[#allocation17 + $0x244] ss:$16 sps:$4 sm:$0xff]  }
 0x46d   :  { %5791 = vmatpush2.bf16.msra.mxu1 %v8456_v7  ;;  %7390 = vmatpush1.bf16.msra.mxu0 %v9020_v50  ;;  %v10366_v7 = vld [vmem:[#allocation16] sm:$0xff]  ;;  %v9088_v48 = vld [vmem:[#allocation17 + $0x104] ss:$16 sps:$4 sm:$0xff]  }
 0x46e   :  { %7421 = vmatprep.mubr.bf16.mxu0 %v10356_v21  ;;  %v10362_v62 = vpop.f32.mrf.mxu0  ;;  %5792 = vmatprep.subr.bf16.mxu1 %v8449_v36  ;;  %v2578_v50 = vrot.slane %v10366_v7, %v1999_v43  ;;  %v5818_v36 = vmax.f32 %v5483_v16, 0.0  ;;  %v9050_v43 = vld [vmem:[#allocation17 + $0x1c0] ss:$16 sps:$4 sm:$0xff]   ;;  %v9094_v52 = vld [vmem:[#allocation17 + $0x3e4] ss:$16 sps:$4 sm:$0xff]  }
 0x46f   :  { %7391 = vmatprep.subr.bf16.mxu0 %v9025_v0  ;;  %v9044_v0 = vld [vmem:[#allocation17 + $0x1e0] ss:$16 sps:$4 sm:$0xff]   ;;  %v9097_v53 = vld [vmem:[#allocation17 + $0x4e4] ss:$16 sps:$4 sm:$0xff]  }
 0x470   :  { %v5525_v23 = vpop.f32.mrf.mxu0  ;;  %v5522_v45 = vadd.f32 %v10358_v63, %v2578_v50  ;;  %v9103_v16 = vld [vmem:[#allocation17 + $0x4c4] ss:$16 sps:$4 sm:$0xff]  }
 0x471   :  { %5793 = vmatpush2.bf16.msra.mxu1 %v8448_v15  ;;  %7392 = vmatpush1.bf16.msra.mxu0 %v9023_v55  ;;  %v10372_v15 = vpack.c.bf16 %v5818_v36, %v5818_v36  ;;  %v9061_v23 = vld [vmem:[#allocation17 + $0x2a4] ss:$16 sps:$4 sm:$0xff]  }
 0x472   :  { %v5526_v25 = vpop.f32.mrf.mxu0  ;;  %5794 = vmatprep.subr.bf16.mxu1 %v8441_v30  ;;  %7393 = vmatprep.subr.bf16.mxu0 %v9028_v18  ;;  %v9053_v18 = vld [vmem:[#allocation17 + $0x2c0] ss:$16 sps:$4 sm:$0xff]   ;;  %v9109_v50 = vld [vmem:[#allocation17 + $0x4a4] ss:$16 sps:$4 sm:$0xff]  }
 0x473   :  { %v9064_v25 = vld [vmem:[#allocation17 + $0x184] ss:$16 sps:$4 sm:$0xff]  }
 0x475   :  { %5795 = vmatpush2.bf16.msra.mxu1 %v8440_v61  ;;  %7394 = vmatpush1.bf16.msra.mxu0 %v9026_v24  ;;  %v9056_v61 = vld [vmem:[#allocation17 + $0x1a0] ss:$16 sps:$4 sm:$0xff]  }
 0x476   :  { %5796 = vmatprep.subr.bf16.mxu1 %v8433_v26  ;;  %7395 = vmatprep.subr.bf16.mxu0 %v9031_v46  ;;  %v9059_v24 = vld [vmem:[#allocation17 + $0x2a0] ss:$16 sps:$4 sm:$0xff]   ;;  %v9067_v26 = vld [vmem:[#allocation17 + $0x284] ss:$16 sps:$4 sm:$0xff]  }
 0x477   :  { %v9062_v46 = vld [vmem:[#allocation17 + $0x180] ss:$16 sps:$4 sm:$0xff]  }
 0x479   :  { %5797 = vmatpush2.bf16.msra.mxu1 %v8432_v38  ;;  %7396 = vmatpush1.bf16.msra.mxu0 %v9029_v17  ;;  %v9073_v38 = vld [vmem:[#allocation17 + $0x264] ss:$16 sps:$4 sm:$0xff]   ;;  %v9068_v17 = vld [vmem:[#allocation17 + $0x160] ss:$16 sps:$4 sm:$0xff]  }
 0x47a   :  { %5798 = vmatprep.subr.bf16.mxu1 %v8425_v39  ;;  %7397 = vmatprep.subr.bf16.mxu0 %v9034_v41  ;;  %v9071_v39 = vld [vmem:[#allocation17 + $0x260] ss:$16 sps:$4 sm:$0xff]   ;;  %v9076_v41 = vld [vmem:[#allocation17 + $0x144] ss:$16 sps:$4 sm:$0xff]  }
 0x47d   :  { %5799 = vmatpush2.bf16.msra.mxu1 %v8424_v34  ;;  %7398 = vmatpush1.bf16.msra.mxu0 %v9032_v49  ;;  %v9077_v34 = vld [vmem:[#allocation17 + $0x240] ss:$16 sps:$4 sm:$0xff]   ;;  %v9082_v49 = vld [vmem:[#allocation17 + $0x124] ss:$16 sps:$4 sm:$0xff]  }
 0x47e   :  { %5800 = vmatprep.subr.bf16.mxu1 %v8417_v58  ;;  %7399 = vmatprep.subr.bf16.mxu0 %v9037_v35  ;;  %v9085_v58 = vld [vmem:[#allocation17 + $0x224] ss:$16 sps:$4 sm:$0xff]   ;;  %v9080_v35 = vld [vmem:[#allocation17 + $0x120] ss:$16 sps:$4 sm:$0xff]  }
 0x481   :  { %5801 = vmatpush2.bf16.msra.mxu1 %v8416_v59  ;;  %7400 = vmatpush1.bf16.msra.mxu0 %v9035_v6  ;;  %v9091_v59 = vld [vmem:[#allocation17 + $0x204] ss:$16 sps:$4 sm:$0xff]   ;;  %v9086_v6 = vld [vmem:[#allocation17 + $0x100] ss:$16 sps:$4 sm:$0xff]  }
 0x482   :  { %5802 = vmatprep.subr.bf16.mxu1 %v8409_v32  ;;  %7401 = vmatprep.subr.bf16.mxu0 %v9040_v57  ;;  %v9089_v32 = vld [vmem:[#allocation17 + $0x200] ss:$16 sps:$4 sm:$0xff]   ;;  %v5815_v57 = vmax.f32 %v10316_v28, 0.0 }
 0x483   :  { %v9098_v28 = vld [vmem:[#allocation17 + $0x3c0] ss:$16 sps:$4 sm:$0xff]  }
 0x485   :  { %5803 = vmatpush2.bf16.msra.mxu1 %v8408_v12  ;;  %7402 = vmatpush1.bf16.msra.mxu0 %v9038_v54  ;;  %v9092_v12 = vld [vmem:[#allocation17 + $0x3e0] ss:$16 sps:$4 sm:$0xff]  }
 0x486   :  { %5804 = vmatprep.subr.bf16.mxu1 %v8401_v56  ;;  %7403 = vmatprep.subr.bf16.mxu0 %v9043_v60  ;;  %v9095_v54 = vld [vmem:[#allocation17 + $0x4e0] ss:$16 sps:$4 sm:$0xff]   ;;  %v10381_v56 = vpack.c.bf16 %v5815_v57, %v5815_v57  ;;  %v9100_v60 = vld [vmem:[#allocation17 + $0x3c4] ss:$16 sps:$4 sm:$0xff]  }
 0x487   :  { %v9143_v57 = vld [vmem:[#allocation17 + $0x5c0] ss:$16 sps:$4 sm:$0xff]  }
 0x489   :  { %5805 = vmatpush2.bf16.msra.mxu1 %v8400_v1  ;;  %7404 = vmatpush1.bf16.msra.mxu0 %v9041_v22  ;;  %v9101_v22 = vld [vmem:[#allocation17 + $0x4c0] ss:$16 sps:$4 sm:$0xff]  }
 0x48a   :  { %7405 = vmatprep.subr.bf16.mxu0 %v9046_v3  ;;  %7430 = vmatprep.subr.bf16.mxu1 %v9049_v4  ;;  %v9106_v4 = vld [vmem:[#allocation17 + $0x3a4] ss:$16 sps:$4 sm:$0xff]  }
 0x48c   :  { %v5562_v55 = vpop.f32.mrf.mxu1  ;;  %5807 = vmatmul.mubr.bf16.vlgmr.msra.gmra.mxu1 %v10278_v51 }
 0x48d   :  { %v10375_v30 = vadd.f32 %v5562_v55, %v5522_v45  ;;  %7406 = vmatpush2.bf16.msra.mxu0 %v9044_v0  ;;  %7431 = vmatpush1.bf16.msra.mxu1 %v9047_v14  ;;  %v9104_v0 = vld [vmem:[#allocation17 + $0x3a0] ss:$16 sps:$4 sm:$0xff]   ;;  %v9112_v45 = vld [vmem:[#allocation17 + $0x384] ss:$16 sps:$4 sm:$0xff]  }
 0x48e   :  { %7462 = vmatprep.mubr.bf16.mxu1 %v10372_v15  ;;  %v10378_v19 = vpop.f32.mrf.mxu1  ;;  %7407 = vmatprep.subr.bf16.mxu0 %v9052_v33  ;;  %v9107_v14 = vld [vmem:[#allocation17 + $0x4a0] ss:$16 sps:$4 sm:$0xff]  }
 0x48f   :  { %7432 = vmatprep.subr.bf16.mxu1 %v9055_v5  ;;  %v9115_v5 = vld [vmem:[#allocation17 + $0x484] ss:$16 sps:$4 sm:$0xff]   ;;  %v9110_v55 = vld [vmem:[#allocation17 + $0x380] ss:$16 sps:$4 sm:$0xff]  }
 0x490   :  { %v5566_v63 = vpop.f32.mrf.mxu1 }
 0x491   :  { %7408 = vmatpush2.bf16.msra.mxu0 %v9050_v43  ;;  %7433 = vmatpush1.bf16.msra.mxu1 %v9053_v18  ;;  %v9113_v43 = vld [vmem:[#allocation17 + $0x480] ss:$16 sps:$4 sm:$0xff]   ;;  %v9118_v18 = vld [vmem:[#allocation17 + $0x364] ss:$16 sps:$4 sm:$0xff]  }
 0x492   :  { %v5567_v51 = vpop.f32.mrf.mxu1  ;;  %7409 = vmatprep.subr.bf16.mxu0 %v9058_v20  ;;  %7434 = vmatprep.subr.bf16.mxu1 %v9061_v23  ;;  %v9121_v20 = vld [vmem:[#allocation17 + $0x464] ss:$16 sps:$4 sm:$0xff]   ;;  %v9116_v23 = vld [vmem:[#allocation17 + $0x360] ss:$16 sps:$4 sm:$0xff]  }
 0x493   :  { %v9119_v63 = vld [vmem:[#allocation17 + $0x460] ss:$16 sps:$4 sm:$0xff]  }
 0x494   :  { %v9122_v51 = vld [vmem:[#allocation17 + $0x340] ss:$16 sps:$4 sm:$0xff]  }
 0x495   :  { %7410 = vmatpush2.bf16.msra.mxu0 %v9056_v61  ;;  %7435 = vmatpush1.bf16.msra.mxu1 %v9059_v24  ;;  %v9124_v61 = vld [vmem:[#allocation17 + $0x344] ss:$16 sps:$4 sm:$0xff]  }
 0x496   :  { %7411 = vmatprep.subr.bf16.mxu0 %v9064_v25  ;;  %7436 = vmatprep.subr.bf16.mxu1 %v9067_v26  ;;  %v9127_v24 = vld [vmem:[#allocation17 + $0x444] ss:$16 sps:$4 sm:$0xff]   ;;  %v9125_v25 = vld [vmem:[#allocation17 + $0x440] ss:$16 sps:$4 sm:$0xff]  }
 0x497   :  { %v9130_v26 = vld [vmem:[#allocation17 + $0x324] ss:$16 sps:$4 sm:$0xff]  }
 0x499   :  { %7412 = vmatpush2.bf16.msra.mxu0 %v9062_v46  ;;  %7437 = vmatpush1.bf16.msra.mxu1 %v9065_v29  ;;  %v9133_v46 = vld [vmem:[#allocation17 + $0x424] ss:$16 sps:$4 sm:$0xff]   ;;  %v9128_v29 = vld [vmem:[#allocation17 + $0x320] ss:$16 sps:$4 sm:$0xff]  }
 0x49a   :  { %7413 = vmatprep.subr.bf16.mxu0 %v9070_v37  ;;  %7438 = vmatprep.subr.bf16.mxu1 %v9073_v38  ;;  %v9131_v37 = vld [vmem:[#allocation17 + $0x420] ss:$16 sps:$4 sm:$0xff]   ;;  %v9136_v38 = vld [vmem:[#allocation17 + $0x304] ss:$16 sps:$4 sm:$0xff]  }
 0x49d   :  { %7414 = vmatpush2.bf16.msra.mxu0 %v9068_v17  ;;  %7439 = vmatpush1.bf16.msra.mxu1 %v9071_v39  ;;  %v9139_v17 = vld [vmem:[#allocation17 + $0x404] ss:$16 sps:$4 sm:$0xff]   ;;  %v2582_v39 = vrot.slane %v10366_v7, %v2003_v40 }
 0x49e   :  { %7415 = vmatprep.subr.bf16.mxu0 %v9076_v41  ;;  %7440 = vmatprep.subr.bf16.mxu1 %v9079_v42  ;;  %v9134_v41 = vld [vmem:[#allocation17 + $0x300] ss:$16 sps:$4 sm:$0xff]   ;;  %v9145_v40 = vld [vmem:[#allocation17 + $0x5c4] ss:$16 sps:$4 sm:$0xff]  }
 0x49f   :  { %v9137_v42 = vld [vmem:[#allocation17 + $0x400] ss:$16 sps:$4 sm:$0xff]  }
 0x4a1   :  { %7416 = vmatpush2.bf16.msra.mxu0 %v9074_v44  ;;  %7441 = vmatpush1.bf16.msra.mxu1 %v9077_v34  ;;  %v5817_v44 = vmax.f32 %v10350_v9, 0.0  ;;  %v9142_v34 = vld [vmem:[#allocation17 + $0x5e4] ss:$16 sps:$4 sm:$0xff]  }
 0x4a2   :  { %7417 = vmatprep.subr.bf16.mxu0 %v9082_v49  ;;  %7442 = vmatprep.subr.bf16.mxu1 %v9085_v58  ;;  %v9199_v49 = vld [vmem:[#allocation17 + $0x6e4] ss:$16 sps:$4 sm:$0xff]   ;;  %v5524_v58 = vadd.f32 %v10362_v62, %v2582_v39  ;;  %v9203_v62 = vld [vmem:[#allocation17 + $0x6c0] ss:$16 sps:$4 sm:$0xff]  }
 0x4a3   :  { %v9247_v39 = vld [vmem:[#allocation17 + $0x7e4] ss:$16 sps:$4 sm:$0xff]  }
 0x4a5   :  { %7418 = vmatpush2.bf16.msra.mxu0 %v9080_v35  ;;  %7443 = vmatpush1.bf16.msra.mxu1 %v9083_v47  ;;  %v9140_v35 = vld [vmem:[#allocation17 + $0x5e0] ss:$16 sps:$4 sm:$0xff]  }
 0x4a6   :  { %7419 = vmatprep.subr.bf16.mxu0 %v9088_v48  ;;  %7444 = vmatprep.subr.bf16.mxu1 %v9091_v59  ;;  %v9197_v47 = vld [vmem:[#allocation17 + $0x6e0] ss:$16 sps:$4 sm:$0xff]   ;;  %v10393_v48 = vpack.c.bf16 %v5817_v44, %v5817_v44  ;;  %v9205_v59 = vld [vmem:[#allocation17 + $0x6c4] ss:$16 sps:$4 sm:$0xff]  }
 0x4a7   :  { %v9253_v44 = vld [vmem:[#allocation17 + $0x7c4] ss:$16 sps:$4 sm:$0xff]  }
 0x4a9   :  { %7420 = vmatpush2.bf16.msra.mxu0 %v9086_v6  ;;  %7445 = vmatpush1.bf16.msra.mxu1 %v9089_v32  ;;  %v5565_v6 = vadd.f32 %v10378_v19, %v5524_v58 }
 0x4aa   :  { %7446 = vmatprep.subr.bf16.mxu1 %v9094_v52  ;;  %7471 = vmatprep.subr.bf16.mxu0 %v9097_v53  ;;  %v9148_v53 = vld [vmem:[#allocation17 + $0x5a4] ss:$16 sps:$4 sm:$0xff]  }
 0x4ac   :  { %v10383_v1 = vpop.f32.mrf.mxu0  ;;  %7422 = vmatmul.mubr.bf16.vlgmr.msra.gmra.mxu0 %v10381_v56 }
 0x4ad   :  { %7447 = vmatpush2.bf16.msra.mxu1 %v9092_v12  ;;  %7472 = vmatpush1.bf16.msra.mxu0 %v9095_v54  ;;  %v9211_v12 = vld [vmem:[#allocation17 + $0x6a4] ss:$16 sps:$4 sm:$0xff]  }
 0x4ae   :  { %v10386_v3 = vpop.f32.mrf.mxu0  ;;  %7448 = vmatprep.subr.bf16.mxu1 %v9100_v60  ;;  %7473 = vmatprep.subr.bf16.mxu0 %v9103_v16 }
 0x4af   :  { %v5606_v9 = vadd.f32 %v10386_v3, %v5565_v6  ;;  %v9170_v6 = vld [vmem:[#allocation17 + $0xa8] ss:$16 sps:$4 sm:$0xff]  }
 0x4b0   :  { %v5607_v36 = vpop.f32.mrf.mxu0 }
 0x4b1   :  { %7449 = vmatpush2.bf16.msra.mxu1 %v9098_v28  ;;  %7474 = vmatpush1.bf16.msra.mxu0 %v9101_v22  ;;  %v9146_v28 = vld [vmem:[#allocation17 + $0x5a0] ss:$16 sps:$4 sm:$0xff]   ;;  %v9151_v22 = vld [vmem:[#allocation17 + $0x584] ss:$16 sps:$4 sm:$0xff]  }
 0x4b2   :  { %v5608_v33 = vpop.f32.mrf.mxu0  ;;  %7450 = vmatprep.subr.bf16.mxu1 %v9106_v4  ;;  %7475 = vmatprep.subr.bf16.mxu0 %v9109_v50  ;;  %v9209_v4 = vld [vmem:[#allocation17 + $0x6a0] ss:$16 sps:$4 sm:$0xff]   ;;  %v9217_v50 = vld [vmem:[#allocation17 + $0x684] ss:$16 sps:$4 sm:$0xff]  }
 0x4b3   :  { %v9149_v36 = vld [vmem:[#allocation17 + $0x580] ss:$16 sps:$4 sm:$0xff]   ;;  %v9223_v33 = vld [vmem:[#allocation17 + $0x664] ss:$16 sps:$4 sm:$0xff]  }
 0x4b5   :  { %7451 = vmatpush2.bf16.msra.mxu1 %v9104_v0  ;;  %7476 = vmatpush1.bf16.msra.mxu0 %v9107_v14  ;;  %v9154_v0 = vld [vmem:[#allocation17 + $0x564] ss:$16 sps:$4 sm:$0xff]   ;;  %v9215_v14 = vld [vmem:[#allocation17 + $0x680] ss:$16 sps:$4 sm:$0xff]  }
 0x4b6   :  { %7452 = vmatprep.subr.bf16.mxu1 %v9112_v45  ;;  %7477 = vmatprep.subr.bf16.mxu0 %v9115_v5  ;;  %v9152_v45 = vld [vmem:[#allocation17 + $0x560] ss:$16 sps:$4 sm:$0xff]   ;;  %v9157_v5 = vld [vmem:[#allocation17 + $0x544] ss:$16 sps:$4 sm:$0xff]  }
 0x4b9   :  { %7453 = vmatpush2.bf16.msra.mxu1 %v9110_v55  ;;  %7478 = vmatpush1.bf16.msra.mxu0 %v9113_v43  ;;  %v9221_v55 = vld [vmem:[#allocation17 + $0x660] ss:$16 sps:$4 sm:$0xff]   ;;  %v9229_v43 = vld [vmem:[#allocation17 + $0x644] ss:$16 sps:$4 sm:$0xff]  }
 0x4ba   :  { %7454 = vmatprep.subr.bf16.mxu1 %v9118_v18  ;;  %7479 = vmatprep.subr.bf16.mxu0 %v9121_v20  ;;  %v9155_v18 = vld [vmem:[#allocation17 + $0x540] ss:$16 sps:$4 sm:$0xff]   ;;  %v9160_v20 = vld [vmem:[#allocation17 + $0x524] ss:$16 sps:$4 sm:$0xff]  }
 0x4bd   :  { %7455 = vmatpush2.bf16.msra.mxu1 %v9116_v23  ;;  %7480 = vmatpush1.bf16.msra.mxu0 %v9119_v63  ;;  %v9227_v23 = vld [vmem:[#allocation17 + $0x640] ss:$16 sps:$4 sm:$0xff]   ;;  %v9235_v63 = vld [vmem:[#allocation17 + $0x624] ss:$16 sps:$4 sm:$0xff]  }
 0x4be   :  { %7456 = vmatprep.subr.bf16.mxu1 %v9124_v61  ;;  %7481 = vmatprep.subr.bf16.mxu0 %v9127_v24  ;;  %v5604_v61 = vadd.f32 %v10383_v1, %v10375_v30  ;;  %v9158_v24 = vld [vmem:[#allocation17 + $0x520] ss:$16 sps:$4 sm:$0xff]   ;;  %v9164_v30 = vld [vmem:[#allocation17 + $0xe8] ss:$16 sps:$4 sm:$0xff]  }
 0x4c1   :  { %7457 = vmatpush2.bf16.msra.mxu1 %v9122_v51  ;;  %7482 = vmatpush1.bf16.msra.mxu0 %v9125_v25  ;;  %v9163_v25 = vld [vmem:[#allocation17 + $0x504] ss:$16 sps:$4 sm:$0xff]  }
 0x4c2   :  { %7458 = vmatprep.subr.bf16.mxu1 %v9130_v26  ;;  %7483 = vmatprep.subr.bf16.mxu0 %v9133_v46  ;;  %v9233_v26 = vld [vmem:[#allocation17 + $0x620] ss:$16 sps:$4 sm:$0xff]   ;;  %v9241_v46 = vld [vmem:[#allocation17 + $0x604] ss:$16 sps:$4 sm:$0xff]  }
 0x4c5   :  { %7459 = vmatpush2.bf16.msra.mxu1 %v9128_v29  ;;  %7484 = vmatpush1.bf16.msra.mxu0 %v9131_v37  ;;  %v9161_v29 = vld [vmem:[#allocation17 + $0x500] ss:$16 sps:$4 sm:$0xff]  }
 0x4c6   :  { %7460 = vmatprep.subr.bf16.mxu1 %v9136_v38  ;;  %7485 = vmatprep.subr.bf16.mxu0 %v9139_v17  ;;  %v9166_v38 = vld [vmem:[#allocation17 + $0xec] ss:$16 sps:$4 sm:$0xff]   ;;  %v9239_v17 = vld [vmem:[#allocation17 + $0x600] ss:$16 sps:$4 sm:$0xff]  }
 0x4c9   :  { %7461 = vmatpush2.bf16.msra.mxu1 %v9134_v41  ;;  %7486 = vmatpush1.bf16.msra.mxu0 %v9137_v42  ;;  %v9169_v41 = vld [vmem:[#allocation17 + $0xcc] ss:$16 sps:$4 sm:$0xff]   ;;  %v9245_v42 = vld [vmem:[#allocation17 + $0x7e0] ss:$16 sps:$4 sm:$0xff]  }
 0x4ca   :  { %7487 = vmatprep.subr.bf16.mxu0 %v9142_v34  ;;  %7512 = vmatprep.subr.bf16.mxu1 %v9199_v49  ;;  %v9167_v49 = vld [vmem:[#allocation17 + $0xc8] ss:$16 sps:$4 sm:$0xff]  }
 0x4cc   :  { %v5644_v32 = vpop.f32.mrf.mxu1  ;;  %7463 = vmatmul.mubr.bf16.vlgmr.msra.gmra.mxu1 %v10393_v48 }
 0x4cd   :  { %7488 = vmatpush2.bf16.msra.mxu0 %v9140_v35  ;;  %7513 = vmatpush1.bf16.msra.mxu1 %v9197_v47  ;;  %v5645_v51 = vadd.f32 %v5644_v32, %v5604_v61  ;;  %v9172_v35 = vld [vmem:[#allocation17 + $0xac] ss:$16 sps:$4 sm:$0xff]   ;;  %v9251_v47 = vld [vmem:[#allocation17 + $0x7c0] ss:$16 sps:$4 sm:$0xff]  }
 0x4ce   :  { %v5646_v52 = vpop.f32.mrf.mxu1  ;;  %7489 = vmatprep.subr.bf16.mxu0 %v9145_v40  ;;  %7514 = vmatprep.subr.bf16.mxu1 %v9205_v59  ;;  %v9259_v40 = vld [vmem:[#allocation17 + $0x7a4] ss:$16 sps:$4 sm:$0xff]  }
 0x4cf   :  { %v5647_v54 = vadd.f32 %v5646_v52, %v5606_v9  ;;  %v5819_v37 = vmax.f32 %v5645_v51, 0.0  ;;  %v9175_v9 = vld [vmem:[#allocation17 + $0x8c] ss:$16 sps:$4 sm:$0xff]  }
 0x4d0   :  { %v5648_v60 = vpop.f32.mrf.mxu1  ;;  %v9178_v52 = vld [vmem:[#allocation17 + $0x6c] ss:$16 sps:$4 sm:$0xff]  }
 0x4d1   :  { %v5820_v16 = vmax.f32 %v5647_v54, 0.0  ;;  %7490 = vmatpush2.bf16.msra.mxu0 %v9143_v57  ;;  %7515 = vmatpush1.bf16.msra.mxu1 %v9203_v62  ;;  %v10403_v1 = vpack.c.bf16 %v5819_v37, %v5819_v37  ;;  %v9257_v57 = vld [vmem:[#allocation17 + $0x7a0] ss:$16 sps:$4 sm:$0xff]   ;;  %v9265_v62 = vld [vmem:[#allocation17 + $0x784] ss:$16 sps:$4 sm:$0xff]  }
 0x4d2   :  { %v5649_v19 = vpop.f32.mrf.mxu1  ;;  %7491 = vmatprep.subr.bf16.mxu0 %v9148_v53  ;;  %7516 = vmatprep.subr.bf16.mxu1 %v9211_v12  ;;  %v9263_v53 = vld [vmem:[#allocation17 + $0x780] ss:$16 sps:$4 sm:$0xff]   ;;  %v9271_v12 = vld [vmem:[#allocation17 + $0x764] ss:$16 sps:$4 sm:$0xff]   ;;  %v9176_v54 = vld [vmem:[#allocation17 + $0x68] ss:$16 sps:$4 sm:$0xff]  }
 0x4d3   :  { %v10398_v3 = vpack.c.bf16 %v5820_v16, %v5820_v16  ;;  %v9181_v60 = vld [vmem:[#allocation17 + $0x4c] ss:$16 sps:$4 sm:$0xff]   ;;  %v9269_v16 = vld [vmem:[#allocation17 + $0x760] ss:$16 sps:$4 sm:$0xff]   ;;  %v9179_v19 = vld [vmem:[#allocation17 + $0x48] ss:$16 sps:$4 sm:$0xff]  }
 0x4d4   :  { %v9208_v37 = vld [vmem:[#allocation17 + $0x16c] ss:$16 sps:$4 sm:$0xff]  }
 0x4d5   :  { %7492 = vmatpush2.bf16.msra.mxu0 %v9146_v28  ;;  %7503 = vmatprep.mubr.bf16.mxu0 %v10398_v3  ;;  %v9277_v28 = vld [vmem:[#allocation17 + $0x744] ss:$16 sps:$4 sm:$0xff]  }
 0x4d6   :  { %7493 = vmatprep.subr.bf16.mxu0 %v9151_v22  ;;  %7517 = vmatpush1.bf16.msra.mxu1 %v9209_v4  ;;  %v9184_v22 = vld [vmem:[#allocation17 + $0x2c] ss:$16 sps:$4 sm:$0xff]   ;;  %v9275_v4 = vld [vmem:[#allocation17 + $0x740] ss:$16 sps:$4 sm:$0xff]  }
 0x4d7   :  { %7518 = vmatprep.subr.bf16.mxu1 %v9217_v50  ;;  %v9283_v50 = vld [vmem:[#allocation17 + $0x724] ss:$16 sps:$4 sm:$0xff]  }
 0x4d9   :  { %7494 = vmatpush2.bf16.msra.mxu0 %v9149_v36  ;;  %v9182_v36 = vld [vmem:[#allocation17 + $0x28] ss:$16 sps:$4 sm:$0xff]  }
 0x4da   :  { %7495 = vmatprep.subr.bf16.mxu0 %v9154_v0  ;;  %7519 = vmatpush1.bf16.msra.mxu1 %v9215_v14  ;;  %v9187_v0 = vld [vmem:[#allocation17 + $0xc] ss:$16 sps:$4 sm:$0xff]   ;;  %v9281_v14 = vld [vmem:[#allocation17 + $0x720] ss:$16 sps:$4 sm:$0xff]  }
 0x4db   :  { %7520 = vmatprep.subr.bf16.mxu1 %v9223_v33  ;;  %v9289_v33 = vld [vmem:[#allocation17 + $0x704] ss:$16 sps:$4 sm:$0xff]  }
 0x4dd   :  { %7496 = vmatpush2.bf16.msra.mxu0 %v9152_v45  ;;  %v9185_v45 = vld [vmem:[#allocation17 + $0x8] ss:$16 sps:$4 sm:$0xff]  }
 0x4de   :  { %7497 = vmatprep.subr.bf16.mxu0 %v9157_v5  ;;  %7521 = vmatpush1.bf16.msra.mxu1 %v9221_v55  ;;  %v9190_v5 = vld [vmem:[#allocation17 + $0x1ec] ss:$16 sps:$4 sm:$0xff]   ;;  %v9287_v55 = vld [vmem:[#allocation17 + $0x700] ss:$16 sps:$4 sm:$0xff]  }
 0x4df   :  { %7522 = vmatprep.subr.bf16.mxu1 %v9229_v43  ;;  %v9295_v43 = vld [vmem:[#allocation17 + $0x2ec] ss:$16 sps:$4 sm:$0xff]  }
 0x4e1   :  { %7498 = vmatpush2.bf16.msra.mxu0 %v9155_v18  ;;  %v9188_v18 = vld [vmem:[#allocation17 + $0x1e8] ss:$16 sps:$4 sm:$0xff]  }
 0x4e2   :  { %7499 = vmatprep.subr.bf16.mxu0 %v9160_v20  ;;  %7523 = vmatpush1.bf16.msra.mxu1 %v9227_v23  ;;  %v9193_v20 = vld [vmem:[#allocation17 + $0x1cc] ss:$16 sps:$4 sm:$0xff]  }
 0x4e3   :  { %7524 = vmatprep.subr.bf16.mxu1 %v9235_v63  ;;  %v9191_v63 = vld [vmem:[#allocation17 + $0x1c8] ss:$16 sps:$4 sm:$0xff]  }
 0x4e5   :  { %7500 = vmatpush2.bf16.msra.mxu0 %v9158_v24  ;;  %v9196_v24 = vld [vmem:[#allocation17 + $0x1ac] ss:$16 sps:$4 sm:$0xff]  }
 0x4e6   :  { %7501 = vmatprep.subr.bf16.mxu0 %v9163_v25  ;;  %7525 = vmatpush1.bf16.msra.mxu1 %v9233_v26  ;;  %v9194_v25 = vld [vmem:[#allocation17 + $0x1a8] ss:$16 sps:$4 sm:$0xff]  }
 0x4e7   :  { %7526 = vmatprep.subr.bf16.mxu1 %v9241_v46  ;;  %v9202_v46 = vld [vmem:[#allocation17 + $0x18c] ss:$16 sps:$4 sm:$0xff]  }
 0x4e9   :  { %7502 = vmatpush2.bf16.msra.mxu0 %v9161_v29  ;;  %v9200_v29 = vld [vmem:[#allocation17 + $0x188] ss:$16 sps:$4 sm:$0xff]  }
 0x4ea   :  { %7553 = vmatprep.subr.bf16.mxu0 %v9166_v38  ;;  %7527 = vmatpush1.bf16.msra.mxu1 %v9239_v17  ;;  %v9206_v38 = vld [vmem:[#allocation17 + $0x168] ss:$16 sps:$4 sm:$0xff]   ;;  %v9214_v17 = vld [vmem:[#allocation17 + $0x14c] ss:$16 sps:$4 sm:$0xff]  }
 0x4eb   :  { %7528 = vmatprep.subr.bf16.mxu1 %v9247_v39  ;;  %v9212_v39 = vld [vmem:[#allocation17 + $0x148] ss:$16 sps:$4 sm:$0xff]  }
 0x4ec   :  { %v10405_v34 = vpop.f32.mrf.mxu0  ;;  %7504 = vmatmul.mubr.bf16.vlgmr.msra.gmra.mxu0 %v10403_v1 }
 0x4ed   :  { %7554 = vmatpush1.bf16.msra.mxu0 %v9164_v30  ;;  %7585 = vmatprep.mubr.bf16.mxu0 %v10356_v21  ;;  %v9173_v21 = vld [vmem:[#allocation17 + $0x88] ss:$16 sps:$4 sm:$0xff]   ;;  %v9220_v30 = vld [vmem:[#allocation17 + $0x12c] ss:$16 sps:$4 sm:$0xff]  }
 0x4ee   :  { %v10409_v58 = vpop.f32.mrf.mxu0  ;;  %7555 = vmatprep.subr.bf16.mxu0 %v9169_v41  ;;  %7529 = vmatpush2.bf16.msra.mxu1 %v9245_v42  ;;  %v9218_v41 = vld [vmem:[#allocation17 + $0x128] ss:$16 sps:$4 sm:$0xff]   ;;  %v9226_v42 = vld [vmem:[#allocation17 + $0x10c] ss:$16 sps:$4 sm:$0xff]  }
 0x4ef   :  { %7530 = vmatprep.subr.bf16.mxu1 %v9253_v44  ;;  %v9224_v44 = vld [vmem:[#allocation17 + $0x108] ss:$16 sps:$4 sm:$0xff]  }
 0x4f0   :  { %v5689_v59 = vpop.f32.mrf.mxu0 }
 0x4f1   :  { %7556 = vmatpush1.bf16.msra.mxu0 %v9167_v49  ;;  %v9232_v49 = vld [vmem:[#allocation17 + $0x4ec] ss:$16 sps:$4 sm:$0xff]   ;;  %v9236_v59 = vld [vmem:[#allocation17 + $0x4c8] ss:$16 sps:$4 sm:$0xff]  }
 0x4f2   :  { %v5690_v32 = vpop.f32.mrf.mxu0  ;;  %7557 = vmatprep.subr.bf16.mxu0 %v9172_v35  ;;  %7531 = vmatpush2.bf16.msra.mxu1 %v9251_v47  ;;  %v9230_v35 = vld [vmem:[#allocation17 + $0x4e8] ss:$16 sps:$4 sm:$0xff]   ;;  %v9238_v47 = vld [vmem:[#allocation17 + $0x4cc] ss:$16 sps:$4 sm:$0xff]  }
 0x4f3   :  { %7532 = vmatprep.subr.bf16.mxu1 %v9259_v40  ;;  %v9244_v32 = vld [vmem:[#allocation17 + $0x4ac] ss:$16 sps:$4 sm:$0xff]  }
 0x4f5   :  { %7558 = vmatpush1.bf16.msra.mxu0 %v9170_v6 }
 0x4f6   :  { %7559 = vmatprep.subr.bf16.mxu0 %v9175_v9  ;;  %7533 = vmatpush2.bf16.msra.mxu1 %v9257_v57  ;;  %v9242_v57 = vld [vmem:[#allocation17 + $0x4a8] ss:$16 sps:$4 sm:$0xff]  }
 0x4f7   :  { %7534 = vmatprep.subr.bf16.mxu1 %v9265_v62 }
 0x4f9   :  { %7560 = vmatpush1.bf16.msra.mxu0 %v9173_v21  ;;  %v9250_v21 = vld [vmem:[#allocation17 + $0x48c] ss:$16 sps:$4 sm:$0xff]  }
 0x4fa   :  { %7561 = vmatprep.subr.bf16.mxu0 %v9178_v52  ;;  %7535 = vmatpush2.bf16.msra.mxu1 %v9263_v53  ;;  %v9248_v52 = vld [vmem:[#allocation17 + $0x488] ss:$16 sps:$4 sm:$0xff]   ;;  %v9256_v53 = vld [vmem:[#allocation17 + $0x46c] ss:$16 sps:$4 sm:$0xff]  }
 0x4fb   :  { %7536 = vmatprep.subr.bf16.mxu1 %v9271_v12  ;;  %v9254_v12 = vld [vmem:[#allocation17 + $0x468] ss:$16 sps:$4 sm:$0xff]  }
 0x4fd   :  { %7562 = vmatpush1.bf16.msra.mxu0 %v9176_v54  ;;  %v9268_v54 = vld [vmem:[#allocation17 + $0x42c] ss:$16 sps:$4 sm:$0xff]  }
 0x4fe   :  { %7563 = vmatprep.subr.bf16.mxu0 %v9181_v60  ;;  %7537 = vmatpush2.bf16.msra.mxu1 %v9269_v16  ;;  %v9266_v60 = vld [vmem:[#allocation17 + $0x428] ss:$16 sps:$4 sm:$0xff]   ;;  %v9274_v16 = vld [vmem:[#allocation17 + $0x40c] ss:$16 sps:$4 sm:$0xff]  }
 0x4ff   :  { %7538 = vmatprep.subr.bf16.mxu1 %v9277_v28  ;;  %v2586_v28 = vrot.slane %v10366_v7, %v2007_v27 }
 0x501   :  { %7564 = vmatpush1.bf16.msra.mxu0 %v9179_v19  ;;  %v2590_v19 = vrot.slane %v10366_v7, %v2011_v31  ;;  %v9284_v7 = vld [vmem:[#allocation17 + $0x5c8] ss:$16 sps:$4 sm:$0xff]  }
 0x502   :  { %7565 = vmatprep.subr.bf16.mxu0 %v9184_v22  ;;  %7539 = vmatpush2.bf16.msra.mxu1 %v9275_v4  ;;  %v9272_v22 = vld [vmem:[#allocation17 + $0x408] ss:$16 sps:$4 sm:$0xff]   ;;  %v9280_v4 = vld [vmem:[#allocation17 + $0x5ec] ss:$16 sps:$4 sm:$0xff]  }
 0x503   :  { %7540 = vmatprep.subr.bf16.mxu1 %v9283_v50  ;;  %v5686_v50 = vadd.f32 %v10405_v34, %v2586_v28  ;;  %v9340_v28 = vld [vmem:[#allocation17 + $0x3ac] ss:$16 sps:$4 sm:$0xff]  }
 0x505   :  { %7566 = vmatpush1.bf16.msra.mxu0 %v9182_v36  ;;  %v5688_v36 = vadd.f32 %v10409_v58, %v2590_v19  ;;  %v9338_v19 = vld [vmem:[#allocation17 + $0x3a8] ss:$16 sps:$4 sm:$0xff]  }
 0x506   :  { %7567 = vmatprep.subr.bf16.mxu0 %v9187_v0  ;;  %7541 = vmatpush2.bf16.msra.mxu1 %v9281_v14  ;;  %v9278_v14 = vld [vmem:[#allocation17 + $0x5e8] ss:$16 sps:$4 sm:$0xff]  }
 0x507   :  { %7542 = vmatprep.subr.bf16.mxu1 %v9289_v33  ;;  %v9286_v33 = vld [vmem:[#allocation17 + $0x5cc] ss:$16 sps:$4 sm:$0xff]  }
 0x509   :  { %7568 = vmatpush1.bf16.msra.mxu0 %v9185_v45 }
 0x50a   :  { %7569 = vmatprep.subr.bf16.mxu0 %v9190_v5  ;;  %7543 = vmatpush2.bf16.msra.mxu1 %v9287_v55 }
 0x50b   :  { %7594 = vmatprep.subr.bf16.mxu1 %v9295_v43  ;;  %v9292_v43 = vld [vmem:[#allocation17 + $0x5ac] ss:$16 sps:$4 sm:$0xff]  }
 0x50c   :  { %v10411_v23 = vpop.f32.mrf.mxu1 }
 0x50d   :  { %7570 = vmatpush2.bf16.msra.mxu0 %v9188_v18  ;;  %v5727_v0 = vadd.f32 %v10411_v23, %v5686_v50  ;;  %v9290_v23 = vld [vmem:[#allocation17 + $0x5a8] ss:$16 sps:$4 sm:$0xff]  }
 0x50e   :  { %v10413_v61 = vpop.f32.mrf.mxu1  ;;  %7571 = vmatprep.subr.bf16.mxu0 %v9193_v20  ;;  %v9344_v50 = vld [vmem:[#allocation17 + $0x368] ss:$16 sps:$4 sm:$0xff]  }
 0x50f   :  { %v5729_v27 = vadd.f32 %v10413_v61, %v5688_v36  ;;  %v9293_v61 = vld [vmem:[#allocation17 + $0x2e8] ss:$16 sps:$4 sm:$0xff]   ;;  %v10435_v36 = vld [vmem:[#allocation19] sm:$0xf] }
 0x510   :  { %v5730_v51 = vpop.f32.mrf.mxu1 }
 0x511   :  { %7572 = vmatpush2.bf16.msra.mxu0 %v9191_v63 }
 0x512   :  { %v5731_v26 = vpop.f32.mrf.mxu1  ;;  %7573 = vmatprep.subr.bf16.mxu0 %v9196_v24  ;;  %v9298_v24 = vld [vmem:[#allocation17 + $0x58c] ss:$16 sps:$4 sm:$0xff]  }
 0x513   :  { %v9301_v26 = vld [vmem:[#allocation17 + $0x2cc] ss:$16 sps:$4 sm:$0xff]  }
 0x515   :  { %7574 = vmatpush2.bf16.msra.mxu0 %v9194_v25 }
 0x516   :  { %7575 = vmatprep.subr.bf16.mxu0 %v9202_v46  ;;  %v9296_v46 = vld [vmem:[#allocation17 + $0x588] ss:$16 sps:$4 sm:$0xff]  }
 0x519   :  { %7576 = vmatpush2.bf16.msra.mxu0 %v9200_v29  ;;  %v9304_v29 = vld [vmem:[#allocation17 + $0x56c] ss:$16 sps:$4 sm:$0xff]  }
 0x51a   :  { %7577 = vmatprep.subr.bf16.mxu0 %v9208_v37  ;;  %v9299_v37 = vld [vmem:[#allocation17 + $0x2c8] ss:$16 sps:$4 sm:$0xff]  }
 0x51d   :  { %7578 = vmatpush2.bf16.msra.mxu0 %v9206_v38  ;;  %v9307_v38 = vld [vmem:[#allocation17 + $0x2ac] ss:$16 sps:$4 sm:$0xff]  }
 0x51e   :  { %7579 = vmatprep.subr.bf16.mxu0 %v9214_v17  ;;  %v9302_v17 = vld [vmem:[#allocation17 + $0x568] ss:$16 sps:$4 sm:$0xff]  }
 0x521   :  { %7580 = vmatpush2.bf16.msra.mxu0 %v9212_v39  ;;  %v9310_v39 = vld [vmem:[#allocation17 + $0x54c] ss:$16 sps:$4 sm:$0xff]  }
 0x522   :  { %7581 = vmatprep.subr.bf16.mxu0 %v9220_v30  ;;  %v9305_v30 = vld [vmem:[#allocation17 + $0x2a8] ss:$16 sps:$4 sm:$0xff]  }
 0x525   :  { %7582 = vmatpush2.bf16.msra.mxu0 %v9218_v41  ;;  %v9313_v41 = vld [vmem:[#allocation17 + $0x28c] ss:$16 sps:$4 sm:$0xff]  }
 0x526   :  { %7583 = vmatprep.subr.bf16.mxu0 %v9226_v42  ;;  %v9308_v42 = vld [vmem:[#allocation17 + $0x548] ss:$16 sps:$4 sm:$0xff]  }
 0x529   :  { %7584 = vmatpush2.bf16.msra.mxu0 %v9224_v44  ;;  %v9316_v44 = vld [vmem:[#allocation17 + $0x52c] ss:$16 sps:$4 sm:$0xff]  }
 0x52a   :  { %7635 = vmatprep.subr.bf16.mxu0 %v9232_v49  ;;  %v9311_v49 = vld [vmem:[#allocation17 + $0x288] ss:$16 sps:$4 sm:$0xff]  }
 0x52c   :  { %v5767_v40 = vpop.f32.mrf.mxu0  ;;  %7586 = vmatmul.mubr.bf16.vlgmr.msra.gmra.mxu0 %v10381_v56  ;;  %v9262_v56 = vld [vmem:[#allocation17 + $0x44c] ss:$16 sps:$4 sm:$0xff]  }
 0x52d   :  { %7636 = vmatpush1.bf16.msra.mxu0 %v9230_v35  ;;  %7667 = vmatprep.mubr.bf16.mxu0 %v10398_v3  ;;  %v9260_v3 = vld [vmem:[#allocation17 + $0x448] ss:$16 sps:$4 sm:$0xff]   ;;  %v5768_v45 = vadd.f32 %v5767_v40, %v5727_v0  ;;  %v9319_v35 = vld [vmem:[#allocation17 + $0x26c] ss:$16 sps:$4 sm:$0xff]  }
 0x52e   :  { %v5769_v6 = vpop.f32.mrf.mxu0  ;;  %7637 = vmatprep.subr.bf16.mxu0 %v9238_v47  ;;  %v9322_v47 = vld [vmem:[#allocation17 + $0x50c] ss:$16 sps:$4 sm:$0xff]   ;;  %v9317_v40 = vld [vmem:[#allocation17 + $0x268] ss:$16 sps:$4 sm:$0xff]  }
 0x52f   :  { %v5770_v5 = vadd.f32 %v5769_v6, %v5729_v27  ;;  %v9320_v6 = vld [vmem:[#allocation17 + $0x508] ss:$16 sps:$4 sm:$0xff]   ;;  %v9349_v0 = vld [vmem:[#allocation17 + $0x34c] ss:$16 sps:$4 sm:$0xff]  }
 0x530   :  { %v5771_v9 = vpop.f32.mrf.mxu0  ;;  %v9352_v27 = vld [vmem:[#allocation17 + $0x32c] ss:$16 sps:$4 sm:$0xff]  }
 0x531   :  { %7638 = vmatpush1.bf16.msra.mxu0 %v9236_v59  ;;  %v9325_v59 = vld [vmem:[#allocation17 + $0x24c] ss:$16 sps:$4 sm:$0xff]  }
 0x532   :  { %v5772_v62 = vpop.f32.mrf.mxu0  ;;  %7639 = vmatprep.subr.bf16.mxu0 %v9244_v32  ;;  %v9323_v32 = vld [vmem:[#allocation17 + $0x248] ss:$16 sps:$4 sm:$0xff]   ;;  %v9328_v9 = vld [vmem:[#allocation17 + $0x22c] ss:$16 sps:$4 sm:$0xff]  }
 0x535   :  { %7640 = vmatpush1.bf16.msra.mxu0 %v9242_v57  ;;  %v9326_v57 = vld [vmem:[#allocation17 + $0x228] ss:$16 sps:$4 sm:$0xff]  }
 0x536   :  { %7641 = vmatprep.subr.bf16.mxu0 %v9250_v21  ;;  %v9331_v21 = vld [vmem:[#allocation17 + $0x20c] ss:$16 sps:$4 sm:$0xff]  }
 0x539   :  { %7642 = vmatpush1.bf16.msra.mxu0 %v9248_v52 }
 0x53a   :  { %7643 = vmatprep.subr.bf16.mxu0 %v9256_v53  ;;  %v9329_v53 = vld [vmem:[#allocation17 + $0x208] ss:$16 sps:$4 sm:$0xff]  }
 0x53d   :  { %7644 = vmatpush1.bf16.msra.mxu0 %v9254_v12 }
 0x53e   :  { %7645 = vmatprep.subr.bf16.mxu0 %v9262_v56  ;;  %v9334_v56 = vld [vmem:[#allocation17 + $0x3ec] ss:$16 sps:$4 sm:$0xff]  }
 0x541   :  { %7646 = vmatpush1.bf16.msra.mxu0 %v9260_v3 }
 0x542   :  { %7647 = vmatprep.subr.bf16.mxu0 %v9268_v54  ;;  %v9332_v54 = vld [vmem:[#allocation17 + $0x3e8] ss:$16 sps:$4 sm:$0xff]  }
 0x545   :  { %7648 = vmatpush1.bf16.msra.mxu0 %v9266_v60  ;;  %v9337_v60 = vld [vmem:[#allocation17 + $0x3cc] ss:$16 sps:$4 sm:$0xff]  }
 0x546   :  { %7649 = vmatprep.subr.bf16.mxu0 %v9274_v16  ;;  %v9335_v16 = vld [vmem:[#allocation17 + $0x3c8] ss:$16 sps:$4 sm:$0xff]  }
 0x549   :  { %7650 = vmatpush1.bf16.msra.mxu0 %v9272_v22  ;;  %v9341_v22 = vld [vmem:[#allocation17 + $0x388] ss:$16 sps:$4 sm:$0xff]  }
 0x54a   :  { %7651 = vmatprep.subr.bf16.mxu0 %v9280_v4  ;;  %v9346_v4 = vld [vmem:[#allocation17 + $0x36c] ss:$16 sps:$4 sm:$0xff]  }
 0x54c   :  { %v5808_v10 = vpop.f32.mrf.mxu1 }
 0x54d   :  { %v5809_v31 = vadd.f32 %v5808_v10, %v5768_v45  ;;  %7652 = vmatpush2.bf16.msra.mxu0 %v9278_v14  ;;  %v6092_v14 = vrot.slane %v10435_v36, %v10203_v11  ;;  %v6096_v45 = vrot.slane %v10435_v36, %v10208_v13 }
 0x54e   :  { %v5810_v55 = vpop.f32.mrf.mxu1  ;;  %7653 = vmatprep.subr.bf16.mxu0 %v9286_v33  ;;  %v9347_v33 = vld [vmem:[#allocation17 + $0x348] ss:$16 sps:$4 sm:$0xff]  }
 0x54f   :  { %v5811_v34 = vadd.f32 %v5810_v55, %v5770_v5  ;;  %v5821_v18 = vmax.f32 %v5809_v31, 0.0  ;;  %v9350_v5 = vld [vmem:[#allocation17 + $0x328] ss:$16 sps:$4 sm:$0xff]  }
 0x550   :  { %v5812_v58 = vpop.f32.mrf.mxu1 }
 0x551   :  { %v5822_v20 = vmax.f32 %v5811_v34, 0.0  ;;  %7654 = vmatpush2.bf16.msra.mxu0 %v9284_v7  ;;  %v10429_v25 = vpack.c.bf16 %v5821_v18, %v5821_v18  ;;  %v9355_v7 = vld [vmem:[#allocation17 + $0x30c] ss:$16 sps:$4 sm:$0xff]   ;;  %v9353_v58 = vld [vmem:[#allocation17 + $0x308] ss:$16 sps:$4 sm:$0xff]  }
 0x552   :  { %v5813_v63 = vpop.f32.mrf.mxu1  ;;  %7655 = vmatprep.subr.bf16.mxu0 %v9292_v43 }
 0x553   :  { %v10427_v51 = vpack.c.bf16 %v5822_v20, %v5822_v20 }
 0x555   :  { %7544 = vmatprep.mubr.bf16.mxu1 %v10427_v51  ;;  %7656 = vmatpush2.bf16.msra.mxu0 %v9290_v23  ;;  %v9358_v23 = vld [vmem:[#allocation17 + $0x6ec] ss:$16 sps:$4 sm:$0xff]  }
 0x556   :  { %7545 = vmatmul.mubr.bf16.vlgmr.msra.gmra.mxu1 %v10429_v25  ;;  %7657 = vmatprep.subr.bf16.mxu0 %v9298_v24  ;;  %v9356_v24 = vld [vmem:[#allocation17 + $0x6e8] ss:$16 sps:$4 sm:$0xff]  }
 0x557   :  { %7595 = vmatpush1.bf16.msra.mxu1 %v9293_v61  ;;  %7626 = vmatprep.mubr.bf16.mxu1 %v10372_v15  ;;  %v9314_v15 = vld [vmem:[#allocation17 + $0x528] ss:$16 sps:$4 sm:$0xff]   ;;  %v9361_v61 = vld [vmem:[#allocation17 + $0x6cc] ss:$16 sps:$4 sm:$0xff]  }
 0x558   :  { %7596 = vmatprep.subr.bf16.mxu1 %v9301_v26  ;;  %v9359_v26 = vld [vmem:[#allocation17 + $0x6c8] ss:$16 sps:$4 sm:$0xff]  }
 0x559   :  { %7658 = vmatpush2.bf16.msra.mxu0 %v9296_v46  ;;  %v9364_v46 = vld [vmem:[#allocation17 + $0x6ac] ss:$16 sps:$4 sm:$0xff]  }
 0x55a   :  { %7659 = vmatprep.subr.bf16.mxu0 %v9304_v29  ;;  %v9362_v29 = vld [vmem:[#allocation17 + $0x6a8] ss:$16 sps:$4 sm:$0xff]  }
 0x55b   :  { %7597 = vmatpush1.bf16.msra.mxu1 %v9299_v37  ;;  %v9367_v37 = vld [vmem:[#allocation17 + $0x68c] ss:$16 sps:$4 sm:$0xff]  }
 0x55c   :  { %7598 = vmatprep.subr.bf16.mxu1 %v9307_v38  ;;  %v9365_v38 = vld [vmem:[#allocation17 + $0x688] ss:$16 sps:$4 sm:$0xff]  }
 0x55d   :  { %7660 = vmatpush2.bf16.msra.mxu0 %v9302_v17  ;;  %v9370_v17 = vld [vmem:[#allocation17 + $0x66c] ss:$16 sps:$4 sm:$0xff]  }
 0x55e   :  { %7661 = vmatprep.subr.bf16.mxu0 %v9310_v39  ;;  %v9368_v39 = vld [vmem:[#allocation17 + $0x668] ss:$16 sps:$4 sm:$0xff]  }
 0x55f   :  { %7599 = vmatpush1.bf16.msra.mxu1 %v9305_v30  ;;  %v9373_v30 = vld [vmem:[#allocation17 + $0x64c] ss:$16 sps:$4 sm:$0xff]  }
 0x560   :  { %7600 = vmatprep.subr.bf16.mxu1 %v9313_v41  ;;  %v9376_v41 = vld [vmem:[#allocation17 + $0x62c] ss:$16 sps:$4 sm:$0xff]  }
 0x561   :  { %7662 = vmatpush2.bf16.msra.mxu0 %v9308_v42 }
 0x562   :  { %7663 = vmatprep.subr.bf16.mxu0 %v9316_v44  ;;  %v9379_v44 = vld [vmem:[#allocation17 + $0x60c] ss:$16 sps:$4 sm:$0xff]  }
 0x563   :  { %7601 = vmatpush1.bf16.msra.mxu1 %v9311_v49 }
 0x564   :  { %7602 = vmatprep.subr.bf16.mxu1 %v9319_v35 }
 0x565   :  { %7664 = vmatpush2.bf16.msra.mxu0 %v9314_v15 }
 0x566   :  { %7665 = vmatprep.subr.bf16.mxu0 %v9322_v47  ;;  %v9377_v47 = vld [vmem:[#allocation17 + $0x608] ss:$16 sps:$4 sm:$0xff]  }
 0x567   :  { %7603 = vmatpush1.bf16.msra.mxu1 %v9317_v40 }
 0x568   :  { %7604 = vmatprep.subr.bf16.mxu1 %v9325_v59  ;;  %v9382_v59 = vld [vmem:[#allocation17 + $0x7ec] ss:$16 sps:$4 sm:$0xff]  }
 0x569   :  { %7666 = vmatpush2.bf16.msra.mxu0 %v9320_v6 }
 0x56b   :  { %7605 = vmatpush1.bf16.msra.mxu1 %v9323_v32  ;;  %v9380_v32 = vld [vmem:[#allocation17 + $0x7e8] ss:$16 sps:$4 sm:$0xff]  }
 0x56c   :  { %v7423_v62 = vpop.f32.mrf.mxu0  ;;  %7668 = vmatmul.mubr.bf16.vlgmr.msra.gmra.mxu0 %v10403_v1  ;;  %7606 = vmatprep.subr.bf16.mxu1 %v9328_v9  ;;  %v9343_v1 = vld [vmem:[#allocation17 + $0x38c] ss:$16 sps:$4 sm:$0xff]  }
 0x56d   :  { %v7424_v10 = vadd.f32 %v7423_v62, %v6092_v14  ;;  %v9385_v9 = vld [vmem:[#allocation17 + $0x7cc] ss:$16 sps:$4 sm:$0xff]   ;;  %v7721_v14 = vld [vmem:[#allocation20] sm:$0xf] }
 0x56e   :  { %v7425_v52 = vpop.f32.mrf.mxu0  ;;  %v9388_v62 = vld [vmem:[#allocation17 + $0x7ac] ss:$16 sps:$4 sm:$0xff]  }
 0x56f   :  { %7607 = vmatpush1.bf16.msra.mxu1 %v9326_v57  ;;  %v7426_v55 = vadd.f32 %v7425_v52, %v6096_v45  ;;  %v9383_v57 = vld [vmem:[#allocation17 + $0x7c8] ss:$16 sps:$4 sm:$0xff]   ;;  %v9391_v52 = vld [vmem:[#allocation17 + $0x78c] ss:$16 sps:$4 sm:$0xff]  }
 0x570   :  { %v7427_v12 = vpop.f32.mrf.mxu0  ;;  %7608 = vmatprep.subr.bf16.mxu1 %v9331_v21  ;;  %v9386_v21 = vld [vmem:[#allocation17 + $0x7a8] ss:$16 sps:$4 sm:$0xff]  }
 0x571   :  { %v9394_v12 = vld [vmem:[#allocation17 + $0x76c] ss:$16 sps:$4 sm:$0xff]  }
 0x572   :  { %v7428_v3 = vpop.f32.mrf.mxu0 }
 0x573   :  { %7609 = vmatpush1.bf16.msra.mxu1 %v9329_v53  ;;  %v9389_v53 = vld [vmem:[#allocation17 + $0x788] ss:$16 sps:$4 sm:$0xff]   ;;  %v9397_v3 = vld [vmem:[#allocation17 + $0x74c] ss:$16 sps:$4 sm:$0xff]  }
 0x574   :  { %7610 = vmatprep.subr.bf16.mxu1 %v9334_v56  ;;  %v9392_v56 = vld [vmem:[#allocation17 + $0x768] ss:$16 sps:$4 sm:$0xff]  }
 0x577   :  { %7611 = vmatpush2.bf16.msra.mxu1 %v9332_v54  ;;  %v9395_v54 = vld [vmem:[#allocation17 + $0x748] ss:$16 sps:$4 sm:$0xff]  }
 0x578   :  { %7612 = vmatprep.subr.bf16.mxu1 %v9337_v60  ;;  %v9400_v60 = vld [vmem:[#allocation17 + $0x72c] ss:$16 sps:$4 sm:$0xff]  }
 0x57b   :  { %7613 = vmatpush2.bf16.msra.mxu1 %v9335_v16  ;;  %v9398_v16 = vld [vmem:[#allocation17 + $0x728] ss:$16 sps:$4 sm:$0xff]  }
 0x57c   :  { %7614 = vmatprep.subr.bf16.mxu1 %v9340_v28  ;;  %v9403_v28 = vld [vmem:[#allocation17 + $0x70c] ss:$16 sps:$4 sm:$0xff]  }
 0x57f   :  { %7615 = vmatpush2.bf16.msra.mxu1 %v9338_v19  ;;  %v9401_v19 = vld [vmem:[#allocation17 + $0x708] ss:$16 sps:$4 sm:$0xff]  }
 0x580   :  { %7616 = vmatprep.subr.bf16.mxu1 %v9343_v1 }
 0x583   :  { %7617 = vmatpush2.bf16.msra.mxu1 %v9341_v22 }
 0x584   :  { %7618 = vmatprep.subr.bf16.mxu1 %v9346_v4 }
 0x587   :  { %7619 = vmatpush2.bf16.msra.mxu1 %v9344_v50 }
 0x588   :  { %7620 = vmatprep.subr.bf16.mxu1 %v9349_v0 }
 0x58b   :  { %7621 = vmatpush2.bf16.msra.mxu1 %v9347_v33 }
 0x58c   :  { %v7464_v31 = vpop.f32.mrf.mxu1  ;;  %7622 = vmatprep.subr.bf16.mxu1 %v9352_v27 }
 0x58d   :  { %v7465_v43 = vadd.f32 %v7464_v31, %v7424_v10  ;;  %v7726_v10 = vrot.slane %v7721_v14, %v10203_v11  ;;  %v7730_v31 = vrot.slane %v7721_v14, %v10208_v13 }
 0x58e   :  { %v7466_v34 = vpop.f32.mrf.mxu1 }
 0x58f   :  { %v7467_v18 = vadd.f32 %v7466_v34, %v7426_v55  ;;  %7623 = vmatpush2.bf16.msra.mxu1 %v9350_v5 }
 0x590   :  { %v7468_v20 = vpop.f32.mrf.mxu1  ;;  %7624 = vmatprep.subr.bf16.mxu1 %v9355_v7 }
 0x592   :  { %v7469_v63 = vpop.f32.mrf.mxu1 }
 0x593   :  { %7625 = vmatpush2.bf16.msra.mxu1 %v9353_v58 }
 0x594   :  { %7676 = vmatprep.subr.bf16.mxu1 %v9358_v23 }
 0x596   :  { %7627 = vmatmul.mubr.bf16.vlgmr.msra.gmra.mxu1 %v10393_v48  ;;  %v9371_v48 = vld [vmem:[#allocation17 + $0x648] ss:$16 sps:$4 sm:$0xff]  }
 0x597   :  { %7677 = vmatpush1.bf16.msra.mxu1 %v9356_v24  ;;  %7708 = vmatprep.mubr.bf16.mxu1 %v10427_v51  ;;  %v9374_v51 = vld [vmem:[#allocation17 + $0x628] ss:$16 sps:$4 sm:$0xff]   ;;  %v6100_v24 = vrot.slane %v10435_v36, %v10235_v2 }
 0x598   :  { %7678 = vmatprep.subr.bf16.mxu1 %v9361_v61  ;;  %v6104_v61 = vrot.slane %v10435_v36, %v10238_v8 }
 0x59b   :  { %7679 = vmatpush1.bf16.msra.mxu1 %v9359_v26 }
 0x59c   :  { %7680 = vmatprep.subr.bf16.mxu1 %v9364_v46 }
 0x59f   :  { %7681 = vmatpush1.bf16.msra.mxu1 %v9362_v29 }
 0x5a0   :  { %7682 = vmatprep.subr.bf16.mxu1 %v9367_v37 }
 0x5a3   :  { %7683 = vmatpush1.bf16.msra.mxu1 %v9365_v38 }
 0x5a4   :  { %7684 = vmatprep.subr.bf16.mxu1 %v9370_v17 }
 0x5a7   :  { %7685 = vmatpush1.bf16.msra.mxu1 %v9368_v39 }
 0x5a8   :  { %7686 = vmatprep.subr.bf16.mxu1 %v9373_v30 }
 0x5ab   :  { %7687 = vmatpush1.bf16.msra.mxu1 %v9371_v48 }
 0x5ac   :  { %v7505_v42 = vpop.f32.mrf.mxu0  ;;  %7688 = vmatprep.subr.bf16.mxu1 %v9376_v41 }
 0x5ad   :  { %v7506_v49 = vadd.f32 %v7505_v42, %v7465_v43 }
 0x5ae   :  { %v7507_v35 = vpop.f32.mrf.mxu0 }
 0x5af   :  { %v7508_v15 = vadd.f32 %v7507_v35, %v7467_v18  ;;  %7689 = vmatpush1.bf16.msra.mxu1 %v9374_v51  ;;  %v7734_v51 = vrot.slane %v7721_v14, %v10235_v2  ;;  %v7738_v35 = vrot.slane %v7721_v14, %v10238_v8 }
 0x5b0   :  { %v7509_v40 = vpop.f32.mrf.mxu0  ;;  %7690 = vmatprep.subr.bf16.mxu1 %v9379_v44 }
 0x5b2   :  { %v7510_v6 = vpop.f32.mrf.mxu0 }
 0x5b3   :  { %7691 = vmatpush1.bf16.msra.mxu1 %v9377_v47 }
 0x5b4   :  { %7692 = vmatprep.subr.bf16.mxu1 %v9382_v59 }
 0x5b7   :  { %7693 = vmatpush2.bf16.msra.mxu1 %v9380_v32 }
 0x5b8   :  { %7694 = vmatprep.subr.bf16.mxu1 %v9385_v9  ;;  %v8714_v9 = vld [vmem:[#allocation2] ss:$0 sm:$0xff] }
 0x5bb   :  { %7695 = vmatpush2.bf16.msra.mxu1 %v9383_v57 }
 0x5bc   :  { %7696 = vmatprep.subr.bf16.mxu1 %v9388_v62 }
 0x5bf   :  { %7697 = vmatpush2.bf16.msra.mxu1 %v9386_v21 }
 0x5c0   :  { %7698 = vmatprep.subr.bf16.mxu1 %v9391_v52 }
 0x5c3   :  { %7699 = vmatpush2.bf16.msra.mxu1 %v9389_v53 }
 0x5c4   :  { %7700 = vmatprep.subr.bf16.mxu1 %v9394_v12 }
 0x5c7   :  { %7701 = vmatpush2.bf16.msra.mxu1 %v9392_v56 }
 0x5c8   :  { %7702 = vmatprep.subr.bf16.mxu1 %v9397_v3 }
 0x5cb   :  { %7703 = vmatpush2.bf16.msra.mxu1 %v9395_v54 }
 0x5cc   :  { %7704 = vmatprep.subr.bf16.mxu1 %v9400_v60 }
 0x5cf   :  { %7705 = vmatpush2.bf16.msra.mxu1 %v9398_v16 }
 0x5d0   :  { %7706 = vmatprep.subr.bf16.mxu1 %v9403_v28 }
 0x5d3   :  { %7707 = vmatpush2.bf16.msra.mxu1 %v9401_v19 }
 0x5d6   :  { %7709 = vmatmul.mubr.bf16.vlgmr.msra.gmra.mxu1 %v10429_v25 }
 0x5ec   :  { %v7587_v1 = vpop.f32.mrf.mxu0 }
 0x5ed   :  { %v7588_v11 = vadd.f32 %v7587_v1, %v6100_v24 }
 0x5ee   :  { %v7589_v22 = vpop.f32.mrf.mxu0 }
 0x5ef   :  { %v7590_v46 = vadd.f32 %v7589_v22, %v6104_v61 }
 0x5f0   :  { %v7591_v4 = vpop.f32.mrf.mxu0 }
 0x5f2   :  { %v7592_v50 = vpop.f32.mrf.mxu0 }
 0x616   :  { %v7546_v0 = vpop.f32.mrf.mxu1 }
 0x617   :  { %v7547_v33 = vadd.f32 %v7546_v0, %v7506_v49 }
 0x618   :  { %v7548_v27 = vpop.f32.mrf.mxu1 }
 0x619   :  { %v7717_v45 = vmax.f32 %v7547_v33, 0.0  ;;  %v7549_v5 = vadd.f32 %v7548_v27, %v7508_v15 }
 0x61a   :  { %v7550_v7 = vpop.f32.mrf.mxu1 }
 0x61b   :  { %v7718_v55 = vmax.f32 %v7549_v5, 0.0  ;;  %v7743_v34 = vmul.f32 %v7726_v10, %v7717_v45 }
 0x61c   :  { %v7551_v43 = vpop.f32.mrf.mxu1 }
 0x61d   :  { %v7744_v18 = vmul.f32 %v7730_v31, %v7718_v55 }
 0x61f   :  { %v7747_v25 = vadd.f32 %v7744_v18, %v7743_v34 }
 0x62c   :  { %v7669_v58 = vpop.f32.mrf.mxu0 }
 0x62e   :  { %v7671_v20 = vpop.f32.mrf.mxu0 }
 0x630   :  { %v7673_v23 = vpop.f32.mrf.mxu0 }
 0x632   :  { %v7674_v63 = vpop.f32.mrf.mxu0 }
 0x656   :  { %v7628_v26 = vpop.f32.mrf.mxu1 }
 0x657   :  { %v7629_v13 = vadd.f32 %v7628_v26, %v7588_v11 }
 0x658   :  { %v7630_v29 = vpop.f32.mrf.mxu1 }
 0x659   :  { %v7631_v37 = vadd.f32 %v7630_v29, %v7590_v46  ;;  %v7670_v38 = vadd.f32 %v7669_v58, %v7629_v13 }
 0x65a   :  { %v7632_v17 = vpop.f32.mrf.mxu1 }
 0x65b   :  { %v7672_v39 = vadd.f32 %v7671_v20, %v7631_v37 }
 0x65c   :  { %v7633_v30 = vpop.f32.mrf.mxu1 }
 0x696   :  { %v7710_v48 = vpop.f32.mrf.mxu1 }
 0x697   :  { %v7711_v41 = vadd.f32 %v7710_v48, %v7670_v38 }
 0x698   :  { %v7712_v42 = vpop.f32.mrf.mxu1 }
 0x699   :  { %v7719_v44 = vmax.f32 %v7711_v41, 0.0  ;;  %v7713_v49 = vadd.f32 %v7712_v42, %v7672_v39 }
 0x69a   :  { %v7714_v36 = vpop.f32.mrf.mxu1 }
 0x69b   :  { %v7745_v15 = vmul.f32 %v7734_v51, %v7719_v44  ;;  %v7720_v47 = vmax.f32 %v7713_v49, 0.0 }
 0x69c   :  { %v7715_v40 = vpop.f32.mrf.mxu1 }
 0x69d   :  { %v7746_v59 = vmul.f32 %v7738_v35, %v7720_v47  ;;  %v7748_v6 = vadd.f32 %v7747_v25, %v7745_v15 }
 0x69f   :  { %v7749_v32 = vadd.f32 %v7748_v6, %v7746_v59 }
 0x6a1   :  { %7750 = vadd.xlane.f32.xlu0 %v7749_v32 }
 0x72a   :  { %v7751_v57 = vpop.xlane.xlu0 %7750 }
 0x72b   :  { %v7759_v62 = vadd.f32 %v8714_v9, %v7751_v57 }
 0x72d   :  { %v7760_v21 = vmax.f32 %v7759_v62, 0.0 }
 0x72f   :  { %7762 = vst.msk [vmem:[%s10470_s15] sm:$0xff] %vm7761_vm3, %v7760_v21 }
 0x730   :  { %7767 = vsyncpa [#allocation4], 1 }
 0x731   :  { %7768 = vsyncpa [#allocation6], 1 }
 0x732   :  { %7769 = vsyncpa [#allocation9], 1 }
 0x733   :  { %7770 = vsyncpa [#allocation12], 1 }
 0x734   :  { %7771 = vsyncpa [#allocation15], 1 }
 0x735   :  { %7772 = vsyncpa [#allocation18], 1 }
 0x736   :  { %7773 = vsyncpa [#allocation21], 1 }

</bundles_post_ra>
